<compile_context>
chip_gen: v7x
topology: tpu7x:2x2x1
jax: 0.10.0
libtpu: 0.0.40
codegen_flags: <defaults>
</compile_context>

<pallas_src>
import jax
import jax.numpy as jnp
from jax.experimental import pallas as pl
from jax.experimental.pallas import tpu as pltpu

# Layer geometry (fixed by the PyTorch module: 32x32x3 input).
H1, W1 = 32, 32
HP1, WP1 = 35, 34          # pad top=1,bottom=2,left=1,right=1 (extra row = slack)
M1 = H1 * WP1              # 1088 conv1 output rows (2 garbage cols per row)
C0, C1, C2 = 3, 16, 32
H2, W2 = 16, 16
WP2 = 18
M2 = H2 * WP2              # 288 conv2 output rows
X2_ROWS = 328              # 18*18 = 324 padded rows + slack, mult of 8
PO1, PO2 = 16, 8           # pooled spatial sizes after pool1 / pool2
FD = 2048                  # fc1 input features (32*8*8)
NH, NO = 128, 10


# ---------------------------------------------------------------------------
# Fused per-image kernel
# ---------------------------------------------------------------------------
def cnn_kernel(x_ref, w1_ref, b1_ref, w2_ref, b2_ref,
               wf1_ref, bf1_ref, wf2_ref, bf2_ref,
               o_ref,
               a1_ref, x2_ref, a2_ref, f_ref):
    # ---------------- conv1: 9 shifted-slice tap matmuls (bf16 MXU) ----------
    acc = None
    for t in range(9):
        ky, kx = divmod(t, 3)
        off = ky * WP1 + kx
        xs = x_ref[off:off + M1, :].astype(jnp.bfloat16)           # [M1, C0]
        wt = w1_ref[t * C0:(t + 1) * C0, :]                        # [C0, C1]
        p = jnp.dot(xs, wt, preferred_element_type=jnp.float32)
        acc = p if acc is None else acc + p
    a1_ref[...] = acc                                              # [M1, C1]

    # ------- pool1 (2x2 max) + bias + relu -> zero-padded conv2 input -------
    x2_ref[...] = jnp.zeros_like(x2_ref)
    b1 = b1_ref[...]
    for i in range(PO1):
        c00 = a1_ref[pl.ds((2 * i) * WP1 + 0, PO1, stride=2), :]
        c01 = a1_ref[pl.ds((2 * i) * WP1 + 1, PO1, stride=2), :]
        c10 = a1_ref[pl.ds((2 * i + 1) * WP1 + 0, PO1, stride=2), :]
        c11 = a1_ref[pl.ds((2 * i + 1) * WP1 + 1, PO1, stride=2), :]
        m = jnp.maximum(jnp.maximum(c00, c01), jnp.maximum(c10, c11))
        pooled = jnp.maximum(m + b1, 0.0)                          # [16, C1]
        start = (i + 1) * WP2 + 1
        x2_ref[start:start + PO1, :] = pooled

    # ---------------- conv2: same shifted-slice tap matmuls ------------------
    acc2 = None
    for t in range(9):
        ky, kx = divmod(t, 3)
        off = ky * WP2 + kx
        xs = x2_ref[off:off + M2, :].astype(jnp.bfloat16)          # [M2, C1]
        wt = w2_ref[t * C1:(t + 1) * C1, :]                        # [C1, C2]
        p = jnp.dot(xs, wt, preferred_element_type=jnp.float32)
        acc2 = p if acc2 is None else acc2 + p
    a2_ref[...] = acc2                                             # [M2, C2]

    # ---- pool2 + bias + relu -> lane-dense FC input  f[j, i*32 + c] ---------
    b2 = b2_ref[...]
    for i in range(PO2):
        c00 = a2_ref[pl.ds((2 * i) * WP2 + 0, PO2, stride=2), :]
        c01 = a2_ref[pl.ds((2 * i) * WP2 + 1, PO2, stride=2), :]
        c10 = a2_ref[pl.ds((2 * i + 1) * WP2 + 0, PO2, stride=2), :]
        c11 = a2_ref[pl.ds((2 * i + 1) * WP2 + 1, PO2, stride=2), :]
        m = jnp.maximum(jnp.maximum(c00, c01), jnp.maximum(c10, c11))
        pooled = jnp.maximum(m + b2, 0.0)                          # [8(j), C2]
        f_ref[:, i * C2:(i + 1) * C2] = pooled

    # ---------------- fc1 + relu (+ dropout identity) + fc2 ------------------
    # TODO(synk): nn.Dropout(p=0.15) treated as inference-mode identity.
    h = bf1_ref[...]                                               # [1, NH] f32
    for j in range(PO2):
        fj = f_ref[j:j + 1, :].astype(jnp.bfloat16)                # [1, 256]
        wj = wf1_ref[j * 256:(j + 1) * 256, :]                     # [256, NH]
        h = h + jnp.dot(fj, wj, preferred_element_type=jnp.float32)
    h = jnp.maximum(h, 0.0).astype(jnp.bfloat16)
    out = jnp.dot(h, wf2_ref[...],
                  preferred_element_type=jnp.float32) + bf2_ref[...]
    o_ref[...] = out.astype(o_ref.dtype)


# ---------------------------------------------------------------------------
# pallas_call wrapper
# ---------------------------------------------------------------------------
def cnn_forward(x_nchw, kp):
    B = x_nchw.shape[0]
    x = jnp.transpose(x_nchw, (0, 2, 3, 1))                 # NCHW -> NHWC
    xp = jnp.pad(x, ((0, 0), (1, 2), (1, 1), (0, 0)))       # [B, 35, 34, 3]
    xf = xp.reshape(B, HP1 * WP1, C0)                       # [B, 1190, 3]

    const = lambda b: (0, 0)
    out = pl.pallas_call(
        cnn_kernel,
        out_shape=jax.ShapeDtypeStruct((B, 1, NO), jnp.float32),
        grid=(B,),
        in_specs=[
            pl.BlockSpec((None, HP1 * WP1, C0), lambda b: (b, 0, 0)),  # image
            pl.BlockSpec((9 * C0, C1), const),                         # w1 taps
            pl.BlockSpec((1, C1), const),                              # b1
            pl.BlockSpec((9 * C1, C2), const),                         # w2 taps
            pl.BlockSpec((1, C2), const),                              # b2
            pl.BlockSpec((FD, NH), const),                             # fc1 w
            pl.BlockSpec((1, NH), const),                              # fc1 b
            pl.BlockSpec((NH, NO), const),                             # fc2 w
            pl.BlockSpec((1, NO), const),                              # fc2 b
        ],
        out_specs=pl.BlockSpec((None, 1, NO), lambda b: (b, 0, 0)),
        scratch_shapes=[
            pltpu.VMEM((M1, C1), jnp.float32),        # conv1 pre-pool
            pltpu.VMEM((X2_ROWS, C1), jnp.float32),   # padded conv2 input
            pltpu.VMEM((M2, C2), jnp.float32),        # conv2 pre-pool
            pltpu.VMEM((PO2, 256), jnp.float32),      # lane-dense FC input
        ],
        compiler_params=pltpu.CompilerParams(
            dimension_semantics=("parallel",)),
    )(xf, kp["w1"], kp["b1"], kp["w2"], kp["b2"],
      kp["wf1"], kp["bf1"], kp["wf2"], kp["bf2"])
    return out.reshape(B, NO)


# ---------------------------------------------------------------------------
# One-time parameter relayout (host-side, outside jit)
# ---------------------------------------------------------------------------
def prepare_params(params):
    bf16 = jnp.bfloat16
    # conv weights -> [tap*(Cin), Cout], tap = ky*3+kx
    w1 = jnp.transpose(params["conv1_w"], (2, 3, 1, 0)).reshape(9 * C0, C1)
    w2 = jnp.transpose(params["conv2_w"], (2, 3, 1, 0)).reshape(9 * C1, C2)
    # fc1 rows permuted: kernel flatten order (j, i, c) vs PyTorch NCHW (c, i, j)
    wf1 = jnp.transpose(params["fc1_w"].reshape(NH, C2, PO2, PO2),
                        (3, 2, 1, 0)).reshape(FD, NH)
    wf2 = params["fc2_w"].T
    return {
        "w1": w1.astype(bf16),
        "b1": params["conv1_b"].reshape(1, C1).astype(jnp.float32),
        "w2": w2.astype(bf16),
        "b2": params["conv2_b"].reshape(1, C2).astype(jnp.float32),
        "wf1": wf1.astype(bf16),
        "bf1": params["fc1_b"].reshape(1, NH).astype(jnp.float32),
        "wf2": wf2.astype(bf16),
        "bf2": params["fc2_b"].reshape(1, NO).astype(jnp.float32),
    }


# ---------------------------------------------------------------------------
# Deterministic params (PyTorch layouts: conv [Cout,Cin,kH,kW], fc [out,in])
# ---------------------------------------------------------------------------
def init_params(key):
    ks = jax.random.split(key, 8)
    s = 0.05
    return {
        "conv1_w": jax.random.normal(ks[0], (16, 3, 3, 3), jnp.float32) * s,
        "conv1_b": jax.random.normal(ks[1], (16,), jnp.float32) * s,
        "conv2_w": jax.random.normal(ks[2], (32, 16, 3, 3), jnp.float32) * s,
        "conv2_b": jax.random.normal(ks[3], (32,), jnp.float32) * s,
        "fc1_w": jax.random.normal(ks[4], (128, 32 * 8 * 8), jnp.float32) * s,
        "fc1_b": jax.random.normal(ks[5], (128,), jnp.float32) * s,
        "fc2_w": jax.random.normal(ks[6], (10, 128), jnp.float32) * s,
        "fc2_b": jax.random.normal(ks[7], (10,), jnp.float32) * s,
    }


# Pure-JAX f32 reference (numerical validation of the Pallas path)
def reference_forward(x_nchw, params):
    x = jnp.transpose(x_nchw, (0, 2, 3, 1))

    def conv(x, w, b):
        wh = jnp.transpose(w, (2, 3, 1, 0))  # [kH,kW,Cin,Cout]
        y = jax.lax.conv_general_dilated(
            x, wh, (1, 1), ((1, 1), (1, 1)),
            dimension_numbers=("NHWC", "HWIO", "NHWC"))
        return y + b.reshape(1, 1, 1, -1)

    def pool(x):
        B, H, W, C = x.shape
        return jnp.max(x.reshape(B, H // 2, 2, W // 2, 2, C), axis=(2, 4))

    y = pool(jax.nn.relu(conv(x, params["conv1_w"], params["conv1_b"])))
    y = pool(jax.nn.relu(conv(y, params["conv2_w"], params["conv2_b"])))
    B = x.shape[0]
    flat = jnp.transpose(y, (0, 3, 1, 2)).reshape(B, -1)
    h = jax.nn.relu(flat @ params["fc1_w"].T + params["fc1_b"])
    return h @ params["fc2_w"].T + params["fc2_b"]


if __name__ == "__main__":
    key = jax.random.PRNGKey(0)
    kx, kparam = jax.random.split(key)
    # fc1 expects 32*8*8 features -> input must be [B, 3, 32, 32] (NCHW).
    x = jax.random.normal(kx, (2, 3, 32, 32), jnp.float32)
    params = init_params(kparam)
    kparams = prepare_params(params)          # one-time weight relayout

    fwd = jax.jit(cnn_forward)
    out = jax.block_until_ready(fwd(x, kparams))

    ref = reference_forward(x, params)
    assert out.shape == (2, 10), out.shape
    err = float(jnp.max(jnp.abs(out - ref)))
    # bf16 MXU operands vs f32 reference -> loosened tolerance
    assert err < 3e-2, err
    print("KERNEL_OK")
</pallas_src>

<mosaic_0001>
module attributes {stable_mosaic.version = 11 : i64} {
  func.func @cnn_kernel(%arg0: i32, %arg1: memref<1x1190x3xf32, #tpu.memory_space<vmem>>, %arg2: memref<27x16xbf16, #tpu.memory_space<vmem>>, %arg3: memref<1x16xf32, #tpu.memory_space<vmem>>, %arg4: memref<144x32xbf16, #tpu.memory_space<vmem>>, %arg5: memref<1x32xf32, #tpu.memory_space<vmem>>, %arg6: memref<2048x128xbf16, #tpu.memory_space<vmem>>, %arg7: memref<1x128xf32, #tpu.memory_space<vmem>>, %arg8: memref<128x10xbf16, #tpu.memory_space<vmem>>, %arg9: memref<1x10xf32, #tpu.memory_space<vmem>>, %arg10: memref<1x1x10xf32, #tpu.memory_space<vmem>>, %arg11: memref<1088x16xf32, #tpu.memory_space<vmem>>, %arg12: memref<328x16xf32, #tpu.memory_space<vmem>>, %arg13: memref<288x32xf32, #tpu.memory_space<vmem>>, %arg14: memref<8x256xf32, #tpu.memory_space<vmem>>) attributes {dimension_semantics = [#tpu.dimension_semantics<parallel>], iteration_bounds = array<i64: 2>, scalar_prefetch = 0 : i64, scratch_operands = 4 : i64, tpu.core_type = #tpu.core_type<tc>, window_params = [{transform_indices = @transform_0, window_bounds = array<i64: 1, 1190, 3>}, {pipeline_mode = #tpu.pipeline_mode<synchronous>, transform_indices = @transform_1, window_bounds = array<i64: 27, 16>}, {pipeline_mode = #tpu.pipeline_mode<synchronous>, transform_indices = @transform_2, window_bounds = array<i64: 1, 16>}, {pipeline_mode = #tpu.pipeline_mode<synchronous>, transform_indices = @transform_3, window_bounds = array<i64: 144, 32>}, {pipeline_mode = #tpu.pipeline_mode<synchronous>, transform_indices = @transform_4, window_bounds = array<i64: 1, 32>}, {pipeline_mode = #tpu.pipeline_mode<synchronous>, transform_indices = @transform_5, window_bounds = array<i64: 2048, 128>}, {pipeline_mode = #tpu.pipeline_mode<synchronous>, transform_indices = @transform_6, window_bounds = array<i64: 1, 128>}, {pipeline_mode = #tpu.pipeline_mode<synchronous>, transform_indices = @transform_7, window_bounds = array<i64: 128, 10>}, {pipeline_mode = #tpu.pipeline_mode<synchronous>, transform_indices = @transform_8, window_bounds = array<i64: 1, 10>}, {transform_indices = @transform_9, window_bounds = array<i64: 1, 1, 10>}]} {
    %c0 = arith.constant 0 : index
    %c0_0 = arith.constant 0 : index
    %c0_1 = arith.constant 0 : index
    %0 = vector.load %arg1[%c0, %c0_0, %c0_1] : memref<1x1190x3xf32, #tpu.memory_space<vmem>>, vector<1x1088x3xf32>
    %1 = vector.shape_cast %0 : vector<1x1088x3xf32> to vector<1088x3xf32>
    %2 = arith.truncf %1 : vector<1088x3xf32> to vector<1088x3xbf16>
    %c0_2 = arith.constant 0 : index
    %c0_3 = arith.constant 0 : index
    %3 = vector.load %arg2[%c0_2, %c0_3] : memref<27x16xbf16, #tpu.memory_space<vmem>>, vector<3x16xbf16>
    %cst = arith.constant dense<0.000000e+00> : vector<1088x16xf32>
    %4 = tpu.matmul %2, %3, %cst {dimension_numbers = #tpu.dot_dimension_numbers<[1], [0], [0], [1], [0, 0, 1, 1], [], []>} : vector<1088x3xbf16>, vector<3x16xbf16>, vector<1088x16xf32> -> vector<1088x16xf32>
    %c0_4 = arith.constant 0 : index
    %c1 = arith.constant 1 : index
    %c0_5 = arith.constant 0 : index
    %5 = vector.load %arg1[%c0_4, %c1, %c0_5] : memref<1x1190x3xf32, #tpu.memory_space<vmem>>, vector<1x1088x3xf32>
    %6 = vector.shape_cast %5 : vector<1x1088x3xf32> to vector<1088x3xf32>
    %7 = arith.truncf %6 : vector<1088x3xf32> to vector<1088x3xbf16>
    %c3 = arith.constant 3 : index
    %c0_6 = arith.constant 0 : index
    %8 = vector.load %arg2[%c3, %c0_6] : memref<27x16xbf16, #tpu.memory_space<vmem>>, vector<3x16xbf16>
    %cst_7 = arith.constant dense<0.000000e+00> : vector<1088x16xf32>
    %9 = tpu.matmul %7, %8, %cst_7 {dimension_numbers = #tpu.dot_dimension_numbers<[1], [0], [0], [1], [0, 0, 1, 1], [], []>} : vector<1088x3xbf16>, vector<3x16xbf16>, vector<1088x16xf32> -> vector<1088x16xf32>
    %10 = arith.addf %4, %9 : vector<1088x16xf32>
    %c0_8 = arith.constant 0 : index
    %c2 = arith.constant 2 : index
    %c0_9 = arith.constant 0 : index
    %11 = vector.load %arg1[%c0_8, %c2, %c0_9] : memref<1x1190x3xf32, #tpu.memory_space<vmem>>, vector<1x1088x3xf32>
    %12 = vector.shape_cast %11 : vector<1x1088x3xf32> to vector<1088x3xf32>
    %13 = arith.truncf %12 : vector<1088x3xf32> to vector<1088x3xbf16>
    %c6 = arith.constant 6 : index
    %c0_10 = arith.constant 0 : index
    %14 = vector.load %arg2[%c6, %c0_10] : memref<27x16xbf16, #tpu.memory_space<vmem>>, vector<3x16xbf16>
    %cst_11 = arith.constant dense<0.000000e+00> : vector<1088x16xf32>
    %15 = tpu.matmul %13, %14, %cst_11 {dimension_numbers = #tpu.dot_dimension_numbers<[1], [0], [0], [1], [0, 0, 1, 1], [], []>} : vector<1088x3xbf16>, vector<3x16xbf16>, vector<1088x16xf32> -> vector<1088x16xf32>
    %16 = arith.addf %10, %15 : vector<1088x16xf32>
    %c0_12 = arith.constant 0 : index
    %c34 = arith.constant 34 : index
    %c0_13 = arith.constant 0 : index
    %17 = vector.load %arg1[%c0_12, %c34, %c0_13] : memref<1x1190x3xf32, #tpu.memory_space<vmem>>, vector<1x1088x3xf32>
    %18 = vector.shape_cast %17 : vector<1x1088x3xf32> to vector<1088x3xf32>
    %19 = arith.truncf %18 : vector<1088x3xf32> to vector<1088x3xbf16>
    %c9 = arith.constant 9 : index
    %c0_14 = arith.constant 0 : index
    %20 = vector.load %arg2[%c9, %c0_14] : memref<27x16xbf16, #tpu.memory_space<vmem>>, vector<3x16xbf16>
    %cst_15 = arith.constant dense<0.000000e+00> : vector<1088x16xf32>
    %21 = tpu.matmul %19, %20, %cst_15 {dimension_numbers = #tpu.dot_dimension_numbers<[1], [0], [0], [1], [0, 0, 1, 1], [], []>} : vector<1088x3xbf16>, vector<3x16xbf16>, vector<1088x16xf32> -> vector<1088x16xf32>
    %22 = arith.addf %16, %21 : vector<1088x16xf32>
    %c0_16 = arith.constant 0 : index
    %c35 = arith.constant 35 : index
    %c0_17 = arith.constant 0 : index
    %23 = vector.load %arg1[%c0_16, %c35, %c0_17] : memref<1x1190x3xf32, #tpu.memory_space<vmem>>, vector<1x1088x3xf32>
    %24 = vector.shape_cast %23 : vector<1x1088x3xf32> to vector<1088x3xf32>
    %25 = arith.truncf %24 : vector<1088x3xf32> to vector<1088x3xbf16>
    %c12 = arith.constant 12 : index
    %c0_18 = arith.constant 0 : index
    %26 = vector.load %arg2[%c12, %c0_18] : memref<27x16xbf16, #tpu.memory_space<vmem>>, vector<3x16xbf16>
    %cst_19 = arith.constant dense<0.000000e+00> : vector<1088x16xf32>
    %27 = tpu.matmul %25, %26, %cst_19 {dimension_numbers = #tpu.dot_dimension_numbers<[1], [0], [0], [1], [0, 0, 1, 1], [], []>} : vector<1088x3xbf16>, vector<3x16xbf16>, vector<1088x16xf32> -> vector<1088x16xf32>
    %28 = arith.addf %22, %27 : vector<1088x16xf32>
    %c0_20 = arith.constant 0 : index
    %c36 = arith.constant 36 : index
    %c0_21 = arith.constant 0 : index
    %29 = vector.load %arg1[%c0_20, %c36, %c0_21] : memref<1x1190x3xf32, #tpu.memory_space<vmem>>, vector<1x1088x3xf32>
    %30 = vector.shape_cast %29 : vector<1x1088x3xf32> to vector<1088x3xf32>
    %31 = arith.truncf %30 : vector<1088x3xf32> to vector<1088x3xbf16>
    %c15 = arith.constant 15 : index
    %c0_22 = arith.constant 0 : index
    %32 = vector.load %arg2[%c15, %c0_22] : memref<27x16xbf16, #tpu.memory_space<vmem>>, vector<3x16xbf16>
    %cst_23 = arith.constant dense<0.000000e+00> : vector<1088x16xf32>
    %33 = tpu.matmul %31, %32, %cst_23 {dimension_numbers = #tpu.dot_dimension_numbers<[1], [0], [0], [1], [0, 0, 1, 1], [], []>} : vector<1088x3xbf16>, vector<3x16xbf16>, vector<1088x16xf32> -> vector<1088x16xf32>
    %34 = arith.addf %28, %33 : vector<1088x16xf32>
    %c0_24 = arith.constant 0 : index
    %c68 = arith.constant 68 : index
    %c0_25 = arith.constant 0 : index
    %35 = vector.load %arg1[%c0_24, %c68, %c0_25] : memref<1x1190x3xf32, #tpu.memory_space<vmem>>, vector<1x1088x3xf32>
    %36 = vector.shape_cast %35 : vector<1x1088x3xf32> to vector<1088x3xf32>
    %37 = arith.truncf %36 : vector<1088x3xf32> to vector<1088x3xbf16>
    %c18 = arith.constant 18 : index
    %c0_26 = arith.constant 0 : index
    %38 = vector.load %arg2[%c18, %c0_26] : memref<27x16xbf16, #tpu.memory_space<vmem>>, vector<3x16xbf16>
    %cst_27 = arith.constant dense<0.000000e+00> : vector<1088x16xf32>
    %39 = tpu.matmul %37, %38, %cst_27 {dimension_numbers = #tpu.dot_dimension_numbers<[1], [0], [0], [1], [0, 0, 1, 1], [], []>} : vector<1088x3xbf16>, vector<3x16xbf16>, vector<1088x16xf32> -> vector<1088x16xf32>
    %40 = arith.addf %34, %39 : vector<1088x16xf32>
    %c0_28 = arith.constant 0 : index
    %c69 = arith.constant 69 : index
    %c0_29 = arith.constant 0 : index
    %41 = vector.load %arg1[%c0_28, %c69, %c0_29] : memref<1x1190x3xf32, #tpu.memory_space<vmem>>, vector<1x1088x3xf32>
    %42 = vector.shape_cast %41 : vector<1x1088x3xf32> to vector<1088x3xf32>
    %43 = arith.truncf %42 : vector<1088x3xf32> to vector<1088x3xbf16>
    %c21 = arith.constant 21 : index
    %c0_30 = arith.constant 0 : index
    %44 = vector.load %arg2[%c21, %c0_30] : memref<27x16xbf16, #tpu.memory_space<vmem>>, vector<3x16xbf16>
    %cst_31 = arith.constant dense<0.000000e+00> : vector<1088x16xf32>
    %45 = tpu.matmul %43, %44, %cst_31 {dimension_numbers = #tpu.dot_dimension_numbers<[1], [0], [0], [1], [0, 0, 1, 1], [], []>} : vector<1088x3xbf16>, vector<3x16xbf16>, vector<1088x16xf32> -> vector<1088x16xf32>
    %46 = arith.addf %40, %45 : vector<1088x16xf32>
    %c0_32 = arith.constant 0 : index
    %c70 = arith.constant 70 : index
    %c0_33 = arith.constant 0 : index
    %47 = vector.load %arg1[%c0_32, %c70, %c0_33] : memref<1x1190x3xf32, #tpu.memory_space<vmem>>, vector<1x1088x3xf32>
    %48 = vector.shape_cast %47 : vector<1x1088x3xf32> to vector<1088x3xf32>
    %49 = arith.truncf %48 : vector<1088x3xf32> to vector<1088x3xbf16>
    %c24 = arith.constant 24 : index
    %c0_34 = arith.constant 0 : index
    %50 = vector.load %arg2[%c24, %c0_34] : memref<27x16xbf16, #tpu.memory_space<vmem>>, vector<3x16xbf16>
    %cst_35 = arith.constant dense<0.000000e+00> : vector<1088x16xf32>
    %51 = tpu.matmul %49, %50, %cst_35 {dimension_numbers = #tpu.dot_dimension_numbers<[1], [0], [0], [1], [0, 0, 1, 1], [], []>} : vector<1088x3xbf16>, vector<3x16xbf16>, vector<1088x16xf32> -> vector<1088x16xf32>
    %52 = arith.addf %46, %51 : vector<1088x16xf32>
    %c0_36 = arith.constant 0 : index
    %c0_37 = arith.constant 0 : index
    %53 = vector.load %arg11[%c0_36, %c0_37] : memref<1088x16xf32, #tpu.memory_space<vmem>>, vector<1088x16xf32>
    tpu.vector_store %arg11[%c0_36, %c0_37], %52 {strides = array<i32>} : memref<1088x16xf32, #tpu.memory_space<vmem>>, vector<1088x16xf32>,
    %cst_38 = arith.constant 0.000000e+00 : f32
    %54 = vector.broadcast %cst_38 : f32 to vector<328x16xf32>
    %c0_39 = arith.constant 0 : index
    %c0_40 = arith.constant 0 : index
    %55 = vector.load %arg12[%c0_39, %c0_40] : memref<328x16xf32, #tpu.memory_space<vmem>>, vector<328x16xf32>
    tpu.vector_store %arg12[%c0_39, %c0_40], %54 {strides = array<i32>} : memref<328x16xf32, #tpu.memory_space<vmem>>, vector<328x16xf32>,
    %c0_41 = arith.constant 0 : index
    %c0_42 = arith.constant 0 : index
    %56 = vector.load %arg3[%c0_41, %c0_42] : memref<1x16xf32, #tpu.memory_space<vmem>>, vector<1x16xf32>
    %c0_43 = arith.constant 0 : index
    %c0_44 = arith.constant 0 : index
    %57 = tpu.strided_load %arg11[%c0_43, %c0_44] {strides = array<i32: 2, 1>} : memref<1088x16xf32, #tpu.memory_space<vmem>>, vector<16x16xf32>
    %c1_45 = arith.constant 1 : index
    %c0_46 = arith.constant 0 : index
    %58 = tpu.strided_load %arg11[%c1_45, %c0_46] {strides = array<i32: 2, 1>} : memref<1088x16xf32, #tpu.memory_space<vmem>>, vector<16x16xf32>
    %c34_47 = arith.constant 34 : index
    %c0_48 = arith.constant 0 : index
    %59 = tpu.strided_load %arg11[%c34_47, %c0_48] {strides = array<i32: 2, 1>} : memref<1088x16xf32, #tpu.memory_space<vmem>>, vector<16x16xf32>
    %c35_49 = arith.constant 35 : index
    %c0_50 = arith.constant 0 : index
    %60 = tpu.strided_load %arg11[%c35_49, %c0_50] {strides = array<i32: 2, 1>} : memref<1088x16xf32, #tpu.memory_space<vmem>>, vector<16x16xf32>
    %61 = arith.maximumf %57, %58 : vector<16x16xf32>
    %62 = arith.maximumf %59, %60 : vector<16x16xf32>
    %63 = arith.maximumf %61, %62 : vector<16x16xf32>
    %64 = vector.broadcast %56 : vector<1x16xf32> to vector<16x16xf32>
    %65 = arith.addf %63, %64 : vector<16x16xf32>
    %cst_51 = arith.constant 0.000000e+00 : f32
    %66 = vector.broadcast %cst_51 : f32 to vector<16x16xf32>
    %67 = arith.maximumf %65, %66 : vector<16x16xf32>
    %c19 = arith.constant 19 : index
    %c0_52 = arith.constant 0 : index
    %68 = vector.load %arg12[%c19, %c0_52] : memref<328x16xf32, #tpu.memory_space<vmem>>, vector<16x16xf32>
    tpu.vector_store %arg12[%c19, %c0_52], %67 {strides = array<i32>} : memref<328x16xf32, #tpu.memory_space<vmem>>, vector<16x16xf32>,
    %c68_53 = arith.constant 68 : index
    %c0_54 = arith.constant 0 : index
    %69 = tpu.strided_load %arg11[%c68_53, %c0_54] {strides = array<i32: 2, 1>} : memref<1088x16xf32, #tpu.memory_space<vmem>>, vector<16x16xf32>
    %c69_55 = arith.constant 69 : index
    %c0_56 = arith.constant 0 : index
    %70 = tpu.strided_load %arg11[%c69_55, %c0_56] {strides = array<i32: 2, 1>} : memref<1088x16xf32, #tpu.memory_space<vmem>>, vector<16x16xf32>
    %c102 = arith.constant 102 : index
    %c0_57 = arith.constant 0 : index
    %71 = tpu.strided_load %arg11[%c102, %c0_57] {strides = array<i32: 2, 1>} : memref<1088x16xf32, #tpu.memory_space<vmem>>, vector<16x16xf32>
    %c103 = arith.constant 103 : index
    %c0_58 = arith.constant 0 : index
    %72 = tpu.strided_load %arg11[%c103, %c0_58] {strides = array<i32: 2, 1>} : memref<1088x16xf32, #tpu.memory_space<vmem>>, vector<16x16xf32>
    %73 = arith.maximumf %69, %70 : vector<16x16xf32>
    %74 = arith.maximumf %71, %72 : vector<16x16xf32>
    %75 = arith.maximumf %73, %74 : vector<16x16xf32>
    %76 = vector.broadcast %56 : vector<1x16xf32> to vector<16x16xf32>
    %77 = arith.addf %75, %76 : vector<16x16xf32>
    %cst_59 = arith.constant 0.000000e+00 : f32
    %78 = vector.broadcast %cst_59 : f32 to vector<16x16xf32>
    %79 = arith.maximumf %77, %78 : vector<16x16xf32>
    %c37 = arith.constant 37 : index
    %c0_60 = arith.constant 0 : index
    %80 = vector.load %arg12[%c37, %c0_60] : memref<328x16xf32, #tpu.memory_space<vmem>>, vector<16x16xf32>
    tpu.vector_store %arg12[%c37, %c0_60], %79 {strides = array<i32>} : memref<328x16xf32, #tpu.memory_space<vmem>>, vector<16x16xf32>,
    %c136 = arith.constant 136 : index
    %c0_61 = arith.constant 0 : index
    %81 = tpu.strided_load %arg11[%c136, %c0_61] {strides = array<i32: 2, 1>} : memref<1088x16xf32, #tpu.memory_space<vmem>>, vector<16x16xf32>
    %c137 = arith.constant 137 : index
    %c0_62 = arith.constant 0 : index
    %82 = tpu.strided_load %arg11[%c137, %c0_62] {strides = array<i32: 2, 1>} : memref<1088x16xf32, #tpu.memory_space<vmem>>, vector<16x16xf32>
    %c170 = arith.constant 170 : index
    %c0_63 = arith.constant 0 : index
    %83 = tpu.strided_load %arg11[%c170, %c0_63] {strides = array<i32: 2, 1>} : memref<1088x16xf32, #tpu.memory_space<vmem>>, vector<16x16xf32>
    %c171 = arith.constant 171 : index
    %c0_64 = arith.constant 0 : index
    %84 = tpu.strided_load %arg11[%c171, %c0_64] {strides = array<i32: 2, 1>} : memref<1088x16xf32, #tpu.memory_space<vmem>>, vector<16x16xf32>
    %85 = arith.maximumf %81, %82 : vector<16x16xf32>
    %86 = arith.maximumf %83, %84 : vector<16x16xf32>
    %87 = arith.maximumf %85, %86 : vector<16x16xf32>
    %88 = vector.broadcast %56 : vector<1x16xf32> to vector<16x16xf32>
    %89 = arith.addf %87, %88 : vector<16x16xf32>
    %cst_65 = arith.constant 0.000000e+00 : f32
    %90 = vector.broadcast %cst_65 : f32 to vector<16x16xf32>
    %91 = arith.maximumf %89, %90 : vector<16x16xf32>
    %c55 = arith.constant 55 : index
    %c0_66 = arith.constant 0 : index
    %92 = vector.load %arg12[%c55, %c0_66] : memref<328x16xf32, #tpu.memory_space<vmem>>, vector<16x16xf32>
    tpu.vector_store %arg12[%c55, %c0_66], %91 {strides = array<i32>} : memref<328x16xf32, #tpu.memory_space<vmem>>, vector<16x16xf32>,
    %c204 = arith.constant 204 : index
    %c0_67 = arith.constant 0 : index
    %93 = tpu.strided_load %arg11[%c204, %c0_67] {strides = array<i32: 2, 1>} : memref<1088x16xf32, #tpu.memory_space<vmem>>, vector<16x16xf32>
    %c205 = arith.constant 205 : index
    %c0_68 = arith.constant 0 : index
    %94 = tpu.strided_load %arg11[%c205, %c0_68] {strides = array<i32: 2, 1>} : memref<1088x16xf32, #tpu.memory_space<vmem>>, vector<16x16xf32>
    %c238 = arith.constant 238 : index
    %c0_69 = arith.constant 0 : index
    %95 = tpu.strided_load %arg11[%c238, %c0_69] {strides = array<i32: 2, 1>} : memref<1088x16xf32, #tpu.memory_space<vmem>>, vector<16x16xf32>
    %c239 = arith.constant 239 : index
    %c0_70 = arith.constant 0 : index
    %96 = tpu.strided_load %arg11[%c239, %c0_70] {strides = array<i32: 2, 1>} : memref<1088x16xf32, #tpu.memory_space<vmem>>, vector<16x16xf32>
    %97 = arith.maximumf %93, %94 : vector<16x16xf32>
    %98 = arith.maximumf %95, %96 : vector<16x16xf32>
    %99 = arith.maximumf %97, %98 : vector<16x16xf32>
    %100 = vector.broadcast %56 : vector<1x16xf32> to vector<16x16xf32>
    %101 = arith.addf %99, %100 : vector<16x16xf32>
    %cst_71 = arith.constant 0.000000e+00 : f32
    %102 = vector.broadcast %cst_71 : f32 to vector<16x16xf32>
    %103 = arith.maximumf %101, %102 : vector<16x16xf32>
    %c73 = arith.constant 73 : index
    %c0_72 = arith.constant 0 : index
    %104 = vector.load %arg12[%c73, %c0_72] : memref<328x16xf32, #tpu.memory_space<vmem>>, vector<16x16xf32>
    tpu.vector_store %arg12[%c73, %c0_72], %103 {strides = array<i32>} : memref<328x16xf32, #tpu.memory_space<vmem>>, vector<16x16xf32>,
    %c272 = arith.constant 272 : index
    %c0_73 = arith.constant 0 : index
    %105 = tpu.strided_load %arg11[%c272, %c0_73] {strides = array<i32: 2, 1>} : memref<1088x16xf32, #tpu.memory_space<vmem>>, vector<16x16xf32>
    %c273 = arith.constant 273 : index
    %c0_74 = arith.constant 0 : index
    %106 = tpu.strided_load %arg11[%c273, %c0_74] {strides = array<i32: 2, 1>} : memref<1088x16xf32, #tpu.memory_space<vmem>>, vector<16x16xf32>
    %c306 = arith.constant 306 : index
    %c0_75 = arith.constant 0 : index
    %107 = tpu.strided_load %arg11[%c306, %c0_75] {strides = array<i32: 2, 1>} : memref<1088x16xf32, #tpu.memory_space<vmem>>, vector<16x16xf32>
    %c307 = arith.constant 307 : index
    %c0_76 = arith.constant 0 : index
    %108 = tpu.strided_load %arg11[%c307, %c0_76] {strides = array<i32: 2, 1>} : memref<1088x16xf32, #tpu.memory_space<vmem>>, vector<16x16xf32>
    %109 = arith.maximumf %105, %106 : vector<16x16xf32>
    %110 = arith.maximumf %107, %108 : vector<16x16xf32>
    %111 = arith.maximumf %109, %110 : vector<16x16xf32>
    %112 = vector.broadcast %56 : vector<1x16xf32> to vector<16x16xf32>
    %113 = arith.addf %111, %112 : vector<16x16xf32>
    %cst_77 = arith.constant 0.000000e+00 : f32
    %114 = vector.broadcast %cst_77 : f32 to vector<16x16xf32>
    %115 = arith.maximumf %113, %114 : vector<16x16xf32>
    %c91 = arith.constant 91 : index
    %c0_78 = arith.constant 0 : index
    %116 = vector.load %arg12[%c91, %c0_78] : memref<328x16xf32, #tpu.memory_space<vmem>>, vector<16x16xf32>
    tpu.vector_store %arg12[%c91, %c0_78], %115 {strides = array<i32>} : memref<328x16xf32, #tpu.memory_space<vmem>>, vector<16x16xf32>,
    %c340 = arith.constant 340 : index
    %c0_79 = arith.constant 0 : index
    %117 = tpu.strided_load %arg11[%c340, %c0_79] {strides = array<i32: 2, 1>} : memref<1088x16xf32, #tpu.memory_space<vmem>>, vector<16x16xf32>
    %c341 = arith.constant 341 : index
    %c0_80 = arith.constant 0 : index
    %118 = tpu.strided_load %arg11[%c341, %c0_80] {strides = array<i32: 2, 1>} : memref<1088x16xf32, #tpu.memory_space<vmem>>, vector<16x16xf32>
    %c374 = arith.constant 374 : index
    %c0_81 = arith.constant 0 : index
    %119 = tpu.strided_load %arg11[%c374, %c0_81] {strides = array<i32: 2, 1>} : memref<1088x16xf32, #tpu.memory_space<vmem>>, vector<16x16xf32>
    %c375 = arith.constant 375 : index
    %c0_82 = arith.constant 0 : index
    %120 = tpu.strided_load %arg11[%c375, %c0_82] {strides = array<i32: 2, 1>} : memref<1088x16xf32, #tpu.memory_space<vmem>>, vector<16x16xf32>
    %121 = arith.maximumf %117, %118 : vector<16x16xf32>
    %122 = arith.maximumf %119, %120 : vector<16x16xf32>
    %123 = arith.maximumf %121, %122 : vector<16x16xf32>
    %124 = vector.broadcast %56 : vector<1x16xf32> to vector<16x16xf32>
    %125 = arith.addf %123, %124 : vector<16x16xf32>
    %cst_83 = arith.constant 0.000000e+00 : f32
    %126 = vector.broadcast %cst_83 : f32 to vector<16x16xf32>
    %127 = arith.maximumf %125, %126 : vector<16x16xf32>
    %c109 = arith.constant 109 : index
    %c0_84 = arith.constant 0 : index
    %128 = vector.load %arg12[%c109, %c0_84] : memref<328x16xf32, #tpu.memory_space<vmem>>, vector<16x16xf32>
    tpu.vector_store %arg12[%c109, %c0_84], %127 {strides = array<i32>} : memref<328x16xf32, #tpu.memory_space<vmem>>, vector<16x16xf32>,
    %c408 = arith.constant 408 : index
    %c0_85 = arith.constant 0 : index
    %129 = tpu.strided_load %arg11[%c408, %c0_85] {strides = array<i32: 2, 1>} : memref<1088x16xf32, #tpu.memory_space<vmem>>, vector<16x16xf32>
    %c409 = arith.constant 409 : index
    %c0_86 = arith.constant 0 : index
    %130 = tpu.strided_load %arg11[%c409, %c0_86] {strides = array<i32: 2, 1>} : memref<1088x16xf32, #tpu.memory_space<vmem>>, vector<16x16xf32>
    %c442 = arith.constant 442 : index
    %c0_87 = arith.constant 0 : index
    %131 = tpu.strided_load %arg11[%c442, %c0_87] {strides = array<i32: 2, 1>} : memref<1088x16xf32, #tpu.memory_space<vmem>>, vector<16x16xf32>
    %c443 = arith.constant 443 : index
    %c0_88 = arith.constant 0 : index
    %132 = tpu.strided_load %arg11[%c443, %c0_88] {strides = array<i32: 2, 1>} : memref<1088x16xf32, #tpu.memory_space<vmem>>, vector<16x16xf32>
    %133 = arith.maximumf %129, %130 : vector<16x16xf32>
    %134 = arith.maximumf %131, %132 : vector<16x16xf32>
    %135 = arith.maximumf %133, %134 : vector<16x16xf32>
    %136 = vector.broadcast %56 : vector<1x16xf32> to vector<16x16xf32>
    %137 = arith.addf %135, %136 : vector<16x16xf32>
    %cst_89 = arith.constant 0.000000e+00 : f32
    %138 = vector.broadcast %cst_89 : f32 to vector<16x16xf32>
    %139 = arith.maximumf %137, %138 : vector<16x16xf32>
    %c127 = arith.constant 127 : index
    %c0_90 = arith.constant 0 : index
    %140 = vector.load %arg12[%c127, %c0_90] : memref<328x16xf32, #tpu.memory_space<vmem>>, vector<16x16xf32>
    tpu.vector_store %arg12[%c127, %c0_90], %139 {strides = array<i32>} : memref<328x16xf32, #tpu.memory_space<vmem>>, vector<16x16xf32>,
    %c476 = arith.constant 476 : index
    %c0_91 = arith.constant 0 : index
    %141 = tpu.strided_load %arg11[%c476, %c0_91] {strides = array<i32: 2, 1>} : memref<1088x16xf32, #tpu.memory_space<vmem>>, vector<16x16xf32>
    %c477 = arith.constant 477 : index
    %c0_92 = arith.constant 0 : index
    %142 = tpu.strided_load %arg11[%c477, %c0_92] {strides = array<i32: 2, 1>} : memref<1088x16xf32, #tpu.memory_space<vmem>>, vector<16x16xf32>
    %c510 = arith.constant 510 : index
    %c0_93 = arith.constant 0 : index
    %143 = tpu.strided_load %arg11[%c510, %c0_93] {strides = array<i32: 2, 1>} : memref<1088x16xf32, #tpu.memory_space<vmem>>, vector<16x16xf32>
    %c511 = arith.constant 511 : index
    %c0_94 = arith.constant 0 : index
    %144 = tpu.strided_load %arg11[%c511, %c0_94] {strides = array<i32: 2, 1>} : memref<1088x16xf32, #tpu.memory_space<vmem>>, vector<16x16xf32>
    %145 = arith.maximumf %141, %142 : vector<16x16xf32>
    %146 = arith.maximumf %143, %144 : vector<16x16xf32>
    %147 = arith.maximumf %145, %146 : vector<16x16xf32>
    %148 = vector.broadcast %56 : vector<1x16xf32> to vector<16x16xf32>
    %149 = arith.addf %147, %148 : vector<16x16xf32>
    %cst_95 = arith.constant 0.000000e+00 : f32
    %150 = vector.broadcast %cst_95 : f32 to vector<16x16xf32>
    %151 = arith.maximumf %149, %150 : vector<16x16xf32>
    %c145 = arith.constant 145 : index
    %c0_96 = arith.constant 0 : index
    %152 = vector.load %arg12[%c145, %c0_96] : memref<328x16xf32, #tpu.memory_space<vmem>>, vector<16x16xf32>
    tpu.vector_store %arg12[%c145, %c0_96], %151 {strides = array<i32>} : memref<328x16xf32, #tpu.memory_space<vmem>>, vector<16x16xf32>,
    %c544 = arith.constant 544 : index
    %c0_97 = arith.constant 0 : index
    %153 = tpu.strided_load %arg11[%c544, %c0_97] {strides = array<i32: 2, 1>} : memref<1088x16xf32, #tpu.memory_space<vmem>>, vector<16x16xf32>
    %c545 = arith.constant 545 : index
    %c0_98 = arith.constant 0 : index
    %154 = tpu.strided_load %arg11[%c545, %c0_98] {strides = array<i32: 2, 1>} : memref<1088x16xf32, #tpu.memory_space<vmem>>, vector<16x16xf32>
    %c578 = arith.constant 578 : index
    %c0_99 = arith.constant 0 : index
    %155 = tpu.strided_load %arg11[%c578, %c0_99] {strides = array<i32: 2, 1>} : memref<1088x16xf32, #tpu.memory_space<vmem>>, vector<16x16xf32>
    %c579 = arith.constant 579 : index
    %c0_100 = arith.constant 0 : index
    %156 = tpu.strided_load %arg11[%c579, %c0_100] {strides = array<i32: 2, 1>} : memref<1088x16xf32, #tpu.memory_space<vmem>>, vector<16x16xf32>
    %157 = arith.maximumf %153, %154 : vector<16x16xf32>
    %158 = arith.maximumf %155, %156 : vector<16x16xf32>
    %159 = arith.maximumf %157, %158 : vector<16x16xf32>
    %160 = vector.broadcast %56 : vector<1x16xf32> to vector<16x16xf32>
    %161 = arith.addf %159, %160 : vector<16x16xf32>
    %cst_101 = arith.constant 0.000000e+00 : f32
    %162 = vector.broadcast %cst_101 : f32 to vector<16x16xf32>
    %163 = arith.maximumf %161, %162 : vector<16x16xf32>
    %c163 = arith.constant 163 : index
    %c0_102 = arith.constant 0 : index
    %164 = vector.load %arg12[%c163, %c0_102] : memref<328x16xf32, #tpu.memory_space<vmem>>, vector<16x16xf32>
    tpu.vector_store %arg12[%c163, %c0_102], %163 {strides = array<i32>} : memref<328x16xf32, #tpu.memory_space<vmem>>, vector<16x16xf32>,
    %c612 = arith.constant 612 : index
    %c0_103 = arith.constant 0 : index
    %165 = tpu.strided_load %arg11[%c612, %c0_103] {strides = array<i32: 2, 1>} : memref<1088x16xf32, #tpu.memory_space<vmem>>, vector<16x16xf32>
    %c613 = arith.constant 613 : index
    %c0_104 = arith.constant 0 : index
    %166 = tpu.strided_load %arg11[%c613, %c0_104] {strides = array<i32: 2, 1>} : memref<1088x16xf32, #tpu.memory_space<vmem>>, vector<16x16xf32>
    %c646 = arith.constant 646 : index
    %c0_105 = arith.constant 0 : index
    %167 = tpu.strided_load %arg11[%c646, %c0_105] {strides = array<i32: 2, 1>} : memref<1088x16xf32, #tpu.memory_space<vmem>>, vector<16x16xf32>
    %c647 = arith.constant 647 : index
    %c0_106 = arith.constant 0 : index
    %168 = tpu.strided_load %arg11[%c647, %c0_106] {strides = array<i32: 2, 1>} : memref<1088x16xf32, #tpu.memory_space<vmem>>, vector<16x16xf32>
    %169 = arith.maximumf %165, %166 : vector<16x16xf32>
    %170 = arith.maximumf %167, %168 : vector<16x16xf32>
    %171 = arith.maximumf %169, %170 : vector<16x16xf32>
    %172 = vector.broadcast %56 : vector<1x16xf32> to vector<16x16xf32>
    %173 = arith.addf %171, %172 : vector<16x16xf32>
    %cst_107 = arith.constant 0.000000e+00 : f32
    %174 = vector.broadcast %cst_107 : f32 to vector<16x16xf32>
    %175 = arith.maximumf %173, %174 : vector<16x16xf32>
    %c181 = arith.constant 181 : index
    %c0_108 = arith.constant 0 : index
    %176 = vector.load %arg12[%c181, %c0_108] : memref<328x16xf32, #tpu.memory_space<vmem>>, vector<16x16xf32>
    tpu.vector_store %arg12[%c181, %c0_108], %175 {strides = array<i32>} : memref<328x16xf32, #tpu.memory_space<vmem>>, vector<16x16xf32>,
    %c680 = arith.constant 680 : index
    %c0_109 = arith.constant 0 : index
    %177 = tpu.strided_load %arg11[%c680, %c0_109] {strides = array<i32: 2, 1>} : memref<1088x16xf32, #tpu.memory_space<vmem>>, vector<16x16xf32>
    %c681 = arith.constant 681 : index
    %c0_110 = arith.constant 0 : index
    %178 = tpu.strided_load %arg11[%c681, %c0_110] {strides = array<i32: 2, 1>} : memref<1088x16xf32, #tpu.memory_space<vmem>>, vector<16x16xf32>
    %c714 = arith.constant 714 : index
    %c0_111 = arith.constant 0 : index
    %179 = tpu.strided_load %arg11[%c714, %c0_111] {strides = array<i32: 2, 1>} : memref<1088x16xf32, #tpu.memory_space<vmem>>, vector<16x16xf32>
    %c715 = arith.constant 715 : index
    %c0_112 = arith.constant 0 : index
    %180 = tpu.strided_load %arg11[%c715, %c0_112] {strides = array<i32: 2, 1>} : memref<1088x16xf32, #tpu.memory_space<vmem>>, vector<16x16xf32>
    %181 = arith.maximumf %177, %178 : vector<16x16xf32>
    %182 = arith.maximumf %179, %180 : vector<16x16xf32>
    %183 = arith.maximumf %181, %182 : vector<16x16xf32>
    %184 = vector.broadcast %56 : vector<1x16xf32> to vector<16x16xf32>
    %185 = arith.addf %183, %184 : vector<16x16xf32>
    %cst_113 = arith.constant 0.000000e+00 : f32
    %186 = vector.broadcast %cst_113 : f32 to vector<16x16xf32>
    %187 = arith.maximumf %185, %186 : vector<16x16xf32>
    %c199 = arith.constant 199 : index
    %c0_114 = arith.constant 0 : index
    %188 = vector.load %arg12[%c199, %c0_114] : memref<328x16xf32, #tpu.memory_space<vmem>>, vector<16x16xf32>
    tpu.vector_store %arg12[%c199, %c0_114], %187 {strides = array<i32>} : memref<328x16xf32, #tpu.memory_space<vmem>>, vector<16x16xf32>,
    %c748 = arith.constant 748 : index
    %c0_115 = arith.constant 0 : index
    %189 = tpu.strided_load %arg11[%c748, %c0_115] {strides = array<i32: 2, 1>} : memref<1088x16xf32, #tpu.memory_space<vmem>>, vector<16x16xf32>
    %c749 = arith.constant 749 : index
    %c0_116 = arith.constant 0 : index
    %190 = tpu.strided_load %arg11[%c749, %c0_116] {strides = array<i32: 2, 1>} : memref<1088x16xf32, #tpu.memory_space<vmem>>, vector<16x16xf32>
    %c782 = arith.constant 782 : index
    %c0_117 = arith.constant 0 : index
    %191 = tpu.strided_load %arg11[%c782, %c0_117] {strides = array<i32: 2, 1>} : memref<1088x16xf32, #tpu.memory_space<vmem>>, vector<16x16xf32>
    %c783 = arith.constant 783 : index
    %c0_118 = arith.constant 0 : index
    %192 = tpu.strided_load %arg11[%c783, %c0_118] {strides = array<i32: 2, 1>} : memref<1088x16xf32, #tpu.memory_space<vmem>>, vector<16x16xf32>
    %193 = arith.maximumf %189, %190 : vector<16x16xf32>
    %194 = arith.maximumf %191, %192 : vector<16x16xf32>
    %195 = arith.maximumf %193, %194 : vector<16x16xf32>
    %196 = vector.broadcast %56 : vector<1x16xf32> to vector<16x16xf32>
    %197 = arith.addf %195, %196 : vector<16x16xf32>
    %cst_119 = arith.constant 0.000000e+00 : f32
    %198 = vector.broadcast %cst_119 : f32 to vector<16x16xf32>
    %199 = arith.maximumf %197, %198 : vector<16x16xf32>
    %c217 = arith.constant 217 : index
    %c0_120 = arith.constant 0 : index
    %200 = vector.load %arg12[%c217, %c0_120] : memref<328x16xf32, #tpu.memory_space<vmem>>, vector<16x16xf32>
    tpu.vector_store %arg12[%c217, %c0_120], %199 {strides = array<i32>} : memref<328x16xf32, #tpu.memory_space<vmem>>, vector<16x16xf32>,
    %c816 = arith.constant 816 : index
    %c0_121 = arith.constant 0 : index
    %201 = tpu.strided_load %arg11[%c816, %c0_121] {strides = array<i32: 2, 1>} : memref<1088x16xf32, #tpu.memory_space<vmem>>, vector<16x16xf32>
    %c817 = arith.constant 817 : index
    %c0_122 = arith.constant 0 : index
    %202 = tpu.strided_load %arg11[%c817, %c0_122] {strides = array<i32: 2, 1>} : memref<1088x16xf32, #tpu.memory_space<vmem>>, vector<16x16xf32>
    %c850 = arith.constant 850 : index
    %c0_123 = arith.constant 0 : index
    %203 = tpu.strided_load %arg11[%c850, %c0_123] {strides = array<i32: 2, 1>} : memref<1088x16xf32, #tpu.memory_space<vmem>>, vector<16x16xf32>
    %c851 = arith.constant 851 : index
    %c0_124 = arith.constant 0 : index
    %204 = tpu.strided_load %arg11[%c851, %c0_124] {strides = array<i32: 2, 1>} : memref<1088x16xf32, #tpu.memory_space<vmem>>, vector<16x16xf32>
    %205 = arith.maximumf %201, %202 : vector<16x16xf32>
    %206 = arith.maximumf %203, %204 : vector<16x16xf32>
    %207 = arith.maximumf %205, %206 : vector<16x16xf32>
    %208 = vector.broadcast %56 : vector<1x16xf32> to vector<16x16xf32>
    %209 = arith.addf %207, %208 : vector<16x16xf32>
    %cst_125 = arith.constant 0.000000e+00 : f32
    %210 = vector.broadcast %cst_125 : f32 to vector<16x16xf32>
    %211 = arith.maximumf %209, %210 : vector<16x16xf32>
    %c235 = arith.constant 235 : index
    %c0_126 = arith.constant 0 : index
    %212 = vector.load %arg12[%c235, %c0_126] : memref<328x16xf32, #tpu.memory_space<vmem>>, vector<16x16xf32>
    tpu.vector_store %arg12[%c235, %c0_126], %211 {strides = array<i32>} : memref<328x16xf32, #tpu.memory_space<vmem>>, vector<16x16xf32>,
    %c884 = arith.constant 884 : index
    %c0_127 = arith.constant 0 : index
    %213 = tpu.strided_load %arg11[%c884, %c0_127] {strides = array<i32: 2, 1>} : memref<1088x16xf32, #tpu.memory_space<vmem>>, vector<16x16xf32>
    %c885 = arith.constant 885 : index
    %c0_128 = arith.constant 0 : index
    %214 = tpu.strided_load %arg11[%c885, %c0_128] {strides = array<i32: 2, 1>} : memref<1088x16xf32, #tpu.memory_space<vmem>>, vector<16x16xf32>
    %c918 = arith.constant 918 : index
    %c0_129 = arith.constant 0 : index
    %215 = tpu.strided_load %arg11[%c918, %c0_129] {strides = array<i32: 2, 1>} : memref<1088x16xf32, #tpu.memory_space<vmem>>, vector<16x16xf32>
    %c919 = arith.constant 919 : index
    %c0_130 = arith.constant 0 : index
    %216 = tpu.strided_load %arg11[%c919, %c0_130] {strides = array<i32: 2, 1>} : memref<1088x16xf32, #tpu.memory_space<vmem>>, vector<16x16xf32>
    %217 = arith.maximumf %213, %214 : vector<16x16xf32>
    %218 = arith.maximumf %215, %216 : vector<16x16xf32>
    %219 = arith.maximumf %217, %218 : vector<16x16xf32>
    %220 = vector.broadcast %56 : vector<1x16xf32> to vector<16x16xf32>
    %221 = arith.addf %219, %220 : vector<16x16xf32>
    %cst_131 = arith.constant 0.000000e+00 : f32
    %222 = vector.broadcast %cst_131 : f32 to vector<16x16xf32>
    %223 = arith.maximumf %221, %222 : vector<16x16xf32>
    %c253 = arith.constant 253 : index
    %c0_132 = arith.constant 0 : index
    %224 = vector.load %arg12[%c253, %c0_132] : memref<328x16xf32, #tpu.memory_space<vmem>>, vector<16x16xf32>
    tpu.vector_store %arg12[%c253, %c0_132], %223 {strides = array<i32>} : memref<328x16xf32, #tpu.memory_space<vmem>>, vector<16x16xf32>,
    %c952 = arith.constant 952 : index
    %c0_133 = arith.constant 0 : index
    %225 = tpu.strided_load %arg11[%c952, %c0_133] {strides = array<i32: 2, 1>} : memref<1088x16xf32, #tpu.memory_space<vmem>>, vector<16x16xf32>
    %c953 = arith.constant 953 : index
    %c0_134 = arith.constant 0 : index
    %226 = tpu.strided_load %arg11[%c953, %c0_134] {strides = array<i32: 2, 1>} : memref<1088x16xf32, #tpu.memory_space<vmem>>, vector<16x16xf32>
    %c986 = arith.constant 986 : index
    %c0_135 = arith.constant 0 : index
    %227 = tpu.strided_load %arg11[%c986, %c0_135] {strides = array<i32: 2, 1>} : memref<1088x16xf32, #tpu.memory_space<vmem>>, vector<16x16xf32>
    %c987 = arith.constant 987 : index
    %c0_136 = arith.constant 0 : index
    %228 = tpu.strided_load %arg11[%c987, %c0_136] {strides = array<i32: 2, 1>} : memref<1088x16xf32, #tpu.memory_space<vmem>>, vector<16x16xf32>
    %229 = arith.maximumf %225, %226 : vector<16x16xf32>
    %230 = arith.maximumf %227, %228 : vector<16x16xf32>
    %231 = arith.maximumf %229, %230 : vector<16x16xf32>
    %232 = vector.broadcast %56 : vector<1x16xf32> to vector<16x16xf32>
    %233 = arith.addf %231, %232 : vector<16x16xf32>
    %cst_137 = arith.constant 0.000000e+00 : f32
    %234 = vector.broadcast %cst_137 : f32 to vector<16x16xf32>
    %235 = arith.maximumf %233, %234 : vector<16x16xf32>
    %c271 = arith.constant 271 : index
    %c0_138 = arith.constant 0 : index
    %236 = vector.load %arg12[%c271, %c0_138] : memref<328x16xf32, #tpu.memory_space<vmem>>, vector<16x16xf32>
    tpu.vector_store %arg12[%c271, %c0_138], %235 {strides = array<i32>} : memref<328x16xf32, #tpu.memory_space<vmem>>, vector<16x16xf32>,
    %c1020 = arith.constant 1020 : index
    %c0_139 = arith.constant 0 : index
    %237 = tpu.strided_load %arg11[%c1020, %c0_139] {strides = array<i32: 2, 1>} : memref<1088x16xf32, #tpu.memory_space<vmem>>, vector<16x16xf32>
    %c1021 = arith.constant 1021 : index
    %c0_140 = arith.constant 0 : index
    %238 = tpu.strided_load %arg11[%c1021, %c0_140] {strides = array<i32: 2, 1>} : memref<1088x16xf32, #tpu.memory_space<vmem>>, vector<16x16xf32>
    %c1054 = arith.constant 1054 : index
    %c0_141 = arith.constant 0 : index
    %239 = tpu.strided_load %arg11[%c1054, %c0_141] {strides = array<i32: 2, 1>} : memref<1088x16xf32, #tpu.memory_space<vmem>>, vector<16x16xf32>
    %c1055 = arith.constant 1055 : index
    %c0_142 = arith.constant 0 : index
    %240 = tpu.strided_load %arg11[%c1055, %c0_142] {strides = array<i32: 2, 1>} : memref<1088x16xf32, #tpu.memory_space<vmem>>, vector<16x16xf32>
    %241 = arith.maximumf %237, %238 : vector<16x16xf32>
    %242 = arith.maximumf %239, %240 : vector<16x16xf32>
    %243 = arith.maximumf %241, %242 : vector<16x16xf32>
    %244 = vector.broadcast %56 : vector<1x16xf32> to vector<16x16xf32>
    %245 = arith.addf %243, %244 : vector<16x16xf32>
    %cst_143 = arith.constant 0.000000e+00 : f32
    %246 = vector.broadcast %cst_143 : f32 to vector<16x16xf32>
    %247 = arith.maximumf %245, %246 : vector<16x16xf32>
    %c289 = arith.constant 289 : index
    %c0_144 = arith.constant 0 : index
    %248 = vector.load %arg12[%c289, %c0_144] : memref<328x16xf32, #tpu.memory_space<vmem>>, vector<16x16xf32>
    tpu.vector_store %arg12[%c289, %c0_144], %247 {strides = array<i32>} : memref<328x16xf32, #tpu.memory_space<vmem>>, vector<16x16xf32>,
    %c0_145 = arith.constant 0 : index
    %c0_146 = arith.constant 0 : index
    %249 = vector.load %arg12[%c0_145, %c0_146] : memref<328x16xf32, #tpu.memory_space<vmem>>, vector<288x16xf32>
    %250 = arith.truncf %249 : vector<288x16xf32> to vector<288x16xbf16>
    %c0_147 = arith.constant 0 : index
    %c0_148 = arith.constant 0 : index
    %251 = vector.load %arg4[%c0_147, %c0_148] : memref<144x32xbf16, #tpu.memory_space<vmem>>, vector<16x32xbf16>
    %cst_149 = arith.constant dense<0.000000e+00> : vector<288x32xf32>
    %252 = tpu.matmul %250, %251, %cst_149 {dimension_numbers = #tpu.dot_dimension_numbers<[1], [0], [0], [1], [0, 0, 1, 1], [], []>} : vector<288x16xbf16>, vector<16x32xbf16>, vector<288x32xf32> -> vector<288x32xf32>
    %c1_150 = arith.constant 1 : index
    %c0_151 = arith.constant 0 : index
    %253 = vector.load %arg12[%c1_150, %c0_151] : memref<328x16xf32, #tpu.memory_space<vmem>>, vector<288x16xf32>
    %254 = arith.truncf %253 : vector<288x16xf32> to vector<288x16xbf16>
    %c16 = arith.constant 16 : index
    %c0_152 = arith.constant 0 : index
    %255 = vector.load %arg4[%c16, %c0_152] : memref<144x32xbf16, #tpu.memory_space<vmem>>, vector<16x32xbf16>
    %cst_153 = arith.constant dense<0.000000e+00> : vector<288x32xf32>
    %256 = tpu.matmul %254, %255, %cst_153 {dimension_numbers = #tpu.dot_dimension_numbers<[1], [0], [0], [1], [0, 0, 1, 1], [], []>} : vector<288x16xbf16>, vector<16x32xbf16>, vector<288x32xf32> -> vector<288x32xf32>
    %257 = arith.addf %252, %256 : vector<288x32xf32>
    %c2_154 = arith.constant 2 : index
    %c0_155 = arith.constant 0 : index
    %258 = vector.load %arg12[%c2_154, %c0_155] : memref<328x16xf32, #tpu.memory_space<vmem>>, vector<288x16xf32>
    %259 = arith.truncf %258 : vector<288x16xf32> to vector<288x16xbf16>
    %c32 = arith.constant 32 : index
    %c0_156 = arith.constant 0 : index
    %260 = vector.load %arg4[%c32, %c0_156] : memref<144x32xbf16, #tpu.memory_space<vmem>>, vector<16x32xbf16>
    %cst_157 = arith.constant dense<0.000000e+00> : vector<288x32xf32>
    %261 = tpu.matmul %259, %260, %cst_157 {dimension_numbers = #tpu.dot_dimension_numbers<[1], [0], [0], [1], [0, 0, 1, 1], [], []>} : vector<288x16xbf16>, vector<16x32xbf16>, vector<288x32xf32> -> vector<288x32xf32>
    %262 = arith.addf %257, %261 : vector<288x32xf32>
    %c18_158 = arith.constant 18 : index
    %c0_159 = arith.constant 0 : index
    %263 = vector.load %arg12[%c18_158, %c0_159] : memref<328x16xf32, #tpu.memory_space<vmem>>, vector<288x16xf32>
    %264 = arith.truncf %263 : vector<288x16xf32> to vector<288x16xbf16>
    %c48 = arith.constant 48 : index
    %c0_160 = arith.constant 0 : index
    %265 = vector.load %arg4[%c48, %c0_160] : memref<144x32xbf16, #tpu.memory_space<vmem>>, vector<16x32xbf16>
    %cst_161 = arith.constant dense<0.000000e+00> : vector<288x32xf32>
    %266 = tpu.matmul %264, %265, %cst_161 {dimension_numbers = #tpu.dot_dimension_numbers<[1], [0], [0], [1], [0, 0, 1, 1], [], []>} : vector<288x16xbf16>, vector<16x32xbf16>, vector<288x32xf32> -> vector<288x32xf32>
    %267 = arith.addf %262, %266 : vector<288x32xf32>
    %c19_162 = arith.constant 19 : index
    %c0_163 = arith.constant 0 : index
    %268 = vector.load %arg12[%c19_162, %c0_163] : memref<328x16xf32, #tpu.memory_space<vmem>>, vector<288x16xf32>
    %269 = arith.truncf %268 : vector<288x16xf32> to vector<288x16xbf16>
    %c64 = arith.constant 64 : index
    %c0_164 = arith.constant 0 : index
    %270 = vector.load %arg4[%c64, %c0_164] : memref<144x32xbf16, #tpu.memory_space<vmem>>, vector<16x32xbf16>
    %cst_165 = arith.constant dense<0.000000e+00> : vector<288x32xf32>
    %271 = tpu.matmul %269, %270, %cst_165 {dimension_numbers = #tpu.dot_dimension_numbers<[1], [0], [0], [1], [0, 0, 1, 1], [], []>} : vector<288x16xbf16>, vector<16x32xbf16>, vector<288x32xf32> -> vector<288x32xf32>
    %272 = arith.addf %267, %271 : vector<288x32xf32>
    %c20 = arith.constant 20 : index
    %c0_166 = arith.constant 0 : index
    %273 = vector.load %arg12[%c20, %c0_166] : memref<328x16xf32, #tpu.memory_space<vmem>>, vector<288x16xf32>
    %274 = arith.truncf %273 : vector<288x16xf32> to vector<288x16xbf16>
    %c80 = arith.constant 80 : index
    %c0_167 = arith.constant 0 : index
    %275 = vector.load %arg4[%c80, %c0_167] : memref<144x32xbf16, #tpu.memory_space<vmem>>, vector<16x32xbf16>
    %cst_168 = arith.constant dense<0.000000e+00> : vector<288x32xf32>
    %276 = tpu.matmul %274, %275, %cst_168 {dimension_numbers = #tpu.dot_dimension_numbers<[1], [0], [0], [1], [0, 0, 1, 1], [], []>} : vector<288x16xbf16>, vector<16x32xbf16>, vector<288x32xf32> -> vector<288x32xf32>
    %277 = arith.addf %272, %276 : vector<288x32xf32>
    %c36_169 = arith.constant 36 : index
    %c0_170 = arith.constant 0 : index
    %278 = vector.load %arg12[%c36_169, %c0_170] : memref<328x16xf32, #tpu.memory_space<vmem>>, vector<288x16xf32>
    %279 = arith.truncf %278 : vector<288x16xf32> to vector<288x16xbf16>
    %c96 = arith.constant 96 : index
    %c0_171 = arith.constant 0 : index
    %280 = vector.load %arg4[%c96, %c0_171] : memref<144x32xbf16, #tpu.memory_space<vmem>>, vector<16x32xbf16>
    %cst_172 = arith.constant dense<0.000000e+00> : vector<288x32xf32>
    %281 = tpu.matmul %279, %280, %cst_172 {dimension_numbers = #tpu.dot_dimension_numbers<[1], [0], [0], [1], [0, 0, 1, 1], [], []>} : vector<288x16xbf16>, vector<16x32xbf16>, vector<288x32xf32> -> vector<288x32xf32>
    %282 = arith.addf %277, %281 : vector<288x32xf32>
    %c37_173 = arith.constant 37 : index
    %c0_174 = arith.constant 0 : index
    %283 = vector.load %arg12[%c37_173, %c0_174] : memref<328x16xf32, #tpu.memory_space<vmem>>, vector<288x16xf32>
    %284 = arith.truncf %283 : vector<288x16xf32> to vector<288x16xbf16>
    %c112 = arith.constant 112 : index
    %c0_175 = arith.constant 0 : index
    %285 = vector.load %arg4[%c112, %c0_175] : memref<144x32xbf16, #tpu.memory_space<vmem>>, vector<16x32xbf16>
    %cst_176 = arith.constant dense<0.000000e+00> : vector<288x32xf32>
    %286 = tpu.matmul %284, %285, %cst_176 {dimension_numbers = #tpu.dot_dimension_numbers<[1], [0], [0], [1], [0, 0, 1, 1], [], []>} : vector<288x16xbf16>, vector<16x32xbf16>, vector<288x32xf32> -> vector<288x32xf32>
    %287 = arith.addf %282, %286 : vector<288x32xf32>
    %c38 = arith.constant 38 : index
    %c0_177 = arith.constant 0 : index
    %288 = vector.load %arg12[%c38, %c0_177] : memref<328x16xf32, #tpu.memory_space<vmem>>, vector<288x16xf32>
    %289 = arith.truncf %288 : vector<288x16xf32> to vector<288x16xbf16>
    %c128 = arith.constant 128 : index
    %c0_178 = arith.constant 0 : index
    %290 = vector.load %arg4[%c128, %c0_178] : memref<144x32xbf16, #tpu.memory_space<vmem>>, vector<16x32xbf16>
    %cst_179 = arith.constant dense<0.000000e+00> : vector<288x32xf32>
    %291 = tpu.matmul %289, %290, %cst_179 {dimension_numbers = #tpu.dot_dimension_numbers<[1], [0], [0], [1], [0, 0, 1, 1], [], []>} : vector<288x16xbf16>, vector<16x32xbf16>, vector<288x32xf32> -> vector<288x32xf32>
    %292 = arith.addf %287, %291 : vector<288x32xf32>
    %c0_180 = arith.constant 0 : index
    %c0_181 = arith.constant 0 : index
    %293 = vector.load %arg13[%c0_180, %c0_181] : memref<288x32xf32, #tpu.memory_space<vmem>>, vector<288x32xf32>
    tpu.vector_store %arg13[%c0_180, %c0_181], %292 {strides = array<i32>} : memref<288x32xf32, #tpu.memory_space<vmem>>, vector<288x32xf32>,
    %c0_182 = arith.constant 0 : index
    %c0_183 = arith.constant 0 : index
    %294 = vector.load %arg5[%c0_182, %c0_183] : memref<1x32xf32, #tpu.memory_space<vmem>>, vector<1x32xf32>
    %c0_184 = arith.constant 0 : index
    %c0_185 = arith.constant 0 : index
    %295 = tpu.strided_load %arg13[%c0_184, %c0_185] {strides = array<i32: 2, 1>} : memref<288x32xf32, #tpu.memory_space<vmem>>, vector<8x32xf32>
    %c1_186 = arith.constant 1 : index
    %c0_187 = arith.constant 0 : index
    %296 = tpu.strided_load %arg13[%c1_186, %c0_187] {strides = array<i32: 2, 1>} : memref<288x32xf32, #tpu.memory_space<vmem>>, vector<8x32xf32>
    %c18_188 = arith.constant 18 : index
    %c0_189 = arith.constant 0 : index
    %297 = tpu.strided_load %arg13[%c18_188, %c0_189] {strides = array<i32: 2, 1>} : memref<288x32xf32, #tpu.memory_space<vmem>>, vector<8x32xf32>
    %c19_190 = arith.constant 19 : index
    %c0_191 = arith.constant 0 : index
    %298 = tpu.strided_load %arg13[%c19_190, %c0_191] {strides = array<i32: 2, 1>} : memref<288x32xf32, #tpu.memory_space<vmem>>, vector<8x32xf32>
    %299 = arith.maximumf %295, %296 : vector<8x32xf32>
    %300 = arith.maximumf %297, %298 : vector<8x32xf32>
    %301 = arith.maximumf %299, %300 : vector<8x32xf32>
    %302 = vector.broadcast %294 : vector<1x32xf32> to vector<8x32xf32>
    %303 = arith.addf %301, %302 : vector<8x32xf32>
    %cst_192 = arith.constant 0.000000e+00 : f32
    %304 = vector.broadcast %cst_192 : f32 to vector<8x32xf32>
    %305 = arith.maximumf %303, %304 : vector<8x32xf32>
    %c0_193 = arith.constant 0 : index
    %c0_194 = arith.constant 0 : index
    %306 = vector.load %arg14[%c0_193, %c0_194] : memref<8x256xf32, #tpu.memory_space<vmem>>, vector<8x32xf32>
    tpu.vector_store %arg14[%c0_193, %c0_194], %305 {strides = array<i32>} : memref<8x256xf32, #tpu.memory_space<vmem>>, vector<8x32xf32>,
    %c36_195 = arith.constant 36 : index
    %c0_196 = arith.constant 0 : index
    %307 = tpu.strided_load %arg13[%c36_195, %c0_196] {strides = array<i32: 2, 1>} : memref<288x32xf32, #tpu.memory_space<vmem>>, vector<8x32xf32>
    %c37_197 = arith.constant 37 : index
    %c0_198 = arith.constant 0 : index
    %308 = tpu.strided_load %arg13[%c37_197, %c0_198] {strides = array<i32: 2, 1>} : memref<288x32xf32, #tpu.memory_space<vmem>>, vector<8x32xf32>
    %c54 = arith.constant 54 : index
    %c0_199 = arith.constant 0 : index
    %309 = tpu.strided_load %arg13[%c54, %c0_199] {strides = array<i32: 2, 1>} : memref<288x32xf32, #tpu.memory_space<vmem>>, vector<8x32xf32>
    %c55_200 = arith.constant 55 : index
    %c0_201 = arith.constant 0 : index
    %310 = tpu.strided_load %arg13[%c55_200, %c0_201] {strides = array<i32: 2, 1>} : memref<288x32xf32, #tpu.memory_space<vmem>>, vector<8x32xf32>
    %311 = arith.maximumf %307, %308 : vector<8x32xf32>
    %312 = arith.maximumf %309, %310 : vector<8x32xf32>
    %313 = arith.maximumf %311, %312 : vector<8x32xf32>
    %314 = vector.broadcast %294 : vector<1x32xf32> to vector<8x32xf32>
    %315 = arith.addf %313, %314 : vector<8x32xf32>
    %cst_202 = arith.constant 0.000000e+00 : f32
    %316 = vector.broadcast %cst_202 : f32 to vector<8x32xf32>
    %317 = arith.maximumf %315, %316 : vector<8x32xf32>
    %c0_203 = arith.constant 0 : index
    %c32_204 = arith.constant 32 : index
    %318 = vector.load %arg14[%c0_203, %c32_204] : memref<8x256xf32, #tpu.memory_space<vmem>>, vector<8x32xf32>
    tpu.vector_store %arg14[%c0_203, %c32_204], %317 {strides = array<i32>} : memref<8x256xf32, #tpu.memory_space<vmem>>, vector<8x32xf32>,
    %c72 = arith.constant 72 : index
    %c0_205 = arith.constant 0 : index
    %319 = tpu.strided_load %arg13[%c72, %c0_205] {strides = array<i32: 2, 1>} : memref<288x32xf32, #tpu.memory_space<vmem>>, vector<8x32xf32>
    %c73_206 = arith.constant 73 : index
    %c0_207 = arith.constant 0 : index
    %320 = tpu.strided_load %arg13[%c73_206, %c0_207] {strides = array<i32: 2, 1>} : memref<288x32xf32, #tpu.memory_space<vmem>>, vector<8x32xf32>
    %c90 = arith.constant 90 : index
    %c0_208 = arith.constant 0 : index
    %321 = tpu.strided_load %arg13[%c90, %c0_208] {strides = array<i32: 2, 1>} : memref<288x32xf32, #tpu.memory_space<vmem>>, vector<8x32xf32>
    %c91_209 = arith.constant 91 : index
    %c0_210 = arith.constant 0 : index
    %322 = tpu.strided_load %arg13[%c91_209, %c0_210] {strides = array<i32: 2, 1>} : memref<288x32xf32, #tpu.memory_space<vmem>>, vector<8x32xf32>
    %323 = arith.maximumf %319, %320 : vector<8x32xf32>
    %324 = arith.maximumf %321, %322 : vector<8x32xf32>
    %325 = arith.maximumf %323, %324 : vector<8x32xf32>
    %326 = vector.broadcast %294 : vector<1x32xf32> to vector<8x32xf32>
    %327 = arith.addf %325, %326 : vector<8x32xf32>
    %cst_211 = arith.constant 0.000000e+00 : f32
    %328 = vector.broadcast %cst_211 : f32 to vector<8x32xf32>
    %329 = arith.maximumf %327, %328 : vector<8x32xf32>
    %c0_212 = arith.constant 0 : index
    %c64_213 = arith.constant 64 : index
    %330 = vector.load %arg14[%c0_212, %c64_213] : memref<8x256xf32, #tpu.memory_space<vmem>>, vector<8x32xf32>
    tpu.vector_store %arg14[%c0_212, %c64_213], %329 {strides = array<i32>} : memref<8x256xf32, #tpu.memory_space<vmem>>, vector<8x32xf32>,
    %c108 = arith.constant 108 : index
    %c0_214 = arith.constant 0 : index
    %331 = tpu.strided_load %arg13[%c108, %c0_214] {strides = array<i32: 2, 1>} : memref<288x32xf32, #tpu.memory_space<vmem>>, vector<8x32xf32>
    %c109_215 = arith.constant 109 : index
    %c0_216 = arith.constant 0 : index
    %332 = tpu.strided_load %arg13[%c109_215, %c0_216] {strides = array<i32: 2, 1>} : memref<288x32xf32, #tpu.memory_space<vmem>>, vector<8x32xf32>
    %c126 = arith.constant 126 : index
    %c0_217 = arith.constant 0 : index
    %333 = tpu.strided_load %arg13[%c126, %c0_217] {strides = array<i32: 2, 1>} : memref<288x32xf32, #tpu.memory_space<vmem>>, vector<8x32xf32>
    %c127_218 = arith.constant 127 : index
    %c0_219 = arith.constant 0 : index
    %334 = tpu.strided_load %arg13[%c127_218, %c0_219] {strides = array<i32: 2, 1>} : memref<288x32xf32, #tpu.memory_space<vmem>>, vector<8x32xf32>
    %335 = arith.maximumf %331, %332 : vector<8x32xf32>
    %336 = arith.maximumf %333, %334 : vector<8x32xf32>
    %337 = arith.maximumf %335, %336 : vector<8x32xf32>
    %338 = vector.broadcast %294 : vector<1x32xf32> to vector<8x32xf32>
    %339 = arith.addf %337, %338 : vector<8x32xf32>
    %cst_220 = arith.constant 0.000000e+00 : f32
    %340 = vector.broadcast %cst_220 : f32 to vector<8x32xf32>
    %341 = arith.maximumf %339, %340 : vector<8x32xf32>
    %c0_221 = arith.constant 0 : index
    %c96_222 = arith.constant 96 : index
    %342 = vector.load %arg14[%c0_221, %c96_222] : memref<8x256xf32, #tpu.memory_space<vmem>>, vector<8x32xf32>
    tpu.vector_store %arg14[%c0_221, %c96_222], %341 {strides = array<i32>} : memref<8x256xf32, #tpu.memory_space<vmem>>, vector<8x32xf32>,
    %c144 = arith.constant 144 : index
    %c0_223 = arith.constant 0 : index
    %343 = tpu.strided_load %arg13[%c144, %c0_223] {strides = array<i32: 2, 1>} : memref<288x32xf32, #tpu.memory_space<vmem>>, vector<8x32xf32>
    %c145_224 = arith.constant 145 : index
    %c0_225 = arith.constant 0 : index
    %344 = tpu.strided_load %arg13[%c145_224, %c0_225] {strides = array<i32: 2, 1>} : memref<288x32xf32, #tpu.memory_space<vmem>>, vector<8x32xf32>
    %c162 = arith.constant 162 : index
    %c0_226 = arith.constant 0 : index
    %345 = tpu.strided_load %arg13[%c162, %c0_226] {strides = array<i32: 2, 1>} : memref<288x32xf32, #tpu.memory_space<vmem>>, vector<8x32xf32>
    %c163_227 = arith.constant 163 : index
    %c0_228 = arith.constant 0 : index
    %346 = tpu.strided_load %arg13[%c163_227, %c0_228] {strides = array<i32: 2, 1>} : memref<288x32xf32, #tpu.memory_space<vmem>>, vector<8x32xf32>
    %347 = arith.maximumf %343, %344 : vector<8x32xf32>
    %348 = arith.maximumf %345, %346 : vector<8x32xf32>
    %349 = arith.maximumf %347, %348 : vector<8x32xf32>
    %350 = vector.broadcast %294 : vector<1x32xf32> to vector<8x32xf32>
    %351 = arith.addf %349, %350 : vector<8x32xf32>
    %cst_229 = arith.constant 0.000000e+00 : f32
    %352 = vector.broadcast %cst_229 : f32 to vector<8x32xf32>
    %353 = arith.maximumf %351, %352 : vector<8x32xf32>
    %c0_230 = arith.constant 0 : index
    %c128_231 = arith.constant 128 : index
    %354 = vector.load %arg14[%c0_230, %c128_231] : memref<8x256xf32, #tpu.memory_space<vmem>>, vector<8x32xf32>
    tpu.vector_store %arg14[%c0_230, %c128_231], %353 {strides = array<i32>} : memref<8x256xf32, #tpu.memory_space<vmem>>, vector<8x32xf32>,
    %c180 = arith.constant 180 : index
    %c0_232 = arith.constant 0 : index
    %355 = tpu.strided_load %arg13[%c180, %c0_232] {strides = array<i32: 2, 1>} : memref<288x32xf32, #tpu.memory_space<vmem>>, vector<8x32xf32>
    %c181_233 = arith.constant 181 : index
    %c0_234 = arith.constant 0 : index
    %356 = tpu.strided_load %arg13[%c181_233, %c0_234] {strides = array<i32: 2, 1>} : memref<288x32xf32, #tpu.memory_space<vmem>>, vector<8x32xf32>
    %c198 = arith.constant 198 : index
    %c0_235 = arith.constant 0 : index
    %357 = tpu.strided_load %arg13[%c198, %c0_235] {strides = array<i32: 2, 1>} : memref<288x32xf32, #tpu.memory_space<vmem>>, vector<8x32xf32>
    %c199_236 = arith.constant 199 : index
    %c0_237 = arith.constant 0 : index
    %358 = tpu.strided_load %arg13[%c199_236, %c0_237] {strides = array<i32: 2, 1>} : memref<288x32xf32, #tpu.memory_space<vmem>>, vector<8x32xf32>
    %359 = arith.maximumf %355, %356 : vector<8x32xf32>
    %360 = arith.maximumf %357, %358 : vector<8x32xf32>
    %361 = arith.maximumf %359, %360 : vector<8x32xf32>
    %362 = vector.broadcast %294 : vector<1x32xf32> to vector<8x32xf32>
    %363 = arith.addf %361, %362 : vector<8x32xf32>
    %cst_238 = arith.constant 0.000000e+00 : f32
    %364 = vector.broadcast %cst_238 : f32 to vector<8x32xf32>
    %365 = arith.maximumf %363, %364 : vector<8x32xf32>
    %c0_239 = arith.constant 0 : index
    %c160 = arith.constant 160 : index
    %366 = vector.load %arg14[%c0_239, %c160] : memref<8x256xf32, #tpu.memory_space<vmem>>, vector<8x32xf32>
    tpu.vector_store %arg14[%c0_239, %c160], %365 {strides = array<i32>} : memref<8x256xf32, #tpu.memory_space<vmem>>, vector<8x32xf32>,
    %c216 = arith.constant 216 : index
    %c0_240 = arith.constant 0 : index
    %367 = tpu.strided_load %arg13[%c216, %c0_240] {strides = array<i32: 2, 1>} : memref<288x32xf32, #tpu.memory_space<vmem>>, vector<8x32xf32>
    %c217_241 = arith.constant 217 : index
    %c0_242 = arith.constant 0 : index
    %368 = tpu.strided_load %arg13[%c217_241, %c0_242] {strides = array<i32: 2, 1>} : memref<288x32xf32, #tpu.memory_space<vmem>>, vector<8x32xf32>
    %c234 = arith.constant 234 : index
    %c0_243 = arith.constant 0 : index
    %369 = tpu.strided_load %arg13[%c234, %c0_243] {strides = array<i32: 2, 1>} : memref<288x32xf32, #tpu.memory_space<vmem>>, vector<8x32xf32>
    %c235_244 = arith.constant 235 : index
    %c0_245 = arith.constant 0 : index
    %370 = tpu.strided_load %arg13[%c235_244, %c0_245] {strides = array<i32: 2, 1>} : memref<288x32xf32, #tpu.memory_space<vmem>>, vector<8x32xf32>
    %371 = arith.maximumf %367, %368 : vector<8x32xf32>
    %372 = arith.maximumf %369, %370 : vector<8x32xf32>
    %373 = arith.maximumf %371, %372 : vector<8x32xf32>
    %374 = vector.broadcast %294 : vector<1x32xf32> to vector<8x32xf32>
    %375 = arith.addf %373, %374 : vector<8x32xf32>
    %cst_246 = arith.constant 0.000000e+00 : f32
    %376 = vector.broadcast %cst_246 : f32 to vector<8x32xf32>
    %377 = arith.maximumf %375, %376 : vector<8x32xf32>
    %c0_247 = arith.constant 0 : index
    %c192 = arith.constant 192 : index
    %378 = vector.load %arg14[%c0_247, %c192] : memref<8x256xf32, #tpu.memory_space<vmem>>, vector<8x32xf32>
    tpu.vector_store %arg14[%c0_247, %c192], %377 {strides = array<i32>} : memref<8x256xf32, #tpu.memory_space<vmem>>, vector<8x32xf32>,
    %c252 = arith.constant 252 : index
    %c0_248 = arith.constant 0 : index
    %379 = tpu.strided_load %arg13[%c252, %c0_248] {strides = array<i32: 2, 1>} : memref<288x32xf32, #tpu.memory_space<vmem>>, vector<8x32xf32>
    %c253_249 = arith.constant 253 : index
    %c0_250 = arith.constant 0 : index
    %380 = tpu.strided_load %arg13[%c253_249, %c0_250] {strides = array<i32: 2, 1>} : memref<288x32xf32, #tpu.memory_space<vmem>>, vector<8x32xf32>
    %c270 = arith.constant 270 : index
    %c0_251 = arith.constant 0 : index
    %381 = tpu.strided_load %arg13[%c270, %c0_251] {strides = array<i32: 2, 1>} : memref<288x32xf32, #tpu.memory_space<vmem>>, vector<8x32xf32>
    %c271_252 = arith.constant 271 : index
    %c0_253 = arith.constant 0 : index
    %382 = tpu.strided_load %arg13[%c271_252, %c0_253] {strides = array<i32: 2, 1>} : memref<288x32xf32, #tpu.memory_space<vmem>>, vector<8x32xf32>
    %383 = arith.maximumf %379, %380 : vector<8x32xf32>
    %384 = arith.maximumf %381, %382 : vector<8x32xf32>
    %385 = arith.maximumf %383, %384 : vector<8x32xf32>
    %386 = vector.broadcast %294 : vector<1x32xf32> to vector<8x32xf32>
    %387 = arith.addf %385, %386 : vector<8x32xf32>
    %cst_254 = arith.constant 0.000000e+00 : f32
    %388 = vector.broadcast %cst_254 : f32 to vector<8x32xf32>
    %389 = arith.maximumf %387, %388 : vector<8x32xf32>
    %c0_255 = arith.constant 0 : index
    %c224 = arith.constant 224 : index
    %390 = vector.load %arg14[%c0_255, %c224] : memref<8x256xf32, #tpu.memory_space<vmem>>, vector<8x32xf32>
    tpu.vector_store %arg14[%c0_255, %c224], %389 {strides = array<i32>} : memref<8x256xf32, #tpu.memory_space<vmem>>, vector<8x32xf32>,
    %c0_256 = arith.constant 0 : index
    %c0_257 = arith.constant 0 : index
    %391 = vector.load %arg7[%c0_256, %c0_257] : memref<1x128xf32, #tpu.memory_space<vmem>>, vector<1x128xf32>
    %c0_258 = arith.constant 0 : index
    %c0_259 = arith.constant 0 : index
    %392 = vector.load %arg14[%c0_258, %c0_259] : memref<8x256xf32, #tpu.memory_space<vmem>>, vector<1x256xf32>
    %393 = arith.truncf %392 : vector<1x256xf32> to vector<1x256xbf16>
    %c0_260 = arith.constant 0 : index
    %c0_261 = arith.constant 0 : index
    %394 = vector.load %arg6[%c0_260, %c0_261] : memref<2048x128xbf16, #tpu.memory_space<vmem>>, vector<256x128xbf16>
    %cst_262 = arith.constant dense<0.000000e+00> : vector<1x128xf32>
    %395 = tpu.matmul %393, %394, %cst_262 {dimension_numbers = #tpu.dot_dimension_numbers<[1], [0], [0], [1], [0, 0, 1, 1], [], []>} : vector<1x256xbf16>, vector<256x128xbf16>, vector<1x128xf32> -> vector<1x128xf32>
    %396 = arith.addf %391, %395 : vector<1x128xf32>
    %c1_263 = arith.constant 1 : index
    %c0_264 = arith.constant 0 : index
    %397 = vector.load %arg14[%c1_263, %c0_264] : memref<8x256xf32, #tpu.memory_space<vmem>>, vector<1x256xf32>
    %398 = arith.truncf %397 : vector<1x256xf32> to vector<1x256xbf16>
    %c256 = arith.constant 256 : index
    %c0_265 = arith.constant 0 : index
    %399 = vector.load %arg6[%c256, %c0_265] : memref<2048x128xbf16, #tpu.memory_space<vmem>>, vector<256x128xbf16>
    %cst_266 = arith.constant dense<0.000000e+00> : vector<1x128xf32>
    %400 = tpu.matmul %398, %399, %cst_266 {dimension_numbers = #tpu.dot_dimension_numbers<[1], [0], [0], [1], [0, 0, 1, 1], [], []>} : vector<1x256xbf16>, vector<256x128xbf16>, vector<1x128xf32> -> vector<1x128xf32>
    %401 = arith.addf %396, %400 : vector<1x128xf32>
    %c2_267 = arith.constant 2 : index
    %c0_268 = arith.constant 0 : index
    %402 = vector.load %arg14[%c2_267, %c0_268] : memref<8x256xf32, #tpu.memory_space<vmem>>, vector<1x256xf32>
    %403 = arith.truncf %402 : vector<1x256xf32> to vector<1x256xbf16>
    %c512 = arith.constant 512 : index
    %c0_269 = arith.constant 0 : index
    %404 = vector.load %arg6[%c512, %c0_269] : memref<2048x128xbf16, #tpu.memory_space<vmem>>, vector<256x128xbf16>
    %cst_270 = arith.constant dense<0.000000e+00> : vector<1x128xf32>
    %405 = tpu.matmul %403, %404, %cst_270 {dimension_numbers = #tpu.dot_dimension_numbers<[1], [0], [0], [1], [0, 0, 1, 1], [], []>} : vector<1x256xbf16>, vector<256x128xbf16>, vector<1x128xf32> -> vector<1x128xf32>
    %406 = arith.addf %401, %405 : vector<1x128xf32>
    %c3_271 = arith.constant 3 : index
    %c0_272 = arith.constant 0 : index
    %407 = vector.load %arg14[%c3_271, %c0_272] : memref<8x256xf32, #tpu.memory_space<vmem>>, vector<1x256xf32>
    %408 = arith.truncf %407 : vector<1x256xf32> to vector<1x256xbf16>
    %c768 = arith.constant 768 : index
    %c0_273 = arith.constant 0 : index
    %409 = vector.load %arg6[%c768, %c0_273] : memref<2048x128xbf16, #tpu.memory_space<vmem>>, vector<256x128xbf16>
    %cst_274 = arith.constant dense<0.000000e+00> : vector<1x128xf32>
    %410 = tpu.matmul %408, %409, %cst_274 {dimension_numbers = #tpu.dot_dimension_numbers<[1], [0], [0], [1], [0, 0, 1, 1], [], []>} : vector<1x256xbf16>, vector<256x128xbf16>, vector<1x128xf32> -> vector<1x128xf32>
    %411 = arith.addf %406, %410 : vector<1x128xf32>
    %c4 = arith.constant 4 : index
    %c0_275 = arith.constant 0 : index
    %412 = vector.load %arg14[%c4, %c0_275] : memref<8x256xf32, #tpu.memory_space<vmem>>, vector<1x256xf32>
    %413 = arith.truncf %412 : vector<1x256xf32> to vector<1x256xbf16>
    %c1024 = arith.constant 1024 : index
    %c0_276 = arith.constant 0 : index
    %414 = vector.load %arg6[%c1024, %c0_276] : memref<2048x128xbf16, #tpu.memory_space<vmem>>, vector<256x128xbf16>
    %cst_277 = arith.constant dense<0.000000e+00> : vector<1x128xf32>
    %415 = tpu.matmul %413, %414, %cst_277 {dimension_numbers = #tpu.dot_dimension_numbers<[1], [0], [0], [1], [0, 0, 1, 1], [], []>} : vector<1x256xbf16>, vector<256x128xbf16>, vector<1x128xf32> -> vector<1x128xf32>
    %416 = arith.addf %411, %415 : vector<1x128xf32>
    %c5 = arith.constant 5 : index
    %c0_278 = arith.constant 0 : index
    %417 = vector.load %arg14[%c5, %c0_278] : memref<8x256xf32, #tpu.memory_space<vmem>>, vector<1x256xf32>
    %418 = arith.truncf %417 : vector<1x256xf32> to vector<1x256xbf16>
    %c1280 = arith.constant 1280 : index
    %c0_279 = arith.constant 0 : index
    %419 = vector.load %arg6[%c1280, %c0_279] : memref<2048x128xbf16, #tpu.memory_space<vmem>>, vector<256x128xbf16>
    %cst_280 = arith.constant dense<0.000000e+00> : vector<1x128xf32>
    %420 = tpu.matmul %418, %419, %cst_280 {dimension_numbers = #tpu.dot_dimension_numbers<[1], [0], [0], [1], [0, 0, 1, 1], [], []>} : vector<1x256xbf16>, vector<256x128xbf16>, vector<1x128xf32> -> vector<1x128xf32>
    %421 = arith.addf %416, %420 : vector<1x128xf32>
    %c6_281 = arith.constant 6 : index
    %c0_282 = arith.constant 0 : index
    %422 = vector.load %arg14[%c6_281, %c0_282] : memref<8x256xf32, #tpu.memory_space<vmem>>, vector<1x256xf32>
    %423 = arith.truncf %422 : vector<1x256xf32> to vector<1x256xbf16>
    %c1536 = arith.constant 1536 : index
    %c0_283 = arith.constant 0 : index
    %424 = vector.load %arg6[%c1536, %c0_283] : memref<2048x128xbf16, #tpu.memory_space<vmem>>, vector<256x128xbf16>
    %cst_284 = arith.constant dense<0.000000e+00> : vector<1x128xf32>
    %425 = tpu.matmul %423, %424, %cst_284 {dimension_numbers = #tpu.dot_dimension_numbers<[1], [0], [0], [1], [0, 0, 1, 1], [], []>} : vector<1x256xbf16>, vector<256x128xbf16>, vector<1x128xf32> -> vector<1x128xf32>
    %426 = arith.addf %421, %425 : vector<1x128xf32>
    %c7 = arith.constant 7 : index
    %c0_285 = arith.constant 0 : index
    %427 = vector.load %arg14[%c7, %c0_285] : memref<8x256xf32, #tpu.memory_space<vmem>>, vector<1x256xf32>
    %428 = arith.truncf %427 : vector<1x256xf32> to vector<1x256xbf16>
    %c1792 = arith.constant 1792 : index
    %c0_286 = arith.constant 0 : index
    %429 = vector.load %arg6[%c1792, %c0_286] : memref<2048x128xbf16, #tpu.memory_space<vmem>>, vector<256x128xbf16>
    %cst_287 = arith.constant dense<0.000000e+00> : vector<1x128xf32>
    %430 = tpu.matmul %428, %429, %cst_287 {dimension_numbers = #tpu.dot_dimension_numbers<[1], [0], [0], [1], [0, 0, 1, 1], [], []>} : vector<1x256xbf16>, vector<256x128xbf16>, vector<1x128xf32> -> vector<1x128xf32>
    %431 = arith.addf %426, %430 : vector<1x128xf32>
    %cst_288 = arith.constant 0.000000e+00 : f32
    %432 = vector.broadcast %cst_288 : f32 to vector<1x128xf32>
    %433 = arith.maximumf %431, %432 : vector<1x128xf32>
    %434 = arith.truncf %433 : vector<1x128xf32> to vector<1x128xbf16>
    %c0_289 = arith.constant 0 : index
    %c0_290 = arith.constant 0 : index
    %435 = vector.load %arg8[%c0_289, %c0_290] : memref<128x10xbf16, #tpu.memory_space<vmem>>, vector<128x10xbf16>
    %cst_291 = arith.constant dense<0.000000e+00> : vector<1x10xf32>
    %436 = tpu.matmul %434, %435, %cst_291 {dimension_numbers = #tpu.dot_dimension_numbers<[1], [0], [0], [1], [0, 0, 1, 1], [], []>} : vector<1x128xbf16>, vector<128x10xbf16>, vector<1x10xf32> -> vector<1x10xf32>
    %c0_292 = arith.constant 0 : index
    %c0_293 = arith.constant 0 : index
    %437 = vector.load %arg9[%c0_292, %c0_293] : memref<1x10xf32, #tpu.memory_space<vmem>>, vector<1x10xf32>
    %438 = arith.addf %436, %437 : vector<1x10xf32>
    %c0_294 = arith.constant 0 : index
    %c0_295 = arith.constant 0 : index
    %c0_296 = arith.constant 0 : index
    %439 = vector.load %arg10[%c0_294, %c0_295, %c0_296] : memref<1x1x10xf32, #tpu.memory_space<vmem>>, vector<1x1x10xf32>
    %440 = vector.shape_cast %439 : vector<1x1x10xf32> to vector<1x10xf32>
    %441 = vector.shape_cast %438 : vector<1x10xf32> to vector<1x1x10xf32>
    tpu.vector_store %arg10[%c0_294, %c0_295, %c0_296], %441 {strides = array<i32>} : memref<1x1x10xf32, #tpu.memory_space<vmem>>, vector<1x1x10xf32>,
    return
  }
  func.func @transform_0(%arg0: i32) -> (i32, i32, i32) {
    %c0_i32 = arith.constant 0 : i32
    %c0_i32_0 = arith.constant 0 : i32
    %c0_i32_1 = arith.constant 0 : i32
    return %arg0, %c0_i32, %c0_i32_0 : i32, i32, i32
  }
  func.func @transform_1(%arg0: i32) -> (i32, i32) {
    %c0_i32 = arith.constant 0 : i32
    %c0_i32_0 = arith.constant 0 : i32
    %c0_i32_1 = arith.constant 0 : i32
    return %c0_i32, %c0_i32_0 : i32, i32
  }
  func.func @transform_2(%arg0: i32) -> (i32, i32) {
    %c0_i32 = arith.constant 0 : i32
    %c0_i32_0 = arith.constant 0 : i32
    %c0_i32_1 = arith.constant 0 : i32
    return %c0_i32, %c0_i32_0 : i32, i32
  }
  func.func @transform_3(%arg0: i32) -> (i32, i32) {
    %c0_i32 = arith.constant 0 : i32
    %c0_i32_0 = arith.constant 0 : i32
    %c0_i32_1 = arith.constant 0 : i32
    return %c0_i32, %c0_i32_0 : i32, i32
  }
  func.func @transform_4(%arg0: i32) -> (i32, i32) {
    %c0_i32 = arith.constant 0 : i32
    %c0_i32_0 = arith.constant 0 : i32
    %c0_i32_1 = arith.constant 0 : i32
    return %c0_i32, %c0_i32_0 : i32, i32
  }
  func.func @transform_5(%arg0: i32) -> (i32, i32) {
    %c0_i32 = arith.constant 0 : i32
    %c0_i32_0 = arith.constant 0 : i32
    %c0_i32_1 = arith.constant 0 : i32
    return %c0_i32, %c0_i32_0 : i32, i32
  }
  func.func @transform_6(%arg0: i32) -> (i32, i32) {
    %c0_i32 = arith.constant 0 : i32
    %c0_i32_0 = arith.constant 0 : i32
    %c0_i32_1 = arith.constant 0 : i32
    return %c0_i32, %c0_i32_0 : i32, i32
  }
  func.func @transform_7(%arg0: i32) -> (i32, i32) {
    %c0_i32 = arith.constant 0 : i32
    %c0_i32_0 = arith.constant 0 : i32
    %c0_i32_1 = arith.constant 0 : i32
    return %c0_i32, %c0_i32_0 : i32, i32
  }
  func.func @transform_8(%arg0: i32) -> (i32, i32) {
    %c0_i32 = arith.constant 0 : i32
    %c0_i32_0 = arith.constant 0 : i32
    %c0_i32_1 = arith.constant 0 : i32
    return %c0_i32, %c0_i32_0 : i32, i32
  }
  func.func @transform_9(%arg0: i32) -> (i32, i32, i32) {
    %c0_i32 = arith.constant 0 : i32
    %c0_i32_0 = arith.constant 0 : i32
    %c0_i32_1 = arith.constant 0 : i32
    return %arg0, %c0_i32, %c0_i32_0 : i32, i32, i32
  }
}

</mosaic_0001>

<bundles_post_ra>
// kernel: cnn_forward.1
= control target key start
LH: loop header
LB: loop body
LE: loop exit
PB: predicated region body
PF: predicated region fallthrough
CT: control target
= control target key end

     0   :  { %14 = vsyncpa [#allocation7], 0  ;;  %s24218_s0 = inlined_call_operand.vmem [shape: f32[2,1190,3], index: 0, kind: input, shape index: {}]   ;;  %s24219_s1 = inlined_call_operand.vmem [shape: bf16[27,16], index: 1, kind: input, shape index: {}]   ;;  %s24220_s2 = inlined_call_operand.vmem [shape: f32[1,16], index: 2, kind: input, shape index: {}]   ;;  %s24221_s3 = inlined_call_operand.vmem [shape: bf16[144,32], index: 3, kind: input, shape index: {}]   ;;  %s24222_s4 = inlined_call_operand.vmem [shape: f32[1,32], index: 4, kind: input, shape index: {}]   ;;  %s24223_s5 = inlined_call_operand.vmem [shape: bf16[2048,128], index: 5, kind: input, shape index: {}]   ;;  %s24224_s6 = inlined_call_operand.vmem [shape: f32[1,128], index: 6, kind: input, shape index: {}]   ;;  %s24225_s7 = inlined_call_operand.vmem [shape: bf16[128,10], index: 7, kind: input, shape index: {}]   ;;  %s24226_s8 = inlined_call_operand.vmem [shape: f32[1,10], index: 8, kind: input, shape index: {}]   ;;  %s24227_s9 = inlined_call_operand.hbm [shape: f32[2,1,10], index: 9, kind: output, shape index: {}]  }
   0x1   :  { %16 = vsyncpa [#allocation7 + $0x1], 0  ;;  %s20817_s30 = smov 0   ;;  %s20819_s10 = smov 0  }
   0x2   :  { %s20821_s11 = smov 0   ;;  %s20823_s12 = smov 0  }
   0x3 LB: > { %s20838_s13 = sadd.s32 4294967295, %s20758_s12   ;;  %s15602_s14 = sadd.s32 4294967294, %s20758_s12   ;;  %s20758_s12 = sphi %s20823_s12, %s24412_s12   ;;  %s20754_s11 = sphi %s20821_s11, %s24411_s11   ;;  %s20750_s10 = sphi %s20819_s10, %s24410_s10   ;;  %s20746_s30 = sphi %s20817_s30, %s24409_s30  }
   0x4   : > { %s20842_s15 = sadd.s32 1, %s20758_s12   ;;  %s223_s16 = sadd.s32 1, %s20754_s11 }
   0x5   : > { %s220_s17 = ssub.s32 %s20758_s12, %s20842_s15  ;;  %p233_p0 = scmp.ne.s32.totalorder %s20754_s11, %s20750_s10 }
   0x6   : > { %p221_p1 = scmp.eq.s32.totalorder %s220_s17, 0  ;;  %p234_p2 = scmp.eq.s32.totalorder %s20838_s13, 1 }
   0x7   : > { %p239_p3 = scmp.ne.s32.totalorder %s20750_s10, %s20746_s30  ;;  %p240_p4 = scmp.eq.s32.totalorder %s15602_s14, 1 }
   0x8   : > { %s20853_s18 = scalar_select %p221_p1, %s20754_s11, %s223_s16  }
   0x9   : > { %p20855_p5 = por %p234_p2, %p233_p0  ;;  %p20859_p6 = por %p240_p4, %p239_p3 }
   0xa   : > { %p15605_p7 = scmp.ge.s32.totalorder %s20758_s12, 1  ;;  %p290_p8 = scmp.lt.s32.totalorder %s20758_s12, 3 }
   0xc   : > { %p291_p9 = pnand %p15605_p7, %p290_p8 }
   0xe   : > { %294 = sbr.rel (%p291_p9) target bundleno = 3543 (0xdd7), region = 56 }
  0x15   : > { %vm957_vm0 = vcmask 1040384   ;;  %vm958_vm1 = vcmask 1041408   ;;  %p325_p10 = scmp.lt.s32.totalorder %s20838_s13, 1  ;;  %v20760_v0 = vmov 65535   ;;  %v20543_v2 = vld [vmem:[%s24219_s1] sm:$0x18]  }
  0x16   : > { %v959_v1 = vsel %vm957_vm0, 4294967295, %v20760_v0  ;;  %v2536_v4 = vrot.slane %v20543_v2, 3  ;;  %v20544_v5 = vld [vmem:[%s24219_s1 + $0x4] ss:$0 sps:$4 sm:$0x33]   ;;  %vm752_vm2 = vcmask 23552  }
  0x17   : > { %v20869_v3 = vsel %vm958_vm1, %v959_v1, 0  ;;  %s326_s23 = scalar_select %p325_p10, %s20838_s13, 1  ;;  %v20545_v6 = vld [vmem:[%s24219_s1 + $0x4] ss:$0 sps:$4 sm:$0xcc]   ;;  %v3666_v8 = vshrl.u32 %v20544_v5, 16 }
  0x18   : > { %v20879_v7 = vand.u32 %v2536_v4, %v20869_v3  ;;  %v3668_v9 = vshll.u32 %v20544_v5, 16  ;;  %v4800_v14 = vrot.slane %v20545_v6, 2  ;;  %vm10250_vm3 = vcmask 130048   ;;  %s20763_s29 = smov 64   ;;  %s20764_s27 = smov 96  }
  0x19   : > { %s20497_s26 = smul.u32 1192, %s326_s23  ;;  %vm13771_vm4 = vcmask 261120   ;;  %vm13845_vm5 = vcmask 523520   ;;  %vm13864_vm6 = vcmask 785920   ;;  %vm13883_vm7 = vcmask 1048320   ;;  %s16535_s25 = sshll.u32 %s20838_s13, 4 }
  0x1a   : > { %17791 = vmatprep.subr.bf16.mxu0 %v20879_v7  ;;  %v3670_v13 = vrot.slane %v3668_v9, 1  ;;  %v5006_v23 = vand.u32 %v4800_v14, %v20869_v3  ;;  %vm20765_vm8 = vmmov 0   ;;  %vm15532_vm9 = vcmask 73728   ;;  %s24176_s17 = scalar_lea.hbm %s24227_s9, %s16535_s25 }
  0x1b   : > { %s20884_s16 = scalar_lea.vmem %s24218_s0, %s20497_s26  ;;  %17792 = vmatpush3.bf16.msra.mxu0 %v20879_v7 }
  0x1c   : > { %v2325_v10 = vld [vmem:[%s20884_s16 + $0x2] sm:$0xff]  ;;  %v2326_v11 = vld [vmem:[%s20884_s16 + $0xa] sm:$0xff]  ;;  %v2327_v12 = vld [vmem:[%s20884_s16 + $0x12] sm:$0xff]  ;;  %v3671_v20 = vor.u32 %v3670_v13, %v3666_v8 }
  0x1d   : > { %v2461_v15 = vpack.c.bf16 %v2326_v11, %v2325_v10  ;;  %v2328_v16 = vld [vmem:[%s20884_s16 + $0x1a] sm:$0xff]  ;;  %v2329_v17 = vld [vmem:[%s20884_s16 + $0x22] sm:$0xff]  ;;  %v2330_v18 = vld [vmem:[%s20884_s16 + $0x2a] sm:$0xff] }
  0x1e   : > { %v2462_v19 = vpack.c.bf16 %v2328_v16, %v2327_v12  ;;  %v2463_v21 = vpack.c.bf16 %v2330_v18, %v2329_v17  ;;  %v3877_v22 = vand.u32 %v3671_v20, %v20869_v3  ;;  %v2331_v24 = vld [vmem:[%s20884_s16 + $0x32] sm:$0xff]  ;;  %v2332_v25 = vld [vmem:[%s20884_s16 + $0x3a] sm:$0xff]  ;;  %v2333_v26 = vld [vmem:[%s20884_s16 + $0x42] sm:$0xff] }
  0x1f   : > { %17793 = vmatprep.mubr.msk.bf16.mxu0 %vm752_vm2, %v2461_v15  ;;  %v2334_v27 = vld [vmem:[%s20884_s16 + $0x4a] sm:$0xff]  ;;  %v2464_v28 = vpack.c.bf16 %v2332_v25, %v2331_v24  ;;  %v2335_v30 = vld [vmem:[%s20884_s16 + $0x52] sm:$0xff]  ;;  %v2336_v31 = vld [vmem:[%s20884_s16 + $0x5a] sm:$0xff] }
  0x20   : > { %17794 = vmatmul.mubr.msk.bf16.vlgmr.msra.gmra.mrb[0].mxu0 %vm752_vm2, %v2462_v19  ;;  %17929 = vmatprep.subr.bf16.mxu0 %v3877_v22  ;;  %v2465_v29 = vpack.c.bf16 %v2334_v27, %v2333_v26  ;;  %v2337_v32 = vld [vmem:[%s20884_s16 + $0x62] sm:$0xff]  ;;  %v2338_v33 = vld [vmem:[%s20884_s16 + $0x6a] sm:$0xff]  ;;  %v2466_v34 = vpack.c.bf16 %v2336_v31, %v2335_v30  ;;  %v2339_v36 = vld [vmem:[%s20884_s16 + $0x72] sm:$0xff] }
  0x21   : > { %17797 = vmatprep.mubr.msk.bf16.mxu0 %vm752_vm2, %v2463_v21  ;;  %17930 = vmatpush3.bf16.msra.mxu0 %v3877_v22  ;;  %v2467_v35 = vpack.c.bf16 %v2338_v33, %v2337_v32  ;;  %v2340_v37 = vld [vmem:[%s20884_s16 + $0x7a] sm:$0xff]  ;;  %v2341_v38 = vld [vmem:[%s20884_s16 + $0x82] sm:$0xff]  ;;  %v2342_v39 = vld [vmem:[%s20884_s16 + $0x8a] sm:$0xff] }
  0x22   : > { %18067 = vmatprep.subr.bf16.mxu0 %v5006_v23  ;;  %v2468_v40 = vpack.c.bf16 %v2340_v37, %v2339_v36  ;;  %v2469_v41 = vpack.c.bf16 %v2342_v39, %v2341_v38  ;;  %v2343_v42 = vld [vmem:[%s20884_s16 + $0x92] sm:$0xff]  ;;  %v2344_v43 = vld [vmem:[%s20884_s16 + $0x9a] sm:$0xff]  ;;  %v2345_v44 = vld [vmem:[%s20884_s16 + $0xa2] sm:$0xff] }
  0x23   : > { %v2346_v45 = vld [vmem:[%s20884_s16 + $0xaa] sm:$0xff]  ;;  %v2470_v46 = vpack.c.bf16 %v2344_v43, %v2343_v42  ;;  %v2347_v48 = vld [vmem:[%s20884_s16 + $0xb2] sm:$0xff]  ;;  %v2348_v49 = vld [vmem:[%s20884_s16 + $0xba] sm:$0xff] }
  0x24   : > { %v2471_v47 = vpack.c.bf16 %v2346_v45, %v2345_v44  ;;  %v2472_v50 = vpack.c.bf16 %v2348_v49, %v2347_v48  ;;  %v3477_v51 = vld [vmem:[%s20884_s16 + $0xc2] sm:$0xff]  ;;  %v3478_v52 = vld [vmem:[%s20884_s16 + $0xca] sm:$0xff]  ;;  %v3479_v54 = vld [vmem:[%s20884_s16 + $0xd2] sm:$0xff] }
  0x25   : > { %v3603_v53 = vpack.c.bf16 %v3478_v52, %v3477_v51  ;;  %v3480_v55 = vld [vmem:[%s20884_s16 + $0xda] sm:$0xff]  ;;  %v3481_v56 = vld [vmem:[%s20884_s16 + $0xe2] sm:$0xff]  ;;  %v3482_v57 = vld [vmem:[%s20884_s16 + $0xea] sm:$0xff] }
  0x26   : > { %v3604_v58 = vpack.c.bf16 %v3480_v55, %v3479_v54  ;;  %v3605_v59 = vpack.c.bf16 %v3482_v57, %v3481_v56  ;;  %v3483_v60 = vld [vmem:[%s20884_s16 + $0xf2] sm:$0xff]  ;;  %v3484_v61 = vld [vmem:[%s20884_s16 + $0xfa] sm:$0xff]  ;;  %v3485_v62 = vld [vmem:[%s20884_s16 + $0x102] sm:$0xff] }
  0x27   : > { %v3486_v63 = vld [vmem:[%s20884_s16 + $0x10a] sm:$0xff]  ;;  %v3606_v0 = vpack.c.bf16 %v3484_v61, %v3483_v60  ;;  %v3487_v2 = vld [vmem:[%s20884_s16 + $0x112] sm:$0xff]  ;;  %v3488_v4 = vld [vmem:[%s20884_s16 + $0x11a] sm:$0xff] }
  0x28   : > { %17798 = vmatmul.mubr.msk.bf16.gmra.mrb[4].mxu0 %vm752_vm2, %v2464_v28  ;;  %v3607_v1 = vpack.c.bf16 %v3486_v63, %v3485_v62  ;;  %v3489_v5 = vld [vmem:[%s20884_s16 + $0x122] sm:$0xff]  ;;  %v3490_v6 = vld [vmem:[%s20884_s16 + $0x12a] sm:$0xff]  ;;  %v3608_v8 = vpack.c.bf16 %v3488_v4, %v3487_v2  ;;  %v3491_v10 = vld [vmem:[%s20884_s16 + $0x132] sm:$0xff] }
  0x29   : > { %17801 = vmatprep.mubr.msk.bf16.mxu0 %vm752_vm2, %v2465_v29  ;;  %v3609_v9 = vpack.c.bf16 %v3490_v6, %v3489_v5  ;;  %v3492_v11 = vld [vmem:[%s20884_s16 + $0x13a] sm:$0xff]  ;;  %v3493_v12 = vld [vmem:[%s20884_s16 + $0x142] sm:$0xff]  ;;  %v3494_v13 = vld [vmem:[%s20884_s16 + $0x14a] sm:$0xff] }
  0x2a   : > { %v3610_v14 = vpack.c.bf16 %v3492_v11, %v3491_v10  ;;  %v3611_v15 = vpack.c.bf16 %v3494_v13, %v3493_v12  ;;  %v3495_v16 = vld [vmem:[%s20884_s16 + $0x152] sm:$0xff]  ;;  %v3496_v17 = vld [vmem:[%s20884_s16 + $0x15a] sm:$0xff]  ;;  %v3497_v18 = vld [vmem:[%s20884_s16 + $0x162] sm:$0xff] }
  0x2b   : > { %v3498_v19 = vld [vmem:[%s20884_s16 + $0x16a] sm:$0xff]  ;;  %v3612_v20 = vpack.c.bf16 %v3496_v17, %v3495_v16  ;;  %v3499_v22 = vld [vmem:[%s20884_s16 + $0x172] sm:$0xff]  ;;  %v3501_v24 = vld [vmem:[%s20884_s16 + $0x182] sm:$0xff] }
  0x2c   : > { %v3502_v25 = vld [vmem:[%s20884_s16 + $0x18a] sm:$0xff]  ;;  %v3505_v30 = vld [vmem:[%s20884_s16 + $0x1a2] sm:$0xff]  ;;  %v3519_v52 = vld [vmem:[%s20884_s16 + $0x212] sm:$0xff] }
  0x2d   : > { %v3615_v27 = vpack.c.bf16 %v3502_v25, %v3501_v24  ;;  %v3506_v31 = vld [vmem:[%s20884_s16 + $0x1aa] sm:$0xff]  ;;  %v3509_v36 = vld [vmem:[%s20884_s16 + $0x1c2] sm:$0xff]  ;;  %v3536_v16 = vld [vmem:[%s20884_s16 + $0x29a] sm:$0xff] }
  0x2e   : > { %v3617_v33 = vpack.c.bf16 %v3506_v31, %v3505_v30  ;;  %v3510_v37 = vld [vmem:[%s20884_s16 + $0x1ca] sm:$0xff]  ;;  %v3513_v42 = vld [vmem:[%s20884_s16 + $0x1e2] sm:$0xff] }
  0x2f   : > { %v3619_v39 = vpack.c.bf16 %v3510_v37, %v3509_v36  ;;  %v3514_v43 = vld [vmem:[%s20884_s16 + $0x1ea] sm:$0xff]  ;;  %v3517_v48 = vld [vmem:[%s20884_s16 + $0x202] sm:$0xff] }
  0x30   : > { %17802 = vmatmul.mubr.msk.bf16.gmra.mrb[8].mxu0 %vm752_vm2, %v2466_v34  ;;  %v3621_v45 = vpack.c.bf16 %v3514_v43, %v3513_v42  ;;  %v3518_v49 = vld [vmem:[%s20884_s16 + $0x20a] sm:$0xff]  ;;  %v3521_v54 = vld [vmem:[%s20884_s16 + $0x222] sm:$0xff] }
  0x31   : > { %17805 = vmatprep.mubr.msk.bf16.mxu0 %vm752_vm2, %v2467_v35  ;;  %v3623_v51 = vpack.c.bf16 %v3518_v49, %v3517_v48  ;;  %v3522_v55 = vld [vmem:[%s20884_s16 + $0x22a] sm:$0xff]  ;;  %v3525_v60 = vld [vmem:[%s20884_s16 + $0x242] sm:$0xff] }
  0x32   : > { %v3625_v57 = vpack.c.bf16 %v3522_v55, %v3521_v54  ;;  %v3526_v61 = vld [vmem:[%s20884_s16 + $0x24a] sm:$0xff]  ;;  %v3529_v2 = vld [vmem:[%s20884_s16 + $0x262] sm:$0xff] }
  0x33   : > { %v3627_v63 = vpack.c.bf16 %v3526_v61, %v3525_v60  ;;  %v3530_v4 = vld [vmem:[%s20884_s16 + $0x26a] sm:$0xff]  ;;  %v3533_v10 = vld [vmem:[%s20884_s16 + $0x282] sm:$0xff] }
  0x34   : > { %v3629_v6 = vpack.c.bf16 %v3530_v4, %v3529_v2  ;;  %v3534_v11 = vld [vmem:[%s20884_s16 + $0x28a] sm:$0xff]  ;;  %v3537_v17 = vld [vmem:[%s20884_s16 + $0x2a2] sm:$0xff] }
  0x35   : > { %v3631_v13 = vpack.c.bf16 %v3534_v11, %v3533_v10  ;;  %v3542_v30 = vld [vmem:[%s20884_s16 + $0x2ca] sm:$0xff] }
  0x36   : > { %v3546_v36 = vld [vmem:[%s20884_s16 + $0x2ea] sm:$0xff] }
  0x37   : > { %v3550_v42 = vld [vmem:[%s20884_s16 + $0x30a] sm:$0xff] }
  0x38   : > { %17806 = vmatmul.mubr.msk.bf16.gmra.mrb[12].mxu0 %vm752_vm2, %v2468_v40  ;;  %v3554_v48 = vld [vmem:[%s20884_s16 + $0x32a] sm:$0xff] }
  0x39   : > { %17809 = vmatprep.mubr.msk.bf16.mxu0 %vm752_vm2, %v2469_v41  ;;  %v3558_v54 = vld [vmem:[%s20884_s16 + $0x34a] sm:$0xff] }
  0x3a   : > { %v3562_v60 = vld [vmem:[%s20884_s16 + $0x36a] sm:$0xff] }
  0x3b   : > { %v3566_v2 = vld [vmem:[%s20884_s16 + $0x38a] sm:$0xff] }
  0x3c   : > { %v3570_v10 = vld [vmem:[%s20884_s16 + $0x3aa] sm:$0xff] }
  0x40   : > { %17810 = vmatmul.mubr.msk.bf16.gmra.mrb[16].mxu0 %vm752_vm2, %v2470_v46 }
  0x41   : > { %17813 = vmatprep.mubr.msk.bf16.mxu0 %vm752_vm2, %v2471_v47 }
  0x48   : > { %17814 = vmatmul.mubr.msk.bf16.gmra.mrb[20].mxu0 %vm752_vm2, %v2472_v50 }
  0x49   : > { %17931 = vmatprep.mubr.msk.bf16.mxu0 %vm752_vm2, %v2463_v21  ;;  %v3613_v21 = vpack.c.bf16 %v3498_v19, %v3497_v18  ;;  %v3538_v18 = vld [vmem:[%s20884_s16 + $0x2aa] sm:$0xff] }
  0x4a   : > { %v3633_v24 = vpack.c.bf16 %v3538_v18, %v3537_v17 }
  0x50   : > { %17932 = vmatmul.mubr.msk.bf16.vlgmr.msra.gmra.mrb[0].mxu0 %vm752_vm2, %v2464_v28  ;;  %v3503_v28 = vld [vmem:[%s20884_s16 + $0x192] sm:$0xff] }
  0x51   : > { %18068 = vmatpush3.bf16.msra.mxu0 %v5006_v23  ;;  %17935 = vmatprep.mubr.msk.bf16.mxu0 %vm752_vm2, %v2465_v29  ;;  %v3500_v23 = vld [vmem:[%s20884_s16 + $0x17a] sm:$0xff] }
  0x52   : > { %v3614_v26 = vpack.c.bf16 %v3500_v23, %v3499_v22  ;;  %v3504_v29 = vld [vmem:[%s20884_s16 + $0x19a] sm:$0xff] }
  0x53   : > { %v3616_v32 = vpack.c.bf16 %v3504_v29, %v3503_v28  ;;  %v3540_v28 = vld [vmem:[%s20884_s16 + $0x2ba] sm:$0xff]  ;;  %v3541_v29 = vld [vmem:[%s20884_s16 + $0x2c2] sm:$0xff] }
  0x58   : > { %17936 = vmatmul.mubr.msk.bf16.gmra.mrb[4].mxu0 %vm752_vm2, %v2466_v34  ;;  %v3507_v34 = vld [vmem:[%s20884_s16 + $0x1b2] sm:$0xff] }
  0x59   : > { %17939 = vmatprep.mubr.msk.bf16.mxu0 %vm752_vm2, %v2467_v35  ;;  %v3508_v35 = vld [vmem:[%s20884_s16 + $0x1ba] sm:$0xff] }
  0x5a   : > { %v3618_v38 = vpack.c.bf16 %v3508_v35, %v3507_v34  ;;  %v3544_v34 = vld [vmem:[%s20884_s16 + $0x2da] sm:$0xff]  ;;  %v3545_v35 = vld [vmem:[%s20884_s16 + $0x2e2] sm:$0xff] }
  0x60   : > { %17940 = vmatmul.mubr.msk.bf16.gmra.mrb[8].mxu0 %vm752_vm2, %v2468_v40  ;;  %v3511_v40 = vld [vmem:[%s20884_s16 + $0x1d2] sm:$0xff] }
  0x61   : > { %17943 = vmatprep.mubr.msk.bf16.mxu0 %vm752_vm2, %v2469_v41  ;;  %v3512_v41 = vld [vmem:[%s20884_s16 + $0x1da] sm:$0xff] }
  0x62   : > { %v3620_v44 = vpack.c.bf16 %v3512_v41, %v3511_v40  ;;  %v3548_v40 = vld [vmem:[%s20884_s16 + $0x2fa] sm:$0xff]  ;;  %v3549_v41 = vld [vmem:[%s20884_s16 + $0x302] sm:$0xff] }
  0x68   : > { %17944 = vmatmul.mubr.msk.bf16.gmra.mrb[12].mxu0 %vm752_vm2, %v2470_v46  ;;  %v3515_v46 = vld [vmem:[%s20884_s16 + $0x1f2] sm:$0xff] }
  0x69   : > { %17947 = vmatprep.mubr.msk.bf16.mxu0 %vm752_vm2, %v2471_v47  ;;  %v3516_v47 = vld [vmem:[%s20884_s16 + $0x1fa] sm:$0xff] }
  0x70   : > { %17948 = vmatmul.mubr.msk.bf16.gmra.mrb[16].mxu0 %vm752_vm2, %v2472_v50  ;;  %v3622_v50 = vpack.c.bf16 %v3516_v47, %v3515_v46  ;;  %v3552_v46 = vld [vmem:[%s20884_s16 + $0x31a] sm:$0xff]  ;;  %v3553_v47 = vld [vmem:[%s20884_s16 + $0x322] sm:$0xff] }
  0x71   : > { %17951 = vmatprep.mubr.msk.bf16.mxu0 %vm752_vm2, %v3603_v53  ;;  %v3520_v53 = vld [vmem:[%s20884_s16 + $0x21a] sm:$0xff] }
  0x72   : > { %v3624_v56 = vpack.c.bf16 %v3520_v53, %v3519_v52  ;;  %v3556_v52 = vld [vmem:[%s20884_s16 + $0x33a] sm:$0xff]  ;;  %v3557_v53 = vld [vmem:[%s20884_s16 + $0x342] sm:$0xff] }
  0x78   : > { %17952 = vmatmul.mubr.msk.bf16.gmra.mrb[20].mxu0 %vm752_vm2, %v3604_v58  ;;  %v3523_v58 = vld [vmem:[%s20884_s16 + $0x232] sm:$0xff] }
  0x79   : > { %17955 = vmatprep.mubr.msk.bf16.mxu0 %vm752_vm2, %v3605_v59  ;;  %v3524_v59 = vld [vmem:[%s20884_s16 + $0x23a] sm:$0xff] }
  0x7a   : > { %v3626_v62 = vpack.c.bf16 %v3524_v59, %v3523_v58  ;;  %v3560_v58 = vld [vmem:[%s20884_s16 + $0x35a] sm:$0xff]  ;;  %v3561_v59 = vld [vmem:[%s20884_s16 + $0x362] sm:$0xff] }
  0x80   : > { %17956 = vmatmul.mubr.msk.bf16.gmra.mrb[24].mxu0 %vm752_vm2, %v3606_v0  ;;  %v3527_v0 = vld [vmem:[%s20884_s16 + $0x252] sm:$0xff] }
  0x81   : > { %17959 = vmatprep.mubr.msk.bf16.mxu0 %vm752_vm2, %v3607_v1  ;;  %v3528_v1 = vld [vmem:[%s20884_s16 + $0x25a] sm:$0xff] }
  0x82   : > { %v3628_v5 = vpack.c.bf16 %v3528_v1, %v3527_v0  ;;  %v3564_v0 = vld [vmem:[%s20884_s16 + $0x37a] sm:$0xff]  ;;  %v3565_v1 = vld [vmem:[%s20884_s16 + $0x382] sm:$0xff] }
  0x88   : > { %17960 = vmatmul.mubr.msk.bf16.gmra.mrb[28].mxu0 %vm752_vm2, %v3608_v8  ;;  %v3531_v8 = vld [vmem:[%s20884_s16 + $0x272] sm:$0xff] }
  0x89   : > { %17963 = vmatprep.mubr.msk.bf16.mxu0 %vm752_vm2, %v3609_v9  ;;  %v3532_v9 = vld [vmem:[%s20884_s16 + $0x27a] sm:$0xff] }
  0x8a   : > { %v3630_v12 = vpack.c.bf16 %v3532_v9, %v3531_v8  ;;  %v3568_v8 = vld [vmem:[%s20884_s16 + $0x39a] sm:$0xff]  ;;  %v3569_v9 = vld [vmem:[%s20884_s16 + $0x3a2] sm:$0xff] }
  0x90   : > { %17964 = vmatmul.mubr.msk.bf16.gmra.mrb[32].mxu0 %vm752_vm2, %v3610_v14  ;;  %v20546_v14 = vld [vmem:[%s24219_s1 + $0x4] sm:$0x18]  }
  0x91   : > { %17967 = vmatprep.mubr.msk.bf16.mxu0 %vm752_vm2, %v3611_v15  ;;  %v3535_v15 = vld [vmem:[%s20884_s16 + $0x292] sm:$0xff]  ;;  %v5933_v19 = vshrl.u32 %v20546_v14, 16 }
  0x93   : > { %v5935_v22 = vrot.slane %v5933_v19, 3  ;;  %v20547_v19 = vld [vmem:[%s24219_s1] ss:$0 sps:$4 sm:$0x66]  }
  0x98   : > { %17968 = vmatmul.mubr.msk.bf16.gmra.mrb[36].mxu0 %vm752_vm2, %v3612_v20  ;;  %v5936_v20 = vshll.u32 %v20546_v14, 16  ;;  %v3572_v14 = vld [vmem:[%s20884_s16 + $0x3ba] sm:$0xff] }
  0x99   : > { %17971 = vmatprep.mubr.msk.bf16.mxu0 %vm752_vm2, %v3613_v21  ;;  %v3632_v21 = vpack.c.bf16 %v3536_v16, %v3535_v15  ;;  %v3573_v15 = vld [vmem:[%s20884_s16 + $0x3c2] sm:$0xff]  ;;  %v3574_v16 = vld [vmem:[%s20884_s16 + $0x3ca] sm:$0xff] }
  0x9a   : > { %v5938_v23 = vrot.slane %v5936_v20, 4  ;;  %v3651_v18 = vpack.c.bf16 %v3574_v16, %v3573_v15  ;;  %v3575_v20 = vld [vmem:[%s20884_s16 + $0x3d2] sm:$0xff] }
  0x9b   : > { %v4593_v15 = vld [vmem:[%s20884_s16 + $0x2b] sm:$0xff] }
  0x9c   : > { %v5939_v25 = vor.u32 %v5938_v23, %v5935_v22  ;;  %v745_v22 = vshrl.u32 %v20547_v19, 16  ;;  %v748_v23 = vshll.u32 %v20547_v19, 16  ;;  %v552_v19 = vld [vmem:[%s20884_s16 + $0x81] sm:$0xff] }
  0xa0   : > { %17972 = vmatmul.mubr.msk.bf16.gmra.mrb[40].mxu0 %vm752_vm2, %v3614_v26  ;;  %v21032_v26 = vand.u32 %v5939_v25, %v20869_v3  ;;  %v3578_v25 = vld [vmem:[%s20884_s16 + $0x3ea] sm:$0xff] }
  0xa1   : > { %17975 = vmatprep.mubr.msk.bf16.mxu0 %vm752_vm2, %v3615_v27  ;;  %v3539_v27 = vld [vmem:[%s20884_s16 + $0x2b2] sm:$0xff] }
  0xa2   : > { %18205 = vmatprep.subr.bf16.mxu0 %v21032_v26  ;;  %v3634_v31 = vpack.c.bf16 %v3540_v28, %v3539_v27  ;;  %v747_v27 = vrot.slane %v745_v22, 1  ;;  %v750_v28 = vrot.slane %v748_v23, 2  ;;  %v4594_v22 = vld [vmem:[%s20884_s16 + $0x33] sm:$0xff]  ;;  %v4595_v23 = vld [vmem:[%s20884_s16 + $0x3b] sm:$0xff] }
  0xa8   : > { %17976 = vmatmul.mubr.msk.bf16.gmra.mrb[44].mxu0 %vm752_vm2, %v3616_v32  ;;  %v3635_v32 = vpack.c.bf16 %v3542_v30, %v3541_v29 }
  0xa9   : > { %17979 = vmatprep.mubr.msk.bf16.mxu0 %vm752_vm2, %v3617_v33  ;;  %v3543_v33 = vld [vmem:[%s20884_s16 + $0x2d2] sm:$0xff] }
  0xaa   : > { %v3636_v37 = vpack.c.bf16 %v3544_v34, %v3543_v33  ;;  %v536_v33 = vld [vmem:[%s20884_s16 + $0x1] sm:$0xff]  ;;  %v537_v34 = vld [vmem:[%s20884_s16 + $0x9] sm:$0xff] }
  0xb0   : > { %17980 = vmatmul.mubr.msk.bf16.gmra.mrb[48].mxu0 %vm752_vm2, %v3618_v38  ;;  %v3637_v38 = vpack.c.bf16 %v3546_v36, %v3545_v35  ;;  %v538_v35 = vld [vmem:[%s20884_s16 + $0x11] sm:$0xff] }
  0xb1   : > { %17983 = vmatprep.mubr.msk.bf16.mxu0 %vm752_vm2, %v3619_v39  ;;  %v3547_v39 = vld [vmem:[%s20884_s16 + $0x2f2] sm:$0xff] }
  0xb2   : > { %v3638_v43 = vpack.c.bf16 %v3548_v40, %v3547_v39  ;;  %v3579_v36 = vld [vmem:[%s20884_s16 + $0x3f2] sm:$0xff]  ;;  %v3581_v40 = vld [vmem:[%s20884_s16 + $0x402] sm:$0xff] }
  0xb3   : > { %v539_v39 = vld [vmem:[%s20884_s16 + $0x19] sm:$0xff] }
  0xb8   : > { %17984 = vmatmul.mubr.msk.bf16.gmra.mrb[52].mxu0 %vm752_vm2, %v3620_v44  ;;  %v3639_v44 = vpack.c.bf16 %v3550_v42, %v3549_v41  ;;  %v3582_v41 = vld [vmem:[%s20884_s16 + $0x40a] sm:$0xff]  ;;  %v673_v42 = vpack.c.bf16 %v539_v39, %v538_v35  ;;  %v4598_v35 = vld [vmem:[%s20884_s16 + $0x53] sm:$0xff] }
  0xb9   : > { %17987 = vmatprep.mubr.msk.bf16.mxu0 %vm752_vm2, %v3621_v45  ;;  %v3551_v45 = vld [vmem:[%s20884_s16 + $0x312] sm:$0xff]  ;;  %v4600_v39 = vld [vmem:[%s20884_s16 + $0x63] sm:$0xff] }
  0xba   : > { %v3640_v49 = vpack.c.bf16 %v3552_v46, %v3551_v45  ;;  %v540_v45 = vld [vmem:[%s20884_s16 + $0x21] sm:$0xff]  ;;  %v541_v46 = vld [vmem:[%s20884_s16 + $0x29] sm:$0xff] }
  0xc0   : > { %17988 = vmatmul.mubr.msk.bf16.gmra.mrb[56].mxu0 %vm752_vm2, %v3622_v50  ;;  %v3641_v50 = vpack.c.bf16 %v3554_v48, %v3553_v47  ;;  %v542_v47 = vld [vmem:[%s20884_s16 + $0x31] sm:$0xff] }
  0xc1   : > { %17991 = vmatprep.mubr.msk.bf16.mxu0 %vm752_vm2, %v3623_v51  ;;  %v3555_v51 = vld [vmem:[%s20884_s16 + $0x332] sm:$0xff] }
  0xc2   : > { %v3642_v55 = vpack.c.bf16 %v3556_v52, %v3555_v51  ;;  %v3583_v48 = vld [vmem:[%s20884_s16 + $0x412] sm:$0xff]  ;;  %v3585_v52 = vld [vmem:[%s20884_s16 + $0x422] sm:$0xff] }
  0xc3   : > { %v543_v51 = vld [vmem:[%s20884_s16 + $0x39] sm:$0xff] }
  0xc8   : > { %17992 = vmatmul.mubr.msk.bf16.gmra.mrb[60].mxu0 %vm752_vm2, %v3624_v56  ;;  %v3643_v56 = vpack.c.bf16 %v3558_v54, %v3557_v53  ;;  %v3586_v53 = vld [vmem:[%s20884_s16 + $0x42a] sm:$0xff]  ;;  %v675_v54 = vpack.c.bf16 %v543_v51, %v542_v47  ;;  %v4603_v47 = vld [vmem:[%s20884_s16 + $0x7b] sm:$0xff] }
  0xc9   : > { %17995 = vmatprep.mubr.msk.bf16.mxu0 %vm752_vm2, %v3625_v57  ;;  %v3559_v57 = vld [vmem:[%s20884_s16 + $0x352] sm:$0xff] }
  0xca   : > { %v3644_v61 = vpack.c.bf16 %v3560_v58, %v3559_v57  ;;  %v544_v57 = vld [vmem:[%s20884_s16 + $0x41] sm:$0xff]  ;;  %v545_v58 = vld [vmem:[%s20884_s16 + $0x49] sm:$0xff] }
  0xcb   : > { %v4605_v51 = vld [vmem:[%s20884_s16 + $0x8b] sm:$0xff] }
  0xd0   : > { %17996 = vmatmul.mubr.msk.bf16.gmra.mrb[64].mxu0 %vm752_vm2, %v3626_v62  ;;  %v3645_v62 = vpack.c.bf16 %v3562_v60, %v3561_v59  ;;  %v546_v59 = vld [vmem:[%s20884_s16 + $0x51] sm:$0xff] }
  0xd1   : > { %17999 = vmatprep.mubr.msk.bf16.mxu0 %vm752_vm2, %v3627_v63  ;;  %v3563_v63 = vld [vmem:[%s20884_s16 + $0x372] sm:$0xff] }
  0xd2   : > { %v3646_v4 = vpack.c.bf16 %v3564_v0, %v3563_v63  ;;  %v3587_v60 = vld [vmem:[%s20884_s16 + $0x432] sm:$0xff]  ;;  %v3589_v0 = vld [vmem:[%s20884_s16 + $0x442] sm:$0xff] }
  0xd3   : > { %v547_v63 = vld [vmem:[%s20884_s16 + $0x59] sm:$0xff] }
  0xd8   : > { %18000 = vmatmul.mubr.msk.bf16.gmra.mrb[68].mxu0 %vm752_vm2, %v3628_v5  ;;  %v3647_v5 = vpack.c.bf16 %v3566_v2, %v3565_v1  ;;  %v3590_v1 = vld [vmem:[%s20884_s16 + $0x44a] sm:$0xff]  ;;  %v677_v2 = vpack.c.bf16 %v547_v63, %v546_v59  ;;  %v4607_v59 = vld [vmem:[%s20884_s16 + $0x9b] sm:$0xff] }
  0xd9   : > { %18003 = vmatprep.mubr.msk.bf16.mxu0 %vm752_vm2, %v3629_v6  ;;  %v3567_v6 = vld [vmem:[%s20884_s16 + $0x392] sm:$0xff] }
  0xda   : > { %v3648_v11 = vpack.c.bf16 %v3568_v8, %v3567_v6  ;;  %v548_v6 = vld [vmem:[%s20884_s16 + $0x61] sm:$0xff]  ;;  %v549_v8 = vld [vmem:[%s20884_s16 + $0x69] sm:$0xff] }
  0xdb   : > { %v4609_v63 = vld [vmem:[%s20884_s16 + $0xab] sm:$0xff] }
  0xe0   : > { %18004 = vmatmul.mubr.msk.bf16.gmra.mrb[72].mxu0 %vm752_vm2, %v3630_v12  ;;  %v3649_v12 = vpack.c.bf16 %v3570_v10, %v3569_v9  ;;  %v550_v9 = vld [vmem:[%s20884_s16 + $0x71] sm:$0xff] }
  0xe1   : > { %18007 = vmatprep.mubr.msk.bf16.mxu0 %vm752_vm2, %v3631_v13  ;;  %v3571_v13 = vld [vmem:[%s20884_s16 + $0x3b2] sm:$0xff] }
  0xe2   : > { %v3650_v17 = vpack.c.bf16 %v3572_v14, %v3571_v13  ;;  %v3591_v10 = vld [vmem:[%s20884_s16 + $0x452] sm:$0xff]  ;;  %v4592_v14 = vld [vmem:[%s20884_s16 + $0x23] sm:$0xff] }
  0xe3   : > { %v551_v13 = vld [vmem:[%s20884_s16 + $0x79] sm:$0xff] }
  0xe4   : > { %v679_v16 = vpack.c.bf16 %v551_v13, %v550_v9  ;;  %v4611_v9 = vld [vmem:[%s20884_s16 + $0xbb] sm:$0xff]  ;;  %v4613_v13 = vld [vmem:[%s20884_s16 + $0xcb] sm:$0xff] }
  0xe8   : > { %18008 = vmatmul.mubr.msk.bf16.gmra.mrb[76].mxu0 %vm752_vm2, %v3632_v21  ;;  %v3576_v21 = vld [vmem:[%s20884_s16 + $0x3da] sm:$0xff] }
  0xe9   : > { %18011 = vmatprep.mubr.msk.bf16.mxu0 %vm752_vm2, %v3633_v24  ;;  %v3577_v24 = vld [vmem:[%s20884_s16 + $0x3e2] sm:$0xff]  ;;  %v3652_v29 = vpack.c.bf16 %v3576_v21, %v3575_v20  ;;  %v554_v21 = vld [vmem:[%s20884_s16 + $0x91] sm:$0xff] }
  0xea   : > { %v3653_v30 = vpack.c.bf16 %v3578_v25, %v3577_v24  ;;  %v553_v20 = vld [vmem:[%s20884_s16 + $0x89] sm:$0xff]  ;;  %v555_v25 = vld [vmem:[%s20884_s16 + $0x99] sm:$0xff] }
  0xeb   : > { %v680_v24 = vpack.c.bf16 %v553_v20, %v552_v19  ;;  %v574_v19 = vld [vmem:[%s20884_s16 + $0x131] sm:$0xff] }
  0xec   : > { %v4614_v20 = vld [vmem:[%s20884_s16 + $0xd3] sm:$0xff] }
  0xf0   : > { %18012 = vmatmul.mubr.msk.bf16.gmra.mrb[80].mxu0 %vm752_vm2, %v3634_v31  ;;  %v751_v31 = vor.u32 %v750_v28, %v747_v27  ;;  %v4596_v27 = vld [vmem:[%s20884_s16 + $0x43] sm:$0xff]  ;;  %v4597_v28 = vld [vmem:[%s20884_s16 + $0x4b] sm:$0xff] }
  0xf1   : > { %18015 = vmatprep.mubr.msk.bf16.mxu0 %vm752_vm2, %v3635_v32 }
  0xf2   : > { %v962_v32 = vand.u32 %v20869_v3, %v751_v31  ;;  %v4730_v31 = vpack.c.bf16 %v4597_v28, %v4596_v27 }
  0xf4   : > { %17515 = vmatprep.subr.bf16.mxu1 %v962_v32 }
  0xf5   : > { %17516 = vmatpush3.bf16.msra.mxu1 %v962_v32  ;;  %v556_v32 = vld [vmem:[%s20884_s16 + $0xa1] sm:$0xff] }
  0xf8   : > { %18016 = vmatmul.mubr.msk.bf16.gmra.mrb[84].mxu0 %vm752_vm2, %v3636_v37  ;;  %v3580_v37 = vld [vmem:[%s20884_s16 + $0x3fa] sm:$0xff] }
  0xf9   : > { %18019 = vmatprep.mubr.msk.bf16.mxu0 %vm752_vm2, %v3637_v38  ;;  %v672_v38 = vpack.c.bf16 %v537_v34, %v536_v33  ;;  %v557_v33 = vld [vmem:[%s20884_s16 + $0xa9] sm:$0xff]  ;;  %v558_v34 = vld [vmem:[%s20884_s16 + $0xb1] sm:$0xff] }
  0xfb   : > { %17517 = vmatprep.mubr.msk.bf16.mxu1 %vm752_vm2, %v672_v38  ;;  %v559_v38 = vld [vmem:[%s20884_s16 + $0xb9] sm:$0xff] }
  0xfc   : > { %17518 = vmatmul.mubr.msk.bf16.vlgmr.msra.gmra.mrb[0].mxu1 %vm752_vm2, %v673_v42 }
 0x100   : > { %18020 = vmatmul.mubr.msk.bf16.gmra.mrb[88].mxu0 %vm752_vm2, %v3638_v43  ;;  %v3654_v43 = vpack.c.bf16 %v3580_v37, %v3579_v36  ;;  %v4599_v36 = vld [vmem:[%s20884_s16 + $0x5b] sm:$0xff]  ;;  %v682_v37 = vpack.c.bf16 %v557_v33, %v556_v32  ;;  %v578_v32 = vld [vmem:[%s20884_s16 + $0x151] sm:$0xff] }
 0x101   : > { %18023 = vmatprep.mubr.msk.bf16.mxu0 %vm752_vm2, %v3639_v44  ;;  %v3655_v44 = vpack.c.bf16 %v3582_v41, %v3581_v40  ;;  %v4601_v40 = vld [vmem:[%s20884_s16 + $0x6b] sm:$0xff]  ;;  %v683_v41 = vpack.c.bf16 %v559_v38, %v558_v34  ;;  %v4731_v42 = vpack.c.bf16 %v4599_v36, %v4598_v35  ;;  %v4618_v33 = vld [vmem:[%s20884_s16 + $0xf3] sm:$0xff]  ;;  %v4619_v34 = vld [vmem:[%s20884_s16 + $0xfb] sm:$0xff] }
 0x102   : > { %v579_v36 = vld [vmem:[%s20884_s16 + $0x159] sm:$0xff]  ;;  %v4621_v38 = vld [vmem:[%s20884_s16 + $0x10b] sm:$0xff] }
 0x108   : > { %18024 = vmatmul.mubr.msk.bf16.gmra.mrb[92].mxu0 %vm752_vm2, %v3640_v49  ;;  %v3584_v49 = vld [vmem:[%s20884_s16 + $0x41a] sm:$0xff] }
 0x109   : > { %18027 = vmatprep.mubr.msk.bf16.mxu0 %vm752_vm2, %v3641_v50  ;;  %v674_v50 = vpack.c.bf16 %v541_v46, %v540_v45  ;;  %v562_v45 = vld [vmem:[%s20884_s16 + $0xd1] sm:$0xff] }
 0x10a   : > { %v4602_v46 = vld [vmem:[%s20884_s16 + $0x73] sm:$0xff] }
 0x10b   : > { %17521 = vmatprep.mubr.msk.bf16.mxu1 %vm752_vm2, %v674_v50  ;;  %v4604_v50 = vld [vmem:[%s20884_s16 + $0x83] sm:$0xff] }
 0x10c   : > { %17522 = vmatmul.mubr.msk.bf16.gmra.mrb[4].mxu1 %vm752_vm2, %v675_v54  ;;  %v4734_v54 = vpack.c.bf16 %v4605_v51, %v4604_v50 }
 0x110   : > { %18028 = vmatmul.mubr.msk.bf16.gmra.mrb[96].mxu0 %vm752_vm2, %v3642_v55  ;;  %v3656_v55 = vpack.c.bf16 %v3584_v49, %v3583_v48  ;;  %v563_v49 = vld [vmem:[%s20884_s16 + $0xd9] sm:$0xff] }
 0x111   : > { %18031 = vmatprep.mubr.msk.bf16.mxu0 %vm752_vm2, %v3643_v56  ;;  %v3657_v56 = vpack.c.bf16 %v3586_v53, %v3585_v52  ;;  %v685_v52 = vpack.c.bf16 %v563_v49, %v562_v45  ;;  %v4733_v53 = vpack.c.bf16 %v4603_v47, %v4602_v46  ;;  %v4623_v45 = vld [vmem:[%s20884_s16 + $0x11b] sm:$0xff]  ;;  %v4625_v49 = vld [vmem:[%s20884_s16 + $0x12b] sm:$0xff] }
 0x112   : > { %v583_v47 = vld [vmem:[%s20884_s16 + $0x179] sm:$0xff] }
 0x118   : > { %18032 = vmatmul.mubr.msk.bf16.gmra.mrb[100].mxu0 %vm752_vm2, %v3644_v61  ;;  %v3588_v61 = vld [vmem:[%s20884_s16 + $0x43a] sm:$0xff] }
 0x119   : > { %18035 = vmatprep.mubr.msk.bf16.mxu0 %vm752_vm2, %v3645_v62  ;;  %v676_v62 = vpack.c.bf16 %v545_v58, %v544_v57  ;;  %v566_v57 = vld [vmem:[%s20884_s16 + $0xf1] sm:$0xff] }
 0x11a   : > { %v4606_v58 = vld [vmem:[%s20884_s16 + $0x93] sm:$0xff] }
 0x11b   : > { %17525 = vmatprep.mubr.msk.bf16.mxu1 %vm752_vm2, %v676_v62  ;;  %v4608_v62 = vld [vmem:[%s20884_s16 + $0xa3] sm:$0xff] }
 0x11c   : > { %17526 = vmatmul.mubr.msk.bf16.gmra.mrb[8].mxu1 %vm752_vm2, %v677_v2  ;;  %v4736_v2 = vpack.c.bf16 %v4609_v63, %v4608_v62 }
 0x120   : > { %18036 = vmatmul.mubr.msk.bf16.gmra.mrb[104].mxu0 %vm752_vm2, %v3646_v4  ;;  %v3658_v4 = vpack.c.bf16 %v3588_v61, %v3587_v60  ;;  %v567_v61 = vld [vmem:[%s20884_s16 + $0xf9] sm:$0xff] }
 0x121   : > { %18039 = vmatprep.mubr.msk.bf16.mxu0 %vm752_vm2, %v3647_v5  ;;  %v3659_v5 = vpack.c.bf16 %v3590_v1, %v3589_v0  ;;  %v687_v0 = vpack.c.bf16 %v567_v61, %v566_v57  ;;  %v4735_v1 = vpack.c.bf16 %v4607_v59, %v4606_v58  ;;  %v4627_v57 = vld [vmem:[%s20884_s16 + $0x13b] sm:$0xff]  ;;  %v4629_v61 = vld [vmem:[%s20884_s16 + $0x14b] sm:$0xff] }
 0x122   : > { %v587_v59 = vld [vmem:[%s20884_s16 + $0x199] sm:$0xff] }
 0x128   : > { %18040 = vmatmul.mubr.msk.bf16.gmra.mrb[108].mxu0 %vm752_vm2, %v3648_v11  ;;  %v3592_v11 = vld [vmem:[%s20884_s16 + $0x45a] sm:$0xff] }
 0x129   : > { %18043 = vmatprep.mubr.msk.bf16.mxu0 %vm752_vm2, %v3649_v12  ;;  %v678_v12 = vpack.c.bf16 %v549_v8, %v548_v6  ;;  %v570_v6 = vld [vmem:[%s20884_s16 + $0x111] sm:$0xff] }
 0x12a   : > { %v4610_v8 = vld [vmem:[%s20884_s16 + $0xb3] sm:$0xff] }
 0x12b   : > { %17529 = vmatprep.mubr.msk.bf16.mxu1 %vm752_vm2, %v678_v12  ;;  %v4612_v12 = vld [vmem:[%s20884_s16 + $0xc3] sm:$0xff] }
 0x12c   : > { %17530 = vmatmul.mubr.msk.bf16.gmra.mrb[12].mxu1 %vm752_vm2, %v679_v16  ;;  %v4738_v16 = vpack.c.bf16 %v4613_v13, %v4612_v12 }
 0x12d   : > { %17533 = vmatprep.mubr.msk.bf16.mxu1 %vm752_vm2, %v680_v24  ;;  %v4616_v24 = vld [vmem:[%s20884_s16 + $0xe3] sm:$0xff] }
 0x130   : > { %18044 = vmatmul.mubr.msk.bf16.gmra.mrb[112].mxu0 %vm752_vm2, %v3650_v17  ;;  %v3660_v17 = vpack.c.bf16 %v3592_v11, %v3591_v10  ;;  %v571_v11 = vld [vmem:[%s20884_s16 + $0x119] sm:$0xff] }
 0x131   : > { %18047 = vmatprep.mubr.msk.bf16.mxu0 %vm752_vm2, %v3651_v18  ;;  %v4728_v18 = vpack.c.bf16 %v4593_v15, %v4592_v14  ;;  %v689_v14 = vpack.c.bf16 %v571_v11, %v570_v6  ;;  %v4737_v15 = vpack.c.bf16 %v4611_v9, %v4610_v8  ;;  %v4631_v6 = vld [vmem:[%s20884_s16 + $0x15b] sm:$0xff]  ;;  %v4633_v11 = vld [vmem:[%s20884_s16 + $0x16b] sm:$0xff] }
 0x132   : > { %v591_v9 = vld [vmem:[%s20884_s16 + $0x1b9] sm:$0xff] }
 0x138   : > { %18048 = vmatmul.mubr.msk.bf16.gmra.mrb[116].mxu0 %vm752_vm2, %v3652_v29  ;;  %v681_v29 = vpack.c.bf16 %v555_v25, %v554_v21  ;;  %v4615_v21 = vld [vmem:[%s20884_s16 + $0xdb] sm:$0xff]  ;;  %v4617_v25 = vld [vmem:[%s20884_s16 + $0xeb] sm:$0xff] }
 0x139   : > { %18051 = vmatprep.mubr.msk.bf16.mxu0 %vm752_vm2, %v3653_v30  ;;  %v4729_v30 = vpack.c.bf16 %v4595_v23, %v4594_v22  ;;  %v575_v23 = vld [vmem:[%s20884_s16 + $0x139] sm:$0xff]  ;;  %v4739_v28 = vpack.c.bf16 %v4615_v21, %v4614_v20 }
 0x13a   : > { %17534 = vmatmul.mubr.msk.bf16.gmra.mrb[16].mxu1 %vm752_vm2, %v681_v29  ;;  %v691_v27 = vpack.c.bf16 %v575_v23, %v574_v19  ;;  %v4740_v29 = vpack.c.bf16 %v4617_v25, %v4616_v24  ;;  %v4635_v19 = vld [vmem:[%s20884_s16 + $0x17b] sm:$0xff]  ;;  %v4637_v23 = vld [vmem:[%s20884_s16 + $0x18b] sm:$0xff] }
 0x13b   : > { %17537 = vmatprep.mubr.msk.bf16.mxu1 %vm752_vm2, %v682_v37  ;;  %v4620_v37 = vld [vmem:[%s20884_s16 + $0x103] sm:$0xff]  ;;  %v595_v21 = vld [vmem:[%s20884_s16 + $0x1d9] sm:$0xff] }
 0x140   : > { %18052 = vmatmul.mubr.msk.bf16.gmra.mrb[120].mxu0 %vm752_vm2, %v3654_v43  ;;  %v4732_v43 = vpack.c.bf16 %v4601_v40, %v4600_v39  ;;  %v693_v39 = vpack.c.bf16 %v579_v36, %v578_v32  ;;  %v4741_v40 = vpack.c.bf16 %v4619_v34, %v4618_v33  ;;  %v4639_v32 = vld [vmem:[%s20884_s16 + $0x19b] sm:$0xff]  ;;  %v4641_v36 = vld [vmem:[%s20884_s16 + $0x1ab] sm:$0xff] }
 0x141   : > { %18055 = vmatprep.mubr.msk.bf16.mxu0 %vm752_vm2, %v3655_v44  ;;  %v561_v44 = vld [vmem:[%s20884_s16 + $0xc9] sm:$0xff]  ;;  %v599_v34 = vld [vmem:[%s20884_s16 + $0x1f9] sm:$0xff] }
 0x142   : > { %17538 = vmatmul.mubr.msk.bf16.gmra.mrb[20].mxu1 %vm752_vm2, %v683_v41  ;;  %v4742_v41 = vpack.c.bf16 %v4621_v38, %v4620_v37 }
 0x148   : > { %18056 = vmatmul.mubr.msk.bf16.gmra.mrb[124].mxu0 %vm752_vm2, %v3656_v55  ;;  %v564_v55 = vld [vmem:[%s20884_s16 + $0xe1] sm:$0xff] }
 0x149   : > { %18059 = vmatprep.mubr.msk.bf16.mxu0 %vm752_vm2, %v3657_v56  ;;  %v565_v56 = vld [vmem:[%s20884_s16 + $0xe9] sm:$0xff] }
 0x14a   : > { %v686_v60 = vpack.c.bf16 %v565_v56, %v564_v55  ;;  %v586_v55 = vld [vmem:[%s20884_s16 + $0x191] sm:$0xff] }
 0x14b   : > { %v4626_v56 = vld [vmem:[%s20884_s16 + $0x133] sm:$0xff]  ;;  %v697_v62 = vpack.c.bf16 %v587_v59, %v586_v55  ;;  %v4647_v55 = vld [vmem:[%s20884_s16 + $0x1db] sm:$0xff]  ;;  %v4649_v59 = vld [vmem:[%s20884_s16 + $0x1eb] sm:$0xff] }
 0x14c   : > { %v4745_v63 = vpack.c.bf16 %v4627_v57, %v4626_v56  ;;  %v607_v57 = vld [vmem:[%s20884_s16 + $0x239] sm:$0xff] }
 0x150   : > { %18060 = vmatmul.mubr.msk.bf16.gmra.mrb[128].mxu0 %vm752_vm2, %v3658_v4  ;;  %v568_v4 = vld [vmem:[%s20884_s16 + $0x101] sm:$0xff] }
 0x151   : > { %18063 = vmatprep.mubr.msk.bf16.mxu0 %vm752_vm2, %v3659_v5  ;;  %v569_v5 = vld [vmem:[%s20884_s16 + $0x109] sm:$0xff] }
 0x152   : > { %v688_v10 = vpack.c.bf16 %v569_v5, %v568_v4  ;;  %v590_v4 = vld [vmem:[%s20884_s16 + $0x1b1] sm:$0xff] }
 0x153   : > { %v4630_v5 = vld [vmem:[%s20884_s16 + $0x153] sm:$0xff]  ;;  %v699_v12 = vpack.c.bf16 %v591_v9, %v590_v4  ;;  %v4651_v4 = vld [vmem:[%s20884_s16 + $0x1fb] sm:$0xff]  ;;  %v4653_v9 = vld [vmem:[%s20884_s16 + $0x20b] sm:$0xff] }
 0x154   : > { %v4747_v13 = vpack.c.bf16 %v4631_v6, %v4630_v5  ;;  %v611_v6 = vld [vmem:[%s20884_s16 + $0x259] sm:$0xff] }
 0x158   : > { %18064 = vmatmul.mubr.msk.bf16.gmra.mrb[132].mxu0 %vm752_vm2, %v3660_v17  ;;  %v572_v17 = vld [vmem:[%s20884_s16 + $0x121] sm:$0xff] }
 0x159   : > { %18069 = vmatprep.mubr.msk.bf16.mxu0 %vm752_vm2, %v4728_v18  ;;  %v573_v18 = vld [vmem:[%s20884_s16 + $0x129] sm:$0xff] }
 0x15a   : > { %v690_v22 = vpack.c.bf16 %v573_v18, %v572_v17  ;;  %v594_v17 = vld [vmem:[%s20884_s16 + $0x1d1] sm:$0xff] }
 0x15b   : > { %v4634_v18 = vld [vmem:[%s20884_s16 + $0x173] sm:$0xff]  ;;  %v701_v24 = vpack.c.bf16 %v595_v21, %v594_v17  ;;  %v4655_v17 = vld [vmem:[%s20884_s16 + $0x21b] sm:$0xff]  ;;  %v4657_v21 = vld [vmem:[%s20884_s16 + $0x22b] sm:$0xff] }
 0x15c   : > { %v4749_v25 = vpack.c.bf16 %v4635_v19, %v4634_v18  ;;  %v615_v19 = vld [vmem:[%s20884_s16 + $0x279] sm:$0xff] }
 0x160   : > { %18070 = vmatmul.mubr.msk.bf16.vlgmr.msra.gmra.mrb[0].mxu0 %vm752_vm2, %v4729_v30  ;;  %v576_v30 = vld [vmem:[%s20884_s16 + $0x141] sm:$0xff] }
 0x161   : > { %18206 = vmatpush3.bf16.msra.mxu0 %v21032_v26  ;;  %18073 = vmatprep.mubr.msk.bf16.mxu0 %vm752_vm2, %v4730_v31  ;;  %v560_v26 = vld [vmem:[%s20884_s16 + $0xc1] sm:$0xff]  ;;  %v577_v31 = vld [vmem:[%s20884_s16 + $0x149] sm:$0xff] }
 0x162   : > { %v684_v48 = vpack.c.bf16 %v561_v44, %v560_v26  ;;  %v692_v35 = vpack.c.bf16 %v577_v31, %v576_v30  ;;  %v582_v26 = vld [vmem:[%s20884_s16 + $0x171] sm:$0xff] }
 0x163   : > { %v4622_v44 = vld [vmem:[%s20884_s16 + $0x113] sm:$0xff]  ;;  %v695_v50 = vpack.c.bf16 %v583_v47, %v582_v26  ;;  %v4643_v26 = vld [vmem:[%s20884_s16 + $0x1bb] sm:$0xff]  ;;  %v4645_v47 = vld [vmem:[%s20884_s16 + $0x1cb] sm:$0xff] }
 0x164   : > { %17541 = vmatprep.mubr.msk.bf16.mxu1 %vm752_vm2, %v684_v48  ;;  %v4624_v48 = vld [vmem:[%s20884_s16 + $0x123] sm:$0xff]  ;;  %v4743_v51 = vpack.c.bf16 %v4623_v45, %v4622_v44  ;;  %v598_v30 = vld [vmem:[%s20884_s16 + $0x1f1] sm:$0xff]  ;;  %v603_v45 = vld [vmem:[%s20884_s16 + $0x219] sm:$0xff] }
 0x165   : > { %17542 = vmatmul.mubr.msk.bf16.gmra.mrb[24].mxu1 %vm752_vm2, %v685_v52  ;;  %v4744_v52 = vpack.c.bf16 %v4625_v49, %v4624_v48  ;;  %v4638_v31 = vld [vmem:[%s20884_s16 + $0x193] sm:$0xff]  ;;  %v703_v37 = vpack.c.bf16 %v599_v34, %v598_v30  ;;  %v4659_v30 = vld [vmem:[%s20884_s16 + $0x23b] sm:$0xff]  ;;  %v4661_v34 = vld [vmem:[%s20884_s16 + $0x24b] sm:$0xff] }
 0x166   : > { %17545 = vmatprep.mubr.msk.bf16.mxu1 %vm752_vm2, %v686_v60  ;;  %v4628_v60 = vld [vmem:[%s20884_s16 + $0x143] sm:$0xff]  ;;  %v4751_v38 = vpack.c.bf16 %v4639_v32, %v4638_v31  ;;  %v619_v32 = vld [vmem:[%s20884_s16 + $0x299] sm:$0xff] }
 0x168   : > { %18074 = vmatmul.mubr.msk.bf16.gmra.mrb[4].mxu0 %vm752_vm2, %v4731_v42  ;;  %v580_v42 = vld [vmem:[%s20884_s16 + $0x161] sm:$0xff] }
 0x169   : > { %18077 = vmatprep.mubr.msk.bf16.mxu0 %vm752_vm2, %v4732_v43  ;;  %v581_v43 = vld [vmem:[%s20884_s16 + $0x169] sm:$0xff] }
 0x16a   : > { %v694_v46 = vpack.c.bf16 %v581_v43, %v580_v42  ;;  %v602_v42 = vld [vmem:[%s20884_s16 + $0x211] sm:$0xff] }
 0x16b   : > { %v4642_v43 = vld [vmem:[%s20884_s16 + $0x1b3] sm:$0xff]  ;;  %v705_v48 = vpack.c.bf16 %v603_v45, %v602_v42  ;;  %v4663_v42 = vld [vmem:[%s20884_s16 + $0x25b] sm:$0xff]  ;;  %v4665_v45 = vld [vmem:[%s20884_s16 + $0x26b] sm:$0xff] }
 0x16c   : > { %v4753_v49 = vpack.c.bf16 %v4643_v26, %v4642_v43  ;;  %v623_v26 = vld [vmem:[%s20884_s16 + $0x2b9] sm:$0xff] }
 0x16d   : > { %17546 = vmatmul.mubr.msk.bf16.gmra.mrb[28].mxu1 %vm752_vm2, %v687_v0  ;;  %v4746_v0 = vpack.c.bf16 %v4629_v61, %v4628_v60 }
 0x16e   : > { %17549 = vmatprep.mubr.msk.bf16.mxu1 %vm752_vm2, %v688_v10  ;;  %v4632_v10 = vld [vmem:[%s20884_s16 + $0x163] sm:$0xff] }
 0x170   : > { %18078 = vmatmul.mubr.msk.bf16.gmra.mrb[8].mxu0 %vm752_vm2, %v4733_v53  ;;  %v584_v53 = vld [vmem:[%s20884_s16 + $0x181] sm:$0xff] }
 0x171   : > { %18081 = vmatprep.mubr.msk.bf16.mxu0 %vm752_vm2, %v4734_v54  ;;  %v585_v54 = vld [vmem:[%s20884_s16 + $0x189] sm:$0xff] }
 0x172   : > { %v696_v58 = vpack.c.bf16 %v585_v54, %v584_v53  ;;  %v606_v53 = vld [vmem:[%s20884_s16 + $0x231] sm:$0xff] }
 0x173   : > { %v4646_v54 = vld [vmem:[%s20884_s16 + $0x1d3] sm:$0xff]  ;;  %v707_v60 = vpack.c.bf16 %v607_v57, %v606_v53  ;;  %v4667_v53 = vld [vmem:[%s20884_s16 + $0x27b] sm:$0xff]  ;;  %v4669_v57 = vld [vmem:[%s20884_s16 + $0x28b] sm:$0xff] }
 0x174   : > { %v4755_v61 = vpack.c.bf16 %v4647_v55, %v4646_v54  ;;  %v627_v55 = vld [vmem:[%s20884_s16 + $0x2d9] sm:$0xff] }
 0x175   : > { %17550 = vmatmul.mubr.msk.bf16.gmra.mrb[32].mxu1 %vm752_vm2, %v689_v14  ;;  %v4748_v14 = vpack.c.bf16 %v4633_v11, %v4632_v10 }
 0x176   : > { %17553 = vmatprep.mubr.msk.bf16.mxu1 %vm752_vm2, %v690_v22  ;;  %v4636_v22 = vld [vmem:[%s20884_s16 + $0x183] sm:$0xff] }
 0x178   : > { %18082 = vmatmul.mubr.msk.bf16.gmra.mrb[12].mxu0 %vm752_vm2, %v4735_v1  ;;  %v588_v1 = vld [vmem:[%s20884_s16 + $0x1a1] sm:$0xff] }
 0x179   : > { %18085 = vmatprep.mubr.msk.bf16.mxu0 %vm752_vm2, %v4736_v2  ;;  %v589_v2 = vld [vmem:[%s20884_s16 + $0x1a9] sm:$0xff] }
 0x17a   : > { %v698_v8 = vpack.c.bf16 %v589_v2, %v588_v1  ;;  %v610_v1 = vld [vmem:[%s20884_s16 + $0x251] sm:$0xff] }
 0x17b   : > { %v4650_v2 = vld [vmem:[%s20884_s16 + $0x1f3] sm:$0xff]  ;;  %v709_v10 = vpack.c.bf16 %v611_v6, %v610_v1  ;;  %v629_v1 = vld [vmem:[%s20884_s16 + $0x2e9] sm:$0xff] }
 0x17c   : > { %v4757_v11 = vpack.c.bf16 %v4651_v4, %v4650_v2  ;;  %v630_v2 = vld [vmem:[%s20884_s16 + $0x2f1] sm:$0xff]  ;;  %v4672_v4 = vld [vmem:[%s20884_s16 + $0x2a3] sm:$0xff] }
 0x17d   : > { %17554 = vmatmul.mubr.msk.bf16.gmra.mrb[36].mxu1 %vm752_vm2, %v691_v27  ;;  %v4750_v27 = vpack.c.bf16 %v4637_v23, %v4636_v22 }
 0x17e   : > { %17557 = vmatprep.mubr.msk.bf16.mxu1 %vm752_vm2, %v692_v35  ;;  %v4640_v35 = vld [vmem:[%s20884_s16 + $0x1a3] sm:$0xff] }
 0x180   : > { %18086 = vmatmul.mubr.msk.bf16.gmra.mrb[16].mxu0 %vm752_vm2, %v4737_v15  ;;  %v592_v15 = vld [vmem:[%s20884_s16 + $0x1c1] sm:$0xff] }
 0x181   : > { %18089 = vmatprep.mubr.msk.bf16.mxu0 %vm752_vm2, %v4738_v16  ;;  %v593_v16 = vld [vmem:[%s20884_s16 + $0x1c9] sm:$0xff] }
 0x182   : > { %v700_v20 = vpack.c.bf16 %v593_v16, %v592_v15  ;;  %v614_v15 = vld [vmem:[%s20884_s16 + $0x271] sm:$0xff] }
 0x183   : > { %v4654_v16 = vld [vmem:[%s20884_s16 + $0x213] sm:$0xff]  ;;  %v711_v22 = vpack.c.bf16 %v615_v19, %v614_v15  ;;  %v633_v15 = vld [vmem:[%s20884_s16 + $0x309] sm:$0xff] }
 0x184   : > { %v4759_v23 = vpack.c.bf16 %v4655_v17, %v4654_v16  ;;  %v634_v16 = vld [vmem:[%s20884_s16 + $0x311] sm:$0xff] }
 0x185   : > { %17558 = vmatmul.mubr.msk.bf16.gmra.mrb[40].mxu1 %vm752_vm2, %v693_v39  ;;  %v4752_v39 = vpack.c.bf16 %v4641_v36, %v4640_v35  ;;  %v4674_v17 = vld [vmem:[%s20884_s16 + $0x2b3] sm:$0xff] }
 0x186   : > { %17561 = vmatprep.mubr.msk.bf16.mxu1 %vm752_vm2, %v694_v46  ;;  %v4644_v46 = vld [vmem:[%s20884_s16 + $0x1c3] sm:$0xff] }
 0x188   : > { %18090 = vmatmul.mubr.msk.bf16.gmra.mrb[20].mxu0 %vm752_vm2, %v4739_v28  ;;  %v596_v28 = vld [vmem:[%s20884_s16 + $0x1e1] sm:$0xff] }
 0x189   : > { %18093 = vmatprep.mubr.msk.bf16.mxu0 %vm752_vm2, %v4740_v29  ;;  %v597_v29 = vld [vmem:[%s20884_s16 + $0x1e9] sm:$0xff] }
 0x18a   : > { %v702_v33 = vpack.c.bf16 %v597_v29, %v596_v28  ;;  %v618_v28 = vld [vmem:[%s20884_s16 + $0x291] sm:$0xff] }
 0x18b   : > { %v4658_v29 = vld [vmem:[%s20884_s16 + $0x233] sm:$0xff]  ;;  %v713_v35 = vpack.c.bf16 %v619_v32, %v618_v28  ;;  %v637_v28 = vld [vmem:[%s20884_s16 + $0x329] sm:$0xff] }
 0x18c   : > { %v4761_v36 = vpack.c.bf16 %v4659_v30, %v4658_v29  ;;  %v638_v29 = vld [vmem:[%s20884_s16 + $0x331] sm:$0xff] }
 0x18d   : > { %17562 = vmatmul.mubr.msk.bf16.gmra.mrb[44].mxu1 %vm752_vm2, %v695_v50  ;;  %v4754_v50 = vpack.c.bf16 %v4645_v47, %v4644_v46  ;;  %v4678_v30 = vld [vmem:[%s20884_s16 + $0x2d3] sm:$0xff] }
 0x18e   : > { %17565 = vmatprep.mubr.msk.bf16.mxu1 %vm752_vm2, %v696_v58  ;;  %v4648_v58 = vld [vmem:[%s20884_s16 + $0x1e3] sm:$0xff] }
 0x190   : > { %18094 = vmatmul.mubr.msk.bf16.gmra.mrb[24].mxu0 %vm752_vm2, %v4741_v40  ;;  %v600_v40 = vld [vmem:[%s20884_s16 + $0x201] sm:$0xff] }
 0x191   : > { %18097 = vmatprep.mubr.msk.bf16.mxu0 %vm752_vm2, %v4742_v41  ;;  %v601_v41 = vld [vmem:[%s20884_s16 + $0x209] sm:$0xff] }
 0x192   : > { %v704_v44 = vpack.c.bf16 %v601_v41, %v600_v40  ;;  %v622_v40 = vld [vmem:[%s20884_s16 + $0x2b1] sm:$0xff] }
 0x193   : > { %v4662_v41 = vld [vmem:[%s20884_s16 + $0x253] sm:$0xff]  ;;  %v715_v46 = vpack.c.bf16 %v623_v26, %v622_v40  ;;  %v641_v40 = vld [vmem:[%s20884_s16 + $0x349] sm:$0xff] }
 0x194   : > { %v4763_v47 = vpack.c.bf16 %v4663_v42, %v4662_v41  ;;  %v642_v41 = vld [vmem:[%s20884_s16 + $0x351] sm:$0xff] }
 0x195   : > { %17566 = vmatmul.mubr.msk.bf16.gmra.mrb[48].mxu1 %vm752_vm2, %v697_v62  ;;  %v4756_v62 = vpack.c.bf16 %v4649_v59, %v4648_v58  ;;  %v4682_v42 = vld [vmem:[%s20884_s16 + $0x2f3] sm:$0xff] }
 0x196   : > { %17569 = vmatprep.mubr.msk.bf16.mxu1 %vm752_vm2, %v698_v8  ;;  %v4652_v8 = vld [vmem:[%s20884_s16 + $0x203] sm:$0xff] }
 0x198   : > { %18098 = vmatmul.mubr.msk.bf16.gmra.mrb[28].mxu0 %vm752_vm2, %v4743_v51  ;;  %v604_v51 = vld [vmem:[%s20884_s16 + $0x221] sm:$0xff] }
 0x199   : > { %18101 = vmatprep.mubr.msk.bf16.mxu0 %vm752_vm2, %v4744_v52  ;;  %v605_v52 = vld [vmem:[%s20884_s16 + $0x229] sm:$0xff] }
 0x19a   : > { %v706_v56 = vpack.c.bf16 %v605_v52, %v604_v51  ;;  %v626_v51 = vld [vmem:[%s20884_s16 + $0x2d1] sm:$0xff] }
 0x19b   : > { %v4666_v52 = vld [vmem:[%s20884_s16 + $0x273] sm:$0xff]  ;;  %v717_v58 = vpack.c.bf16 %v627_v55, %v626_v51  ;;  %v645_v51 = vld [vmem:[%s20884_s16 + $0x369] sm:$0xff] }
 0x19c   : > { %v4765_v59 = vpack.c.bf16 %v4667_v53, %v4666_v52  ;;  %v646_v52 = vld [vmem:[%s20884_s16 + $0x371] sm:$0xff] }
 0x19d   : > { %17570 = vmatmul.mubr.msk.bf16.gmra.mrb[52].mxu1 %vm752_vm2, %v699_v12  ;;  %v4758_v12 = vpack.c.bf16 %v4653_v9, %v4652_v8  ;;  %v631_v9 = vld [vmem:[%s20884_s16 + $0x2f9] sm:$0xff] }
 0x19e   : > { %17573 = vmatprep.mubr.msk.bf16.mxu1 %vm752_vm2, %v700_v20  ;;  %v4656_v20 = vld [vmem:[%s20884_s16 + $0x223] sm:$0xff]  ;;  %v4686_v53 = vld [vmem:[%s20884_s16 + $0x313] sm:$0xff] }
 0x1a0   : > { %18102 = vmatmul.mubr.msk.bf16.gmra.mrb[32].mxu0 %vm752_vm2, %v4745_v63  ;;  %v608_v63 = vld [vmem:[%s20884_s16 + $0x241] sm:$0xff] }
 0x1a1   : > { %18105 = vmatprep.mubr.msk.bf16.mxu0 %vm752_vm2, %v4746_v0  ;;  %v609_v0 = vld [vmem:[%s20884_s16 + $0x249] sm:$0xff] }
 0x1a2   : > { %v708_v5 = vpack.c.bf16 %v609_v0, %v608_v63  ;;  %v20548_v63 = vld [vmem:[%s24219_s1 + $0x8] ss:$0 sps:$4 sm:$0x66]  }
 0x1a3   : > { %v628_v0 = vld [vmem:[%s20884_s16 + $0x2e1] sm:$0xff]  ;;  %v7068_v6 = vrot.slane %v20548_v63, 1  ;;  %v649_v63 = vld [vmem:[%s20884_s16 + $0x389] sm:$0xff] }
 0x1a4   : > { %v718_v8 = vpack.c.bf16 %v629_v1, %v628_v0  ;;  %v650_v0 = vld [vmem:[%s20884_s16 + $0x391] sm:$0xff] }
 0x1a5   : > { %17574 = vmatmul.mubr.msk.bf16.gmra.mrb[56].mxu1 %vm752_vm2, %v701_v24  ;;  %v4760_v24 = vpack.c.bf16 %v4657_v21, %v4656_v20  ;;  %v635_v20 = vld [vmem:[%s20884_s16 + $0x319] sm:$0xff]  ;;  %v4676_v21 = vld [vmem:[%s20884_s16 + $0x2c3] sm:$0xff] }
 0x1a6   : > { %17577 = vmatprep.mubr.msk.bf16.mxu1 %vm752_vm2, %v702_v33  ;;  %v4660_v33 = vld [vmem:[%s20884_s16 + $0x243] sm:$0xff]  ;;  %v4690_v1 = vld [vmem:[%s20884_s16 + $0x333] sm:$0xff] }
 0x1a8   : > { %18106 = vmatmul.mubr.msk.bf16.gmra.mrb[36].mxu0 %vm752_vm2, %v4747_v13  ;;  %v612_v13 = vld [vmem:[%s20884_s16 + $0x261] sm:$0xff] }
 0x1a9   : > { %18109 = vmatprep.mubr.msk.bf16.mxu0 %vm752_vm2, %v4748_v14  ;;  %v613_v14 = vld [vmem:[%s20884_s16 + $0x269] sm:$0xff] }
 0x1aa   : > { %v710_v18 = vpack.c.bf16 %v613_v14, %v612_v13  ;;  %v632_v14 = vld [vmem:[%s20884_s16 + $0x301] sm:$0xff] }
 0x1ab   : > { %v720_v19 = vpack.c.bf16 %v633_v15, %v632_v14  ;;  %v653_v14 = vld [vmem:[%s20884_s16 + $0x3a9] sm:$0xff]  ;;  %v654_v15 = vld [vmem:[%s20884_s16 + $0x3b1] sm:$0xff] }
 0x1ad   : > { %17578 = vmatmul.mubr.msk.bf16.gmra.mrb[60].mxu1 %vm752_vm2, %v703_v37  ;;  %v4762_v37 = vpack.c.bf16 %v4661_v34, %v4660_v33  ;;  %v639_v33 = vld [vmem:[%s20884_s16 + $0x339] sm:$0xff]  ;;  %v4680_v34 = vld [vmem:[%s20884_s16 + $0x2e3] sm:$0xff] }
 0x1ae   : > { %17581 = vmatprep.mubr.msk.bf16.mxu1 %vm752_vm2, %v704_v44  ;;  %v4664_v44 = vld [vmem:[%s20884_s16 + $0x263] sm:$0xff] }
 0x1b0   : > { %18110 = vmatmul.mubr.msk.bf16.gmra.mrb[40].mxu0 %vm752_vm2, %v4749_v25  ;;  %v616_v25 = vld [vmem:[%s20884_s16 + $0x281] sm:$0xff] }
 0x1b1   : > { %18113 = vmatprep.mubr.msk.bf16.mxu0 %vm752_vm2, %v4750_v27  ;;  %v617_v27 = vld [vmem:[%s20884_s16 + $0x289] sm:$0xff] }
 0x1b2   : > { %v712_v31 = vpack.c.bf16 %v617_v27, %v616_v25  ;;  %v636_v27 = vld [vmem:[%s20884_s16 + $0x321] sm:$0xff] }
 0x1b3   : > { %v722_v32 = vpack.c.bf16 %v637_v28, %v636_v27  ;;  %v657_v27 = vld [vmem:[%s20884_s16 + $0x3c9] sm:$0xff]  ;;  %v658_v28 = vld [vmem:[%s20884_s16 + $0x3d1] sm:$0xff] }
 0x1b5   : > { %17582 = vmatmul.mubr.msk.bf16.gmra.mrb[64].mxu1 %vm752_vm2, %v705_v48  ;;  %v4764_v48 = vpack.c.bf16 %v4665_v45, %v4664_v44  ;;  %v643_v44 = vld [vmem:[%s20884_s16 + $0x359] sm:$0xff]  ;;  %v4684_v45 = vld [vmem:[%s20884_s16 + $0x303] sm:$0xff] }
 0x1b6   : > { %17585 = vmatprep.mubr.msk.bf16.mxu1 %vm752_vm2, %v706_v56  ;;  %v4668_v56 = vld [vmem:[%s20884_s16 + $0x283] sm:$0xff] }
 0x1b8   : > { %18114 = vmatmul.mubr.msk.bf16.gmra.mrb[44].mxu0 %vm752_vm2, %v4751_v38  ;;  %v620_v38 = vld [vmem:[%s20884_s16 + $0x2a1] sm:$0xff] }
 0x1b9   : > { %18117 = vmatprep.mubr.msk.bf16.mxu0 %vm752_vm2, %v4752_v39  ;;  %v621_v39 = vld [vmem:[%s20884_s16 + $0x2a9] sm:$0xff] }
 0x1ba   : > { %v714_v43 = vpack.c.bf16 %v621_v39, %v620_v38  ;;  %v640_v39 = vld [vmem:[%s20884_s16 + $0x341] sm:$0xff] }
 0x1bb   : > { %v724_v26 = vpack.c.bf16 %v641_v40, %v640_v39  ;;  %v661_v39 = vld [vmem:[%s20884_s16 + $0x3e9] sm:$0xff]  ;;  %v662_v40 = vld [vmem:[%s20884_s16 + $0x3f1] sm:$0xff] }
 0x1bd   : > { %17586 = vmatmul.mubr.msk.bf16.gmra.mrb[68].mxu1 %vm752_vm2, %v707_v60  ;;  %v4766_v60 = vpack.c.bf16 %v4669_v57, %v4668_v56  ;;  %v647_v56 = vld [vmem:[%s20884_s16 + $0x379] sm:$0xff]  ;;  %v4688_v57 = vld [vmem:[%s20884_s16 + $0x323] sm:$0xff] }
 0x1be   : > { %17589 = vmatprep.mubr.msk.bf16.mxu1 %vm752_vm2, %v708_v5  ;;  %v4673_v5 = vld [vmem:[%s20884_s16 + $0x2ab] sm:$0xff] }
 0x1bf   : > { %v4768_v13 = vpack.c.bf16 %v4673_v5, %v4672_v4  ;;  %v651_v5 = vld [vmem:[%s20884_s16 + $0x399] sm:$0xff] }
 0x1c0   : > { %18118 = vmatmul.mubr.msk.bf16.gmra.mrb[48].mxu0 %vm752_vm2, %v4753_v49  ;;  %v624_v49 = vld [vmem:[%s20884_s16 + $0x2c1] sm:$0xff] }
 0x1c1   : > { %18121 = vmatprep.mubr.msk.bf16.mxu0 %vm752_vm2, %v4754_v50  ;;  %v625_v50 = vld [vmem:[%s20884_s16 + $0x2c9] sm:$0xff] }
 0x1c2   : > { %v716_v54 = vpack.c.bf16 %v625_v50, %v624_v49  ;;  %v644_v50 = vld [vmem:[%s20884_s16 + $0x361] sm:$0xff] }
 0x1c3   : > { %v726_v55 = vpack.c.bf16 %v645_v51, %v644_v50  ;;  %v665_v50 = vld [vmem:[%s20884_s16 + $0x409] sm:$0xff]  ;;  %v666_v51 = vld [vmem:[%s20884_s16 + $0x411] sm:$0xff] }
 0x1c5   : > { %17590 = vmatmul.mubr.msk.bf16.gmra.mrb[72].mxu1 %vm752_vm2, %v709_v10  ;;  %v719_v10 = vpack.c.bf16 %v631_v9, %v630_v2  ;;  %v4691_v2 = vld [vmem:[%s20884_s16 + $0x33b] sm:$0xff]  ;;  %v729_v9 = vpack.c.bf16 %v651_v5, %v650_v0  ;;  %v4710_v0 = vld [vmem:[%s20884_s16 + $0x3d3] sm:$0xff]  ;;  %v4712_v5 = vld [vmem:[%s20884_s16 + $0x3e3] sm:$0xff] }
 0x1c6   : > { %17593 = vmatprep.mubr.msk.bf16.mxu1 %vm752_vm2, %v710_v18  ;;  %v4675_v18 = vld [vmem:[%s20884_s16 + $0x2bb] sm:$0xff] }
 0x1c8   : > { %18122 = vmatmul.mubr.msk.bf16.gmra.mrb[52].mxu0 %vm752_vm2, %v4755_v61  ;;  %v4670_v61 = vld [vmem:[%s20884_s16 + $0x293] sm:$0xff] }
 0x1c9   : > { %18125 = vmatprep.mubr.msk.bf16.mxu0 %vm752_vm2, %v4756_v62  ;;  %v4671_v62 = vld [vmem:[%s20884_s16 + $0x29b] sm:$0xff] }
 0x1cd   : > { %17594 = vmatmul.mubr.msk.bf16.gmra.mrb[76].mxu1 %vm752_vm2, %v711_v22  ;;  %v4677_v22 = vld [vmem:[%s20884_s16 + $0x2cb] sm:$0xff] }
 0x1ce   : > { %17597 = vmatprep.mubr.msk.bf16.mxu1 %vm752_vm2, %v712_v31  ;;  %v4770_v25 = vpack.c.bf16 %v4677_v22, %v4676_v21  ;;  %v4679_v31 = vld [vmem:[%s20884_s16 + $0x2db] sm:$0xff]  ;;  %v4697_v21 = vld [vmem:[%s20884_s16 + $0x36b] sm:$0xff] }
 0x1d0   : > { %18126 = vmatmul.mubr.msk.bf16.gmra.mrb[56].mxu0 %vm752_vm2, %v4757_v11  ;;  %v4767_v11 = vpack.c.bf16 %v4671_v62, %v4670_v61  ;;  %v648_v62 = vld [vmem:[%s20884_s16 + $0x381] sm:$0xff] }
 0x1d1   : > { %18129 = vmatprep.mubr.msk.bf16.mxu0 %vm752_vm2, %v4758_v12  ;;  %v21389_v12 = vand.u32 %v7068_v6, %v20869_v3  ;;  %v728_v4 = vpack.c.bf16 %v649_v63, %v648_v62  ;;  %v4692_v6 = vld [vmem:[%s20884_s16 + $0x343] sm:$0xff]  ;;  %v670_v63 = vld [vmem:[%s20884_s16 + $0x431] sm:$0xff] }
 0x1d2   : > { %v669_v62 = vld [vmem:[%s20884_s16 + $0x429] sm:$0xff] }
 0x1d3   : > { %18343 = vmatprep.subr.bf16.mxu0 %v21389_v12 }
 0x1d5   : > { %17598 = vmatmul.mubr.msk.bf16.gmra.mrb[80].mxu1 %vm752_vm2, %v713_v35  ;;  %v4681_v35 = vld [vmem:[%s20884_s16 + $0x2eb] sm:$0xff] }
 0x1d6   : > { %17601 = vmatprep.mubr.msk.bf16.mxu1 %vm752_vm2, %v714_v43  ;;  %v4772_v38 = vpack.c.bf16 %v4681_v35, %v4680_v34  ;;  %v4683_v43 = vld [vmem:[%s20884_s16 + $0x2fb] sm:$0xff]  ;;  %v4701_v34 = vld [vmem:[%s20884_s16 + $0x38b] sm:$0xff] }
 0x1d8   : > { %18130 = vmatmul.mubr.msk.bf16.gmra.mrb[60].mxu0 %vm752_vm2, %v4759_v23  ;;  %v721_v23 = vpack.c.bf16 %v635_v20, %v634_v16  ;;  %v4694_v16 = vld [vmem:[%s20884_s16 + $0x353] sm:$0xff]  ;;  %v4696_v20 = vld [vmem:[%s20884_s16 + $0x363] sm:$0xff] }
 0x1d9   : > { %18133 = vmatprep.mubr.msk.bf16.mxu0 %vm752_vm2, %v4760_v24  ;;  %v4769_v24 = vpack.c.bf16 %v4675_v18, %v4674_v17  ;;  %v4695_v17 = vld [vmem:[%s20884_s16 + $0x35b] sm:$0xff] }
 0x1dd   : > { %17602 = vmatmul.mubr.msk.bf16.gmra.mrb[84].mxu1 %vm752_vm2, %v715_v46  ;;  %v4685_v46 = vld [vmem:[%s20884_s16 + $0x30b] sm:$0xff] }
 0x1de   : > { %17605 = vmatprep.mubr.msk.bf16.mxu1 %vm752_vm2, %v716_v54  ;;  %v4774_v49 = vpack.c.bf16 %v4685_v46, %v4684_v45  ;;  %v4687_v54 = vld [vmem:[%s20884_s16 + $0x31b] sm:$0xff]  ;;  %v4705_v45 = vld [vmem:[%s20884_s16 + $0x3ab] sm:$0xff] }
 0x1e0   : > { %18134 = vmatmul.mubr.msk.bf16.gmra.mrb[64].mxu0 %vm752_vm2, %v4761_v36  ;;  %v723_v36 = vpack.c.bf16 %v639_v33, %v638_v29  ;;  %v4698_v29 = vld [vmem:[%s20884_s16 + $0x373] sm:$0xff]  ;;  %v4700_v33 = vld [vmem:[%s20884_s16 + $0x383] sm:$0xff] }
 0x1e1   : > { %18137 = vmatprep.mubr.msk.bf16.mxu0 %vm752_vm2, %v4762_v37  ;;  %v4771_v37 = vpack.c.bf16 %v4679_v31, %v4678_v30  ;;  %v4699_v30 = vld [vmem:[%s20884_s16 + $0x37b] sm:$0xff] }
 0x1e5   : > { %17606 = vmatmul.mubr.msk.bf16.gmra.mrb[88].mxu1 %vm752_vm2, %v717_v58  ;;  %v4689_v58 = vld [vmem:[%s20884_s16 + $0x32b] sm:$0xff] }
 0x1e6   : > { %17609 = vmatprep.mubr.msk.bf16.mxu1 %vm752_vm2, %v718_v8  ;;  %v4776_v61 = vpack.c.bf16 %v4689_v58, %v4688_v57  ;;  %v4693_v8 = vld [vmem:[%s20884_s16 + $0x34b] sm:$0xff] }
 0x1e7   : > { %v4709_v57 = vld [vmem:[%s20884_s16 + $0x3cb] sm:$0xff] }
 0x1e8   : > { %18138 = vmatmul.mubr.msk.bf16.gmra.mrb[68].mxu0 %vm752_vm2, %v4763_v47  ;;  %v725_v47 = vpack.c.bf16 %v643_v44, %v642_v41  ;;  %v4702_v41 = vld [vmem:[%s20884_s16 + $0x393] sm:$0xff]  ;;  %v4704_v44 = vld [vmem:[%s20884_s16 + $0x3a3] sm:$0xff] }
 0x1e9   : > { %18141 = vmatprep.mubr.msk.bf16.mxu0 %vm752_vm2, %v4764_v48  ;;  %v4773_v48 = vpack.c.bf16 %v4683_v43, %v4682_v42  ;;  %v4703_v42 = vld [vmem:[%s20884_s16 + $0x39b] sm:$0xff] }
 0x1ed   : > { %17610 = vmatmul.mubr.msk.bf16.gmra.mrb[92].mxu1 %vm752_vm2, %v719_v10  ;;  %v4777_v10 = vpack.c.bf16 %v4691_v2, %v4690_v1  ;;  %v4711_v1 = vld [vmem:[%s20884_s16 + $0x3db] sm:$0xff] }
 0x1ee   : > { %17613 = vmatprep.mubr.msk.bf16.mxu1 %vm752_vm2, %v720_v19  ;;  %v655_v19 = vld [vmem:[%s20884_s16 + $0x3b9] sm:$0xff] }
 0x1ef   : > { %v731_v22 = vpack.c.bf16 %v655_v19, %v654_v15  ;;  %v332_v15 = vld [vmem:[%s20884_s16 + $0x8] sm:$0xff] }
 0x1f0   : > { %18142 = vmatmul.mubr.msk.bf16.gmra.mrb[72].mxu0 %vm752_vm2, %v4765_v59  ;;  %v727_v59 = vpack.c.bf16 %v647_v56, %v646_v52  ;;  %v4706_v52 = vld [vmem:[%s20884_s16 + $0x3b3] sm:$0xff]  ;;  %v4708_v56 = vld [vmem:[%s20884_s16 + $0x3c3] sm:$0xff] }
 0x1f1   : > { %18145 = vmatprep.mubr.msk.bf16.mxu0 %vm752_vm2, %v4766_v60  ;;  %v4775_v60 = vpack.c.bf16 %v4687_v54, %v4686_v53  ;;  %v4707_v53 = vld [vmem:[%s20884_s16 + $0x3bb] sm:$0xff] }
 0x1f5   : > { %17614 = vmatmul.mubr.msk.bf16.gmra.mrb[96].mxu1 %vm752_vm2, %v721_v23  ;;  %v4779_v23 = vpack.c.bf16 %v4695_v17, %v4694_v16  ;;  %v333_v16 = vld [vmem:[%s20884_s16 + $0x10] sm:$0xff] }
 0x1f6   : > { %17617 = vmatprep.mubr.msk.bf16.mxu1 %vm752_vm2, %v722_v32  ;;  %v659_v32 = vld [vmem:[%s20884_s16 + $0x3d9] sm:$0xff] }
 0x1f7   : > { %v733_v35 = vpack.c.bf16 %v659_v32, %v658_v28  ;;  %v4714_v17 = vld [vmem:[%s20884_s16 + $0x3f3] sm:$0xff]  ;;  %v336_v28 = vld [vmem:[%s20884_s16 + $0x28] sm:$0xff] }
 0x1f8   : > { %18146 = vmatmul.mubr.msk.bf16.gmra.mrb[76].mxu0 %vm752_vm2, %v4767_v11  ;;  %v4778_v11 = vpack.c.bf16 %v4693_v8, %v4692_v6  ;;  %v4713_v6 = vld [vmem:[%s20884_s16 + $0x3eb] sm:$0xff] }
 0x1f9   : > { %18149 = vmatprep.mubr.msk.bf16.mxu0 %vm752_vm2, %v4768_v13  ;;  %v652_v13 = vld [vmem:[%s20884_s16 + $0x3a1] sm:$0xff] }
 0x1fa   : > { %v730_v18 = vpack.c.bf16 %v653_v14, %v652_v13  ;;  %v331_v14 = vld [vmem:[%s20884_s16] sm:$0xff] }
 0x1fb   : > { %v467_v19 = vpack.c.bf16 %v332_v15, %v331_v14  ;;  %v353_v14 = vld [vmem:[%s20884_s16 + $0xb0] sm:$0xff] }
 0x1fc   : > { %v5727_v15 = vld [vmem:[%s20884_s16 + $0x54] sm:$0xff] }
 0x1fd   : > { %17618 = vmatmul.mubr.msk.bf16.gmra.mrb[100].mxu1 %vm752_vm2, %v723_v36  ;;  %v4781_v36 = vpack.c.bf16 %v4699_v30, %v4698_v29  ;;  %v337_v29 = vld [vmem:[%s20884_s16 + $0x30] sm:$0xff] }
 0x1fe   : > { %17621 = vmatprep.mubr.msk.bf16.mxu1 %vm752_vm2, %v724_v26  ;;  %v663_v26 = vld [vmem:[%s20884_s16 + $0x3f9] sm:$0xff] }
 0x1ff   : > { %v735_v46 = vpack.c.bf16 %v663_v26, %v662_v40  ;;  %v4718_v30 = vld [vmem:[%s20884_s16 + $0x413] sm:$0xff] }
 0x200   : > { %18150 = vmatmul.mubr.msk.bf16.gmra.mrb[80].mxu0 %vm752_vm2, %v4769_v24  ;;  %v4780_v24 = vpack.c.bf16 %v4697_v21, %v4696_v20  ;;  %v334_v20 = vld [vmem:[%s20884_s16 + $0x18] sm:$0xff]  ;;  %v4716_v21 = vld [vmem:[%s20884_s16 + $0x403] sm:$0xff]  ;;  %v341_v40 = vld [vmem:[%s20884_s16 + $0x50] sm:$0xff] }
 0x201   : > { %18153 = vmatprep.mubr.msk.bf16.mxu0 %vm752_vm2, %v4770_v25  ;;  %v656_v25 = vld [vmem:[%s20884_s16 + $0x3c1] sm:$0xff]  ;;  %v342_v26 = vld [vmem:[%s20884_s16 + $0x58] sm:$0xff] }
 0x202   : > { %v732_v31 = vpack.c.bf16 %v657_v27, %v656_v25  ;;  %v335_v27 = vld [vmem:[%s20884_s16 + $0x20] sm:$0xff] }
 0x203   : > { %v469_v32 = vpack.c.bf16 %v336_v28, %v335_v27  ;;  %v5731_v27 = vld [vmem:[%s20884_s16 + $0x74] sm:$0xff]  ;;  %v5732_v28 = vld [vmem:[%s20884_s16 + $0x7c] sm:$0xff] }
 0x205   : > { %17622 = vmatmul.mubr.msk.bf16.gmra.mrb[104].mxu1 %vm752_vm2, %v725_v47  ;;  %v4783_v47 = vpack.c.bf16 %v4703_v42, %v4702_v41  ;;  %v4722_v41 = vld [vmem:[%s20884_s16 + $0x433] sm:$0xff]  ;;  %v4723_v42 = vld [vmem:[%s20884_s16 + $0x43b] sm:$0xff] }
 0x206   : > { %17625 = vmatprep.mubr.msk.bf16.mxu1 %vm752_vm2, %v726_v55  ;;  %v667_v55 = vld [vmem:[%s20884_s16 + $0x419] sm:$0xff] }
 0x207   : > { %v737_v58 = vpack.c.bf16 %v667_v55, %v666_v51  ;;  %v345_v51 = vld [vmem:[%s20884_s16 + $0x70] sm:$0xff]  ;;  %v346_v55 = vld [vmem:[%s20884_s16 + $0x78] sm:$0xff] }
 0x208   : > { %18154 = vmatmul.mubr.msk.bf16.gmra.mrb[84].mxu0 %vm752_vm2, %v4771_v37  ;;  %v4782_v37 = vpack.c.bf16 %v4701_v34, %v4700_v33  ;;  %v338_v33 = vld [vmem:[%s20884_s16 + $0x38] sm:$0xff]  ;;  %v4720_v34 = vld [vmem:[%s20884_s16 + $0x423] sm:$0xff] }
 0x209   : > { %18157 = vmatprep.mubr.msk.bf16.mxu0 %vm752_vm2, %v4772_v38  ;;  %v660_v38 = vld [vmem:[%s20884_s16 + $0x3e1] sm:$0xff] }
 0x20a   : > { %v734_v43 = vpack.c.bf16 %v661_v39, %v660_v38  ;;  %v339_v38 = vld [vmem:[%s20884_s16 + $0x40] sm:$0xff]  ;;  %v340_v39 = vld [vmem:[%s20884_s16 + $0x48] sm:$0xff] }
 0x20d   : > { %17626 = vmatmul.mubr.msk.bf16.gmra.mrb[108].mxu1 %vm752_vm2, %v727_v59  ;;  %v4785_v59 = vpack.c.bf16 %v4707_v53, %v4706_v52  ;;  %v4726_v52 = vld [vmem:[%s20884_s16 + $0x453] sm:$0xff]  ;;  %v4727_v53 = vld [vmem:[%s20884_s16 + $0x45b] sm:$0xff] }
 0x20e   : > { %17629 = vmatprep.mubr.msk.bf16.mxu1 %vm752_vm2, %v728_v4  ;;  %v671_v4 = vld [vmem:[%s20884_s16 + $0x439] sm:$0xff] }
 0x20f   : > { %v739_v8 = vpack.c.bf16 %v671_v4, %v670_v63  ;;  %v349_v63 = vld [vmem:[%s20884_s16 + $0x90] sm:$0xff]  ;;  %v350_v4 = vld [vmem:[%s20884_s16 + $0x98] sm:$0xff] }
 0x210   : > { %18158 = vmatmul.mubr.msk.bf16.gmra.mrb[88].mxu0 %vm752_vm2, %v4773_v48  ;;  %v4784_v48 = vpack.c.bf16 %v4705_v45, %v4704_v44  ;;  %v4724_v44 = vld [vmem:[%s20884_s16 + $0x443] sm:$0xff]  ;;  %v4725_v45 = vld [vmem:[%s20884_s16 + $0x44b] sm:$0xff] }
 0x211   : > { %18161 = vmatprep.mubr.msk.bf16.mxu0 %vm752_vm2, %v4774_v49  ;;  %v664_v49 = vld [vmem:[%s20884_s16 + $0x401] sm:$0xff] }
 0x212   : > { %v736_v54 = vpack.c.bf16 %v665_v50, %v664_v49  ;;  %v343_v49 = vld [vmem:[%s20884_s16 + $0x60] sm:$0xff]  ;;  %v344_v50 = vld [vmem:[%s20884_s16 + $0x68] sm:$0xff] }
 0x215   : > { %17630 = vmatmul.mubr.msk.bf16.gmra.mrb[112].mxu1 %vm752_vm2, %v729_v9  ;;  %v4787_v9 = vpack.c.bf16 %v4711_v1, %v4710_v0  ;;  %v5723_v0 = vld [vmem:[%s20884_s16 + $0x34] sm:$0xff]  ;;  %v5724_v1 = vld [vmem:[%s20884_s16 + $0x3c] sm:$0xff] }
 0x216   : > { %17633 = vmatprep.mubr.msk.bf16.mxu1 %vm752_vm2, %v730_v18  ;;  %v4715_v18 = vld [vmem:[%s20884_s16 + $0x3fb] sm:$0xff] }
 0x218   : > { %18162 = vmatmul.mubr.msk.bf16.gmra.mrb[92].mxu0 %vm752_vm2, %v4775_v60  ;;  %v4786_v60 = vpack.c.bf16 %v4709_v57, %v4708_v56  ;;  %v5721_v56 = vld [vmem:[%s20884_s16 + $0x24] sm:$0xff]  ;;  %v5722_v57 = vld [vmem:[%s20884_s16 + $0x2c] sm:$0xff] }
 0x219   : > { %18165 = vmatprep.mubr.msk.bf16.mxu0 %vm752_vm2, %v4776_v61  ;;  %v668_v61 = vld [vmem:[%s20884_s16 + $0x421] sm:$0xff] }
 0x21a   : > { %v738_v2 = vpack.c.bf16 %v669_v62, %v668_v61  ;;  %v347_v61 = vld [vmem:[%s20884_s16 + $0x80] sm:$0xff]  ;;  %v348_v62 = vld [vmem:[%s20884_s16 + $0x88] sm:$0xff] }
 0x21d   : > { %17634 = vmatmul.mubr.msk.bf16.gmra.mrb[116].mxu1 %vm752_vm2, %v731_v22  ;;  %v4717_v22 = vld [vmem:[%s20884_s16 + $0x40b] sm:$0xff] }
 0x21e   : > { %17637 = vmatprep.mubr.msk.bf16.mxu1 %vm752_vm2, %v732_v31  ;;  %v4790_v25 = vpack.c.bf16 %v4717_v22, %v4716_v21  ;;  %v4719_v31 = vld [vmem:[%s20884_s16 + $0x41b] sm:$0xff] }
 0x220   : > { %18166 = vmatmul.mubr.msk.bf16.gmra.mrb[96].mxu0 %vm752_vm2, %v4777_v10  ;;  %v4788_v10 = vpack.c.bf16 %v4713_v6, %v4712_v5  ;;  %v5725_v5 = vld [vmem:[%s20884_s16 + $0x44] sm:$0xff]  ;;  %v5726_v6 = vld [vmem:[%s20884_s16 + $0x4c] sm:$0xff] }
 0x221   : > { %18169 = vmatprep.mubr.msk.bf16.mxu0 %vm752_vm2, %v4778_v11  ;;  %v535_v11 = vld [vmem:[%s24219_s1] sm:$0x3] }
 0x222   : > { %v1746_v13 = vand.u32 %v20869_v3, %v535_v11  ;;  %v351_v11 = vld [vmem:[%s20884_s16 + $0xa0] sm:$0xff] }
 0x224   : > { %17653 = vmatprep.subr.bf16.mxu1 %v1746_v13 }
 0x225   : > { %17638 = vmatmul.mubr.msk.bf16.gmra.mrb[120].mxu1 %vm752_vm2, %v733_v35  ;;  %v470_v35 = vpack.c.bf16 %v338_v33, %v337_v29 }
 0x226   : > { %17641 = vmatprep.mubr.msk.bf16.mxu1 %vm752_vm2, %v734_v43  ;;  %17654 = vmatpush3.bf16.msra.mxu1 %v1746_v13  ;;  %v471_v43 = vpack.c.bf16 %v340_v39, %v339_v38  ;;  %v352_v13 = vld [vmem:[%s20884_s16 + $0xa8] sm:$0xff]  ;;  %v5735_v38 = vld [vmem:[%s20884_s16 + $0x94] sm:$0xff]  ;;  %v5736_v39 = vld [vmem:[%s20884_s16 + $0x9c] sm:$0xff] }
 0x227   : > { %19119 = vmatprep.subr.bf16.mxu1 %v20879_v7 }
 0x228   : > { %18170 = vmatmul.mubr.msk.bf16.gmra.mrb[100].mxu0 %vm752_vm2, %v4779_v23  ;;  %v468_v23 = vpack.c.bf16 %v334_v20, %v333_v16  ;;  %v5728_v16 = vld [vmem:[%s20884_s16 + $0x5c] sm:$0xff]  ;;  %v5730_v20 = vld [vmem:[%s20884_s16 + $0x6c] sm:$0xff] }
 0x229   : > { %18173 = vmatprep.mubr.msk.bf16.mxu0 %vm752_vm2, %v4780_v24  ;;  %v4789_v24 = vpack.c.bf16 %v4715_v18, %v4714_v17  ;;  %v477_v17 = vpack.c.bf16 %v352_v13, %v351_v11  ;;  %v354_v18 = vld [vmem:[%s20884_s16 + $0xb8] sm:$0xff]  ;;  %v5860_v22 = vpack.c.bf16 %v5728_v16, %v5727_v15  ;;  %v5749_v16 = vld [vmem:[%s20884_s16 + $0x104] sm:$0xff] }
 0x22a   : > { %v478_v21 = vpack.c.bf16 %v354_v18, %v353_v14  ;;  %v5747_v11 = vld [vmem:[%s20884_s16 + $0xf4] sm:$0xff]  ;;  %v5748_v13 = vld [vmem:[%s20884_s16 + $0xfc] sm:$0xff] }
 0x22b   : > { %v374_v15 = vld [vmem:[%s20884_s16 + $0x158] sm:$0xff] }
 0x22d   : > { %17642 = vmatmul.mubr.msk.bf16.gmra.mrb[124].mxu1 %vm752_vm2, %v735_v46  ;;  %v472_v46 = vpack.c.bf16 %v342_v26, %v341_v40 }
 0x22e   : > { %17645 = vmatprep.mubr.msk.bf16.mxu1 %vm752_vm2, %v736_v54  ;;  %v473_v54 = vpack.c.bf16 %v344_v50, %v343_v49  ;;  %v5739_v49 = vld [vmem:[%s20884_s16 + $0xb4] sm:$0xff]  ;;  %v5740_v50 = vld [vmem:[%s20884_s16 + $0xbc] sm:$0xff] }
 0x230   : > { %18174 = vmatmul.mubr.msk.bf16.gmra.mrb[104].mxu0 %vm752_vm2, %v4781_v36  ;;  %v4791_v36 = vpack.c.bf16 %v4719_v31, %v4718_v30  ;;  %v358_v30 = vld [vmem:[%s20884_s16 + $0xd8] sm:$0xff]  ;;  %v5733_v31 = vld [vmem:[%s20884_s16 + $0x84] sm:$0xff] }
 0x231   : > { %18177 = vmatprep.mubr.msk.bf16.mxu0 %vm752_vm2, %v4782_v37 }
 0x235   : > { %17646 = vmatmul.mubr.msk.bf16.gmra.mrb[128].mxu1 %vm752_vm2, %v737_v58  ;;  %v474_v58 = vpack.c.bf16 %v346_v55, %v345_v51 }
 0x236   : > { %17649 = vmatprep.mubr.msk.bf16.mxu1 %vm752_vm2, %v738_v2  ;;  %v475_v2 = vpack.c.bf16 %v348_v62, %v347_v61  ;;  %v5743_v61 = vld [vmem:[%s20884_s16 + $0xd4] sm:$0xff]  ;;  %v5744_v62 = vld [vmem:[%s20884_s16 + $0xdc] sm:$0xff] }
 0x238   : > { %18178 = vmatmul.mubr.msk.bf16.gmra.mrb[108].mxu0 %vm752_vm2, %v4783_v47  ;;  %v4793_v47 = vpack.c.bf16 %v4723_v42, %v4722_v41  ;;  %v362_v41 = vld [vmem:[%s20884_s16 + $0xf8] sm:$0xff]  ;;  %v5737_v42 = vld [vmem:[%s20884_s16 + $0xa4] sm:$0xff] }
 0x239   : > { %18181 = vmatprep.mubr.msk.bf16.mxu0 %vm752_vm2, %v4784_v48  ;;  %v4794_v48 = vpack.c.bf16 %v4725_v45, %v4724_v44  ;;  %v5864_v44 = vpack.c.bf16 %v5736_v39, %v5735_v38  ;;  %v382_v38 = vld [vmem:[%s20884_s16 + $0x198] sm:$0xff]  ;;  %v5757_v39 = vld [vmem:[%s20884_s16 + $0x144] sm:$0xff] }
 0x23d   : > { %17650 = vmatmul.mubr.msk.bf16.gmra.mrb[132].mxu1 %vm752_vm2, %v739_v8  ;;  %v476_v8 = vpack.c.bf16 %v350_v4, %v349_v63 }
 0x23e   : > { %17655 = vmatprep.mubr.msk.bf16.mxu1 %vm752_vm2, %v467_v19  ;;  %v5729_v19 = vld [vmem:[%s20884_s16 + $0x64] sm:$0xff] }
 0x240   : > { %18182 = vmatmul.mubr.msk.bf16.gmra.mrb[112].mxu0 %vm752_vm2, %v4785_v59  ;;  %v4795_v59 = vpack.c.bf16 %v4727_v53, %v4726_v52  ;;  %v366_v52 = vld [vmem:[%s20884_s16 + $0x118] sm:$0xff]  ;;  %v5741_v53 = vld [vmem:[%s20884_s16 + $0xc4] sm:$0xff] }
 0x241   : > { %18185 = vmatprep.mubr.msk.bf16.mxu0 %vm752_vm2, %v4786_v60  ;;  %v5857_v60 = vpack.c.bf16 %v5722_v57, %v5721_v56  ;;  %v5866_v56 = vpack.c.bf16 %v5740_v50, %v5739_v49  ;;  %v386_v49 = vld [vmem:[%s20884_s16 + $0x1b8] sm:$0xff]  ;;  %v5761_v50 = vld [vmem:[%s20884_s16 + $0x164] sm:$0xff] }
 0x245   : > { %17656 = vmatmul.mubr.msk.bf16.vlgmr.msra.gmra.mrb[0].mxu1 %vm752_vm2, %v468_v23  ;;  %v5861_v23 = vpack.c.bf16 %v5730_v20, %v5729_v19  ;;  %v5870_v19 = vpack.c.bf16 %v5748_v13, %v5747_v11  ;;  %v394_v11 = vld [vmem:[%s20884_s16 + $0x1f8] sm:$0xff]  ;;  %v5769_v13 = vld [vmem:[%s20884_s16 + $0x1a4] sm:$0xff] }
 0x246   : > { %19120 = vmatpush3.bf16.msra.mxu1 %v20879_v7  ;;  %v4721_v7 = vld [vmem:[%s20884_s16 + $0x42b] sm:$0xff]  ;;  %17659 = vmatprep.mubr.msk.bf16.mxu1 %vm752_vm2, %v469_v32 }
 0x247   : > { %v4792_v37 = vpack.c.bf16 %v4721_v7, %v4720_v34  ;;  %v5734_v32 = vld [vmem:[%s20884_s16 + $0x8c] sm:$0xff]  ;;  %v5862_v34 = vpack.c.bf16 %v5732_v28, %v5731_v27  ;;  %v378_v27 = vld [vmem:[%s20884_s16 + $0x178] sm:$0xff]  ;;  %v5753_v28 = vld [vmem:[%s20884_s16 + $0x124] sm:$0xff] }
 0x248   : > { %18186 = vmatmul.mubr.msk.bf16.gmra.mrb[116].mxu0 %vm752_vm2, %v4787_v9  ;;  %v5858_v9 = vpack.c.bf16 %v5724_v1, %v5723_v0  ;;  %v5863_v7 = vpack.c.bf16 %v5734_v32, %v5733_v31  ;;  %v370_v0 = vld [vmem:[%s20884_s16 + $0x138] sm:$0xff]  ;;  %v5745_v1 = vld [vmem:[%s20884_s16 + $0xe4] sm:$0xff] }
 0x249   : > { %18189 = vmatprep.mubr.msk.bf16.mxu0 %vm752_vm2, %v4788_v10  ;;  %v5859_v10 = vpack.c.bf16 %v5726_v6, %v5725_v5  ;;  %v5868_v5 = vpack.c.bf16 %v5744_v62, %v5743_v61  ;;  %v390_v61 = vld [vmem:[%s20884_s16 + $0x1d8] sm:$0xff]  ;;  %v5765_v62 = vld [vmem:[%s20884_s16 + $0x184] sm:$0xff] }
 0x24d   : > { %17660 = vmatmul.mubr.msk.bf16.gmra.mrb[4].mxu1 %vm752_vm2, %v470_v35  ;;  %v359_v35 = vld [vmem:[%s20884_s16 + $0xe0] sm:$0xff] }
 0x24e   : > { %17663 = vmatprep.mubr.msk.bf16.mxu1 %vm752_vm2, %v471_v43  ;;  %v5738_v43 = vld [vmem:[%s20884_s16 + $0xac] sm:$0xff] }
 0x24f   : > { %v5865_v45 = vpack.c.bf16 %v5738_v43, %v5737_v42 }
 0x250   : > { %18190 = vmatmul.mubr.msk.bf16.gmra.mrb[120].mxu0 %vm752_vm2, %v4789_v24  ;;  %v356_v24 = vld [vmem:[%s20884_s16 + $0xc8] sm:$0xff] }
 0x251   : > { %18193 = vmatprep.mubr.msk.bf16.mxu0 %vm752_vm2, %v4790_v25  ;;  %v357_v25 = vld [vmem:[%s20884_s16 + $0xd0] sm:$0xff] }
 0x252   : > { %v480_v33 = vpack.c.bf16 %v358_v30, %v357_v25 }
 0x255   : > { %17664 = vmatmul.mubr.msk.bf16.gmra.mrb[8].mxu1 %vm752_vm2, %v472_v46  ;;  %v363_v46 = vld [vmem:[%s20884_s16 + $0x100] sm:$0xff] }
 0x256   : > { %17667 = vmatprep.mubr.msk.bf16.mxu1 %vm752_vm2, %v473_v54  ;;  %v5742_v54 = vld [vmem:[%s20884_s16 + $0xcc] sm:$0xff] }
 0x257   : > { %v5867_v57 = vpack.c.bf16 %v5742_v54, %v5741_v53 }
 0x258   : > { %18194 = vmatmul.mubr.msk.bf16.gmra.mrb[124].mxu0 %vm752_vm2, %v4791_v36  ;;  %v360_v36 = vld [vmem:[%s20884_s16 + $0xe8] sm:$0xff] }
 0x259   : > { %18197 = vmatprep.mubr.msk.bf16.mxu0 %vm752_vm2, %v4792_v37  ;;  %v361_v37 = vld [vmem:[%s20884_s16 + $0xf0] sm:$0xff]  ;;  %v481_v40 = vpack.c.bf16 %v360_v36, %v359_v35  ;;  %v5756_v36 = vld [vmem:[%s20884_s16 + $0x13c] sm:$0xff] }
 0x25a   : > { %v482_v26 = vpack.c.bf16 %v362_v41, %v361_v37  ;;  %v5755_v35 = vld [vmem:[%s20884_s16 + $0x134] sm:$0xff] }
 0x25b   : > { %v5874_v42 = vpack.c.bf16 %v5756_v36, %v5755_v35  ;;  %v402_v35 = vld [vmem:[%s20884_s16 + $0x238] sm:$0xff]  ;;  %v5777_v36 = vld [vmem:[%s20884_s16 + $0x1e4] sm:$0xff] }
 0x25d   : > { %17668 = vmatmul.mubr.msk.bf16.gmra.mrb[12].mxu1 %vm752_vm2, %v474_v58  ;;  %v367_v58 = vld [vmem:[%s20884_s16 + $0x120] sm:$0xff] }
 0x25e   : > { %17671 = vmatprep.mubr.msk.bf16.mxu1 %vm752_vm2, %v475_v2  ;;  %v5746_v2 = vld [vmem:[%s20884_s16 + $0xec] sm:$0xff] }
 0x25f   : > { %v5869_v6 = vpack.c.bf16 %v5746_v2, %v5745_v1 }
 0x260   : > { %18198 = vmatmul.mubr.msk.bf16.gmra.mrb[128].mxu0 %vm752_vm2, %v4793_v47  ;;  %v364_v47 = vld [vmem:[%s20884_s16 + $0x108] sm:$0xff] }
 0x261   : > { %18201 = vmatprep.mubr.msk.bf16.mxu0 %vm752_vm2, %v4794_v48  ;;  %v365_v48 = vld [vmem:[%s20884_s16 + $0x110] sm:$0xff]  ;;  %v483_v51 = vpack.c.bf16 %v364_v47, %v363_v46  ;;  %v5760_v47 = vld [vmem:[%s20884_s16 + $0x15c] sm:$0xff] }
 0x262   : > { %v484_v55 = vpack.c.bf16 %v366_v52, %v365_v48  ;;  %v5759_v46 = vld [vmem:[%s20884_s16 + $0x154] sm:$0xff] }
 0x263   : > { %v5876_v53 = vpack.c.bf16 %v5760_v47, %v5759_v46  ;;  %v406_v46 = vld [vmem:[%s20884_s16 + $0x258] sm:$0xff]  ;;  %v5781_v47 = vld [vmem:[%s20884_s16 + $0x204] sm:$0xff] }
 0x265   : > { %17672 = vmatmul.mubr.msk.bf16.gmra.mrb[16].mxu1 %vm752_vm2, %v476_v8  ;;  %v371_v8 = vld [vmem:[%s20884_s16 + $0x140] sm:$0xff] }
 0x266   : > { %17675 = vmatprep.mubr.msk.bf16.mxu1 %vm752_vm2, %v477_v17  ;;  %v5750_v17 = vld [vmem:[%s20884_s16 + $0x10c] sm:$0xff] }
 0x267   : > { %v5871_v20 = vpack.c.bf16 %v5750_v17, %v5749_v16 }
 0x268   : > { %18202 = vmatmul.mubr.msk.bf16.gmra.mrb[132].mxu0 %vm752_vm2, %v4795_v59  ;;  %v368_v59 = vld [vmem:[%s20884_s16 + $0x128] sm:$0xff] }
 0x269   : > { %18207 = vmatprep.mubr.msk.bf16.mxu0 %vm752_vm2, %v5857_v60  ;;  %v369_v60 = vld [vmem:[%s20884_s16 + $0x130] sm:$0xff]  ;;  %v485_v63 = vpack.c.bf16 %v368_v59, %v367_v58  ;;  %v5764_v59 = vld [vmem:[%s20884_s16 + $0x17c] sm:$0xff] }
 0x26a   : > { %v486_v4 = vpack.c.bf16 %v370_v0, %v369_v60  ;;  %v5763_v58 = vld [vmem:[%s20884_s16 + $0x174] sm:$0xff] }
 0x26b   : > { %v5878_v1 = vpack.c.bf16 %v5764_v59, %v5763_v58  ;;  %v410_v58 = vld [vmem:[%s20884_s16 + $0x278] sm:$0xff]  ;;  %v5785_v59 = vld [vmem:[%s20884_s16 + $0x224] sm:$0xff] }
 0x26d   : > { %17676 = vmatmul.mubr.msk.bf16.gmra.mrb[20].mxu1 %vm752_vm2, %v478_v21  ;;  %v375_v21 = vld [vmem:[%s20884_s16 + $0x160] sm:$0xff] }
 0x270   : > { %18208 = vmatmul.mubr.msk.bf16.vlgmr.msra.gmra.mrb[0].mxu0 %vm752_vm2, %v5858_v9  ;;  %v372_v9 = vld [vmem:[%s20884_s16 + $0x148] sm:$0xff] }
 0x271   : > { %18344 = vmatpush3.bf16.msra.mxu0 %v21389_v12  ;;  %18211 = vmatprep.mubr.msk.bf16.mxu0 %vm752_vm2, %v5859_v10  ;;  %v355_v12 = vld [vmem:[%s20884_s16 + $0xc0] sm:$0xff]  ;;  %v373_v10 = vld [vmem:[%s20884_s16 + $0x150] sm:$0xff]  ;;  %v487_v14 = vpack.c.bf16 %v372_v9, %v371_v8 }
 0x272   : > { %v479_v29 = vpack.c.bf16 %v356_v24, %v355_v12  ;;  %v488_v18 = vpack.c.bf16 %v374_v15, %v373_v10  ;;  %v5751_v12 = vld [vmem:[%s20884_s16 + $0x114] sm:$0xff]  ;;  %v5752_v24 = vld [vmem:[%s20884_s16 + $0x11c] sm:$0xff] }
 0x273   : > { %v5872_v31 = vpack.c.bf16 %v5752_v24, %v5751_v12  ;;  %v5767_v8 = vld [vmem:[%s20884_s16 + $0x194] sm:$0xff]  ;;  %v5768_v9 = vld [vmem:[%s20884_s16 + $0x19c] sm:$0xff]  ;;  %v5773_v24 = vld [vmem:[%s20884_s16 + $0x1c4] sm:$0xff] }
 0x274   : > { %17679 = vmatprep.mubr.msk.bf16.mxu1 %vm752_vm2, %v479_v29  ;;  %v5754_v29 = vld [vmem:[%s20884_s16 + $0x12c] sm:$0xff]  ;;  %v5880_v16 = vpack.c.bf16 %v5768_v9, %v5767_v8  ;;  %v398_v12 = vld [vmem:[%s20884_s16 + $0x218] sm:$0xff]  ;;  %v5789_v9 = vld [vmem:[%s20884_s16 + $0x244] sm:$0xff] }
 0x275   : > { %17680 = vmatmul.mubr.msk.bf16.gmra.mrb[24].mxu1 %vm752_vm2, %v480_v33  ;;  %v5873_v32 = vpack.c.bf16 %v5754_v29, %v5753_v28  ;;  %v379_v33 = vld [vmem:[%s20884_s16 + $0x180] sm:$0xff]  ;;  %v414_v8 = vld [vmem:[%s20884_s16 + $0x298] sm:$0xff] }
 0x276   : > { %17683 = vmatprep.mubr.msk.bf16.mxu1 %vm752_vm2, %v481_v40  ;;  %v5758_v40 = vld [vmem:[%s20884_s16 + $0x14c] sm:$0xff] }
 0x277   : > { %v5875_v43 = vpack.c.bf16 %v5758_v40, %v5757_v39 }
 0x278   : > { %18212 = vmatmul.mubr.msk.bf16.gmra.mrb[4].mxu0 %vm752_vm2, %v5860_v22  ;;  %v376_v22 = vld [vmem:[%s20884_s16 + $0x168] sm:$0xff] }
 0x279   : > { %18215 = vmatprep.mubr.msk.bf16.mxu0 %vm752_vm2, %v5861_v23  ;;  %v377_v23 = vld [vmem:[%s20884_s16 + $0x170] sm:$0xff]  ;;  %v489_v25 = vpack.c.bf16 %v376_v22, %v375_v21  ;;  %v5772_v22 = vld [vmem:[%s20884_s16 + $0x1bc] sm:$0xff] }
 0x27a   : > { %v490_v30 = vpack.c.bf16 %v378_v27, %v377_v23  ;;  %v5771_v21 = vld [vmem:[%s20884_s16 + $0x1b4] sm:$0xff] }
 0x27b   : > { %v5882_v28 = vpack.c.bf16 %v5772_v22, %v5771_v21  ;;  %v418_v21 = vld [vmem:[%s20884_s16 + $0x2b8] sm:$0xff]  ;;  %v5793_v22 = vld [vmem:[%s20884_s16 + $0x264] sm:$0xff] }
 0x27d   : > { %17684 = vmatmul.mubr.msk.bf16.gmra.mrb[28].mxu1 %vm752_vm2, %v482_v26  ;;  %v383_v26 = vld [vmem:[%s20884_s16 + $0x1a0] sm:$0xff] }
 0x27e   : > { %17687 = vmatprep.mubr.msk.bf16.mxu1 %vm752_vm2, %v483_v51  ;;  %v5762_v51 = vld [vmem:[%s20884_s16 + $0x16c] sm:$0xff] }
 0x27f   : > { %v5877_v54 = vpack.c.bf16 %v5762_v51, %v5761_v50 }
 0x280   : > { %18216 = vmatmul.mubr.msk.bf16.gmra.mrb[8].mxu0 %vm752_vm2, %v5862_v34  ;;  %v380_v34 = vld [vmem:[%s20884_s16 + $0x188] sm:$0xff] }
 0x281   : > { %18219 = vmatprep.mubr.msk.bf16.mxu0 %vm752_vm2, %v5863_v7  ;;  %v381_v7 = vld [vmem:[%s20884_s16 + $0x190] sm:$0xff]  ;;  %v491_v37 = vpack.c.bf16 %v380_v34, %v379_v33  ;;  %v5776_v34 = vld [vmem:[%s20884_s16 + $0x1dc] sm:$0xff] }
 0x282   : > { %v492_v41 = vpack.c.bf16 %v382_v38, %v381_v7  ;;  %v5775_v33 = vld [vmem:[%s20884_s16 + $0x1d4] sm:$0xff] }
 0x283   : > { %v5884_v39 = vpack.c.bf16 %v5776_v34, %v5775_v33  ;;  %v422_v33 = vld [vmem:[%s20884_s16 + $0x2d8] sm:$0xff]  ;;  %v5797_v34 = vld [vmem:[%s20884_s16 + $0x284] sm:$0xff] }
 0x285   : > { %17688 = vmatmul.mubr.msk.bf16.gmra.mrb[32].mxu1 %vm752_vm2, %v484_v55  ;;  %v387_v55 = vld [vmem:[%s20884_s16 + $0x1c0] sm:$0xff] }
 0x286   : > { %17691 = vmatprep.mubr.msk.bf16.mxu1 %vm752_vm2, %v485_v63  ;;  %v5766_v63 = vld [vmem:[%s20884_s16 + $0x18c] sm:$0xff] }
 0x287   : > { %v5879_v2 = vpack.c.bf16 %v5766_v63, %v5765_v62 }
 0x288   : > { %18220 = vmatmul.mubr.msk.bf16.gmra.mrb[12].mxu0 %vm752_vm2, %v5864_v44  ;;  %v384_v44 = vld [vmem:[%s20884_s16 + $0x1a8] sm:$0xff] }
 0x289   : > { %18223 = vmatprep.mubr.msk.bf16.mxu0 %vm752_vm2, %v5865_v45  ;;  %v385_v45 = vld [vmem:[%s20884_s16 + $0x1b0] sm:$0xff]  ;;  %v493_v48 = vpack.c.bf16 %v384_v44, %v383_v26  ;;  %v5780_v44 = vld [vmem:[%s20884_s16 + $0x1fc] sm:$0xff] }
 0x28a   : > { %v494_v52 = vpack.c.bf16 %v386_v49, %v385_v45  ;;  %v5779_v26 = vld [vmem:[%s20884_s16 + $0x1f4] sm:$0xff] }
 0x28b   : > { %v5886_v50 = vpack.c.bf16 %v5780_v44, %v5779_v26  ;;  %v5801_v26 = vld [vmem:[%s20884_s16 + $0x2a4] sm:$0xff]  ;;  %v5802_v44 = vld [vmem:[%s20884_s16 + $0x2ac] sm:$0xff] }
 0x28d   : > { %17692 = vmatmul.mubr.msk.bf16.gmra.mrb[36].mxu1 %vm752_vm2, %v486_v4  ;;  %v391_v4 = vld [vmem:[%s20884_s16 + $0x1e0] sm:$0xff] }
 0x28e   : > { %17695 = vmatprep.mubr.msk.bf16.mxu1 %vm752_vm2, %v487_v14  ;;  %v5770_v14 = vld [vmem:[%s20884_s16 + $0x1ac] sm:$0xff] }
 0x28f   : > { %v5881_v17 = vpack.c.bf16 %v5770_v14, %v5769_v13 }
 0x290   : > { %18224 = vmatmul.mubr.msk.bf16.gmra.mrb[16].mxu0 %vm752_vm2, %v5866_v56  ;;  %v388_v56 = vld [vmem:[%s20884_s16 + $0x1c8] sm:$0xff] }
 0x291   : > { %18227 = vmatprep.mubr.msk.bf16.mxu0 %vm752_vm2, %v5867_v57  ;;  %v389_v57 = vld [vmem:[%s20884_s16 + $0x1d0] sm:$0xff]  ;;  %v495_v60 = vpack.c.bf16 %v388_v56, %v387_v55  ;;  %v5784_v56 = vld [vmem:[%s20884_s16 + $0x21c] sm:$0xff] }
 0x292   : > { %v496_v0 = vpack.c.bf16 %v390_v61, %v389_v57  ;;  %v5783_v55 = vld [vmem:[%s20884_s16 + $0x214] sm:$0xff] }
 0x293   : > { %v5888_v62 = vpack.c.bf16 %v5784_v56, %v5783_v55  ;;  %v427_v56 = vld [vmem:[%s20884_s16 + $0x300] sm:$0xff] }
 0x295   : > { %17696 = vmatmul.mubr.msk.bf16.gmra.mrb[40].mxu1 %vm752_vm2, %v488_v18  ;;  %v395_v18 = vld [vmem:[%s20884_s16 + $0x200] sm:$0xff] }
 0x296   : > { %17699 = vmatprep.mubr.msk.bf16.mxu1 %vm752_vm2, %v489_v25  ;;  %v5774_v25 = vld [vmem:[%s20884_s16 + $0x1cc] sm:$0xff] }
 0x297   : > { %v5883_v29 = vpack.c.bf16 %v5774_v25, %v5773_v24 }
 0x298   : > { %18228 = vmatmul.mubr.msk.bf16.gmra.mrb[20].mxu0 %vm752_vm2, %v5868_v5  ;;  %v392_v5 = vld [vmem:[%s20884_s16 + $0x1e8] sm:$0xff] }
 0x299   : > { %18231 = vmatprep.mubr.msk.bf16.mxu0 %vm752_vm2, %v5869_v6  ;;  %v393_v6 = vld [vmem:[%s20884_s16 + $0x1f0] sm:$0xff]  ;;  %v497_v10 = vpack.c.bf16 %v392_v5, %v391_v4  ;;  %v5788_v5 = vld [vmem:[%s20884_s16 + $0x23c] sm:$0xff] }
 0x29a   : > { %v498_v15 = vpack.c.bf16 %v394_v11, %v393_v6  ;;  %v5787_v4 = vld [vmem:[%s20884_s16 + $0x234] sm:$0xff] }
 0x29b   : > { %v5890_v13 = vpack.c.bf16 %v5788_v5, %v5787_v4  ;;  %v431_v5 = vld [vmem:[%s20884_s16 + $0x320] sm:$0xff] }
 0x29d   : > { %17700 = vmatmul.mubr.msk.bf16.gmra.mrb[44].mxu1 %vm752_vm2, %v490_v30  ;;  %v399_v30 = vld [vmem:[%s20884_s16 + $0x220] sm:$0xff] }
 0x29e   : > { %17703 = vmatprep.mubr.msk.bf16.mxu1 %vm752_vm2, %v491_v37  ;;  %v5778_v37 = vld [vmem:[%s20884_s16 + $0x1ec] sm:$0xff] }
 0x29f   : > { %v5885_v40 = vpack.c.bf16 %v5778_v37, %v5777_v36 }
 0x2a0   : > { %18232 = vmatmul.mubr.msk.bf16.gmra.mrb[24].mxu0 %vm752_vm2, %v5870_v19  ;;  %v396_v19 = vld [vmem:[%s20884_s16 + $0x208] sm:$0xff] }
 0x2a1   : > { %18235 = vmatprep.mubr.msk.bf16.mxu0 %vm752_vm2, %v5871_v20  ;;  %v397_v20 = vld [vmem:[%s20884_s16 + $0x210] sm:$0xff]  ;;  %v499_v23 = vpack.c.bf16 %v396_v19, %v395_v18  ;;  %v5792_v19 = vld [vmem:[%s20884_s16 + $0x25c] sm:$0xff] }
 0x2a2   : > { %v500_v27 = vpack.c.bf16 %v398_v12, %v397_v20  ;;  %v5791_v18 = vld [vmem:[%s20884_s16 + $0x254] sm:$0xff] }
 0x2a3   : > { %v5892_v24 = vpack.c.bf16 %v5792_v19, %v5791_v18  ;;  %v435_v19 = vld [vmem:[%s20884_s16 + $0x340] sm:$0xff] }
 0x2a5   : > { %17704 = vmatmul.mubr.msk.bf16.gmra.mrb[48].mxu1 %vm752_vm2, %v492_v41  ;;  %v403_v41 = vld [vmem:[%s20884_s16 + $0x240] sm:$0xff] }
 0x2a6   : > { %17707 = vmatprep.mubr.msk.bf16.mxu1 %vm752_vm2, %v493_v48  ;;  %v5782_v48 = vld [vmem:[%s20884_s16 + $0x20c] sm:$0xff] }
 0x2a7   : > { %v5887_v51 = vpack.c.bf16 %v5782_v48, %v5781_v47  ;;  %v426_v48 = vld [vmem:[%s20884_s16 + $0x2f8] sm:$0xff] }
 0x2a8   : > { %18236 = vmatmul.mubr.msk.bf16.gmra.mrb[28].mxu0 %vm752_vm2, %v5872_v31  ;;  %v400_v31 = vld [vmem:[%s20884_s16 + $0x228] sm:$0xff] }
 0x2a9   : > { %18239 = vmatprep.mubr.msk.bf16.mxu0 %vm752_vm2, %v5873_v32  ;;  %v401_v32 = vld [vmem:[%s20884_s16 + $0x230] sm:$0xff]  ;;  %v501_v7 = vpack.c.bf16 %v400_v31, %v399_v30  ;;  %v5796_v31 = vld [vmem:[%s20884_s16 + $0x27c] sm:$0xff] }
 0x2aa   : > { %v502_v38 = vpack.c.bf16 %v402_v35, %v401_v32  ;;  %v5795_v30 = vld [vmem:[%s20884_s16 + $0x274] sm:$0xff] }
 0x2ab   : > { %v5894_v36 = vpack.c.bf16 %v5796_v31, %v5795_v30  ;;  %v439_v31 = vld [vmem:[%s20884_s16 + $0x360] sm:$0xff] }
 0x2ad   : > { %17708 = vmatmul.mubr.msk.bf16.gmra.mrb[52].mxu1 %vm752_vm2, %v494_v52  ;;  %v407_v52 = vld [vmem:[%s20884_s16 + $0x260] sm:$0xff] }
 0x2ae   : > { %17711 = vmatprep.mubr.msk.bf16.mxu1 %vm752_vm2, %v495_v60  ;;  %v5786_v60 = vld [vmem:[%s20884_s16 + $0x22c] sm:$0xff] }
 0x2af   : > { %v5889_v63 = vpack.c.bf16 %v5786_v60, %v5785_v59  ;;  %v5803_v59 = vld [vmem:[%s20884_s16 + $0x2b4] sm:$0xff]  ;;  %v5804_v60 = vld [vmem:[%s20884_s16 + $0x2bc] sm:$0xff] }
 0x2b0   : > { %18240 = vmatmul.mubr.msk.bf16.gmra.mrb[32].mxu0 %vm752_vm2, %v5874_v42  ;;  %v404_v42 = vld [vmem:[%s20884_s16 + $0x248] sm:$0xff] }
 0x2b1   : > { %18243 = vmatprep.mubr.msk.bf16.mxu0 %vm752_vm2, %v5875_v43  ;;  %v405_v43 = vld [vmem:[%s20884_s16 + $0x250] sm:$0xff]  ;;  %v503_v45 = vpack.c.bf16 %v404_v42, %v403_v41  ;;  %v423_v41 = vld [vmem:[%s20884_s16 + $0x2e0] sm:$0xff]  ;;  %v424_v42 = vld [vmem:[%s20884_s16 + $0x2e8] sm:$0xff] }
 0x2b2   : > { %v504_v49 = vpack.c.bf16 %v406_v46, %v405_v43  ;;  %v425_v43 = vld [vmem:[%s20884_s16 + $0x2f0] sm:$0xff]  ;;  %v513_v47 = vpack.c.bf16 %v424_v42, %v423_v41  ;;  %v443_v42 = vld [vmem:[%s20884_s16 + $0x380] sm:$0xff] }
 0x2b5   : > { %17712 = vmatmul.mubr.msk.bf16.gmra.mrb[56].mxu1 %vm752_vm2, %v496_v0  ;;  %v411_v0 = vld [vmem:[%s20884_s16 + $0x280] sm:$0xff] }
 0x2b6   : > { %17715 = vmatprep.mubr.msk.bf16.mxu1 %vm752_vm2, %v497_v10  ;;  %v5790_v10 = vld [vmem:[%s20884_s16 + $0x24c] sm:$0xff] }
 0x2b7   : > { %v5891_v14 = vpack.c.bf16 %v5790_v10, %v5789_v9  ;;  %v5807_v9 = vld [vmem:[%s20884_s16 + $0x2d4] sm:$0xff]  ;;  %v5808_v10 = vld [vmem:[%s20884_s16 + $0x2dc] sm:$0xff] }
 0x2b8   : > { %18244 = vmatmul.mubr.msk.bf16.gmra.mrb[36].mxu0 %vm752_vm2, %v5876_v53  ;;  %v408_v53 = vld [vmem:[%s20884_s16 + $0x268] sm:$0xff] }
 0x2b9   : > { %18247 = vmatprep.mubr.msk.bf16.mxu0 %vm752_vm2, %v5877_v54  ;;  %v409_v54 = vld [vmem:[%s20884_s16 + $0x270] sm:$0xff]  ;;  %v505_v57 = vpack.c.bf16 %v408_v53, %v407_v52  ;;  %v5897_v53 = vpack.c.bf16 %v5802_v44, %v5801_v26 }
 0x2ba   : > { %v506_v61 = vpack.c.bf16 %v410_v58, %v409_v54  ;;  %v429_v58 = vld [vmem:[%s20884_s16 + $0x310] sm:$0xff] }
 0x2bb   : > { %v445_v26 = vld [vmem:[%s20884_s16 + $0x390] sm:$0xff] }
 0x2bc   : > { %v5819_v44 = vld [vmem:[%s20884_s16 + $0x334] sm:$0xff] }
 0x2bd   : > { %17716 = vmatmul.mubr.msk.bf16.gmra.mrb[60].mxu1 %vm752_vm2, %v498_v15  ;;  %v415_v15 = vld [vmem:[%s20884_s16 + $0x2a0] sm:$0xff] }
 0x2be   : > { %17719 = vmatprep.mubr.msk.bf16.mxu1 %vm752_vm2, %v499_v23  ;;  %v5794_v23 = vld [vmem:[%s20884_s16 + $0x26c] sm:$0xff] }
 0x2bf   : > { %v5893_v25 = vpack.c.bf16 %v5794_v23, %v5793_v22  ;;  %v5811_v22 = vld [vmem:[%s20884_s16 + $0x2f4] sm:$0xff]  ;;  %v5812_v23 = vld [vmem:[%s20884_s16 + $0x2fc] sm:$0xff] }
 0x2c0   : > { %18248 = vmatmul.mubr.msk.bf16.gmra.mrb[40].mxu0 %vm752_vm2, %v5878_v1  ;;  %v412_v1 = vld [vmem:[%s20884_s16 + $0x288] sm:$0xff] }
 0x2c1   : > { %18251 = vmatprep.mubr.msk.bf16.mxu0 %vm752_vm2, %v5879_v2  ;;  %v413_v2 = vld [vmem:[%s20884_s16 + $0x290] sm:$0xff]  ;;  %v507_v6 = vpack.c.bf16 %v412_v1, %v411_v0 }
 0x2c2   : > { %v508_v11 = vpack.c.bf16 %v414_v8, %v413_v2  ;;  %v5806_v0 = vld [vmem:[%s20884_s16 + $0x2cc] sm:$0xff]  ;;  %v5898_v2 = vpack.c.bf16 %v5804_v60, %v5803_v59  ;;  %v450_v60 = vld [vmem:[%s20884_s16 + $0x3b8] sm:$0xff] }
 0x2c3   : > { %v433_v8 = vld [vmem:[%s20884_s16 + $0x330] sm:$0xff] }
 0x2c5   : > { %17720 = vmatmul.mubr.msk.bf16.gmra.mrb[64].mxu1 %vm752_vm2, %v500_v27  ;;  %v419_v27 = vld [vmem:[%s20884_s16 + $0x2c0] sm:$0xff] }
 0x2c6   : > { %17723 = vmatprep.mubr.msk.bf16.mxu1 %vm752_vm2, %v501_v7  ;;  %v5798_v7 = vld [vmem:[%s20884_s16 + $0x28c] sm:$0xff] }
 0x2c7   : > { %v5895_v37 = vpack.c.bf16 %v5798_v7, %v5797_v34  ;;  %v5815_v34 = vld [vmem:[%s20884_s16 + $0x314] sm:$0xff]  ;;  %v5816_v7 = vld [vmem:[%s20884_s16 + $0x31c] sm:$0xff] }
 0x2c8   : > { %18252 = vmatmul.mubr.msk.bf16.gmra.mrb[44].mxu0 %vm752_vm2, %v5880_v16  ;;  %v416_v16 = vld [vmem:[%s20884_s16 + $0x2a8] sm:$0xff] }
 0x2c9   : > { %18255 = vmatprep.mubr.msk.bf16.mxu0 %vm752_vm2, %v5881_v17  ;;  %v417_v17 = vld [vmem:[%s20884_s16 + $0x2b0] sm:$0xff]  ;;  %v509_v20 = vpack.c.bf16 %v416_v16, %v415_v15 }
 0x2ca   : > { %v510_v12 = vpack.c.bf16 %v418_v21, %v417_v17  ;;  %v5810_v15 = vld [vmem:[%s20884_s16 + $0x2ec] sm:$0xff]  ;;  %v5900_v17 = vpack.c.bf16 %v5808_v10, %v5807_v9  ;;  %v454_v10 = vld [vmem:[%s20884_s16 + $0x3d8] sm:$0xff] }
 0x2cb   : > { %v437_v21 = vld [vmem:[%s20884_s16 + $0x350] sm:$0xff] }
 0x2cd   : > { %17724 = vmatmul.mubr.msk.bf16.gmra.mrb[68].mxu1 %vm752_vm2, %v502_v38  ;;  %v5799_v38 = vld [vmem:[%s20884_s16 + $0x294] sm:$0xff] }
 0x2ce   : > { %17727 = vmatprep.mubr.msk.bf16.mxu1 %vm752_vm2, %v503_v45 }
 0x2d0   : > { %18256 = vmatmul.mubr.msk.bf16.gmra.mrb[48].mxu0 %vm752_vm2, %v5882_v28  ;;  %v420_v28 = vld [vmem:[%s20884_s16 + $0x2c8] sm:$0xff] }
 0x2d1   : > { %18259 = vmatprep.mubr.msk.bf16.mxu0 %vm752_vm2, %v5883_v29  ;;  %v421_v29 = vld [vmem:[%s20884_s16 + $0x2d0] sm:$0xff]  ;;  %v511_v32 = vpack.c.bf16 %v420_v28, %v419_v27 }
 0x2d2   : > { %v512_v35 = vpack.c.bf16 %v422_v33, %v421_v29  ;;  %v5814_v27 = vld [vmem:[%s20884_s16 + $0x30c] sm:$0xff]  ;;  %v5902_v29 = vpack.c.bf16 %v5812_v23, %v5811_v22  ;;  %v458_v23 = vld [vmem:[%s20884_s16 + $0x3f8] sm:$0xff] }
 0x2d3   : > { %v441_v33 = vld [vmem:[%s20884_s16 + $0x370] sm:$0xff] }
 0x2d5   : > { %17728 = vmatmul.mubr.msk.bf16.gmra.mrb[72].mxu1 %vm752_vm2, %v504_v49  ;;  %v514_v49 = vpack.c.bf16 %v426_v48, %v425_v43  ;;  %v444_v43 = vld [vmem:[%s20884_s16 + $0x388] sm:$0xff] }
 0x2d6   : > { %17731 = vmatprep.mubr.msk.bf16.mxu1 %vm752_vm2, %v505_v57  ;;  %v428_v57 = vld [vmem:[%s20884_s16 + $0x308] sm:$0xff] }
 0x2d7   : > { %v5821_v48 = vld [vmem:[%s20884_s16 + $0x344] sm:$0xff] }
 0x2d8   : > { %18260 = vmatmul.mubr.msk.bf16.gmra.mrb[52].mxu0 %vm752_vm2, %v5884_v39  ;;  %v5800_v39 = vld [vmem:[%s20884_s16 + $0x29c] sm:$0xff] }
 0x2d9   : > { %18263 = vmatprep.mubr.msk.bf16.mxu0 %vm752_vm2, %v5885_v40  ;;  %v20549_v40 = vld [vmem:[%s24219_s1 + $0x8] ss:$0 sps:$4 sm:$0xcc]  }
 0x2da   : > { %v8198_v45 = vshrl.u32 %v20549_v40, 16  ;;  %v8201_v46 = vshll.u32 %v20549_v40, 16  ;;  %v5904_v40 = vpack.c.bf16 %v5816_v7, %v5815_v34  ;;  %v462_v7 = vld [vmem:[%s20884_s16 + $0x418] sm:$0xff] }
 0x2dc   : > { %v8203_v52 = vrot.slane %v8201_v46, 3  ;;  %v523_v46 = vpack.c.bf16 %v444_v43, %v443_v42  ;;  %v465_v42 = vld [vmem:[%s20884_s16 + $0x430] sm:$0xff] }
 0x2dd   : > { %17732 = vmatmul.mubr.msk.bf16.gmra.mrb[76].mxu1 %vm752_vm2, %v506_v61  ;;  %v515_v61 = vpack.c.bf16 %v428_v57, %v427_v56  ;;  %v449_v56 = vld [vmem:[%s20884_s16 + $0x3b0] sm:$0xff] }
 0x2de   : > { %17735 = vmatprep.mubr.msk.bf16.mxu1 %vm752_vm2, %v507_v6  ;;  %v432_v6 = vld [vmem:[%s20884_s16 + $0x328] sm:$0xff]  ;;  %v5823_v57 = vld [vmem:[%s20884_s16 + $0x354] sm:$0xff] }
 0x2df   : > { %v5839_v43 = vld [vmem:[%s20884_s16 + $0x3d4] sm:$0xff] }
 0x2e0   : > { %18264 = vmatmul.mubr.msk.bf16.gmra.mrb[56].mxu0 %vm752_vm2, %v5886_v50  ;;  %v5896_v50 = vpack.c.bf16 %v5800_v39, %v5799_v38  ;;  %v5818_v38 = vld [vmem:[%s20884_s16 + $0x32c] sm:$0xff] }
 0x2e1   : > { %18267 = vmatprep.mubr.msk.bf16.mxu0 %vm752_vm2, %v5887_v51  ;;  %v8200_v51 = vrot.slane %v8198_v45, 2  ;;  %v5820_v45 = vld [vmem:[%s20884_s16 + $0x33c] sm:$0xff] }
 0x2e3   : > { %v8204_v54 = vor.u32 %v8203_v52, %v8200_v51  ;;  %v5906_v51 = vpack.c.bf16 %v5820_v45, %v5819_v44  ;;  %v466_v45 = vld [vmem:[%s20884_s16 + $0x438] sm:$0xff] }
 0x2e5   : > { %17736 = vmatmul.mubr.msk.bf16.gmra.mrb[80].mxu1 %vm752_vm2, %v508_v11  ;;  %v21814_v55 = vand.u32 %v8204_v54, %v20869_v3  ;;  %v517_v11 = vpack.c.bf16 %v432_v6, %v431_v5  ;;  %v448_v54 = vld [vmem:[%s20884_s16 + $0x3a8] sm:$0xff]  ;;  %v453_v5 = vld [vmem:[%s20884_s16 + $0x3d0] sm:$0xff] }
 0x2e6   : > { %17739 = vmatprep.mubr.msk.bf16.mxu1 %vm752_vm2, %v509_v20  ;;  %v436_v20 = vld [vmem:[%s20884_s16 + $0x348] sm:$0xff]  ;;  %v5827_v6 = vld [vmem:[%s20884_s16 + $0x374] sm:$0xff] }
 0x2e7   : > { %18481 = vmatprep.subr.bf16.mxu0 %v21814_v55 }
 0x2e8   : > { %18268 = vmatmul.mubr.msk.bf16.gmra.mrb[60].mxu0 %vm752_vm2, %v5888_v62  ;;  %v430_v62 = vld [vmem:[%s20884_s16 + $0x318] sm:$0xff] }
 0x2e9   : > { %18271 = vmatprep.mubr.msk.bf16.mxu0 %vm752_vm2, %v5889_v63  ;;  %v5805_v63 = vld [vmem:[%s20884_s16 + $0x2c4] sm:$0xff]  ;;  %v516_v1 = vpack.c.bf16 %v430_v62, %v429_v58  ;;  %v5824_v58 = vld [vmem:[%s20884_s16 + $0x35c] sm:$0xff]  ;;  %v5826_v62 = vld [vmem:[%s20884_s16 + $0x36c] sm:$0xff] }
 0x2ea   : > { %v5899_v4 = vpack.c.bf16 %v5806_v0, %v5805_v63  ;;  %v526_v63 = vpack.c.bf16 %v450_v60, %v449_v56  ;;  %v5908_v0 = vpack.c.bf16 %v5824_v58, %v5823_v57  ;;  %v5844_v56 = vld [vmem:[%s20884_s16 + $0x3fc] sm:$0xff]  ;;  %v5846_v60 = vld [vmem:[%s20884_s16 + $0x40c] sm:$0xff] }
 0x2eb   : > { %v2352_v58 = vld [vmem:[%s20884_s16 + $0xda] sm:$0xff] }
 0x2ed   : > { %17740 = vmatmul.mubr.msk.bf16.gmra.mrb[84].mxu1 %vm752_vm2, %v510_v12  ;;  %v519_v12 = vpack.c.bf16 %v436_v20, %v435_v19  ;;  %v457_v19 = vld [vmem:[%s20884_s16 + $0x3f0] sm:$0xff] }
 0x2ee   : > { %17743 = vmatprep.mubr.msk.bf16.mxu1 %vm752_vm2, %v511_v32  ;;  %v440_v32 = vld [vmem:[%s20884_s16 + $0x368] sm:$0xff]  ;;  %v5831_v20 = vld [vmem:[%s20884_s16 + $0x394] sm:$0xff] }
 0x2f0   : > { %18272 = vmatmul.mubr.msk.bf16.gmra.mrb[64].mxu0 %vm752_vm2, %v5890_v13  ;;  %v434_v13 = vld [vmem:[%s20884_s16 + $0x338] sm:$0xff] }
 0x2f1   : > { %18275 = vmatprep.mubr.msk.bf16.mxu0 %vm752_vm2, %v5891_v14  ;;  %v5809_v14 = vld [vmem:[%s20884_s16 + $0x2e4] sm:$0xff]  ;;  %v518_v16 = vpack.c.bf16 %v434_v13, %v433_v8  ;;  %v5828_v8 = vld [vmem:[%s20884_s16 + $0x37c] sm:$0xff]  ;;  %v5830_v13 = vld [vmem:[%s20884_s16 + $0x38c] sm:$0xff] }
 0x2f2   : > { %v5901_v18 = vpack.c.bf16 %v5810_v15, %v5809_v14  ;;  %v528_v14 = vpack.c.bf16 %v454_v10, %v453_v5  ;;  %v5910_v15 = vpack.c.bf16 %v5828_v8, %v5827_v6  ;;  %v5848_v5 = vld [vmem:[%s20884_s16 + $0x41c] sm:$0xff]  ;;  %v5850_v10 = vld [vmem:[%s20884_s16 + $0x42c] sm:$0xff] }
 0x2f3   : > { %v2356_v8 = vld [vmem:[%s20884_s16 + $0xfa] sm:$0xff] }
 0x2f5   : > { %17744 = vmatmul.mubr.msk.bf16.gmra.mrb[88].mxu1 %vm752_vm2, %v512_v35  ;;  %v521_v35 = vpack.c.bf16 %v440_v32, %v439_v31  ;;  %v461_v31 = vld [vmem:[%s20884_s16 + $0x410] sm:$0xff] }
 0x2f6   : > { %17747 = vmatprep.mubr.msk.bf16.mxu1 %vm752_vm2, %v513_v47  ;;  %v446_v47 = vld [vmem:[%s20884_s16 + $0x398] sm:$0xff] }
 0x2f7   : > { %v5835_v32 = vld [vmem:[%s20884_s16 + $0x3b4] sm:$0xff] }
 0x2f8   : > { %18276 = vmatmul.mubr.msk.bf16.gmra.mrb[68].mxu0 %vm752_vm2, %v5892_v24  ;;  %v438_v24 = vld [vmem:[%s20884_s16 + $0x358] sm:$0xff] }
 0x2f9   : > { %18279 = vmatprep.mubr.msk.bf16.mxu0 %vm752_vm2, %v5893_v25  ;;  %v5813_v25 = vld [vmem:[%s20884_s16 + $0x304] sm:$0xff]  ;;  %v520_v28 = vpack.c.bf16 %v438_v24, %v437_v21  ;;  %v5832_v21 = vld [vmem:[%s20884_s16 + $0x39c] sm:$0xff]  ;;  %v5834_v24 = vld [vmem:[%s20884_s16 + $0x3ac] sm:$0xff] }
 0x2fa   : > { %v5903_v30 = vpack.c.bf16 %v5814_v27, %v5813_v25  ;;  %v530_v25 = vpack.c.bf16 %v458_v23, %v457_v19  ;;  %v5912_v27 = vpack.c.bf16 %v5832_v21, %v5831_v20  ;;  %v5852_v19 = vld [vmem:[%s20884_s16 + $0x43c] sm:$0xff]  ;;  %v5854_v23 = vld [vmem:[%s20884_s16 + $0x44c] sm:$0xff] }
 0x2fb   : > { %v2360_v21 = vld [vmem:[%s20884_s16 + $0x11a] sm:$0xff] }
 0x2fd   : > { %17748 = vmatmul.mubr.msk.bf16.gmra.mrb[92].mxu1 %vm752_vm2, %v514_v49  ;;  %v5822_v49 = vld [vmem:[%s20884_s16 + $0x34c] sm:$0xff] }
 0x2fe   : > { %17751 = vmatprep.mubr.msk.bf16.mxu1 %vm752_vm2, %v515_v61  ;;  %v5907_v52 = vpack.c.bf16 %v5822_v49, %v5821_v48  ;;  %v5825_v61 = vld [vmem:[%s20884_s16 + $0x364] sm:$0xff]  ;;  %v534_v48 = vpack.c.bf16 %v466_v45, %v465_v42  ;;  %v6863_v42 = vld [vmem:[%s20884_s16 + $0x5c] sm:$0xff]  ;;  %v6865_v45 = vld [vmem:[%s20884_s16 + $0x6c] sm:$0xff] }
 0x300   : > { %18280 = vmatmul.mubr.msk.bf16.gmra.mrb[72].mxu0 %vm752_vm2, %v5894_v36  ;;  %v442_v36 = vld [vmem:[%s20884_s16 + $0x378] sm:$0xff] }
 0x301   : > { %18283 = vmatprep.mubr.msk.bf16.mxu0 %vm752_vm2, %v5895_v37  ;;  %v5817_v37 = vld [vmem:[%s20884_s16 + $0x324] sm:$0xff]  ;;  %v522_v39 = vpack.c.bf16 %v442_v36, %v441_v33  ;;  %v5836_v33 = vld [vmem:[%s20884_s16 + $0x3bc] sm:$0xff]  ;;  %v5838_v36 = vld [vmem:[%s20884_s16 + $0x3cc] sm:$0xff] }
 0x302   : > { %v5905_v41 = vpack.c.bf16 %v5818_v38, %v5817_v37  ;;  %v532_v37 = vpack.c.bf16 %v462_v7, %v461_v31  ;;  %v5914_v38 = vpack.c.bf16 %v5836_v33, %v5835_v32  ;;  %v5856_v31 = vld [vmem:[%s20884_s16 + $0x45c] sm:$0xff]  ;;  %v6861_v7 = vld [vmem:[%s20884_s16 + $0x4c] sm:$0xff] }
 0x303   : > { %v2364_v33 = vld [vmem:[%s20884_s16 + $0x13a] sm:$0xff] }
 0x305   : > { %17752 = vmatmul.mubr.msk.bf16.gmra.mrb[96].mxu1 %vm752_vm2, %v516_v1  ;;  %v5909_v1 = vpack.c.bf16 %v5826_v62, %v5825_v61 }
 0x306   : > { %17755 = vmatprep.mubr.msk.bf16.mxu1 %vm752_vm2, %v517_v11  ;;  %v5829_v11 = vld [vmem:[%s20884_s16 + $0x384] sm:$0xff] }
 0x308   : > { %18284 = vmatmul.mubr.msk.bf16.gmra.mrb[76].mxu0 %vm752_vm2, %v5896_v50  ;;  %v524_v50 = vpack.c.bf16 %v446_v47, %v445_v26  ;;  %v5840_v26 = vld [vmem:[%s20884_s16 + $0x3dc] sm:$0xff]  ;;  %v5842_v47 = vld [vmem:[%s20884_s16 + $0x3ec] sm:$0xff] }
 0x309   : > { %18287 = vmatprep.mubr.msk.bf16.mxu0 %vm752_vm2, %v5897_v53  ;;  %v447_v53 = vld [vmem:[%s20884_s16 + $0x3a0] sm:$0xff]  ;;  %v5916_v49 = vpack.c.bf16 %v5840_v26, %v5839_v43 }
 0x30a   : > { %v525_v59 = vpack.c.bf16 %v448_v54, %v447_v53  ;;  %v2351_v53 = vld [vmem:[%s20884_s16 + $0xd2] sm:$0xff]  ;;  %v2368_v26 = vld [vmem:[%s20884_s16 + $0x15a] sm:$0xff] }
 0x30b   : > { %v5843_v54 = vld [vmem:[%s20884_s16 + $0x3f4] sm:$0xff]  ;;  %v2474_v61 = vpack.c.bf16 %v2352_v58, %v2351_v53  ;;  %v6867_v53 = vld [vmem:[%s20884_s16 + $0x7c] sm:$0xff]  ;;  %v6869_v58 = vld [vmem:[%s20884_s16 + $0x8c] sm:$0xff] }
 0x30c   : > { %v5918_v62 = vpack.c.bf16 %v5844_v56, %v5843_v54  ;;  %v2372_v56 = vld [vmem:[%s20884_s16 + $0x17a] sm:$0xff] }
 0x30d   : > { %17756 = vmatmul.mubr.msk.bf16.gmra.mrb[100].mxu1 %vm752_vm2, %v518_v16  ;;  %v5911_v16 = vpack.c.bf16 %v5830_v13, %v5829_v11 }
 0x30e   : > { %17759 = vmatprep.mubr.msk.bf16.mxu1 %vm752_vm2, %v519_v12  ;;  %v5833_v12 = vld [vmem:[%s20884_s16 + $0x3a4] sm:$0xff] }
 0x310   : > { %18288 = vmatmul.mubr.msk.bf16.gmra.mrb[80].mxu0 %vm752_vm2, %v5898_v2  ;;  %v451_v2 = vld [vmem:[%s20884_s16 + $0x3c0] sm:$0xff] }
 0x311   : > { %18291 = vmatprep.mubr.msk.bf16.mxu0 %vm752_vm2, %v5899_v4  ;;  %v452_v4 = vld [vmem:[%s20884_s16 + $0x3c8] sm:$0xff] }
 0x312   : > { %v527_v9 = vpack.c.bf16 %v452_v4, %v451_v2  ;;  %v2355_v2 = vld [vmem:[%s20884_s16 + $0xf2] sm:$0xff] }
 0x313   : > { %v5847_v4 = vld [vmem:[%s20884_s16 + $0x414] sm:$0xff]  ;;  %v2476_v11 = vpack.c.bf16 %v2356_v8, %v2355_v2 }
 0x314   : > { %v5920_v13 = vpack.c.bf16 %v5848_v5, %v5847_v4  ;;  %v2376_v4 = vld [vmem:[%s20884_s16 + $0x19a] sm:$0xff]  ;;  %v6872_v5 = vld [vmem:[%s20884_s16 + $0xa4] sm:$0xff] }
 0x315   : > { %17760 = vmatmul.mubr.msk.bf16.gmra.mrb[104].mxu1 %vm752_vm2, %v520_v28  ;;  %v5913_v28 = vpack.c.bf16 %v5834_v24, %v5833_v12 }
 0x316   : > { %17763 = vmatprep.mubr.msk.bf16.mxu1 %vm752_vm2, %v521_v35  ;;  %v5837_v35 = vld [vmem:[%s20884_s16 + $0x3c4] sm:$0xff] }
 0x318   : > { %18292 = vmatmul.mubr.msk.bf16.gmra.mrb[84].mxu0 %vm752_vm2, %v5900_v17  ;;  %v455_v17 = vld [vmem:[%s20884_s16 + $0x3e0] sm:$0xff] }
 0x319   : > { %18295 = vmatprep.mubr.msk.bf16.mxu0 %vm752_vm2, %v5901_v18  ;;  %v456_v18 = vld [vmem:[%s20884_s16 + $0x3e8] sm:$0xff] }
 0x31a   : > { %v529_v22 = vpack.c.bf16 %v456_v18, %v455_v17  ;;  %v2359_v17 = vld [vmem:[%s20884_s16 + $0x112] sm:$0xff] }
 0x31b   : > { %v5851_v18 = vld [vmem:[%s20884_s16 + $0x434] sm:$0xff]  ;;  %v2478_v12 = vpack.c.bf16 %v2360_v21, %v2359_v17 }
 0x31c   : > { %v5922_v24 = vpack.c.bf16 %v5852_v19, %v5851_v18  ;;  %v2380_v18 = vld [vmem:[%s20884_s16 + $0x1ba] sm:$0xff]  ;;  %v6876_v19 = vld [vmem:[%s20884_s16 + $0xc4] sm:$0xff] }
 0x31d   : > { %17764 = vmatmul.mubr.msk.bf16.gmra.mrb[108].mxu1 %vm752_vm2, %v522_v39  ;;  %v5915_v39 = vpack.c.bf16 %v5838_v36, %v5837_v35 }
 0x31e   : > { %17767 = vmatprep.mubr.msk.bf16.mxu1 %vm752_vm2, %v523_v46  ;;  %v5841_v46 = vld [vmem:[%s20884_s16 + $0x3e4] sm:$0xff] }
 0x320   : > { %18296 = vmatmul.mubr.msk.bf16.gmra.mrb[88].mxu0 %vm752_vm2, %v5902_v29  ;;  %v459_v29 = vld [vmem:[%s20884_s16 + $0x400] sm:$0xff] }
 0x321   : > { %18299 = vmatprep.mubr.msk.bf16.mxu0 %vm752_vm2, %v5903_v30  ;;  %v460_v30 = vld [vmem:[%s20884_s16 + $0x408] sm:$0xff] }
 0x322   : > { %v531_v34 = vpack.c.bf16 %v460_v30, %v459_v29  ;;  %v2363_v29 = vld [vmem:[%s20884_s16 + $0x132] sm:$0xff] }
 0x323   : > { %v5855_v30 = vld [vmem:[%s20884_s16 + $0x454] sm:$0xff]  ;;  %v2480_v35 = vpack.c.bf16 %v2364_v33, %v2363_v29 }
 0x324   : > { %v5924_v36 = vpack.c.bf16 %v5856_v31, %v5855_v30  ;;  %v2384_v30 = vld [vmem:[%s20884_s16 + $0x1da] sm:$0xff]  ;;  %v6880_v31 = vld [vmem:[%s20884_s16 + $0xe4] sm:$0xff] }
 0x325   : > { %17768 = vmatmul.mubr.msk.bf16.gmra.mrb[112].mxu1 %vm752_vm2, %v524_v50  ;;  %v5917_v50 = vpack.c.bf16 %v5842_v47, %v5841_v46 }
 0x326   : > { %17771 = vmatprep.mubr.msk.bf16.mxu1 %vm752_vm2, %v525_v59  ;;  %v5845_v59 = vld [vmem:[%s20884_s16 + $0x404] sm:$0xff] }
 0x328   : > { %18300 = vmatmul.mubr.msk.bf16.gmra.mrb[92].mxu0 %vm752_vm2, %v5904_v40  ;;  %v463_v40 = vld [vmem:[%s20884_s16 + $0x420] sm:$0xff] }
 0x329   : > { %18303 = vmatprep.mubr.msk.bf16.mxu0 %vm752_vm2, %v5905_v41  ;;  %v464_v41 = vld [vmem:[%s20884_s16 + $0x428] sm:$0xff] }
 0x32a   : > { %v533_v44 = vpack.c.bf16 %v464_v41, %v463_v40  ;;  %v2367_v40 = vld [vmem:[%s20884_s16 + $0x152] sm:$0xff] }
 0x32b   : > { %v6862_v41 = vld [vmem:[%s20884_s16 + $0x54] sm:$0xff]  ;;  %v2482_v46 = vpack.c.bf16 %v2368_v26, %v2367_v40 }
 0x32c   : > { %v6997_v47 = vpack.c.bf16 %v6863_v42, %v6862_v41  ;;  %v2388_v41 = vld [vmem:[%s20884_s16 + $0x1fa] sm:$0xff]  ;;  %v6884_v42 = vld [vmem:[%s20884_s16 + $0x104] sm:$0xff] }
 0x32d   : > { %17772 = vmatmul.mubr.msk.bf16.gmra.mrb[116].mxu1 %vm752_vm2, %v526_v63  ;;  %v5919_v63 = vpack.c.bf16 %v5846_v60, %v5845_v59 }
 0x32e   : > { %17775 = vmatprep.mubr.msk.bf16.mxu1 %vm752_vm2, %v527_v9  ;;  %v5849_v9 = vld [vmem:[%s20884_s16 + $0x424] sm:$0xff] }
 0x330   : > { %18304 = vmatmul.mubr.msk.bf16.gmra.mrb[96].mxu0 %vm752_vm2, %v5906_v51  ;;  %v2349_v51 = vld [vmem:[%s20884_s16 + $0xc2] sm:$0xff] }
 0x331   : > { %18307 = vmatprep.mubr.msk.bf16.mxu0 %vm752_vm2, %v5907_v52  ;;  %v2350_v52 = vld [vmem:[%s20884_s16 + $0xca] sm:$0xff] }
 0x332   : > { %v2473_v57 = vpack.c.bf16 %v2350_v52, %v2349_v51  ;;  %v2371_v51 = vld [vmem:[%s20884_s16 + $0x172] sm:$0xff] }
 0x333   : > { %v6866_v52 = vld [vmem:[%s20884_s16 + $0x74] sm:$0xff]  ;;  %v2484_v59 = vpack.c.bf16 %v2372_v56, %v2371_v51 }
 0x334   : > { %v6999_v60 = vpack.c.bf16 %v6867_v53, %v6866_v52  ;;  %v2392_v52 = vld [vmem:[%s20884_s16 + $0x21a] sm:$0xff]  ;;  %v6888_v53 = vld [vmem:[%s20884_s16 + $0x124] sm:$0xff] }
 0x335   : > { %17776 = vmatmul.mubr.msk.bf16.gmra.mrb[120].mxu1 %vm752_vm2, %v528_v14  ;;  %v5921_v14 = vpack.c.bf16 %v5850_v10, %v5849_v9 }
 0x336   : > { %17779 = vmatprep.mubr.msk.bf16.mxu1 %vm752_vm2, %v529_v22  ;;  %v5853_v22 = vld [vmem:[%s20884_s16 + $0x444] sm:$0xff] }
 0x338   : > { %18308 = vmatmul.mubr.msk.bf16.gmra.mrb[100].mxu0 %vm752_vm2, %v5908_v0  ;;  %v2353_v0 = vld [vmem:[%s20884_s16 + $0xe2] sm:$0xff] }
 0x339   : > { %18311 = vmatprep.mubr.msk.bf16.mxu0 %vm752_vm2, %v5909_v1  ;;  %v2354_v1 = vld [vmem:[%s20884_s16 + $0xea] sm:$0xff] }
 0x33a   : > { %v2475_v6 = vpack.c.bf16 %v2354_v1, %v2353_v0  ;;  %v6870_v0 = vld [vmem:[%s20884_s16 + $0x94] sm:$0xff]  ;;  %v6871_v1 = vld [vmem:[%s20884_s16 + $0x9c] sm:$0xff] }
 0x33b   : > { %v7001_v9 = vpack.c.bf16 %v6871_v1, %v6870_v0  ;;  %v2396_v0 = vld [vmem:[%s20884_s16 + $0x23a] sm:$0xff]  ;;  %v6892_v1 = vld [vmem:[%s20884_s16 + $0x144] sm:$0xff] }
 0x33d   : > { %17780 = vmatmul.mubr.msk.bf16.gmra.mrb[124].mxu1 %vm752_vm2, %v530_v25  ;;  %v5923_v25 = vpack.c.bf16 %v5854_v23, %v5853_v22 }
 0x33e   : > { %17783 = vmatprep.mubr.msk.bf16.mxu1 %vm752_vm2, %v531_v34  ;;  %v6860_v34 = vld [vmem:[%s20884_s16 + $0x44] sm:$0xff] }
 0x340   : > { %18312 = vmatmul.mubr.msk.bf16.gmra.mrb[104].mxu0 %vm752_vm2, %v5910_v15  ;;  %v2357_v15 = vld [vmem:[%s20884_s16 + $0x102] sm:$0xff] }
 0x341   : > { %18315 = vmatprep.mubr.msk.bf16.mxu0 %vm752_vm2, %v5911_v16  ;;  %v2358_v16 = vld [vmem:[%s20884_s16 + $0x10a] sm:$0xff] }
 0x342   : > { %v2477_v20 = vpack.c.bf16 %v2358_v16, %v2357_v15  ;;  %v6874_v15 = vld [vmem:[%s20884_s16 + $0xb4] sm:$0xff]  ;;  %v6875_v16 = vld [vmem:[%s20884_s16 + $0xbc] sm:$0xff] }
 0x343   : > { %v7003_v22 = vpack.c.bf16 %v6875_v16, %v6874_v15  ;;  %v2400_v15 = vld [vmem:[%s20884_s16 + $0x25a] sm:$0xff]  ;;  %v6896_v16 = vld [vmem:[%s20884_s16 + $0x164] sm:$0xff] }
 0x345   : > { %17784 = vmatmul.mubr.msk.bf16.gmra.mrb[128].mxu1 %vm752_vm2, %v532_v37  ;;  %v6996_v37 = vpack.c.bf16 %v6861_v7, %v6860_v34 }
 0x346   : > { %17787 = vmatprep.mubr.msk.bf16.mxu1 %vm752_vm2, %v533_v44  ;;  %v6864_v44 = vld [vmem:[%s20884_s16 + $0x64] sm:$0xff] }
 0x348   : > { %18316 = vmatmul.mubr.msk.bf16.gmra.mrb[108].mxu0 %vm752_vm2, %v5912_v27  ;;  %v2361_v27 = vld [vmem:[%s20884_s16 + $0x122] sm:$0xff] }
 0x349   : > { %18319 = vmatprep.mubr.msk.bf16.mxu0 %vm752_vm2, %v5913_v28  ;;  %v2362_v28 = vld [vmem:[%s20884_s16 + $0x12a] sm:$0xff] }
 0x34a   : > { %v2479_v32 = vpack.c.bf16 %v2362_v28, %v2361_v27  ;;  %v6878_v27 = vld [vmem:[%s20884_s16 + $0xd4] sm:$0xff]  ;;  %v6879_v28 = vld [vmem:[%s20884_s16 + $0xdc] sm:$0xff] }
 0x34b   : > { %v7005_v34 = vpack.c.bf16 %v6879_v28, %v6878_v27  ;;  %v2404_v27 = vld [vmem:[%s20884_s16 + $0x27a] sm:$0xff]  ;;  %v6900_v28 = vld [vmem:[%s20884_s16 + $0x184] sm:$0xff] }
 0x34d   : > { %17788 = vmatmul.mubr.msk.bf16.gmra.mrb[132].mxu1 %vm752_vm2, %v534_v48  ;;  %v6998_v48 = vpack.c.bf16 %v6865_v45, %v6864_v44 }
 0x34e   : > { %17817 = vmatprep.mubr.msk.bf16.mxu1 %vm752_vm2, %v2473_v57  ;;  %v6868_v57 = vld [vmem:[%s20884_s16 + $0x84] sm:$0xff] }
 0x350   : > { %18320 = vmatmul.mubr.msk.bf16.gmra.mrb[112].mxu0 %vm752_vm2, %v5914_v38  ;;  %v2365_v38 = vld [vmem:[%s20884_s16 + $0x142] sm:$0xff] }
 0x351   : > { %18323 = vmatprep.mubr.msk.bf16.mxu0 %vm752_vm2, %v5915_v39  ;;  %v2366_v39 = vld [vmem:[%s20884_s16 + $0x14a] sm:$0xff] }
 0x352   : > { %v2481_v43 = vpack.c.bf16 %v2366_v39, %v2365_v38  ;;  %v6882_v38 = vld [vmem:[%s20884_s16 + $0xf4] sm:$0xff]  ;;  %v6883_v39 = vld [vmem:[%s20884_s16 + $0xfc] sm:$0xff] }
 0x353   : > { %v7007_v44 = vpack.c.bf16 %v6883_v39, %v6882_v38  ;;  %v2408_v38 = vld [vmem:[%s20884_s16 + $0x29a] sm:$0xff]  ;;  %v6904_v39 = vld [vmem:[%s20884_s16 + $0x1a4] sm:$0xff] }
 0x355   : > { %17818 = vmatmul.mubr.msk.bf16.vlgmr.msra.gmra.mrb[24].mxu1 %vm752_vm2, %v2474_v61  ;;  %v7000_v61 = vpack.c.bf16 %v6869_v58, %v6868_v57 }
 0x356   : > { %17821 = vmatprep.mubr.msk.bf16.mxu1 %vm752_vm2, %v2475_v6  ;;  %v6873_v6 = vld [vmem:[%s20884_s16 + $0xac] sm:$0xff] }
 0x357   : > { %v7002_v10 = vpack.c.bf16 %v6873_v6, %v6872_v5 }
 0x358   : > { %18324 = vmatmul.mubr.msk.bf16.gmra.mrb[116].mxu0 %vm752_vm2, %v5916_v49  ;;  %v2369_v49 = vld [vmem:[%s20884_s16 + $0x162] sm:$0xff] }
 0x359   : > { %18327 = vmatprep.mubr.msk.bf16.mxu0 %vm752_vm2, %v5917_v50  ;;  %v2370_v50 = vld [vmem:[%s20884_s16 + $0x16a] sm:$0xff] }
 0x35a   : > { %v2483_v54 = vpack.c.bf16 %v2370_v50, %v2369_v49  ;;  %v6886_v49 = vld [vmem:[%s20884_s16 + $0x114] sm:$0xff]  ;;  %v6887_v50 = vld [vmem:[%s20884_s16 + $0x11c] sm:$0xff] }
 0x35b   : > { %v7009_v57 = vpack.c.bf16 %v6887_v50, %v6886_v49  ;;  %v2412_v49 = vld [vmem:[%s20884_s16 + $0x2ba] sm:$0xff]  ;;  %v6908_v50 = vld [vmem:[%s20884_s16 + $0x1c4] sm:$0xff] }
 0x35d   : > { %17822 = vmatmul.mubr.msk.bf16.gmra.mrb[28].mxu1 %vm752_vm2, %v2476_v11  ;;  %v2377_v11 = vld [vmem:[%s20884_s16 + $0x1a2] sm:$0xff] }
 0x35e   : > { %17825 = vmatprep.mubr.msk.bf16.mxu1 %vm752_vm2, %v2477_v20  ;;  %v6877_v20 = vld [vmem:[%s20884_s16 + $0xcc] sm:$0xff] }
 0x35f   : > { %v7004_v23 = vpack.c.bf16 %v6877_v20, %v6876_v19 }
 0x360   : > { %18328 = vmatmul.mubr.msk.bf16.gmra.mrb[120].mxu0 %vm752_vm2, %v5918_v62  ;;  %v2374_v62 = vld [vmem:[%s20884_s16 + $0x18a] sm:$0xff] }
 0x361   : > { %18331 = vmatprep.mubr.msk.bf16.mxu0 %vm752_vm2, %v5919_v63  ;;  %v2375_v63 = vld [vmem:[%s20884_s16 + $0x192] sm:$0xff] }
 0x362   : > { %v2486_v8 = vpack.c.bf16 %v2376_v4, %v2375_v63 }
 0x365   : > { %17826 = vmatmul.mubr.msk.bf16.gmra.mrb[32].mxu1 %vm752_vm2, %v2478_v12  ;;  %v2381_v12 = vld [vmem:[%s20884_s16 + $0x1c2] sm:$0xff] }
 0x366   : > { %17829 = vmatprep.mubr.msk.bf16.mxu1 %vm752_vm2, %v2479_v32  ;;  %v6881_v32 = vld [vmem:[%s20884_s16 + $0xec] sm:$0xff] }
 0x367   : > { %v7006_v7 = vpack.c.bf16 %v6881_v32, %v6880_v31 }
 0x368   : > { %18332 = vmatmul.mubr.msk.bf16.gmra.mrb[124].mxu0 %vm752_vm2, %v5920_v13  ;;  %v2378_v13 = vld [vmem:[%s20884_s16 + $0x1aa] sm:$0xff] }
 0x369   : > { %18335 = vmatprep.mubr.msk.bf16.mxu0 %vm752_vm2, %v5921_v14  ;;  %v2379_v14 = vld [vmem:[%s20884_s16 + $0x1b2] sm:$0xff]  ;;  %v2487_v17 = vpack.c.bf16 %v2378_v13, %v2377_v11  ;;  %v6895_v13 = vld [vmem:[%s20884_s16 + $0x15c] sm:$0xff] }
 0x36a   : > { %v2488_v21 = vpack.c.bf16 %v2380_v18, %v2379_v14  ;;  %v6894_v11 = vld [vmem:[%s20884_s16 + $0x154] sm:$0xff] }
 0x36b   : > { %v7013_v19 = vpack.c.bf16 %v6895_v13, %v6894_v11  ;;  %v2420_v11 = vld [vmem:[%s20884_s16 + $0x2fa] sm:$0xff]  ;;  %v6916_v13 = vld [vmem:[%s20884_s16 + $0x204] sm:$0xff] }
 0x36d   : > { %17830 = vmatmul.mubr.msk.bf16.gmra.mrb[36].mxu1 %vm752_vm2, %v2480_v35  ;;  %v2385_v35 = vld [vmem:[%s20884_s16 + $0x1e2] sm:$0xff] }
 0x36e   : > { %17833 = vmatprep.mubr.msk.bf16.mxu1 %vm752_vm2, %v2481_v43  ;;  %v6885_v43 = vld [vmem:[%s20884_s16 + $0x10c] sm:$0xff] }
 0x36f   : > { %v7008_v45 = vpack.c.bf16 %v6885_v43, %v6884_v42 }
 0x370   : > { %18336 = vmatmul.mubr.msk.bf16.gmra.mrb[128].mxu0 %vm752_vm2, %v5922_v24  ;;  %v2382_v24 = vld [vmem:[%s20884_s16 + $0x1ca] sm:$0xff] }
 0x371   : > { %18339 = vmatprep.mubr.msk.bf16.mxu0 %vm752_vm2, %v5923_v25  ;;  %v2383_v25 = vld [vmem:[%s20884_s16 + $0x1d2] sm:$0xff]  ;;  %v2489_v29 = vpack.c.bf16 %v2382_v24, %v2381_v12  ;;  %v6899_v24 = vld [vmem:[%s20884_s16 + $0x17c] sm:$0xff] }
 0x372   : > { %v2490_v33 = vpack.c.bf16 %v2384_v30, %v2383_v25  ;;  %v6898_v12 = vld [vmem:[%s20884_s16 + $0x174] sm:$0xff] }
 0x373   : > { %v7015_v31 = vpack.c.bf16 %v6899_v24, %v6898_v12  ;;  %v2424_v12 = vld [vmem:[%s20884_s16 + $0x31a] sm:$0xff]  ;;  %v6920_v24 = vld [vmem:[%s20884_s16 + $0x224] sm:$0xff] }
 0x375   : > { %17834 = vmatmul.mubr.msk.bf16.gmra.mrb[40].mxu1 %vm752_vm2, %v2482_v46  ;;  %v2389_v46 = vld [vmem:[%s20884_s16 + $0x202] sm:$0xff] }
 0x376   : > { %17837 = vmatprep.mubr.msk.bf16.mxu1 %vm752_vm2, %v2483_v54  ;;  %v6889_v54 = vld [vmem:[%s20884_s16 + $0x12c] sm:$0xff] }
 0x377   : > { %v7010_v58 = vpack.c.bf16 %v6889_v54, %v6888_v53 }
 0x378   : > { %18340 = vmatmul.mubr.msk.bf16.gmra.mrb[132].mxu0 %vm752_vm2, %v5924_v36  ;;  %v2386_v36 = vld [vmem:[%s20884_s16 + $0x1ea] sm:$0xff] }
 0x379   : > { %18345 = vmatprep.mubr.msk.bf16.mxu0 %vm752_vm2, %v6996_v37  ;;  %v2387_v37 = vld [vmem:[%s20884_s16 + $0x1f2] sm:$0xff]  ;;  %v2491_v40 = vpack.c.bf16 %v2386_v36, %v2385_v35  ;;  %v6903_v36 = vld [vmem:[%s20884_s16 + $0x19c] sm:$0xff] }
 0x37a   : > { %v2492_v26 = vpack.c.bf16 %v2388_v41, %v2387_v37  ;;  %v6902_v35 = vld [vmem:[%s20884_s16 + $0x194] sm:$0xff] }
 0x37b   : > { %v7017_v42 = vpack.c.bf16 %v6903_v36, %v6902_v35  ;;  %v2428_v35 = vld [vmem:[%s20884_s16 + $0x33a] sm:$0xff]  ;;  %v6924_v36 = vld [vmem:[%s20884_s16 + $0x244] sm:$0xff] }
 0x37d   : > { %17838 = vmatmul.mubr.msk.bf16.gmra.mrb[44].mxu1 %vm752_vm2, %v2484_v59  ;;  %v2393_v59 = vld [vmem:[%s20884_s16 + $0x222] sm:$0xff] }
 0x380   : > { %18346 = vmatmul.mubr.msk.bf16.vlgmr.msra.gmra.mrb[0].mxu0 %vm752_vm2, %v6997_v47  ;;  %v2390_v47 = vld [vmem:[%s20884_s16 + $0x20a] sm:$0xff] }
 0x381   : > { %18482 = vmatpush3.bf16.msra.mxu0 %v21814_v55  ;;  %18349 = vmatprep.mubr.msk.bf16.mxu0 %vm752_vm2, %v6998_v48  ;;  %v2373_v55 = vld [vmem:[%s20884_s16 + $0x182] sm:$0xff]  ;;  %v2391_v48 = vld [vmem:[%s20884_s16 + $0x212] sm:$0xff]  ;;  %v2493_v51 = vpack.c.bf16 %v2390_v47, %v2389_v46 }
 0x382   : > { %v2485_v2 = vpack.c.bf16 %v2374_v62, %v2373_v55  ;;  %v2494_v56 = vpack.c.bf16 %v2392_v52, %v2391_v48  ;;  %v6890_v55 = vld [vmem:[%s20884_s16 + $0x134] sm:$0xff]  ;;  %v6891_v62 = vld [vmem:[%s20884_s16 + $0x13c] sm:$0xff] }
 0x383   : > { %v7011_v5 = vpack.c.bf16 %v6891_v62, %v6890_v55  ;;  %v6906_v46 = vld [vmem:[%s20884_s16 + $0x1b4] sm:$0xff]  ;;  %v6907_v47 = vld [vmem:[%s20884_s16 + $0x1bc] sm:$0xff]  ;;  %v6912_v62 = vld [vmem:[%s20884_s16 + $0x1e4] sm:$0xff] }
 0x384   : > { %17841 = vmatprep.mubr.msk.bf16.mxu1 %vm752_vm2, %v2485_v2  ;;  %v6893_v2 = vld [vmem:[%s20884_s16 + $0x14c] sm:$0xff]  ;;  %v7019_v53 = vpack.c.bf16 %v6907_v47, %v6906_v46  ;;  %v2416_v55 = vld [vmem:[%s20884_s16 + $0x2da] sm:$0xff]  ;;  %v6928_v47 = vld [vmem:[%s20884_s16 + $0x264] sm:$0xff] }
 0x385   : > { %17842 = vmatmul.mubr.msk.bf16.gmra.mrb[48].mxu1 %vm752_vm2, %v2486_v8  ;;  %v7012_v6 = vpack.c.bf16 %v6893_v2, %v6892_v1  ;;  %v2397_v8 = vld [vmem:[%s20884_s16 + $0x242] sm:$0xff]  ;;  %v2432_v46 = vld [vmem:[%s20884_s16 + $0x35a] sm:$0xff] }
 0x386   : > { %17845 = vmatprep.mubr.msk.bf16.mxu1 %vm752_vm2, %v2487_v17  ;;  %v6897_v17 = vld [vmem:[%s20884_s16 + $0x16c] sm:$0xff] }
 0x387   : > { %v7014_v20 = vpack.c.bf16 %v6897_v17, %v6896_v16 }
 0x388   : > { %18350 = vmatmul.mubr.msk.bf16.gmra.mrb[4].mxu0 %vm752_vm2, %v6999_v60  ;;  %v2394_v60 = vld [vmem:[%s20884_s16 + $0x22a] sm:$0xff] }
 0x389   : > { %18353 = vmatprep.mubr.msk.bf16.mxu0 %vm752_vm2, %v7000_v61  ;;  %v2395_v61 = vld [vmem:[%s20884_s16 + $0x232] sm:$0xff]  ;;  %v2495_v63 = vpack.c.bf16 %v2394_v60, %v2393_v59  ;;  %v6911_v60 = vld [vmem:[%s20884_s16 + $0x1dc] sm:$0xff] }
 0x38a   : > { %v2496_v4 = vpack.c.bf16 %v2396_v0, %v2395_v61  ;;  %v6910_v59 = vld [vmem:[%s20884_s16 + $0x1d4] sm:$0xff] }
 0x38b   : > { %v7021_v1 = vpack.c.bf16 %v6911_v60, %v6910_v59 }
 0x38d   : > { %17846 = vmatmul.mubr.msk.bf16.gmra.mrb[52].mxu1 %vm752_vm2, %v2488_v21  ;;  %v2401_v21 = vld [vmem:[%s20884_s16 + $0x262] sm:$0xff] }
 0x38e   : > { %17849 = vmatprep.mubr.msk.bf16.mxu1 %vm752_vm2, %v2489_v29  ;;  %v6901_v29 = vld [vmem:[%s20884_s16 + $0x18c] sm:$0xff] }
 0x38f   : > { %v7016_v32 = vpack.c.bf16 %v6901_v29, %v6900_v28 }
 0x390   : > { %18354 = vmatmul.mubr.msk.bf16.gmra.mrb[8].mxu0 %vm752_vm2, %v7001_v9  ;;  %v2398_v9 = vld [vmem:[%s20884_s16 + $0x24a] sm:$0xff] }
 0x391   : > { %18357 = vmatprep.mubr.msk.bf16.mxu0 %vm752_vm2, %v7002_v10  ;;  %v2399_v10 = vld [vmem:[%s20884_s16 + $0x252] sm:$0xff]  ;;  %v2497_v14 = vpack.c.bf16 %v2398_v9, %v2397_v8  ;;  %v6915_v9 = vld [vmem:[%s20884_s16 + $0x1fc] sm:$0xff] }
 0x392   : > { %v2498_v18 = vpack.c.bf16 %v2400_v15, %v2399_v10  ;;  %v6914_v8 = vld [vmem:[%s20884_s16 + $0x1f4] sm:$0xff] }
 0x393   : > { %v7023_v16 = vpack.c.bf16 %v6915_v9, %v6914_v8  ;;  %v2438_v8 = vld [vmem:[%s20884_s16 + $0x38a] sm:$0xff]  ;;  %v2439_v9 = vld [vmem:[%s20884_s16 + $0x392] sm:$0xff] }
 0x395   : > { %17850 = vmatmul.mubr.msk.bf16.gmra.mrb[56].mxu1 %vm752_vm2, %v2490_v33  ;;  %v2405_v33 = vld [vmem:[%s20884_s16 + $0x282] sm:$0xff] }
 0x396   : > { %17853 = vmatprep.mubr.msk.bf16.mxu1 %vm752_vm2, %v2491_v40  ;;  %v6905_v40 = vld [vmem:[%s20884_s16 + $0x1ac] sm:$0xff] }
 0x397   : > { %v7018_v43 = vpack.c.bf16 %v6905_v40, %v6904_v39 }
 0x398   : > { %18358 = vmatmul.mubr.msk.bf16.gmra.mrb[12].mxu0 %vm752_vm2, %v7003_v22  ;;  %v2402_v22 = vld [vmem:[%s20884_s16 + $0x26a] sm:$0xff] }
 0x399   : > { %18361 = vmatprep.mubr.msk.bf16.mxu0 %vm752_vm2, %v7004_v23  ;;  %v2403_v23 = vld [vmem:[%s20884_s16 + $0x272] sm:$0xff]  ;;  %v2499_v25 = vpack.c.bf16 %v2402_v22, %v2401_v21  ;;  %v6919_v22 = vld [vmem:[%s20884_s16 + $0x21c] sm:$0xff] }
 0x39a   : > { %v2500_v30 = vpack.c.bf16 %v2404_v27, %v2403_v23  ;;  %v6918_v21 = vld [vmem:[%s20884_s16 + $0x214] sm:$0xff] }
 0x39b   : > { %v7025_v28 = vpack.c.bf16 %v6919_v22, %v6918_v21 }
 0x39d   : > { %17854 = vmatmul.mubr.msk.bf16.gmra.mrb[60].mxu1 %vm752_vm2, %v2492_v26  ;;  %v2409_v26 = vld [vmem:[%s20884_s16 + $0x2a2] sm:$0xff] }
 0x39e   : > { %17857 = vmatprep.mubr.msk.bf16.mxu1 %vm752_vm2, %v2493_v51  ;;  %v6909_v51 = vld [vmem:[%s20884_s16 + $0x1cc] sm:$0xff] }
 0x39f   : > { %v7020_v54 = vpack.c.bf16 %v6909_v51, %v6908_v50 }
 0x3a0   : > { %18362 = vmatmul.mubr.msk.bf16.gmra.mrb[16].mxu0 %vm752_vm2, %v7005_v34  ;;  %v2406_v34 = vld [vmem:[%s20884_s16 + $0x28a] sm:$0xff] }
 0x3a1   : > { %18365 = vmatprep.mubr.msk.bf16.mxu0 %vm752_vm2, %v7006_v7  ;;  %v2407_v7 = vld [vmem:[%s20884_s16 + $0x292] sm:$0xff]  ;;  %v2501_v37 = vpack.c.bf16 %v2406_v34, %v2405_v33  ;;  %v6923_v34 = vld [vmem:[%s20884_s16 + $0x23c] sm:$0xff] }
 0x3a2   : > { %v2502_v41 = vpack.c.bf16 %v2408_v38, %v2407_v7  ;;  %v6922_v33 = vld [vmem:[%s20884_s16 + $0x234] sm:$0xff] }
 0x3a3   : > { %v7027_v39 = vpack.c.bf16 %v6923_v34, %v6922_v33  ;;  %v6941_v33 = vld [vmem:[%s20884_s16 + $0x2cc] sm:$0xff] }
 0x3a5   : > { %17858 = vmatmul.mubr.msk.bf16.gmra.mrb[64].mxu1 %vm752_vm2, %v2494_v56  ;;  %v2413_v56 = vld [vmem:[%s20884_s16 + $0x2c2] sm:$0xff] }
 0x3a6   : > { %17861 = vmatprep.mubr.msk.bf16.mxu1 %vm752_vm2, %v2495_v63  ;;  %v6913_v63 = vld [vmem:[%s20884_s16 + $0x1ec] sm:$0xff] }
 0x3a7   : > { %v7022_v2 = vpack.c.bf16 %v6913_v63, %v6912_v62  ;;  %v6933_v62 = vld [vmem:[%s20884_s16 + $0x28c] sm:$0xff] }
 0x3a8   : > { %18366 = vmatmul.mubr.msk.bf16.gmra.mrb[20].mxu0 %vm752_vm2, %v7007_v44  ;;  %v2410_v44 = vld [vmem:[%s20884_s16 + $0x2aa] sm:$0xff] }
 0x3a9   : > { %18369 = vmatprep.mubr.msk.bf16.mxu0 %vm752_vm2, %v7008_v45  ;;  %v2411_v45 = vld [vmem:[%s20884_s16 + $0x2b2] sm:$0xff]  ;;  %v2503_v48 = vpack.c.bf16 %v2410_v44, %v2409_v26  ;;  %v6927_v44 = vld [vmem:[%s20884_s16 + $0x25c] sm:$0xff] }
 0x3aa   : > { %v2504_v52 = vpack.c.bf16 %v2412_v49, %v2411_v45  ;;  %v6926_v26 = vld [vmem:[%s20884_s16 + $0x254] sm:$0xff] }
 0x3ab   : > { %v7029_v50 = vpack.c.bf16 %v6927_v44, %v6926_v26  ;;  %v6943_v26 = vld [vmem:[%s20884_s16 + $0x2dc] sm:$0xff] }
 0x3ad   : > { %17862 = vmatmul.mubr.msk.bf16.gmra.mrb[68].mxu1 %vm752_vm2, %v2496_v4  ;;  %v2417_v4 = vld [vmem:[%s20884_s16 + $0x2e2] sm:$0xff] }
 0x3ae   : > { %17865 = vmatprep.mubr.msk.bf16.mxu1 %vm752_vm2, %v2497_v14  ;;  %v6917_v14 = vld [vmem:[%s20884_s16 + $0x20c] sm:$0xff] }
 0x3af   : > { %v7024_v17 = vpack.c.bf16 %v6917_v14, %v6916_v13 }
 0x3b0   : > { %18370 = vmatmul.mubr.msk.bf16.gmra.mrb[24].mxu0 %vm752_vm2, %v7009_v57  ;;  %v2414_v57 = vld [vmem:[%s20884_s16 + $0x2ca] sm:$0xff] }
 0x3b1   : > { %18373 = vmatprep.mubr.msk.bf16.mxu0 %vm752_vm2, %v7010_v58  ;;  %v2415_v58 = vld [vmem:[%s20884_s16 + $0x2d2] sm:$0xff]  ;;  %v2505_v61 = vpack.c.bf16 %v2414_v57, %v2413_v56 }
 0x3b2   : > { %v2506_v0 = vpack.c.bf16 %v2416_v55, %v2415_v58  ;;  %v2435_v56 = vld [vmem:[%s20884_s16 + $0x372] sm:$0xff]  ;;  %v6931_v58 = vld [vmem:[%s20884_s16 + $0x27c] sm:$0xff]  ;;  %v6932_v55 = vld [vmem:[%s20884_s16 + $0x284] sm:$0xff] }
 0x3b3   : > { %v6930_v57 = vld [vmem:[%s20884_s16 + $0x274] sm:$0xff] }
 0x3b5   : > { %17866 = vmatmul.mubr.msk.bf16.gmra.mrb[72].mxu1 %vm752_vm2, %v2498_v18  ;;  %v2421_v18 = vld [vmem:[%s20884_s16 + $0x302] sm:$0xff] }
 0x3b6   : > { %17869 = vmatprep.mubr.msk.bf16.mxu1 %vm752_vm2, %v2499_v25  ;;  %v6921_v25 = vld [vmem:[%s20884_s16 + $0x22c] sm:$0xff] }
 0x3b7   : > { %v7026_v29 = vpack.c.bf16 %v6921_v25, %v6920_v24  ;;  %v9329_v24 = vld [vmem:[%s24219_s1 + $0xc] sm:$0x3] }
 0x3b8   : > { %18374 = vmatmul.mubr.msk.bf16.gmra.mrb[28].mxu0 %vm752_vm2, %v7011_v5  ;;  %v2418_v5 = vld [vmem:[%s20884_s16 + $0x2ea] sm:$0xff] }
 0x3b9   : > { %18377 = vmatprep.mubr.msk.bf16.mxu0 %vm752_vm2, %v7012_v6  ;;  %v2419_v6 = vld [vmem:[%s20884_s16 + $0x2f2] sm:$0xff]  ;;  %v2507_v10 = vpack.c.bf16 %v2418_v5, %v2417_v4  ;;  %v7032_v4 = vpack.c.bf16 %v6933_v62, %v6932_v55  ;;  %v6947_v55 = vld [vmem:[%s20884_s16 + $0x2fc] sm:$0xff] }
 0x3ba   : > { %v2508_v15 = vpack.c.bf16 %v2420_v11, %v2419_v6  ;;  %v2437_v6 = vld [vmem:[%s20884_s16 + $0x382] sm:$0xff] }
 0x3bb   : > { %v6935_v11 = vld [vmem:[%s20884_s16 + $0x29c] sm:$0xff]  ;;  %v2517_v14 = vpack.c.bf16 %v2438_v8, %v2437_v6  ;;  %v6949_v6 = vld [vmem:[%s20884_s16 + $0x30c] sm:$0xff] }
 0x3bd   : > { %17870 = vmatmul.mubr.msk.bf16.gmra.mrb[76].mxu1 %vm752_vm2, %v2500_v30  ;;  %v2425_v30 = vld [vmem:[%s20884_s16 + $0x322] sm:$0xff] }
 0x3be   : > { %17873 = vmatprep.mubr.msk.bf16.mxu1 %vm752_vm2, %v2501_v37  ;;  %v6925_v37 = vld [vmem:[%s20884_s16 + $0x24c] sm:$0xff] }
 0x3bf   : > { %v7028_v40 = vpack.c.bf16 %v6925_v37, %v6924_v36 }
 0x3c0   : > { %18378 = vmatmul.mubr.msk.bf16.gmra.mrb[32].mxu0 %vm752_vm2, %v7013_v19  ;;  %v2422_v19 = vld [vmem:[%s20884_s16 + $0x30a] sm:$0xff] }
 0x3c1   : > { %18381 = vmatprep.mubr.msk.bf16.mxu0 %vm752_vm2, %v7014_v20  ;;  %v2423_v20 = vld [vmem:[%s20884_s16 + $0x312] sm:$0xff]  ;;  %v2509_v23 = vpack.c.bf16 %v2422_v19, %v2421_v18 }
 0x3c2   : > { %v2510_v27 = vpack.c.bf16 %v2424_v12, %v2423_v20  ;;  %v6939_v12 = vld [vmem:[%s20884_s16 + $0x2bc] sm:$0xff] }
 0x3c5   : > { %17874 = vmatmul.mubr.msk.bf16.gmra.mrb[80].mxu1 %vm752_vm2, %v2502_v41  ;;  %v2429_v41 = vld [vmem:[%s20884_s16 + $0x342] sm:$0xff] }
 0x3c6   : > { %17877 = vmatprep.mubr.msk.bf16.mxu1 %vm752_vm2, %v2503_v48  ;;  %v6929_v48 = vld [vmem:[%s20884_s16 + $0x26c] sm:$0xff] }
 0x3c7   : > { %v7030_v51 = vpack.c.bf16 %v6929_v48, %v6928_v47  ;;  %v6944_v47 = vld [vmem:[%s20884_s16 + $0x2e4] sm:$0xff]  ;;  %v6945_v48 = vld [vmem:[%s20884_s16 + $0x2ec] sm:$0xff] }
 0x3c8   : > { %18382 = vmatmul.mubr.msk.bf16.gmra.mrb[36].mxu0 %vm752_vm2, %v7015_v31  ;;  %v2426_v31 = vld [vmem:[%s20884_s16 + $0x32a] sm:$0xff] }
 0x3c9   : > { %18385 = vmatprep.mubr.msk.bf16.mxu0 %vm752_vm2, %v7016_v32  ;;  %v2427_v32 = vld [vmem:[%s20884_s16 + $0x332] sm:$0xff]  ;;  %v2511_v7 = vpack.c.bf16 %v2426_v31, %v2425_v30  ;;  %v2442_v30 = vld [vmem:[%s20884_s16 + $0x3aa] sm:$0xff] }
 0x3ca   : > { %v2512_v38 = vpack.c.bf16 %v2428_v35, %v2427_v32  ;;  %v2443_v31 = vld [vmem:[%s20884_s16 + $0x3b2] sm:$0xff]  ;;  %v6940_v32 = vld [vmem:[%s20884_s16 + $0x2c4] sm:$0xff]  ;;  %v2444_v35 = vld [vmem:[%s20884_s16 + $0x3ba] sm:$0xff] }
 0x3cb   : > { %v2520_v36 = vpack.c.bf16 %v2444_v35, %v2443_v31 }
 0x3cd   : > { %17878 = vmatmul.mubr.msk.bf16.gmra.mrb[84].mxu1 %vm752_vm2, %v2504_v52  ;;  %v22190_v52 = vpop.f32.mrb[0].mxu1 }
 0x3ce   : > { %17881 = vmatprep.mubr.msk.bf16.mxu1 %vm752_vm2, %v2505_v61  ;;  %v22198_v59 = vpop.f32.mrb[1].mxu1  ;;  %v2436_v61 = vld [vmem:[%s20884_s16 + $0x37a] sm:$0xff] }
 0x3cf   : > { %v22203_v63 = vpop.f32.mrb[2].mxu1 }
 0x3d0   : > { %18386 = vmatmul.mubr.msk.bf16.gmra.mrb[40].mxu0 %vm752_vm2, %v7017_v42  ;;  %v2430_v42 = vld [vmem:[%s20884_s16 + $0x34a] sm:$0xff] }
 0x3d1   : > { %18389 = vmatprep.mubr.msk.bf16.mxu0 %vm752_vm2, %v7018_v43  ;;  %v2431_v43 = vld [vmem:[%s20884_s16 + $0x352] sm:$0xff]  ;;  %v2513_v45 = vpack.c.bf16 %v2430_v42, %v2429_v41  ;;  %v2446_v41 = vld [vmem:[%s20884_s16 + $0x3ca] sm:$0xff] }
 0x3d2   : > { %v2514_v49 = vpack.c.bf16 %v2432_v46, %v2431_v43  ;;  %v2447_v42 = vld [vmem:[%s20884_s16 + $0x3d2] sm:$0xff]  ;;  %v2448_v46 = vld [vmem:[%s20884_s16 + $0x3da] sm:$0xff] }
 0x3d3   : > { %v6942_v43 = vld [vmem:[%s20884_s16 + $0x2d4] sm:$0xff] }
 0x3d5   : > { %17882 = vmatmul.mubr.msk.bf16.gmra.mrb[88].mxu1 %vm752_vm2, %v2506_v0  ;;  %v2516_v0 = vpack.c.bf16 %v2436_v61, %v2435_v56  ;;  %v6946_v61 = vld [vmem:[%s20884_s16 + $0x2f4] sm:$0xff] }
 0x3d6   : > { %17885 = vmatprep.mubr.msk.bf16.mxu1 %vm752_vm2, %v2507_v10  ;;  %v6934_v10 = vld [vmem:[%s20884_s16 + $0x294] sm:$0xff] }
 0x3d7   : > { %v7033_v21 = vpack.c.bf16 %v6935_v11, %v6934_v10  ;;  %v7039_v11 = vpack.c.bf16 %v6947_v55, %v6946_v61  ;;  %v6959_v61 = vld [vmem:[%s20884_s16 + $0x35c] sm:$0xff] }
 0x3d8   : > { %18390 = vmatmul.mubr.msk.bf16.gmra.mrb[44].mxu0 %vm752_vm2, %v7019_v53  ;;  %v2433_v53 = vld [vmem:[%s20884_s16 + $0x362] sm:$0xff] }
 0x3d9   : > { %18393 = vmatprep.mubr.msk.bf16.mxu0 %vm752_vm2, %v7020_v54  ;;  %v2434_v54 = vld [vmem:[%s20884_s16 + $0x36a] sm:$0xff] }
 0x3da   : > { %v2515_v60 = vpack.c.bf16 %v2434_v54, %v2433_v53  ;;  %v7037_v53 = vpack.c.bf16 %v6943_v26, %v6942_v43  ;;  %v7038_v54 = vpack.c.bf16 %v6945_v48, %v6944_v47  ;;  %v6957_v47 = vld [vmem:[%s20884_s16 + $0x34c] sm:$0xff] }
 0x3dd   : > { %17886 = vmatmul.mubr.msk.bf16.gmra.mrb[92].mxu1 %vm752_vm2, %v2508_v15  ;;  %v2440_v15 = vld [vmem:[%s20884_s16 + $0x39a] sm:$0xff] }
 0x3de   : > { %17889 = vmatprep.mubr.msk.bf16.mxu1 %vm752_vm2, %v2509_v23  ;;  %v2518_v19 = vpack.c.bf16 %v2440_v15, %v2439_v9  ;;  %v6938_v23 = vld [vmem:[%s20884_s16 + $0x2b4] sm:$0xff] }
 0x3df   : > { %v7035_v37 = vpack.c.bf16 %v6939_v12, %v6938_v23 }
 0x3e0   : > { %18394 = vmatmul.mubr.msk.bf16.gmra.mrb[48].mxu0 %vm752_vm2, %v7021_v1  ;;  %v22205_v1 = vpop.f32.mrb[3].mxu1 }
 0x3e1   : > { %18397 = vmatprep.mubr.msk.bf16.mxu0 %vm752_vm2, %v7022_v2  ;;  %v7031_v2 = vpack.c.bf16 %v6931_v58, %v6930_v57  ;;  %v22210_v5 = vpop.f32.mrb[4].mxu1  ;;  %v2449_v57 = vld [vmem:[%s20884_s16 + $0x3e2] sm:$0xff]  ;;  %v2450_v58 = vld [vmem:[%s20884_s16 + $0x3ea] sm:$0xff] }
 0x3e2   : > { %v22218_v13 = vpop.f32.mrb[5].mxu1 }
 0x3e3   : > { %v22223_v18 = vpop.f32.mrb[6].mxu1 }
 0x3e4   : > { %v22225_v20 = vpop.f32.mrb[7].mxu1 }
 0x3e5   : > { %17890 = vmatmul.mubr.msk.bf16.gmra.mrb[96].mxu1 %vm752_vm2, %v2510_v27  ;;  %v22235_v25 = vpop.f32.mrb[8].mxu1  ;;  %v22239_v27 = vand.u32 %v9329_v24, %v20869_v3  ;;  %v2456_v24 = vld [vmem:[%s20884_s16 + $0x41a] sm:$0xff] }
 0x3e6   : > { %17893 = vmatprep.mubr.msk.bf16.mxu1 %vm752_vm2, %v2511_v7 }
 0x3e7   : > { %18619 = vmatprep.subr.bf16.mxu0 %v22239_v27 }
 0x3e8   : > { %18398 = vmatmul.mubr.msk.bf16.gmra.mrb[52].mxu0 %vm752_vm2, %v7023_v16  ;;  %v6936_v16 = vld [vmem:[%s20884_s16 + $0x2a4] sm:$0xff] }
 0x3e9   : > { %18401 = vmatprep.mubr.msk.bf16.mxu0 %vm752_vm2, %v7024_v17  ;;  %v6937_v17 = vld [vmem:[%s20884_s16 + $0x2ac] sm:$0xff] }
 0x3ea   : > { %v7034_v22 = vpack.c.bf16 %v6937_v17, %v6936_v16  ;;  %v2453_v16 = vld [vmem:[%s20884_s16 + $0x402] sm:$0xff]  ;;  %v2454_v17 = vld [vmem:[%s20884_s16 + $0x40a] sm:$0xff] }
 0x3eb   : > { %v2525_v12 = vpack.c.bf16 %v2454_v17, %v2453_v16  ;;  %v6962_v16 = vld [vmem:[%s20884_s16 + $0x374] sm:$0xff]  ;;  %v6963_v17 = vld [vmem:[%s20884_s16 + $0x37c] sm:$0xff] }
 0x3ed   : > { %17894 = vmatmul.mubr.msk.bf16.gmra.mrb[100].mxu1 %vm752_vm2, %v2512_v38  ;;  %v7036_v38 = vpack.c.bf16 %v6941_v33, %v6940_v32 }
 0x3ee   : > { %17897 = vmatprep.mubr.msk.bf16.mxu1 %vm752_vm2, %v2513_v45 }
 0x3f0   : > { %18402 = vmatmul.mubr.msk.bf16.gmra.mrb[56].mxu0 %vm752_vm2, %v7025_v28  ;;  %v22241_v28 = vpop.f32.mrb[9].mxu1 }
 0x3f1   : > { %18405 = vmatprep.mubr.msk.bf16.mxu0 %vm752_vm2, %v7026_v29  ;;  %v2441_v29 = vld [vmem:[%s20884_s16 + $0x3a2] sm:$0xff]  ;;  %v22248_v34 = vpop.f32.mrb[10].mxu1 }
 0x3f2   : > { %v2519_v7 = vpack.c.bf16 %v2442_v30, %v2441_v29  ;;  %v22252_v3 = vpop.f32.mrb[11].mxu1  ;;  %v6952_v29 = vld [vmem:[%s20884_s16 + $0x324] sm:$0xff]  ;;  %v6953_v30 = vld [vmem:[%s20884_s16 + $0x32c] sm:$0xff] }
 0x3f3   : > { %v7042_v35 = vpack.c.bf16 %v6953_v30, %v6952_v29  ;;  %v7047_v29 = vpack.c.bf16 %v6963_v17, %v6962_v16  ;;  %v6974_v16 = vld [vmem:[%s20884_s16 + $0x3d4] sm:$0xff]  ;;  %v6975_v17 = vld [vmem:[%s20884_s16 + $0x3dc] sm:$0xff] }
 0x3f5   : > { %17898 = vmatmul.mubr.msk.bf16.gmra.mrb[104].mxu1 %vm752_vm2, %v2514_v49 }
 0x3f6   : > { %17901 = vmatprep.mubr.msk.bf16.mxu1 %vm752_vm2, %v2515_v60  ;;  %v2451_v60 = vld [vmem:[%s20884_s16 + $0x3f2] sm:$0xff] }
 0x3f8   : > { %18406 = vmatmul.mubr.msk.bf16.gmra.mrb[60].mxu0 %vm752_vm2, %v7027_v39  ;;  %v22257_v39 = vpop.f32.mrb[12].mxu1 }
 0x3f9   : > { %18409 = vmatprep.mubr.msk.bf16.mxu0 %vm752_vm2, %v7028_v40  ;;  %v2445_v40 = vld [vmem:[%s20884_s16 + $0x3c2] sm:$0xff]  ;;  %v22265_v44 = vpop.f32.mrb[13].mxu1 }
 0x3fa   : > { %v2521_v45 = vpack.c.bf16 %v2446_v41, %v2445_v40  ;;  %v22270_v49 = vpop.f32.mrb[14].mxu1  ;;  %v2459_v40 = vld [vmem:[%s20884_s16 + $0x432] sm:$0xff] }
 0x3fb   : > { %v6954_v41 = vld [vmem:[%s20884_s16 + $0x334] sm:$0xff] }
 0x3fd   : > { %17902 = vmatmul.mubr.msk.bf16.gmra.mrb[108].mxu1 %vm752_vm2, %v2516_v0  ;;  %v2523_v0 = vpack.c.bf16 %v2450_v58, %v2449_v57 }
 0x3fe   : > { %17905 = vmatprep.mubr.msk.bf16.mxu1 %vm752_vm2, %v2517_v14 }
 0x400   : > { %18410 = vmatmul.mubr.msk.bf16.gmra.mrb[64].mxu0 %vm752_vm2, %v7029_v50  ;;  %v2522_v50 = vpack.c.bf16 %v2448_v46, %v2447_v42  ;;  %v6955_v42 = vld [vmem:[%s20884_s16 + $0x33c] sm:$0xff]  ;;  %v6956_v46 = vld [vmem:[%s20884_s16 + $0x344] sm:$0xff] }
 0x401   : > { %18413 = vmatprep.mubr.msk.bf16.mxu0 %vm752_vm2, %v7030_v51  ;;  %v22272_v51 = vpop.f32.mrb[15].mxu1  ;;  %v7044_v57 = vpack.c.bf16 %v6957_v47, %v6956_v46  ;;  %v6970_v47 = vld [vmem:[%s20884_s16 + $0x3b4] sm:$0xff] }
 0x402   : > { %v22277_v56 = vpop.f32.mrb[16].mxu1 }
 0x403   : > { %v22285_v62 = vpop.f32.mrb[17].mxu1 }
 0x404   : > { %v22290_v8 = vpop.f32.mrb[18].mxu1 }
 0x405   : > { %17906 = vmatmul.mubr.msk.bf16.gmra.mrb[112].mxu1 %vm752_vm2, %v2518_v19  ;;  %v22292_v10 = vpop.f32.mrb[19].mxu1  ;;  %v2455_v19 = vld [vmem:[%s20884_s16 + $0x412] sm:$0xff] }
 0x406   : > { %17909 = vmatprep.mubr.msk.bf16.mxu1 %vm752_vm2, %v2519_v7  ;;  %v22297_v15 = vpop.f32.mrb[20].mxu1  ;;  %v2526_v32 = vpack.c.bf16 %v2456_v24, %v2455_v19 }
 0x407   : > { %v22305_v23 = vpop.f32.mrb[21].mxu1 }
 0x408   : > { %18414 = vmatmul.mubr.msk.bf16.gmra.mrb[68].mxu0 %vm752_vm2, %v7031_v2  ;;  %v2452_v2 = vld [vmem:[%s20884_s16 + $0x3fa] sm:$0xff]  ;;  %v22310_v31 = vpop.f32.mrb[22].mxu1 }
 0x409   : > { %18417 = vmatprep.mubr.msk.bf16.mxu0 %vm752_vm2, %v7032_v4  ;;  %v6948_v4 = vld [vmem:[%s20884_s16 + $0x304] sm:$0xff]  ;;  %v2524_v9 = vpack.c.bf16 %v2452_v2, %v2451_v60  ;;  %v22312_v33 = vpop.f32.mrb[23].mxu1  ;;  %v6958_v60 = vld [vmem:[%s20884_s16 + $0x354] sm:$0xff]  ;;  %v6961_v2 = vld [vmem:[%s20884_s16 + $0x36c] sm:$0xff] }
 0x40a   : > { %v7040_v14 = vpack.c.bf16 %v6949_v6, %v6948_v4 }
 0x40d   : > { %17910 = vmatmul.mubr.msk.bf16.gmra.mrb[116].mxu1 %vm752_vm2, %v2520_v36 }
 0x40e   : > { %17913 = vmatprep.mubr.msk.bf16.mxu1 %vm752_vm2, %v2521_v45  ;;  %v2460_v45 = vld [vmem:[%s20884_s16 + $0x43a] sm:$0xff] }
 0x410   : > { %18418 = vmatmul.mubr.msk.bf16.gmra.mrb[72].mxu0 %vm752_vm2, %v7033_v21  ;;  %v6950_v21 = vld [vmem:[%s20884_s16 + $0x314] sm:$0xff] }
 0x411   : > { %18421 = vmatprep.mubr.msk.bf16.mxu0 %vm752_vm2, %v7034_v22  ;;  %v6951_v22 = vld [vmem:[%s20884_s16 + $0x31c] sm:$0xff] }
 0x412   : > { %v7041_v7 = vpack.c.bf16 %v6951_v22, %v6950_v21  ;;  %v6964_v21 = vld [vmem:[%s20884_s16 + $0x384] sm:$0xff]  ;;  %v6965_v22 = vld [vmem:[%s20884_s16 + $0x38c] sm:$0xff] }
 0x413   : > { %v7048_v30 = vpack.c.bf16 %v6965_v22, %v6964_v21  ;;  %v6976_v22 = vld [vmem:[%s20884_s16 + $0x3e4] sm:$0xff] }
 0x415   : > { %17914 = vmatmul.mubr.msk.bf16.gmra.mrb[120].mxu1 %vm752_vm2, %v2522_v50  ;;  %v2528_v50 = vpack.c.bf16 %v2460_v45, %v2459_v40  ;;  %v6969_v40 = vld [vmem:[%s20884_s16 + $0x3ac] sm:$0xff] }
 0x416   : > { %17917 = vmatprep.mubr.msk.bf16.mxu1 %vm752_vm2, %v2523_v0  ;;  %v6960_v0 = vld [vmem:[%s20884_s16 + $0x364] sm:$0xff] }
 0x418   : > { %18422 = vmatmul.mubr.msk.bf16.gmra.mrb[76].mxu0 %vm752_vm2, %v7035_v37  ;;  %v2457_v37 = vld [vmem:[%s20884_s16 + $0x422] sm:$0xff] }
 0x419   : > { %18425 = vmatprep.mubr.msk.bf16.mxu0 %vm752_vm2, %v7036_v38  ;;  %v2458_v38 = vld [vmem:[%s20884_s16 + $0x42a] sm:$0xff] }
 0x41a   : > { %v2527_v26 = vpack.c.bf16 %v2458_v38, %v2457_v37  ;;  %v6968_v38 = vld [vmem:[%s20884_s16 + $0x3a4] sm:$0xff] }
 0x41b   : > { %v7050_v45 = vpack.c.bf16 %v6969_v40, %v6968_v38 }
 0x41d   : > { %17918 = vmatmul.mubr.msk.bf16.gmra.mrb[124].mxu1 %vm752_vm2, %v2524_v9  ;;  %v7045_v9 = vpack.c.bf16 %v6959_v61, %v6958_v60  ;;  %v6973_v60 = vld [vmem:[%s20884_s16 + $0x3cc] sm:$0xff] }
 0x41e   : > { %17921 = vmatprep.mubr.msk.bf16.mxu1 %vm752_vm2, %v2525_v12 }
 0x420   : > { %18426 = vmatmul.mubr.msk.bf16.gmra.mrb[80].mxu0 %vm752_vm2, %v7037_v53 }
 0x421   : > { %18429 = vmatprep.mubr.msk.bf16.mxu0 %vm752_vm2, %v7038_v54  ;;  %v7043_v54 = vpack.c.bf16 %v6955_v42, %v6954_v41 }
 0x425   : > { %17922 = vmatmul.mubr.msk.bf16.gmra.mrb[128].mxu1 %vm752_vm2, %v2526_v32 }
 0x426   : > { %17925 = vmatprep.mubr.msk.bf16.mxu1 %vm752_vm2, %v2527_v26 }
 0x428   : > { %18430 = vmatmul.mubr.msk.bf16.gmra.mrb[84].mxu0 %vm752_vm2, %v7039_v11  ;;  %v22317_v36 = vpop.f32.mrb[24].mxu1  ;;  %v7046_v11 = vpack.c.bf16 %v6961_v2, %v6960_v0 }
 0x429   : > { %18433 = vmatprep.mubr.msk.bf16.mxu0 %vm752_vm2, %v7040_v14  ;;  %v22325_v43 = vpop.f32.mrb[25].mxu1 }
 0x42a   : > { %v22330_v48 = vpop.f32.mrb[26].mxu1 }
 0x42b   : > { %v22332_v53 = vpop.f32.mrb[27].mxu1 }
 0x42d   : > { %17926 = vmatmul.mubr.msk.bf16.gmra.mrb[132].mxu1 %vm752_vm2, %v2528_v50  ;;  %v6971_v50 = vld [vmem:[%s20884_s16 + $0x3bc] sm:$0xff] }
 0x42e   : > { %v7051_v2 = vpack.c.bf16 %v6971_v50, %v6970_v47  ;;  %v6980_v50 = vld [vmem:[%s20884_s16 + $0x404] sm:$0xff] }
 0x430   : > { %18434 = vmatmul.mubr.msk.bf16.gmra.mrb[88].mxu0 %vm752_vm2, %v7041_v7  ;;  %v22337_v58 = vpop.f32.mrb[28].mxu1  ;;  %v6966_v7 = vld [vmem:[%s20884_s16 + $0x394] sm:$0xff] }
 0x431   : > { %18437 = vmatprep.mubr.msk.bf16.mxu0 %vm752_vm2, %v7042_v35  ;;  %v22342_v55 = vpop.f32.mrb[29].mxu1  ;;  %v6967_v35 = vld [vmem:[%s20884_s16 + $0x39c] sm:$0xff] }
 0x432   : > { %v22346_v4 = vpop.f32.mrb[30].mxu1  ;;  %v7049_v26 = vpack.c.bf16 %v6967_v35, %v6966_v7  ;;  %v7053_v35 = vpack.c.bf16 %v6975_v17, %v6974_v16 }
 0x433   : > { %v22348_v6 = vpop.f32.mrb[31].mxu1 }
 0x438   : > { %18438 = vmatmul.mubr.msk.bf16.gmra.mrb[92].mxu0 %vm752_vm2, %v7043_v54  ;;  %v22351_v14 = vpop.f32.mrb[32].mxu1 }
 0x439   : > { %18441 = vmatprep.mubr.msk.bf16.mxu0 %vm752_vm2, %v7044_v57  ;;  %v22356_v19 = vpop.f32.mrb[33].mxu1  ;;  %v6972_v57 = vld [vmem:[%s20884_s16 + $0x3c4] sm:$0xff] }
 0x43a   : > { %v22360_v12 = vpop.f32.mrb[34].mxu1 }
 0x43b   : > { %v22362_v24 = vpop.f32.mrb[35].mxu1 }
 0x440   : > { %18442 = vmatmul.mubr.msk.bf16.gmra.mrb[96].mxu0 %vm752_vm2, %v7045_v9  ;;  %v22365_v32 = vpop.f32.mrb[36].mxu1  ;;  %v7052_v9 = vpack.c.bf16 %v6973_v60, %v6972_v57  ;;  %v6981_v57 = vld [vmem:[%s20884_s16 + $0x40c] sm:$0xff] }
 0x441   : > { %18445 = vmatprep.mubr.msk.bf16.mxu0 %vm752_vm2, %v7046_v11  ;;  %v22370_v37 = vpop.f32.mrb[37].mxu1  ;;  %v7056_v16 = vpack.c.bf16 %v6981_v57, %v6980_v50 }
 0x442   : > { %v22374_v41 = vpop.f32.mrb[38].mxu1 }
 0x443   : > { %v22376_v42 = vpop.f32.mrb[39].mxu1 }
 0x448   : > { %18446 = vmatmul.mubr.msk.bf16.gmra.mrb[100].mxu0 %vm752_vm2, %v7047_v29  ;;  %v22379_v46 = vpop.f32.mrb[40].mxu1  ;;  %v6977_v29 = vld [vmem:[%s20884_s16 + $0x3ec] sm:$0xff] }
 0x449   : > { %18449 = vmatprep.mubr.msk.bf16.mxu0 %vm752_vm2, %v7048_v30  ;;  %v22384_v54 = vpop.f32.mrb[41].mxu1  ;;  %v7054_v38 = vpack.c.bf16 %v6977_v29, %v6976_v22  ;;  %v6982_v22 = vld [vmem:[%s20884_s16 + $0x414] sm:$0xff]  ;;  %v6983_v29 = vld [vmem:[%s20884_s16 + $0x41c] sm:$0xff] }
 0x44a   : > { %v22388_v61 = vpop.f32.mrb[42].mxu1 }
 0x44b   : > { %v22390_v0 = vpop.f32.mrb[43].mxu1 }
 0x450   : > { %18450 = vmatmul.mubr.msk.bf16.gmra.mrb[104].mxu0 %vm752_vm2, %v7049_v26  ;;  %v22393_v11 = vpop.f32.mrb[44].mxu1  ;;  %v6978_v26 = vld [vmem:[%s20884_s16 + $0x3f4] sm:$0xff] }
 0x451   : > { %18453 = vmatprep.mubr.msk.bf16.mxu0 %vm752_vm2, %v7050_v45  ;;  %v22398_v21 = vpop.f32.mrb[45].mxu1  ;;  %v6979_v45 = vld [vmem:[%s20884_s16 + $0x3fc] sm:$0xff] }
 0x452   : > { %v22402_v30 = vpop.f32.mrb[46].mxu1 }
 0x453   : > { %v22404_v7 = vpop.f32.mrb[47].mxu1 }
 0x458   : > { %18454 = vmatmul.mubr.msk.bf16.gmra.mrb[108].mxu0 %vm752_vm2, %v7051_v2  ;;  %v22407_v40 = vpop.f32.mrb[48].mxu1 }
 0x459   : > { %18457 = vmatprep.mubr.msk.bf16.mxu0 %vm752_vm2, %v7052_v9  ;;  %24232 = vst [vmem:[#allocation9_spill] sm:$0xff] %v22407_v40  ;;  %v22412_v47 = vpop.f32.mrb[49].mxu1  ;;  %v7055_v9 = vpack.c.bf16 %v6979_v45, %v6978_v26  ;;  %v7057_v45 = vpack.c.bf16 %v6983_v29, %v6982_v22  ;;  %v9186_v40 = vld [vmem:[%s20884_s16 + $0x22e] sm:$0xff] }
 0x45a   : > { %24233 = vst [vmem:[#allocation10_spill] sm:$0xff] %v22412_v47  ;;  %v22416_v60 = vpop.f32.mrb[50].mxu1 }
 0x45b   : > { %24234 = vst [vmem:[#allocation11_spill] sm:$0xff] %v22416_v60  ;;  %v22418_v2 = vpop.f32.mrb[51].mxu1  ;;  %v6985_v60 = vld [vmem:[%s20884_s16 + $0x42c] sm:$0xff] }
 0x45c   : > { %24235 = vst [vmem:[#allocation12_spill] sm:$0xff] %v22418_v2 }
 0x460   : > { %18458 = vmatmul.mubr.msk.bf16.gmra.mrb[112].mxu0 %vm752_vm2, %v7053_v35  ;;  %v22421_v17 = vpop.f32.mrb[52].mxu1 }
 0x461   : > { %18461 = vmatprep.mubr.msk.bf16.mxu0 %vm752_vm2, %v7054_v38  ;;  %24236 = vst [vmem:[#allocation13_spill] sm:$0xff] %v22421_v17  ;;  %v22426_v35 = vpop.f32.mrb[53].mxu1  ;;  %v6984_v38 = vld [vmem:[%s20884_s16 + $0x424] sm:$0xff] }
 0x462   : > { %24237 = vst [vmem:[#allocation14_spill] sm:$0xff] %v22426_v35  ;;  %v22430_v47 = vpop.f32.mrb[54].mxu1  ;;  %v7058_v50 = vpack.c.bf16 %v6985_v60, %v6984_v38  ;;  %v6988_v17 = vld [vmem:[%s20884_s16 + $0x444] sm:$0xff] }
 0x463   : > { %24238 = vst [vmem:[#allocation15_spill] sm:$0xff] %v22430_v47  ;;  %v22432_v26 = vpop.f32.mrb[55].mxu1  ;;  %v6989_v47 = vld [vmem:[%s20884_s16 + $0x44c] sm:$0xff] }
 0x464   : > { %24239 = vst [vmem:[#allocation16_spill] sm:$0xff] %v22432_v26  ;;  %v7060_v29 = vpack.c.bf16 %v6989_v47, %v6988_v17 }
 0x468   : > { %18462 = vmatmul.mubr.msk.bf16.gmra.mrb[116].mxu0 %vm752_vm2, %v7055_v9  ;;  %v22435_v57 = vpop.f32.mrb[56].mxu1  ;;  %v6986_v9 = vld [vmem:[%s20884_s16 + $0x434] sm:$0xff] }
 0x469   : > { %18465 = vmatprep.mubr.msk.bf16.mxu0 %vm752_vm2, %v7056_v16  ;;  %24240 = vst [vmem:[#allocation17_spill] sm:$0xff] %v22435_v57  ;;  %v6987_v16 = vld [vmem:[%s20884_s16 + $0x43c] sm:$0xff]  ;;  %v22440_v35 = vpop.f32.mrb[57].mxu1  ;;  %v6992_v57 = vld [vmem:[%s20884_s16 + $0x464] sm:$0xff] }
 0x46a   : > { %24241 = vst [vmem:[#allocation18_spill] sm:$0xff] %v22440_v35  ;;  %v22444_v2 = vpop.f32.mrb[58].mxu1  ;;  %v7059_v60 = vpack.c.bf16 %v6987_v16, %v6986_v9 }
 0x46b   : > { %24242 = vst [vmem:[#allocation19_spill] sm:$0xff] %v22444_v2  ;;  %v22446_v22 = vpop.f32.mrb[59].mxu1  ;;  %v6993_v2 = vld [vmem:[%s20884_s16 + $0x46c] sm:$0xff] }
 0x46c   : > { %24243 = vst [vmem:[#allocation20_spill] sm:$0xff] %v22446_v22  ;;  %v7062_v17 = vpack.c.bf16 %v6993_v2, %v6992_v57 }
 0x470   : > { %18466 = vmatmul.mubr.msk.bf16.gmra.mrb[120].mxu0 %vm752_vm2, %v7057_v45  ;;  %v22449_v38 = vpop.f32.mrb[60].mxu1  ;;  %v6990_v45 = vld [vmem:[%s20884_s16 + $0x454] sm:$0xff] }
 0x471   : > { %18469 = vmatprep.mubr.msk.bf16.mxu0 %vm752_vm2, %v7058_v50  ;;  %24244 = vst [vmem:[#allocation21_spill] sm:$0xff] %v22449_v38  ;;  %v6991_v50 = vld [vmem:[%s20884_s16 + $0x45c] sm:$0xff]  ;;  %v22454_v35 = vpop.f32.mrb[61].mxu1  ;;  %v7989_v38 = vld [vmem:[%s20884_s16 + $0x45] sm:$0xff] }
 0x472   : > { %24245 = vst [vmem:[#allocation22_spill] sm:$0xff] %v22454_v35  ;;  %v22458_v26 = vpop.f32.mrb[62].mxu1  ;;  %v7061_v47 = vpack.c.bf16 %v6991_v50, %v6990_v45 }
 0x473   : > { %24246 = vst [vmem:[#allocation23_spill] sm:$0xff] %v22458_v26  ;;  %v22460_v9 = vpop.f32.mrb[63].mxu1  ;;  %v7990_v26 = vld [vmem:[%s20884_s16 + $0x4d] sm:$0xff] }
 0x474   : > { %24247 = vst [vmem:[#allocation24_spill] sm:$0xff] %v22460_v9  ;;  %v8125_v57 = vpack.c.bf16 %v7990_v26, %v7989_v38 }
 0x478   : > { %18470 = vmatmul.mubr.msk.bf16.gmra.mrb[124].mxu0 %vm752_vm2, %v7059_v60  ;;  %v22463_v16 = vpop.f32.mrb[64].mxu1  ;;  %v6994_v60 = vld [vmem:[%s20884_s16 + $0x474] sm:$0xff] }
 0x479   : > { %18473 = vmatprep.mubr.msk.bf16.mxu0 %vm752_vm2, %v7060_v29  ;;  %24248 = vst [vmem:[#allocation25_spill] sm:$0xff] %v22463_v16  ;;  %v6995_v29 = vld [vmem:[%s20884_s16 + $0x47c] sm:$0xff]  ;;  %v22468_v35 = vpop.f32.mrb[65].mxu1  ;;  %v7993_v16 = vld [vmem:[%s20884_s16 + $0x65] sm:$0xff] }
 0x47a   : > { %24249 = vst [vmem:[#allocation26_spill] sm:$0xff] %v22468_v35  ;;  %v22472_v22 = vpop.f32.mrb[66].mxu1  ;;  %v7063_v2 = vpack.c.bf16 %v6995_v29, %v6994_v60 }
 0x47b   : > { %24250 = vst [vmem:[#allocation27_spill] sm:$0xff] %v22472_v22  ;;  %v22474_v45 = vpop.f32.mrb[67].mxu1  ;;  %v7994_v22 = vld [vmem:[%s20884_s16 + $0x6d] sm:$0xff] }
 0x47c   : > { %24251 = vst [vmem:[#allocation28_spill] sm:$0xff] %v22474_v45  ;;  %v8127_v38 = vpack.c.bf16 %v7994_v22, %v7993_v16  ;;  %v9185_v45 = vld [vmem:[%s20884_s16 + $0x226] sm:$0xff] }
 0x480   : > { %18474 = vmatmul.mubr.msk.bf16.gmra.mrb[128].mxu0 %vm752_vm2, %v7061_v47  ;;  %v22477_v50 = vpop.f32.mrb[68].mxu1  ;;  %v7991_v47 = vld [vmem:[%s20884_s16 + $0x55] sm:$0xff] }
 0x481   : > { %18477 = vmatprep.mubr.msk.bf16.mxu0 %vm752_vm2, %v7062_v17  ;;  %24252 = vst [vmem:[#allocation29_spill] sm:$0xff] %v22477_v50  ;;  %v7992_v17 = vld [vmem:[%s20884_s16 + $0x5d] sm:$0xff]  ;;  %v22482_v35 = vpop.f32.mrb[69].mxu1 }
 0x482   : > { %24253 = vst [vmem:[#allocation30_spill] sm:$0xff] %v22482_v35  ;;  %v22486_v9 = vpop.f32.mrb[70].mxu1  ;;  %v8126_v26 = vpack.c.bf16 %v7992_v17, %v7991_v47 }
 0x483   : > { %24254 = vst [vmem:[#allocation31_spill] sm:$0xff] %v22486_v9  ;;  %v22488_v60 = vpop.f32.mrb[71].mxu1  ;;  %v7997_v9 = vld [vmem:[%s20884_s16 + $0x85] sm:$0xff] }
 0x484   : > { %24255 = vst [vmem:[#allocation32_spill] sm:$0xff] %v22488_v60  ;;  %v7998_v60 = vld [vmem:[%s20884_s16 + $0x8d] sm:$0xff] }
 0x485   : > { %v8129_v17 = vpack.c.bf16 %v7998_v60, %v7997_v9 }
 0x488   : > { %18478 = vmatmul.mubr.msk.bf16.gmra.mrb[132].mxu0 %vm752_vm2, %v7063_v2  ;;  %v22491_v29 = vpop.f32.mrb[72].mxu1  ;;  %v7995_v2 = vld [vmem:[%s20884_s16 + $0x75] sm:$0xff] }
 0x489   : > { %18483 = vmatprep.mubr.msk.bf16.mxu0 %vm752_vm2, %v8125_v57  ;;  %24256 = vst [vmem:[#allocation33_spill] sm:$0xff] %v22491_v29  ;;  %v7996_v57 = vld [vmem:[%s20884_s16 + $0x7d] sm:$0xff]  ;;  %v22497_v35 = vpop.f32.mrb[73].mxu1  ;;  %v8001_v29 = vld [vmem:[%s20884_s16 + $0xa5] sm:$0xff] }
 0x48a   : > { %24257 = vst [vmem:[#allocation34_spill] sm:$0xff] %v22497_v35  ;;  %v22501_v47 = vpop.f32.mrb[74].mxu1  ;;  %v8128_v16 = vpack.c.bf16 %v7996_v57, %v7995_v2 }
 0x48b   : > { %24258 = vst [vmem:[#allocation35_spill] sm:$0xff] %v22501_v47  ;;  %v22503_v22 = vpop.f32.mrb[75].mxu1  ;;  %v8002_v47 = vld [vmem:[%s20884_s16 + $0xad] sm:$0xff] }
 0x48c   : > { %24259 = vst [vmem:[#allocation36_spill] sm:$0xff] %v22503_v22  ;;  %v8131_v60 = vpack.c.bf16 %v8002_v47, %v8001_v29 }
 0x490   : > { %18484 = vmatmul.mubr.msk.bf16.vlgmr.msra.gmra.mrb[0].mxu0 %vm752_vm2, %v8126_v26  ;;  %v7999_v26 = vld [vmem:[%s20884_s16 + $0x95] sm:$0xff] }
 0x491   : > { %18620 = vmatpush3.bf16.msra.mxu0 %v22239_v27  ;;  %18487 = vmatprep.mubr.msk.bf16.mxu0 %vm752_vm2, %v8127_v38  ;;  %v22506_v27 = vpop.f32.mrb[76].mxu1  ;;  %v8000_v38 = vld [vmem:[%s20884_s16 + $0x9d] sm:$0xff] }
 0x492   : > { %24260 = vst [vmem:[#allocation37_spill] sm:$0xff] %v22506_v27  ;;  %v22511_v35 = vpop.f32.mrb[77].mxu1  ;;  %v8130_v9 = vpack.c.bf16 %v8000_v38, %v7999_v26  ;;  %v8005_v27 = vld [vmem:[%s20884_s16 + $0xc5] sm:$0xff] }
 0x493   : > { %24261 = vst [vmem:[#allocation38_spill] sm:$0xff] %v22511_v35  ;;  %v22515_v50 = vpop.f32.mrb[78].mxu1 }
 0x494   : > { %24262 = vst [vmem:[#allocation39_spill] sm:$0xff] %v22515_v50  ;;  %v22517_v2 = vpop.f32.mrb[79].mxu1  ;;  %v8006_v50 = vld [vmem:[%s20884_s16 + $0xcd] sm:$0xff] }
 0x495   : > { %24263 = vst [vmem:[#allocation40_spill] sm:$0xff] %v22517_v2  ;;  %v8133_v47 = vpack.c.bf16 %v8006_v50, %v8005_v27 }
 0x498   : > { %18488 = vmatmul.mubr.msk.bf16.gmra.mrb[4].mxu0 %vm752_vm2, %v8128_v16  ;;  %v22520_v57 = vpop.f32.mrb[80].mxu1  ;;  %v8003_v16 = vld [vmem:[%s20884_s16 + $0xb5] sm:$0xff] }
 0x499   : > { %18491 = vmatprep.mubr.msk.bf16.mxu0 %vm752_vm2, %v8129_v17  ;;  %24264 = vst [vmem:[#allocation41_spill] sm:$0xff] %v22520_v57  ;;  %v8004_v17 = vld [vmem:[%s20884_s16 + $0xbd] sm:$0xff]  ;;  %v22525_v35 = vpop.f32.mrb[81].mxu1  ;;  %v8009_v57 = vld [vmem:[%s20884_s16 + $0xe5] sm:$0xff] }
 0x49a   : > { %24265 = vst [vmem:[#allocation42_spill] sm:$0xff] %v22525_v35  ;;  %v22529_v22 = vpop.f32.mrb[82].mxu1  ;;  %v8132_v29 = vpack.c.bf16 %v8004_v17, %v8003_v16 }
 0x49b   : > { %24266 = vst [vmem:[#allocation43_spill] sm:$0xff] %v22529_v22  ;;  %v22531_v26 = vpop.f32.mrb[83].mxu1  ;;  %v8010_v22 = vld [vmem:[%s20884_s16 + $0xed] sm:$0xff] }
 0x49c   : > { %24267 = vst [vmem:[#allocation44_spill] sm:$0xff] %v22531_v26  ;;  %v8135_v27 = vpack.c.bf16 %v8010_v22, %v8009_v57 }
 0x4a0   : > { %18492 = vmatmul.mubr.msk.bf16.gmra.mrb[8].mxu0 %vm752_vm2, %v8130_v9  ;;  %v22534_v38 = vpop.f32.mrb[84].mxu1  ;;  %v8007_v9 = vld [vmem:[%s20884_s16 + $0xd5] sm:$0xff] }
 0x4a1   : > { %18495 = vmatprep.mubr.msk.bf16.mxu0 %vm752_vm2, %v8131_v60  ;;  %24268 = vst [vmem:[#allocation45_spill] sm:$0xff] %v22534_v38  ;;  %v8008_v60 = vld [vmem:[%s20884_s16 + $0xdd] sm:$0xff]  ;;  %v22539_v35 = vpop.f32.mrb[85].mxu1  ;;  %v8013_v38 = vld [vmem:[%s20884_s16 + $0x105] sm:$0xff] }
 0x4a2   : > { %24269 = vst [vmem:[#allocation46_spill] sm:$0xff] %v22539_v35  ;;  %v22543_v2 = vpop.f32.mrb[86].mxu1  ;;  %v8134_v50 = vpack.c.bf16 %v8008_v60, %v8007_v9 }
 0x4a3   : > { %24270 = vst [vmem:[#allocation47_spill] sm:$0xff] %v22543_v2  ;;  %v22545_v16 = vpop.f32.mrb[87].mxu1  ;;  %v8014_v2 = vld [vmem:[%s20884_s16 + $0x10d] sm:$0xff] }
 0x4a4   : > { %24271 = vst [vmem:[#allocation48_spill] sm:$0xff] %v22545_v16  ;;  %v8137_v57 = vpack.c.bf16 %v8014_v2, %v8013_v38 }
 0x4a8   : > { %18496 = vmatmul.mubr.msk.bf16.gmra.mrb[12].mxu0 %vm752_vm2, %v8132_v29  ;;  %v22548_v17 = vpop.f32.mrb[88].mxu1  ;;  %v8011_v29 = vld [vmem:[%s20884_s16 + $0xf5] sm:$0xff] }
 0x4a9   : > { %18499 = vmatprep.mubr.msk.bf16.mxu0 %vm752_vm2, %v8133_v47  ;;  %24272 = vst [vmem:[#allocation49_spill] sm:$0xff] %v22548_v17  ;;  %v8012_v47 = vld [vmem:[%s20884_s16 + $0xfd] sm:$0xff]  ;;  %v22553_v35 = vpop.f32.mrb[89].mxu1  ;;  %v8017_v17 = vld [vmem:[%s20884_s16 + $0x125] sm:$0xff] }
 0x4aa   : > { %24273 = vst [vmem:[#allocation50_spill] sm:$0xff] %v22553_v35  ;;  %v22557_v26 = vpop.f32.mrb[90].mxu1  ;;  %v8136_v22 = vpack.c.bf16 %v8012_v47, %v8011_v29 }
 0x4ab   : > { %24274 = vst [vmem:[#allocation51_spill] sm:$0xff] %v22557_v26  ;;  %v22559_v9 = vpop.f32.mrb[91].mxu1  ;;  %v8018_v26 = vld [vmem:[%s20884_s16 + $0x12d] sm:$0xff] }
 0x4ac   : > { %24275 = vst [vmem:[#allocation52_spill] sm:$0xff] %v22559_v9  ;;  %v8139_v38 = vpack.c.bf16 %v8018_v26, %v8017_v17 }
 0x4b0   : > { %18500 = vmatmul.mubr.msk.bf16.gmra.mrb[16].mxu0 %vm752_vm2, %v8134_v50  ;;  %v22562_v60 = vpop.f32.mrb[92].mxu1  ;;  %v8015_v50 = vld [vmem:[%s20884_s16 + $0x115] sm:$0xff] }
 0x4b1   : > { %18503 = vmatprep.mubr.msk.bf16.mxu0 %vm752_vm2, %v8135_v27  ;;  %24276 = vst [vmem:[#allocation53_spill] sm:$0xff] %v22562_v60  ;;  %v8016_v27 = vld [vmem:[%s20884_s16 + $0x11d] sm:$0xff]  ;;  %v22567_v35 = vpop.f32.mrb[93].mxu1  ;;  %v8021_v60 = vld [vmem:[%s20884_s16 + $0x145] sm:$0xff] }
 0x4b2   : > { %24277 = vst [vmem:[#allocation54_spill] sm:$0xff] %v22567_v35  ;;  %v22571_v16 = vpop.f32.mrb[94].mxu1  ;;  %v8138_v2 = vpack.c.bf16 %v8016_v27, %v8015_v50 }
 0x4b3   : > { %24278 = vst [vmem:[#allocation55_spill] sm:$0xff] %v22571_v16  ;;  %v22573_v29 = vpop.f32.mrb[95].mxu1  ;;  %v8022_v16 = vld [vmem:[%s20884_s16 + $0x14d] sm:$0xff] }
 0x4b4   : > { %24279 = vst [vmem:[#allocation56_spill] sm:$0xff] %v22573_v29  ;;  %v8141_v17 = vpack.c.bf16 %v8022_v16, %v8021_v60 }
 0x4b8   : > { %18504 = vmatmul.mubr.msk.bf16.gmra.mrb[20].mxu0 %vm752_vm2, %v8136_v22  ;;  %v22576_v47 = vpop.f32.mrb[96].mxu1  ;;  %v8019_v22 = vld [vmem:[%s20884_s16 + $0x135] sm:$0xff] }
 0x4b9   : > { %18507 = vmatprep.mubr.msk.bf16.mxu0 %vm752_vm2, %v8137_v57  ;;  %24280 = vst [vmem:[#allocation57_spill] sm:$0xff] %v22576_v47  ;;  %v8020_v57 = vld [vmem:[%s20884_s16 + $0x13d] sm:$0xff]  ;;  %v22581_v35 = vpop.f32.mrb[97].mxu1  ;;  %v8025_v47 = vld [vmem:[%s20884_s16 + $0x165] sm:$0xff] }
 0x4ba   : > { %24281 = vst [vmem:[#allocation58_spill] sm:$0xff] %v22581_v35  ;;  %v22585_v9 = vpop.f32.mrb[98].mxu1  ;;  %v8140_v26 = vpack.c.bf16 %v8020_v57, %v8019_v22 }
 0x4bb   : > { %24282 = vst [vmem:[#allocation59_spill] sm:$0xff] %v22585_v9  ;;  %v22587_v50 = vpop.f32.mrb[99].mxu1  ;;  %v8026_v9 = vld [vmem:[%s20884_s16 + $0x16d] sm:$0xff] }
 0x4bc   : > { %24283 = vst [vmem:[#allocation60_spill] sm:$0xff] %v22587_v50  ;;  %v8143_v60 = vpack.c.bf16 %v8026_v9, %v8025_v47 }
 0x4c0   : > { %18508 = vmatmul.mubr.msk.bf16.gmra.mrb[24].mxu0 %vm752_vm2, %v8138_v2  ;;  %v22590_v27 = vpop.f32.mrb[100].mxu1  ;;  %v8023_v2 = vld [vmem:[%s20884_s16 + $0x155] sm:$0xff] }
 0x4c1   : > { %18511 = vmatprep.mubr.msk.bf16.mxu0 %vm752_vm2, %v8139_v38  ;;  %24284 = vst [vmem:[#allocation61_spill] sm:$0xff] %v22590_v27  ;;  %v8024_v38 = vld [vmem:[%s20884_s16 + $0x15d] sm:$0xff]  ;;  %v22595_v35 = vpop.f32.mrb[101].mxu1  ;;  %v8029_v27 = vld [vmem:[%s20884_s16 + $0x185] sm:$0xff] }
 0x4c2   : > { %24285 = vst [vmem:[#allocation62_spill] sm:$0xff] %v22595_v35  ;;  %v22599_v29 = vpop.f32.mrb[102].mxu1  ;;  %v8142_v16 = vpack.c.bf16 %v8024_v38, %v8023_v2 }
 0x4c3   : > { %24286 = vst [vmem:[#allocation63_spill] sm:$0xff] %v22599_v29  ;;  %v22601_v22 = vpop.f32.mrb[103].mxu1  ;;  %v8030_v29 = vld [vmem:[%s20884_s16 + $0x18d] sm:$0xff] }
 0x4c4   : > { %24287 = vst [vmem:[#allocation64_spill] sm:$0xff] %v22601_v22  ;;  %v8145_v47 = vpack.c.bf16 %v8030_v29, %v8029_v27 }
 0x4c8   : > { %18512 = vmatmul.mubr.msk.bf16.gmra.mrb[28].mxu0 %vm752_vm2, %v8140_v26  ;;  %v22604_v57 = vpop.f32.mrb[104].mxu1  ;;  %v8027_v26 = vld [vmem:[%s20884_s16 + $0x175] sm:$0xff] }
 0x4c9   : > { %18515 = vmatprep.mubr.msk.bf16.mxu0 %vm752_vm2, %v8141_v17  ;;  %24288 = vst [vmem:[#allocation65_spill] sm:$0xff] %v22604_v57  ;;  %v8028_v17 = vld [vmem:[%s20884_s16 + $0x17d] sm:$0xff]  ;;  %v22609_v35 = vpop.f32.mrb[105].mxu1  ;;  %v8033_v57 = vld [vmem:[%s20884_s16 + $0x1a5] sm:$0xff] }
 0x4ca   : > { %24289 = vst [vmem:[#allocation66_spill] sm:$0xff] %v22609_v35  ;;  %v22613_v50 = vpop.f32.mrb[106].mxu1  ;;  %v8144_v9 = vpack.c.bf16 %v8028_v17, %v8027_v26 }
 0x4cb   : > { %24290 = vst [vmem:[#allocation67_spill] sm:$0xff] %v22613_v50  ;;  %v22615_v2 = vpop.f32.mrb[107].mxu1  ;;  %v8034_v50 = vld [vmem:[%s20884_s16 + $0x1ad] sm:$0xff] }
 0x4cc   : > { %24291 = vst [vmem:[#allocation68_spill] sm:$0xff] %v22615_v2  ;;  %v8147_v27 = vpack.c.bf16 %v8034_v50, %v8033_v57 }
 0x4d0   : > { %18516 = vmatmul.mubr.msk.bf16.gmra.mrb[32].mxu0 %vm752_vm2, %v8142_v16  ;;  %v22618_v38 = vpop.f32.mrb[108].mxu1  ;;  %v8031_v16 = vld [vmem:[%s20884_s16 + $0x195] sm:$0xff] }
 0x4d1   : > { %18519 = vmatprep.mubr.msk.bf16.mxu0 %vm752_vm2, %v8143_v60  ;;  %24292 = vst [vmem:[#allocation69_spill] sm:$0xff] %v22618_v38  ;;  %v8032_v60 = vld [vmem:[%s20884_s16 + $0x19d] sm:$0xff]  ;;  %v22623_v35 = vpop.f32.mrb[109].mxu1  ;;  %v8037_v38 = vld [vmem:[%s20884_s16 + $0x1c5] sm:$0xff] }
 0x4d2   : > { %24293 = vst [vmem:[#allocation70_spill] sm:$0xff] %v22623_v35  ;;  %v22627_v22 = vpop.f32.mrb[110].mxu1  ;;  %v8146_v29 = vpack.c.bf16 %v8032_v60, %v8031_v16 }
 0x4d3   : > { %24294 = vst [vmem:[#allocation71_spill] sm:$0xff] %v22627_v22  ;;  %v22629_v26 = vpop.f32.mrb[111].mxu1  ;;  %v8038_v22 = vld [vmem:[%s20884_s16 + $0x1cd] sm:$0xff] }
 0x4d4   : > { %24295 = vst [vmem:[#allocation72_spill] sm:$0xff] %v22629_v26  ;;  %v8149_v57 = vpack.c.bf16 %v8038_v22, %v8037_v38 }
 0x4d8   : > { %18520 = vmatmul.mubr.msk.bf16.gmra.mrb[36].mxu0 %vm752_vm2, %v8144_v9  ;;  %v22632_v17 = vpop.f32.mrb[112].mxu1  ;;  %v8035_v9 = vld [vmem:[%s20884_s16 + $0x1b5] sm:$0xff] }
 0x4d9   : > { %18523 = vmatprep.mubr.msk.bf16.mxu0 %vm752_vm2, %v8145_v47  ;;  %24296 = vst [vmem:[#allocation73_spill] sm:$0xff] %v22632_v17  ;;  %v8036_v47 = vld [vmem:[%s20884_s16 + $0x1bd] sm:$0xff]  ;;  %v22637_v35 = vpop.f32.mrb[113].mxu1  ;;  %v8041_v17 = vld [vmem:[%s20884_s16 + $0x1e5] sm:$0xff] }
 0x4da   : > { %24297 = vst [vmem:[#allocation74_spill] sm:$0xff] %v22637_v35  ;;  %v22641_v2 = vpop.f32.mrb[114].mxu1  ;;  %v8148_v50 = vpack.c.bf16 %v8036_v47, %v8035_v9 }
 0x4db   : > { %24298 = vst [vmem:[#allocation75_spill] sm:$0xff] %v22641_v2  ;;  %v22643_v16 = vpop.f32.mrb[115].mxu1  ;;  %v8042_v2 = vld [vmem:[%s20884_s16 + $0x1ed] sm:$0xff] }
 0x4dc   : > { %24299 = vst [vmem:[#allocation76_spill] sm:$0xff] %v22643_v16  ;;  %v8151_v38 = vpack.c.bf16 %v8042_v2, %v8041_v17 }
 0x4e0   : > { %18524 = vmatmul.mubr.msk.bf16.gmra.mrb[40].mxu0 %vm752_vm2, %v8146_v29  ;;  %v22646_v60 = vpop.f32.mrb[116].mxu1  ;;  %v8039_v29 = vld [vmem:[%s20884_s16 + $0x1d5] sm:$0xff] }
 0x4e1   : > { %18527 = vmatprep.mubr.msk.bf16.mxu0 %vm752_vm2, %v8147_v27  ;;  %24300 = vst [vmem:[#allocation77_spill] sm:$0xff] %v22646_v60  ;;  %v8040_v27 = vld [vmem:[%s20884_s16 + $0x1dd] sm:$0xff]  ;;  %v22651_v35 = vpop.f32.mrb[117].mxu1  ;;  %v8045_v60 = vld [vmem:[%s20884_s16 + $0x205] sm:$0xff] }
 0x4e2   : > { %24301 = vst [vmem:[#allocation78_spill] sm:$0xff] %v22651_v35  ;;  %v22655_v26 = vpop.f32.mrb[118].mxu1  ;;  %v8150_v22 = vpack.c.bf16 %v8040_v27, %v8039_v29 }
 0x4e3   : > { %24302 = vst [vmem:[#allocation79_spill] sm:$0xff] %v22655_v26  ;;  %v22657_v9 = vpop.f32.mrb[119].mxu1  ;;  %v8046_v26 = vld [vmem:[%s20884_s16 + $0x20d] sm:$0xff] }
 0x4e4   : > { %24303 = vst [vmem:[#allocation80_spill] sm:$0xff] %v22657_v9  ;;  %v8153_v17 = vpack.c.bf16 %v8046_v26, %v8045_v60 }
 0x4e8   : > { %18528 = vmatmul.mubr.msk.bf16.gmra.mrb[44].mxu0 %vm752_vm2, %v8148_v50  ;;  %v22660_v47 = vpop.f32.mrb[120].mxu1  ;;  %v8043_v50 = vld [vmem:[%s20884_s16 + $0x1f5] sm:$0xff] }
 0x4e9   : > { %18531 = vmatprep.mubr.msk.bf16.mxu0 %vm752_vm2, %v8149_v57  ;;  %24304 = vst [vmem:[#allocation81_spill] sm:$0xff] %v22660_v47  ;;  %v8044_v57 = vld [vmem:[%s20884_s16 + $0x1fd] sm:$0xff]  ;;  %v22665_v35 = vpop.f32.mrb[121].mxu1  ;;  %v8049_v47 = vld [vmem:[%s20884_s16 + $0x225] sm:$0xff] }
 0x4ea   : > { %24305 = vst [vmem:[#allocation82_spill] sm:$0xff] %v22665_v35  ;;  %v22669_v16 = vpop.f32.mrb[122].mxu1  ;;  %v8152_v2 = vpack.c.bf16 %v8044_v57, %v8043_v50 }
 0x4eb   : > { %24306 = vst [vmem:[#allocation83_spill] sm:$0xff] %v22669_v16  ;;  %v22671_v29 = vpop.f32.mrb[123].mxu1  ;;  %v8050_v16 = vld [vmem:[%s20884_s16 + $0x22d] sm:$0xff] }
 0x4ec   : > { %24307 = vst [vmem:[#allocation84_spill] sm:$0xff] %v22671_v29  ;;  %v8155_v60 = vpack.c.bf16 %v8050_v16, %v8049_v47 }
 0x4f0   : > { %18532 = vmatmul.mubr.msk.bf16.gmra.mrb[48].mxu0 %vm752_vm2, %v8150_v22  ;;  %v22674_v27 = vpop.f32.mrb[124].mxu1  ;;  %v8047_v22 = vld [vmem:[%s20884_s16 + $0x215] sm:$0xff] }
 0x4f1   : > { %18535 = vmatprep.mubr.msk.bf16.mxu0 %vm752_vm2, %v8151_v38  ;;  %24308 = vst [vmem:[#allocation85_spill] sm:$0xff] %v22674_v27  ;;  %v8048_v38 = vld [vmem:[%s20884_s16 + $0x21d] sm:$0xff]  ;;  %v22679_v35 = vpop.f32.mrb[125].mxu1  ;;  %v8053_v27 = vld [vmem:[%s20884_s16 + $0x245] sm:$0xff] }
 0x4f2   : > { %24309 = vst [vmem:[#allocation86_spill] sm:$0xff] %v22679_v35  ;;  %v22683_v9 = vpop.f32.mrb[126].mxu1  ;;  %v8154_v26 = vpack.c.bf16 %v8048_v38, %v8047_v22 }
 0x4f3   : > { %24310 = vst [vmem:[#allocation87_spill] sm:$0xff] %v22683_v9  ;;  %v22685_v50 = vpop.f32.mrb[127].mxu1  ;;  %v8054_v9 = vld [vmem:[%s20884_s16 + $0x24d] sm:$0xff] }
 0x4f4   : > { %24311 = vst [vmem:[#allocation88_spill] sm:$0xff] %v22685_v50  ;;  %v8157_v47 = vpack.c.bf16 %v8054_v9, %v8053_v27  ;;  %v9184_v50 = vld [vmem:[%s20884_s16 + $0x21e] sm:$0xff] }
 0x4f8   : > { %18536 = vmatmul.mubr.msk.bf16.gmra.mrb[52].mxu0 %vm752_vm2, %v8152_v2  ;;  %v22688_v57 = vpop.f32.mrb[128].mxu1  ;;  %v8051_v2 = vld [vmem:[%s20884_s16 + $0x235] sm:$0xff] }
 0x4f9   : > { %18539 = vmatprep.mubr.msk.bf16.mxu0 %vm752_vm2, %v8153_v17  ;;  %24312 = vst [vmem:[#allocation89_spill] sm:$0xff] %v22688_v57  ;;  %v8052_v17 = vld [vmem:[%s20884_s16 + $0x23d] sm:$0xff]  ;;  %v22693_v35 = vpop.f32.mrb[129].mxu1  ;;  %v8057_v57 = vld [vmem:[%s20884_s16 + $0x265] sm:$0xff] }
 0x4fa   : > { %24313 = vst [vmem:[#allocation90_spill] sm:$0xff] %v22693_v35  ;;  %v22697_v29 = vpop.f32.mrb[130].mxu1  ;;  %v8156_v16 = vpack.c.bf16 %v8052_v17, %v8051_v2 }
 0x4fb   : > { %24314 = vst [vmem:[#allocation91_spill] sm:$0xff] %v22697_v29  ;;  %v22699_v22 = vpop.f32.mrb[131].mxu1  ;;  %v8058_v29 = vld [vmem:[%s20884_s16 + $0x26d] sm:$0xff] }
 0x4fc   : > { %24315 = vst [vmem:[#allocation92_spill] sm:$0xff] %v22699_v22  ;;  %v8159_v17 = vpack.c.bf16 %v8058_v29, %v8057_v57  ;;  %v8064_v29 = vld [vmem:[%s20884_s16 + $0x29d] sm:$0xff]  ;;  %v8065_v57 = vld [vmem:[%s20884_s16 + $0x2a5] sm:$0xff] }
 0x500   : > { %18540 = vmatmul.mubr.msk.bf16.gmra.mrb[56].mxu0 %vm752_vm2, %v8154_v26  ;;  %v22702_v38 = vpop.f32.mrb[132].mxu1  ;;  %v8055_v26 = vld [vmem:[%s20884_s16 + $0x255] sm:$0xff] }
 0x501   : > { %18543 = vmatprep.mubr.msk.bf16.mxu0 %vm752_vm2, %v8155_v60  ;;  %24316 = vst [vmem:[#allocation93_spill] sm:$0xff] %v22702_v38  ;;  %v8056_v60 = vld [vmem:[%s20884_s16 + $0x25d] sm:$0xff]  ;;  %v22707_v35 = vpop.f32.mrb[133].mxu1  ;;  %v8062_v38 = vld [vmem:[%s20884_s16 + $0x28d] sm:$0xff] }
 0x502   : > { %24317 = vst [vmem:[#allocation94_spill] sm:$0xff] %v22707_v35  ;;  %v22711_v2 = vpop.f32.mrb[134].mxu1  ;;  %v8158_v27 = vpack.c.bf16 %v8056_v60, %v8055_v26  ;;  %v8061_v35 = vld [vmem:[%s20884_s16 + $0x285] sm:$0xff]  ;;  %v8063_v26 = vld [vmem:[%s20884_s16 + $0x295] sm:$0xff]  ;;  %v8066_v60 = vld [vmem:[%s20884_s16 + $0x2ad] sm:$0xff] }
 0x503   : > { %24318 = vst [vmem:[#allocation95_spill] sm:$0xff] %v22711_v2  ;;  %v22713_v9 = vpop.f32.mrb[135].mxu1  ;;  %v8161_v2 = vpack.c.bf16 %v8062_v38, %v8061_v35  ;;  %v8068_v35 = vld [vmem:[%s20884_s16 + $0x2bd] sm:$0xff]  ;;  %v8070_v38 = vld [vmem:[%s20884_s16 + $0x2cd] sm:$0xff] }
 0x504   : > { %24319 = vst [vmem:[#allocation96_spill] sm:$0xff] %v22713_v9 }
 0x508   : > { %18544 = vmatmul.mubr.msk.bf16.gmra.mrb[60].mxu0 %vm752_vm2, %v8156_v16  ;;  %v8059_v16 = vld [vmem:[%s20884_s16 + $0x275] sm:$0xff] }
 0x509   : > { %18547 = vmatprep.mubr.msk.bf16.mxu0 %vm752_vm2, %v8157_v47  ;;  %v8060_v47 = vld [vmem:[%s20884_s16 + $0x27d] sm:$0xff] }
 0x50a   : > { %v8160_v22 = vpack.c.bf16 %v8060_v47, %v8059_v16  ;;  %v8067_v16 = vld [vmem:[%s20884_s16 + $0x2b5] sm:$0xff] }
 0x510   : > { %18548 = vmatmul.mubr.msk.bf16.gmra.mrb[64].mxu0 %vm752_vm2, %v8158_v27  ;;  %v8162_v27 = vpack.c.bf16 %v8064_v29, %v8063_v26  ;;  %v8071_v26 = vld [vmem:[%s20884_s16 + $0x2d5] sm:$0xff]  ;;  %v8072_v29 = vld [vmem:[%s20884_s16 + $0x2dd] sm:$0xff] }
 0x511   : > { %18551 = vmatprep.mubr.msk.bf16.mxu0 %vm752_vm2, %v8159_v17  ;;  %v8163_v17 = vpack.c.bf16 %v8066_v60, %v8065_v57  ;;  %v8073_v57 = vld [vmem:[%s20884_s16 + $0x2e5] sm:$0xff]  ;;  %v8074_v60 = vld [vmem:[%s20884_s16 + $0x2ed] sm:$0xff] }
 0x518   : > { %18552 = vmatmul.mubr.msk.bf16.gmra.mrb[68].mxu0 %vm752_vm2, %v8160_v22  ;;  %v8069_v22 = vld [vmem:[%s20884_s16 + $0x2c5] sm:$0xff] }
 0x519   : > { %18555 = vmatprep.mubr.msk.bf16.mxu0 %vm752_vm2, %v8161_v2  ;;  %v8164_v2 = vpack.c.bf16 %v8068_v35, %v8067_v16  ;;  %v8165_v47 = vpack.c.bf16 %v8070_v38, %v8069_v22  ;;  %v8075_v16 = vld [vmem:[%s20884_s16 + $0x2f5] sm:$0xff]  ;;  %v8076_v35 = vld [vmem:[%s20884_s16 + $0x2fd] sm:$0xff]  ;;  %v8077_v22 = vld [vmem:[%s20884_s16 + $0x305] sm:$0xff] }
 0x51a   : > { %v8078_v38 = vld [vmem:[%s20884_s16 + $0x30d] sm:$0xff] }
 0x520   : > { %18556 = vmatmul.mubr.msk.bf16.gmra.mrb[72].mxu0 %vm752_vm2, %v8162_v27  ;;  %v8166_v27 = vpack.c.bf16 %v8072_v29, %v8071_v26  ;;  %v8079_v26 = vld [vmem:[%s20884_s16 + $0x315] sm:$0xff]  ;;  %v8080_v29 = vld [vmem:[%s20884_s16 + $0x31d] sm:$0xff] }
 0x521   : > { %18559 = vmatprep.mubr.msk.bf16.mxu0 %vm752_vm2, %v8163_v17  ;;  %v8167_v17 = vpack.c.bf16 %v8074_v60, %v8073_v57  ;;  %v8081_v57 = vld [vmem:[%s20884_s16 + $0x325] sm:$0xff]  ;;  %v8082_v60 = vld [vmem:[%s20884_s16 + $0x32d] sm:$0xff] }
 0x528   : > { %18560 = vmatmul.mubr.msk.bf16.gmra.mrb[76].mxu0 %vm752_vm2, %v8164_v2  ;;  %v8168_v2 = vpack.c.bf16 %v8076_v35, %v8075_v16  ;;  %v8083_v16 = vld [vmem:[%s20884_s16 + $0x335] sm:$0xff]  ;;  %v8084_v35 = vld [vmem:[%s20884_s16 + $0x33d] sm:$0xff] }
 0x529   : > { %18563 = vmatprep.mubr.msk.bf16.mxu0 %vm752_vm2, %v8165_v47  ;;  %v8169_v47 = vpack.c.bf16 %v8078_v38, %v8077_v22  ;;  %v8085_v22 = vld [vmem:[%s20884_s16 + $0x345] sm:$0xff]  ;;  %v8086_v38 = vld [vmem:[%s20884_s16 + $0x34d] sm:$0xff] }
 0x530   : > { %18564 = vmatmul.mubr.msk.bf16.gmra.mrb[80].mxu0 %vm752_vm2, %v8166_v27  ;;  %v8170_v27 = vpack.c.bf16 %v8080_v29, %v8079_v26  ;;  %v8087_v26 = vld [vmem:[%s20884_s16 + $0x355] sm:$0xff]  ;;  %v8088_v29 = vld [vmem:[%s20884_s16 + $0x35d] sm:$0xff] }
 0x531   : > { %18567 = vmatprep.mubr.msk.bf16.mxu0 %vm752_vm2, %v8167_v17  ;;  %v8171_v17 = vpack.c.bf16 %v8082_v60, %v8081_v57  ;;  %v8089_v57 = vld [vmem:[%s20884_s16 + $0x365] sm:$0xff]  ;;  %v8090_v60 = vld [vmem:[%s20884_s16 + $0x36d] sm:$0xff] }
 0x538   : > { %18568 = vmatmul.mubr.msk.bf16.gmra.mrb[84].mxu0 %vm752_vm2, %v8168_v2  ;;  %v8172_v2 = vpack.c.bf16 %v8084_v35, %v8083_v16  ;;  %v8091_v16 = vld [vmem:[%s20884_s16 + $0x375] sm:$0xff]  ;;  %v8092_v35 = vld [vmem:[%s20884_s16 + $0x37d] sm:$0xff] }
 0x539   : > { %18571 = vmatprep.mubr.msk.bf16.mxu0 %vm752_vm2, %v8169_v47  ;;  %v8173_v47 = vpack.c.bf16 %v8086_v38, %v8085_v22  ;;  %v8093_v22 = vld [vmem:[%s20884_s16 + $0x385] sm:$0xff]  ;;  %v8094_v38 = vld [vmem:[%s20884_s16 + $0x38d] sm:$0xff] }
 0x540   : > { %18572 = vmatmul.mubr.msk.bf16.gmra.mrb[88].mxu0 %vm752_vm2, %v8170_v27  ;;  %v8174_v27 = vpack.c.bf16 %v8088_v29, %v8087_v26  ;;  %v8095_v26 = vld [vmem:[%s20884_s16 + $0x395] sm:$0xff]  ;;  %v8096_v29 = vld [vmem:[%s20884_s16 + $0x39d] sm:$0xff] }
 0x541   : > { %18575 = vmatprep.mubr.msk.bf16.mxu0 %vm752_vm2, %v8171_v17  ;;  %v8175_v17 = vpack.c.bf16 %v8090_v60, %v8089_v57  ;;  %v8097_v57 = vld [vmem:[%s20884_s16 + $0x3a5] sm:$0xff]  ;;  %v8098_v60 = vld [vmem:[%s20884_s16 + $0x3ad] sm:$0xff] }
 0x548   : > { %18576 = vmatmul.mubr.msk.bf16.gmra.mrb[92].mxu0 %vm752_vm2, %v8172_v2  ;;  %v8176_v2 = vpack.c.bf16 %v8092_v35, %v8091_v16  ;;  %v8099_v16 = vld [vmem:[%s20884_s16 + $0x3b5] sm:$0xff]  ;;  %v8100_v35 = vld [vmem:[%s20884_s16 + $0x3bd] sm:$0xff] }
 0x549   : > { %18579 = vmatprep.mubr.msk.bf16.mxu0 %vm752_vm2, %v8173_v47  ;;  %v8177_v47 = vpack.c.bf16 %v8094_v38, %v8093_v22  ;;  %v8101_v22 = vld [vmem:[%s20884_s16 + $0x3c5] sm:$0xff]  ;;  %v8102_v38 = vld [vmem:[%s20884_s16 + $0x3cd] sm:$0xff] }
 0x550   : > { %18580 = vmatmul.mubr.msk.bf16.gmra.mrb[96].mxu0 %vm752_vm2, %v8174_v27  ;;  %v8178_v27 = vpack.c.bf16 %v8096_v29, %v8095_v26  ;;  %v8103_v26 = vld [vmem:[%s20884_s16 + $0x3d5] sm:$0xff]  ;;  %v8104_v29 = vld [vmem:[%s20884_s16 + $0x3dd] sm:$0xff] }
 0x551   : > { %18583 = vmatprep.mubr.msk.bf16.mxu0 %vm752_vm2, %v8175_v17  ;;  %v8179_v17 = vpack.c.bf16 %v8098_v60, %v8097_v57  ;;  %v8105_v57 = vld [vmem:[%s20884_s16 + $0x3e5] sm:$0xff]  ;;  %v8106_v60 = vld [vmem:[%s20884_s16 + $0x3ed] sm:$0xff] }
 0x558   : > { %18584 = vmatmul.mubr.msk.bf16.gmra.mrb[100].mxu0 %vm752_vm2, %v8176_v2  ;;  %v8180_v2 = vpack.c.bf16 %v8100_v35, %v8099_v16  ;;  %v8107_v16 = vld [vmem:[%s20884_s16 + $0x3f5] sm:$0xff]  ;;  %v8108_v35 = vld [vmem:[%s20884_s16 + $0x3fd] sm:$0xff] }
 0x559   : > { %18587 = vmatprep.mubr.msk.bf16.mxu0 %vm752_vm2, %v8177_v47  ;;  %v8181_v47 = vpack.c.bf16 %v8102_v38, %v8101_v22  ;;  %v8109_v22 = vld [vmem:[%s20884_s16 + $0x405] sm:$0xff]  ;;  %v8110_v38 = vld [vmem:[%s20884_s16 + $0x40d] sm:$0xff] }
 0x560   : > { %18588 = vmatmul.mubr.msk.bf16.gmra.mrb[104].mxu0 %vm752_vm2, %v8178_v27  ;;  %v8182_v27 = vpack.c.bf16 %v8104_v29, %v8103_v26  ;;  %v8111_v26 = vld [vmem:[%s20884_s16 + $0x415] sm:$0xff]  ;;  %v8112_v29 = vld [vmem:[%s20884_s16 + $0x41d] sm:$0xff] }
 0x561   : > { %18591 = vmatprep.mubr.msk.bf16.mxu0 %vm752_vm2, %v8179_v17  ;;  %v8183_v17 = vpack.c.bf16 %v8106_v60, %v8105_v57  ;;  %v8113_v57 = vld [vmem:[%s20884_s16 + $0x425] sm:$0xff]  ;;  %v8114_v60 = vld [vmem:[%s20884_s16 + $0x42d] sm:$0xff] }
 0x568   : > { %18592 = vmatmul.mubr.msk.bf16.gmra.mrb[108].mxu0 %vm752_vm2, %v8180_v2  ;;  %v8184_v2 = vpack.c.bf16 %v8108_v35, %v8107_v16  ;;  %v8115_v16 = vld [vmem:[%s20884_s16 + $0x435] sm:$0xff]  ;;  %v8116_v35 = vld [vmem:[%s20884_s16 + $0x43d] sm:$0xff] }
 0x569   : > { %18595 = vmatprep.mubr.msk.bf16.mxu0 %vm752_vm2, %v8181_v47  ;;  %v8185_v47 = vpack.c.bf16 %v8110_v38, %v8109_v22  ;;  %v8117_v22 = vld [vmem:[%s20884_s16 + $0x445] sm:$0xff]  ;;  %v8118_v38 = vld [vmem:[%s20884_s16 + $0x44d] sm:$0xff] }
 0x570   : > { %18596 = vmatmul.mubr.msk.bf16.gmra.mrb[112].mxu0 %vm752_vm2, %v8182_v27  ;;  %v8186_v27 = vpack.c.bf16 %v8112_v29, %v8111_v26  ;;  %v8119_v26 = vld [vmem:[%s20884_s16 + $0x455] sm:$0xff]  ;;  %v8120_v29 = vld [vmem:[%s20884_s16 + $0x45d] sm:$0xff] }
 0x571   : > { %18599 = vmatprep.mubr.msk.bf16.mxu0 %vm752_vm2, %v8183_v17  ;;  %v8187_v17 = vpack.c.bf16 %v8114_v60, %v8113_v57  ;;  %v8121_v57 = vld [vmem:[%s20884_s16 + $0x465] sm:$0xff]  ;;  %v8122_v60 = vld [vmem:[%s20884_s16 + $0x46d] sm:$0xff] }
 0x578   : > { %18600 = vmatmul.mubr.msk.bf16.gmra.mrb[116].mxu0 %vm752_vm2, %v8184_v2  ;;  %v8188_v2 = vpack.c.bf16 %v8116_v35, %v8115_v16  ;;  %v8123_v16 = vld [vmem:[%s20884_s16 + $0x475] sm:$0xff]  ;;  %v8124_v35 = vld [vmem:[%s20884_s16 + $0x47d] sm:$0xff] }
 0x579   : > { %18603 = vmatprep.mubr.msk.bf16.mxu0 %vm752_vm2, %v8185_v47  ;;  %v8189_v47 = vpack.c.bf16 %v8118_v38, %v8117_v22  ;;  %v9125_v22 = vld [vmem:[%s20884_s16 + $0x46] sm:$0xff]  ;;  %v9126_v38 = vld [vmem:[%s20884_s16 + $0x4e] sm:$0xff] }
 0x580   : > { %18604 = vmatmul.mubr.msk.bf16.gmra.mrb[120].mxu0 %vm752_vm2, %v8186_v27  ;;  %v8190_v27 = vpack.c.bf16 %v8120_v29, %v8119_v26  ;;  %v9127_v26 = vld [vmem:[%s20884_s16 + $0x56] sm:$0xff]  ;;  %v9128_v29 = vld [vmem:[%s20884_s16 + $0x5e] sm:$0xff] }
 0x581   : > { %18607 = vmatprep.mubr.msk.bf16.mxu0 %vm752_vm2, %v8187_v17  ;;  %v8191_v17 = vpack.c.bf16 %v8122_v60, %v8121_v57  ;;  %v9129_v57 = vld [vmem:[%s20884_s16 + $0x66] sm:$0xff]  ;;  %v9130_v60 = vld [vmem:[%s20884_s16 + $0x6e] sm:$0xff] }
 0x588   : > { %18608 = vmatmul.mubr.msk.bf16.gmra.mrb[124].mxu0 %vm752_vm2, %v8188_v2  ;;  %v8192_v2 = vpack.c.bf16 %v8124_v35, %v8123_v16  ;;  %v9131_v16 = vld [vmem:[%s20884_s16 + $0x76] sm:$0xff]  ;;  %v9132_v35 = vld [vmem:[%s20884_s16 + $0x7e] sm:$0xff] }
 0x589   : > { %18611 = vmatprep.mubr.msk.bf16.mxu0 %vm752_vm2, %v8189_v47  ;;  %v9261_v47 = vpack.c.bf16 %v9126_v38, %v9125_v22  ;;  %v9133_v22 = vld [vmem:[%s20884_s16 + $0x86] sm:$0xff]  ;;  %v9134_v38 = vld [vmem:[%s20884_s16 + $0x8e] sm:$0xff] }
 0x590   : > { %18612 = vmatmul.mubr.msk.bf16.gmra.mrb[128].mxu0 %vm752_vm2, %v8190_v27  ;;  %v9262_v27 = vpack.c.bf16 %v9128_v29, %v9127_v26  ;;  %v9135_v26 = vld [vmem:[%s20884_s16 + $0x96] sm:$0xff]  ;;  %v9136_v29 = vld [vmem:[%s20884_s16 + $0x9e] sm:$0xff] }
 0x591   : > { %18615 = vmatprep.mubr.msk.bf16.mxu0 %vm752_vm2, %v8191_v17  ;;  %v9263_v17 = vpack.c.bf16 %v9130_v60, %v9129_v57  ;;  %v9137_v57 = vld [vmem:[%s20884_s16 + $0xa6] sm:$0xff]  ;;  %v9138_v60 = vld [vmem:[%s20884_s16 + $0xae] sm:$0xff] }
 0x598   : > { %18616 = vmatmul.mubr.msk.bf16.gmra.mrb[132].mxu0 %vm752_vm2, %v8192_v2  ;;  %v9264_v2 = vpack.c.bf16 %v9132_v35, %v9131_v16  ;;  %v9139_v16 = vld [vmem:[%s20884_s16 + $0xb6] sm:$0xff]  ;;  %v9140_v35 = vld [vmem:[%s20884_s16 + $0xbe] sm:$0xff] }
 0x599   : > { %18621 = vmatprep.mubr.msk.bf16.mxu0 %vm752_vm2, %v9261_v47  ;;  %v9265_v47 = vpack.c.bf16 %v9134_v38, %v9133_v22  ;;  %v9141_v22 = vld [vmem:[%s20884_s16 + $0xc6] sm:$0xff]  ;;  %v9142_v38 = vld [vmem:[%s20884_s16 + $0xce] sm:$0xff] }
 0x5a0   : > { %18622 = vmatmul.mubr.msk.bf16.vlgmr.msra.gmra.mrb[0].mxu0 %vm752_vm2, %v9262_v27  ;;  %v9266_v27 = vpack.c.bf16 %v9136_v29, %v9135_v26  ;;  %v9143_v26 = vld [vmem:[%s20884_s16 + $0xd6] sm:$0xff]  ;;  %v9144_v29 = vld [vmem:[%s20884_s16 + $0xde] sm:$0xff] }
 0x5a1   : > { %18625 = vmatprep.mubr.msk.bf16.mxu0 %vm752_vm2, %v9263_v17  ;;  %v9267_v17 = vpack.c.bf16 %v9138_v60, %v9137_v57  ;;  %v9145_v57 = vld [vmem:[%s20884_s16 + $0xe6] sm:$0xff]  ;;  %v9146_v60 = vld [vmem:[%s20884_s16 + $0xee] sm:$0xff] }
 0x5a8   : > { %18626 = vmatmul.mubr.msk.bf16.gmra.mrb[4].mxu0 %vm752_vm2, %v9264_v2  ;;  %v9268_v2 = vpack.c.bf16 %v9140_v35, %v9139_v16  ;;  %v9147_v16 = vld [vmem:[%s20884_s16 + $0xf6] sm:$0xff]  ;;  %v9148_v35 = vld [vmem:[%s20884_s16 + $0xfe] sm:$0xff] }
 0x5a9   : > { %18629 = vmatprep.mubr.msk.bf16.mxu0 %vm752_vm2, %v9265_v47  ;;  %v9269_v47 = vpack.c.bf16 %v9142_v38, %v9141_v22  ;;  %v9149_v22 = vld [vmem:[%s20884_s16 + $0x106] sm:$0xff]  ;;  %v9150_v38 = vld [vmem:[%s20884_s16 + $0x10e] sm:$0xff] }
 0x5b0   : > { %18630 = vmatmul.mubr.msk.bf16.gmra.mrb[8].mxu0 %vm752_vm2, %v9266_v27  ;;  %v9270_v27 = vpack.c.bf16 %v9144_v29, %v9143_v26  ;;  %v9151_v26 = vld [vmem:[%s20884_s16 + $0x116] sm:$0xff]  ;;  %v9152_v29 = vld [vmem:[%s20884_s16 + $0x11e] sm:$0xff] }
 0x5b1   : > { %18633 = vmatprep.mubr.msk.bf16.mxu0 %vm752_vm2, %v9267_v17  ;;  %v9271_v17 = vpack.c.bf16 %v9146_v60, %v9145_v57  ;;  %v9153_v57 = vld [vmem:[%s20884_s16 + $0x126] sm:$0xff]  ;;  %v9154_v60 = vld [vmem:[%s20884_s16 + $0x12e] sm:$0xff] }
 0x5b8   : > { %18634 = vmatmul.mubr.msk.bf16.gmra.mrb[12].mxu0 %vm752_vm2, %v9268_v2  ;;  %v9272_v2 = vpack.c.bf16 %v9148_v35, %v9147_v16  ;;  %v9155_v16 = vld [vmem:[%s20884_s16 + $0x136] sm:$0xff]  ;;  %v9156_v35 = vld [vmem:[%s20884_s16 + $0x13e] sm:$0xff] }
 0x5b9   : > { %18637 = vmatprep.mubr.msk.bf16.mxu0 %vm752_vm2, %v9269_v47  ;;  %v9273_v47 = vpack.c.bf16 %v9150_v38, %v9149_v22  ;;  %v9157_v22 = vld [vmem:[%s20884_s16 + $0x146] sm:$0xff]  ;;  %v9158_v38 = vld [vmem:[%s20884_s16 + $0x14e] sm:$0xff] }
 0x5c0   : > { %18638 = vmatmul.mubr.msk.bf16.gmra.mrb[16].mxu0 %vm752_vm2, %v9270_v27  ;;  %v9274_v27 = vpack.c.bf16 %v9152_v29, %v9151_v26  ;;  %v9159_v26 = vld [vmem:[%s20884_s16 + $0x156] sm:$0xff]  ;;  %v9160_v29 = vld [vmem:[%s20884_s16 + $0x15e] sm:$0xff] }
 0x5c1   : > { %18641 = vmatprep.mubr.msk.bf16.mxu0 %vm752_vm2, %v9271_v17  ;;  %v9275_v17 = vpack.c.bf16 %v9154_v60, %v9153_v57  ;;  %v9161_v57 = vld [vmem:[%s20884_s16 + $0x166] sm:$0xff]  ;;  %v9162_v60 = vld [vmem:[%s20884_s16 + $0x16e] sm:$0xff] }
 0x5c8   : > { %18642 = vmatmul.mubr.msk.bf16.gmra.mrb[20].mxu0 %vm752_vm2, %v9272_v2  ;;  %v9276_v2 = vpack.c.bf16 %v9156_v35, %v9155_v16  ;;  %v9163_v16 = vld [vmem:[%s20884_s16 + $0x176] sm:$0xff]  ;;  %v9164_v35 = vld [vmem:[%s20884_s16 + $0x17e] sm:$0xff] }
 0x5c9   : > { %18645 = vmatprep.mubr.msk.bf16.mxu0 %vm752_vm2, %v9273_v47  ;;  %v9277_v47 = vpack.c.bf16 %v9158_v38, %v9157_v22  ;;  %v9165_v22 = vld [vmem:[%s20884_s16 + $0x186] sm:$0xff]  ;;  %v9166_v38 = vld [vmem:[%s20884_s16 + $0x18e] sm:$0xff] }
 0x5d0   : > { %18646 = vmatmul.mubr.msk.bf16.gmra.mrb[24].mxu0 %vm752_vm2, %v9274_v27  ;;  %v9278_v27 = vpack.c.bf16 %v9160_v29, %v9159_v26  ;;  %v20550_v26 = vld [vmem:[%s24221_s3 + $0x8] sm:$0xff]   ;;  %v9167_v29 = vld [vmem:[%s20884_s16 + $0x196] sm:$0xff] }
 0x5d1   : > { %18649 = vmatprep.mubr.msk.bf16.mxu0 %vm752_vm2, %v9275_v17  ;;  %v9279_v17 = vpack.c.bf16 %v9162_v60, %v9161_v57  ;;  %v9168_v57 = vld [vmem:[%s20884_s16 + $0x19e] sm:$0xff]  ;;  %v9169_v60 = vld [vmem:[%s20884_s16 + $0x1a6] sm:$0xff]  ;;  %18757 = vmatprep.subr.bf16.mxu1 %v20550_v26 }
 0x5d2   : > { %18758 = vmatpush3.bf16.msra.mxu1 %v20550_v26  ;;  %v9175_v26 = vld [vmem:[%s20884_s16 + $0x1d6] sm:$0xff] }
 0x5d8   : > { %18650 = vmatmul.mubr.msk.bf16.gmra.mrb[28].mxu0 %vm752_vm2, %v9276_v2  ;;  %v9280_v2 = vpack.c.bf16 %v9164_v35, %v9163_v16  ;;  %v9171_v35 = vld [vmem:[%s20884_s16 + $0x1b6] sm:$0xff] }
 0x5d9   : > { %18653 = vmatprep.mubr.msk.bf16.mxu0 %vm752_vm2, %v9277_v47  ;;  %v9281_v47 = vpack.c.bf16 %v9166_v38, %v9165_v22  ;;  %v9172_v22 = vld [vmem:[%s20884_s16 + $0x1be] sm:$0xff]  ;;  %v9173_v38 = vld [vmem:[%s20884_s16 + $0x1c6] sm:$0xff] }
 0x5e0   : > { %18654 = vmatmul.mubr.msk.bf16.gmra.mrb[32].mxu0 %vm752_vm2, %v9278_v27  ;;  %v9170_v27 = vld [vmem:[%s20884_s16 + $0x1ae] sm:$0xff] }
 0x5e1   : > { %18657 = vmatprep.mubr.msk.bf16.mxu0 %vm752_vm2, %v9279_v17  ;;  %v9282_v17 = vpack.c.bf16 %v9168_v57, %v9167_v29  ;;  %v9283_v16 = vpack.c.bf16 %v9170_v27, %v9169_v60  ;;  %v9176_v29 = vld [vmem:[%s20884_s16 + $0x1de] sm:$0xff]  ;;  %v9177_v57 = vld [vmem:[%s20884_s16 + $0x1e6] sm:$0xff]  ;;  %v9178_v60 = vld [vmem:[%s20884_s16 + $0x1ee] sm:$0xff] }
 0x5e2   : > { %v9286_v27 = vpack.c.bf16 %v9176_v29, %v9175_v26  ;;  %v9291_v29 = vpack.c.bf16 %v9186_v40, %v9185_v45  ;;  %v9187_v40 = vld [vmem:[%s20884_s16 + $0x236] sm:$0xff]  ;;  %v9188_v45 = vld [vmem:[%s20884_s16 + $0x23e] sm:$0xff] }
 0x5e8   : > { %18658 = vmatmul.mubr.msk.bf16.gmra.mrb[36].mxu0 %vm752_vm2, %v9280_v2  ;;  %v9174_v2 = vld [vmem:[%s20884_s16 + $0x1ce] sm:$0xff] }
 0x5e9   : > { %18661 = vmatprep.mubr.msk.bf16.mxu0 %vm752_vm2, %v9281_v47  ;;  %v9284_v47 = vpack.c.bf16 %v9172_v22, %v9171_v35  ;;  %v9285_v9 = vpack.c.bf16 %v9174_v2, %v9173_v38  ;;  %v9180_v35 = vld [vmem:[%s20884_s16 + $0x1fe] sm:$0xff]  ;;  %v9181_v22 = vld [vmem:[%s20884_s16 + $0x206] sm:$0xff]  ;;  %v9182_v38 = vld [vmem:[%s20884_s16 + $0x20e] sm:$0xff] }
 0x5f0   : > { %18662 = vmatmul.mubr.msk.bf16.gmra.mrb[40].mxu0 %vm752_vm2, %v9282_v17  ;;  %v9287_v17 = vpack.c.bf16 %v9178_v60, %v9177_v57  ;;  %v24228_v57 = vmov 0.0   ;;  %v9190_v60 = vld [vmem:[%s20884_s16 + $0x24e] sm:$0xff] }
 0x5f1   : > { %18665 = vmatprep.mubr.msk.bf16.mxu0 %vm752_vm2, %v9283_v16  ;;  %v9179_v16 = vld [vmem:[%s20884_s16 + $0x1f6] sm:$0xff]  ;;  %10390 = vst.msk [vmem:[#allocation3 + $0x18] sm:$0xff] %vm10250_vm3, %v24228_v57  ;;  %10391 = vst.msk [vmem:[#allocation3 + $0x20] sm:$0xff] %vm10250_vm3, %v24228_v57 }
 0x5f2   : > { %v9288_v2 = vpack.c.bf16 %v9180_v35, %v9179_v16  ;;  %10387 = vst.msk [vmem:[#allocation3] sm:$0xff] %vm10250_vm3, %v24228_v57  ;;  %10388 = vst.msk [vmem:[#allocation3 + $0x8] sm:$0xff] %vm10250_vm3, %v24228_v57  ;;  %v9191_v16 = vld [vmem:[%s20884_s16 + $0x256] sm:$0xff]  ;;  %v9192_v35 = vld [vmem:[%s20884_s16 + $0x25e] sm:$0xff] }
 0x5f3   : > { %10389 = vst.msk [vmem:[#allocation3 + $0x10] sm:$0xff] %vm10250_vm3, %v24228_v57  ;;  %10392 = vst.msk [vmem:[#allocation3 + $0x28] sm:$0xff] %vm10250_vm3, %v24228_v57 }
 0x5f4   : > { %10393 = vst.msk [vmem:[#allocation3 + $0x30] sm:$0xff] %vm10250_vm3, %v24228_v57  ;;  %10394 = vst.msk [vmem:[#allocation3 + $0x38] sm:$0xff] %vm10250_vm3, %v24228_v57 }
 0x5f5   : > { %10395 = vst.msk [vmem:[#allocation3 + $0x40] sm:$0xff] %vm10250_vm3, %v24228_v57  ;;  %10396 = vst.msk [vmem:[#allocation3 + $0x48] sm:$0xff] %vm10250_vm3, %v24228_v57 }
 0x5f6   : > { %10397 = vst.msk [vmem:[#allocation3 + $0x50] sm:$0xff] %vm10250_vm3, %v24228_v57  ;;  %10398 = vst.msk [vmem:[#allocation3 + $0x58] sm:$0xff] %vm10250_vm3, %v24228_v57 }
 0x5f7   : > { %10399 = vst.msk [vmem:[#allocation3 + $0x60] sm:$0xff] %vm10250_vm3, %v24228_v57  ;;  %10400 = vst.msk [vmem:[#allocation3 + $0x68] sm:$0xff] %vm10250_vm3, %v24228_v57 }
 0x5f8   : > { %18666 = vmatmul.mubr.msk.bf16.gmra.mrb[44].mxu0 %vm752_vm2, %v9284_v47  ;;  %v9183_v47 = vld [vmem:[%s20884_s16 + $0x216] sm:$0xff]  ;;  %10401 = vst.msk [vmem:[#allocation3 + $0x70] sm:$0xff] %vm10250_vm3, %v24228_v57  ;;  %10402 = vst.msk [vmem:[#allocation3 + $0x78] sm:$0xff] %vm10250_vm3, %v24228_v57 }
 0x5f9   : > { %18669 = vmatprep.mubr.msk.bf16.mxu0 %vm752_vm2, %v9285_v9  ;;  %v9289_v9 = vpack.c.bf16 %v9182_v38, %v9181_v22  ;;  %v9290_v26 = vpack.c.bf16 %v9184_v50, %v9183_v47  ;;  %10403 = vst.msk [vmem:[#allocation3 + $0x80] sm:$0xff] %vm10250_vm3, %v24228_v57  ;;  %10404 = vst.msk [vmem:[#allocation3 + $0x88] sm:$0xff] %vm10250_vm3, %v24228_v57  ;;  %v9189_v50 = vld [vmem:[%s20884_s16 + $0x246] sm:$0xff]  ;;  %v9194_v38 = vld [vmem:[%s20884_s16 + $0x26e] sm:$0xff] }
 0x5fa   : > { %10405 = vst.msk [vmem:[#allocation3 + $0x90] sm:$0xff] %vm10250_vm3, %v24228_v57  ;;  %10406 = vst.msk [vmem:[#allocation3 + $0x98] sm:$0xff] %vm10250_vm3, %v24228_v57  ;;  %v9193_v22 = vld [vmem:[%s20884_s16 + $0x266] sm:$0xff] }
 0x5fb   : > { %10407 = vst.msk [vmem:[#allocation3 + $0xa0] sm:$0xff] %vm10250_vm3, %v24228_v57  ;;  %10408 = vst.msk [vmem:[#allocation3 + $0xa8] sm:$0xff] %vm10250_vm3, %v24228_v57  ;;  %v10938_v47 = vld [vmem:[#allocation3 + $0x1] sm:$0xff] }
 0x5fc   : > { %10409 = vst.msk [vmem:[#allocation3 + $0xb0] sm:$0xff] %vm10250_vm3, %v24228_v57  ;;  %10410 = vst.msk [vmem:[#allocation3 + $0xb8] sm:$0xff] %vm10250_vm3, %v24228_v57 }
 0x5fd   : > { %10411 = vst.msk [vmem:[#allocation3 + $0xc0] sm:$0xff] %vm10250_vm3, %v24228_v57  ;;  %10412 = vst.msk [vmem:[#allocation3 + $0xc8] sm:$0xff] %vm10250_vm3, %v24228_v57 }
 0x5fe   : > { %10413 = vst.msk [vmem:[#allocation3 + $0xd0] sm:$0xff] %vm10250_vm3, %v24228_v57  ;;  %10414 = vst.msk [vmem:[#allocation3 + $0xd8] sm:$0xff] %vm10250_vm3, %v24228_v57 }
 0x5ff   : > { %10415 = vst.msk [vmem:[#allocation3 + $0xe0] sm:$0xff] %vm10250_vm3, %v24228_v57  ;;  %10416 = vst.msk [vmem:[#allocation3 + $0xe8] sm:$0xff] %vm10250_vm3, %v24228_v57 }
 0x600   : > { %18670 = vmatmul.mubr.msk.bf16.gmra.mrb[48].mxu0 %vm752_vm2, %v9286_v27  ;;  %10417 = vst.msk [vmem:[#allocation3 + $0xf0] sm:$0xff] %vm10250_vm3, %v24228_v57  ;;  %10418 = vst.msk [vmem:[#allocation3 + $0xf8] sm:$0xff] %vm10250_vm3, %v24228_v57  ;;  %v9292_v27 = vpack.c.bf16 %v9188_v45, %v9187_v40  ;;  %v9195_v40 = vld [vmem:[%s20884_s16 + $0x276] sm:$0xff]  ;;  %v9196_v45 = vld [vmem:[%s20884_s16 + $0x27e] sm:$0xff] }
 0x601   : > { %18673 = vmatprep.mubr.msk.bf16.mxu0 %vm752_vm2, %v9287_v17  ;;  %10419 = vst.msk [vmem:[#allocation3 + $0x100] sm:$0xff] %vm10250_vm3, %v24228_v57  ;;  %10420 = vst.msk [vmem:[#allocation3 + $0x108] sm:$0xff] %vm10250_vm3, %v24228_v57  ;;  %v9293_v17 = vpack.c.bf16 %v9190_v60, %v9189_v50  ;;  %v9197_v50 = vld [vmem:[%s20884_s16 + $0x286] sm:$0xff]  ;;  %v9198_v60 = vld [vmem:[%s20884_s16 + $0x28e] sm:$0xff] }
 0x602   : > { %10421 = vst.msk [vmem:[#allocation3 + $0x110] sm:$0xff] %vm10250_vm3, %v24228_v57  ;;  %10422 = vst.msk [vmem:[#allocation3 + $0x118] sm:$0xff] %vm10250_vm3, %v24228_v57 }
 0x603   : > { %10423 = vst.msk [vmem:[#allocation3 + $0x120] sm:$0xff] %vm10250_vm3, %v24228_v57  ;;  %10424 = vst.msk [vmem:[#allocation3 + $0x128] sm:$0xff] %vm10250_vm3, %v24228_v57 }
 0x604   : > { %10425 = vst.msk [vmem:[#allocation3 + $0x130] sm:$0xff] %vm10250_vm3, %v24228_v57  ;;  %10426 = vst.msk [vmem:[#allocation3 + $0x138] sm:$0xff] %vm10250_vm3, %v24228_v57 }
 0x605   : > { %10427 = vst.msk [vmem:[#allocation3 + $0x140] sm:$0xff] %vm10250_vm3, %v24228_v57  ;;  %v9238_v57 = vld [vmem:[%s20884_s16 + $0x3ce] sm:$0xff] }
 0x608   : > { %18674 = vmatmul.mubr.msk.bf16.gmra.mrb[52].mxu0 %vm752_vm2, %v9288_v2  ;;  %v9294_v2 = vpack.c.bf16 %v9192_v35, %v9191_v16  ;;  %v9199_v16 = vld [vmem:[%s20884_s16 + $0x296] sm:$0xff]  ;;  %v9200_v35 = vld [vmem:[%s20884_s16 + $0x29e] sm:$0xff] }
 0x609   : > { %18677 = vmatprep.mubr.msk.bf16.mxu0 %vm752_vm2, %v9289_v9  ;;  %v9295_v9 = vpack.c.bf16 %v9194_v38, %v9193_v22  ;;  %v9201_v22 = vld [vmem:[%s20884_s16 + $0x2a6] sm:$0xff]  ;;  %v9202_v38 = vld [vmem:[%s20884_s16 + $0x2ae] sm:$0xff] }
 0x610   : > { %18678 = vmatmul.mubr.msk.bf16.gmra.mrb[56].mxu0 %vm752_vm2, %v9290_v26  ;;  %v10939_v26 = vld [vmem:[#allocation3 + $0x9] sm:$0xff] }
 0x611   : > { %18681 = vmatprep.mubr.msk.bf16.mxu0 %vm752_vm2, %v9291_v29  ;;  %v10974_v29 = vpack.c.bf16 %v10939_v26, %v10938_v47  ;;  %v9203_v47 = vld [vmem:[%s20884_s16 + $0x2b6] sm:$0xff]  ;;  %v9204_v26 = vld [vmem:[%s20884_s16 + $0x2be] sm:$0xff] }
 0x613   : > { %18759 = vmatprep.mubr.msk.bf16.mxu1 %vm10250_vm3, %v10974_v29  ;;  %v9205_v29 = vld [vmem:[%s20884_s16 + $0x2c6] sm:$0xff] }
 0x618   : > { %18682 = vmatmul.mubr.msk.bf16.gmra.mrb[60].mxu0 %vm752_vm2, %v9292_v27  ;;  %v9296_v27 = vpack.c.bf16 %v9196_v45, %v9195_v40  ;;  %v9206_v40 = vld [vmem:[%s20884_s16 + $0x2ce] sm:$0xff]  ;;  %v9300_v45 = vpack.c.bf16 %v9204_v26, %v9203_v47 }
 0x619   : > { %18685 = vmatprep.mubr.msk.bf16.mxu0 %vm752_vm2, %v9293_v17  ;;  %v9297_v17 = vpack.c.bf16 %v9198_v60, %v9197_v50  ;;  %v9301_v50 = vpack.c.bf16 %v9206_v40, %v9205_v29  ;;  %v9207_v60 = vld [vmem:[%s20884_s16 + $0x2d6] sm:$0xff]  ;;  %v9214_v47 = vld [vmem:[%s20884_s16 + $0x30e] sm:$0xff] }
 0x61a   : > { %v9215_v40 = vld [vmem:[%s20884_s16 + $0x316] sm:$0xff] }
 0x620   : > { %18686 = vmatmul.mubr.msk.bf16.gmra.mrb[64].mxu0 %vm752_vm2, %v9294_v2  ;;  %v9298_v2 = vpack.c.bf16 %v9200_v35, %v9199_v16  ;;  %v9210_v16 = vld [vmem:[%s20884_s16 + $0x2ee] sm:$0xff] }
 0x621   : > { %18689 = vmatprep.mubr.msk.bf16.mxu0 %vm752_vm2, %v9295_v9  ;;  %v9299_v9 = vpack.c.bf16 %v9202_v38, %v9201_v22  ;;  %v9211_v38 = vld [vmem:[%s20884_s16 + $0x2f6] sm:$0xff] }
 0x628   : > { %18690 = vmatmul.mubr.msk.bf16.gmra.mrb[68].mxu0 %vm752_vm2, %v9296_v27  ;;  %v9208_v27 = vld [vmem:[%s20884_s16 + $0x2de] sm:$0xff] }
 0x629   : > { %18693 = vmatprep.mubr.msk.bf16.mxu0 %vm752_vm2, %v9297_v17  ;;  %v9209_v17 = vld [vmem:[%s20884_s16 + $0x2e6] sm:$0xff]  ;;  %v9302_v35 = vpack.c.bf16 %v9208_v27, %v9207_v60  ;;  %v9218_v60 = vld [vmem:[%s20884_s16 + $0x32e] sm:$0xff] }
 0x62a   : > { %v9303_v22 = vpack.c.bf16 %v9210_v16, %v9209_v17  ;;  %v9219_v16 = vld [vmem:[%s20884_s16 + $0x336] sm:$0xff] }
 0x630   : > { %18694 = vmatmul.mubr.msk.bf16.gmra.mrb[72].mxu0 %vm752_vm2, %v9298_v2  ;;  %v9212_v2 = vld [vmem:[%s20884_s16 + $0x2fe] sm:$0xff] }
 0x631   : > { %18697 = vmatprep.mubr.msk.bf16.mxu0 %vm752_vm2, %v9299_v9  ;;  %v9213_v9 = vld [vmem:[%s20884_s16 + $0x306] sm:$0xff]  ;;  %v9304_v26 = vpack.c.bf16 %v9212_v2, %v9211_v38  ;;  %v9222_v38 = vld [vmem:[%s20884_s16 + $0x34e] sm:$0xff] }
 0x632   : > { %v9305_v29 = vpack.c.bf16 %v9214_v47, %v9213_v9  ;;  %v9223_v47 = vld [vmem:[%s20884_s16 + $0x356] sm:$0xff] }
 0x638   : > { %18698 = vmatmul.mubr.msk.bf16.gmra.mrb[76].mxu0 %vm752_vm2, %v9300_v45  ;;  %v9216_v45 = vld [vmem:[%s20884_s16 + $0x31e] sm:$0xff] }
 0x639   : > { %18701 = vmatprep.mubr.msk.bf16.mxu0 %vm752_vm2, %v9301_v50  ;;  %v9217_v50 = vld [vmem:[%s20884_s16 + $0x326] sm:$0xff]  ;;  %v9306_v27 = vpack.c.bf16 %v9216_v45, %v9215_v40  ;;  %v9226_v40 = vld [vmem:[%s20884_s16 + $0x36e] sm:$0xff] }
 0x63a   : > { %v9307_v17 = vpack.c.bf16 %v9218_v60, %v9217_v50  ;;  %v9227_v60 = vld [vmem:[%s20884_s16 + $0x376] sm:$0xff] }
 0x640   : > { %18702 = vmatmul.mubr.msk.bf16.gmra.mrb[80].mxu0 %vm752_vm2, %v9302_v35  ;;  %v9220_v35 = vld [vmem:[%s20884_s16 + $0x33e] sm:$0xff] }
 0x641   : > { %18705 = vmatprep.mubr.msk.bf16.mxu0 %vm752_vm2, %v9303_v22  ;;  %v9221_v22 = vld [vmem:[%s20884_s16 + $0x346] sm:$0xff]  ;;  %v9308_v2 = vpack.c.bf16 %v9220_v35, %v9219_v16  ;;  %v9230_v16 = vld [vmem:[%s20884_s16 + $0x38e] sm:$0xff] }
 0x642   : > { %v9309_v9 = vpack.c.bf16 %v9222_v38, %v9221_v22  ;;  %v9231_v38 = vld [vmem:[%s20884_s16 + $0x396] sm:$0xff] }
 0x648   : > { %18706 = vmatmul.mubr.msk.bf16.gmra.mrb[84].mxu0 %vm752_vm2, %v9304_v26  ;;  %v9224_v26 = vld [vmem:[%s20884_s16 + $0x35e] sm:$0xff] }
 0x649   : > { %18709 = vmatprep.mubr.msk.bf16.mxu0 %vm752_vm2, %v9305_v29  ;;  %v9225_v29 = vld [vmem:[%s20884_s16 + $0x366] sm:$0xff]  ;;  %v9310_v45 = vpack.c.bf16 %v9224_v26, %v9223_v47  ;;  %v9234_v47 = vld [vmem:[%s20884_s16 + $0x3ae] sm:$0xff] }
 0x64a   : > { %v9311_v50 = vpack.c.bf16 %v9226_v40, %v9225_v29  ;;  %v9235_v40 = vld [vmem:[%s20884_s16 + $0x3b6] sm:$0xff] }
 0x650   : > { %18710 = vmatmul.mubr.msk.bf16.gmra.mrb[88].mxu0 %vm752_vm2, %v9306_v27  ;;  %v9228_v27 = vld [vmem:[%s20884_s16 + $0x37e] sm:$0xff] }
 0x651   : > { %18713 = vmatprep.mubr.msk.bf16.mxu0 %vm752_vm2, %v9307_v17  ;;  %v9229_v17 = vld [vmem:[%s20884_s16 + $0x386] sm:$0xff]  ;;  %v9312_v35 = vpack.c.bf16 %v9228_v27, %v9227_v60 }
 0x652   : > { %v9313_v22 = vpack.c.bf16 %v9230_v16, %v9229_v17 }
 0x658   : > { %18714 = vmatmul.mubr.msk.bf16.gmra.mrb[92].mxu0 %vm752_vm2, %v9308_v2  ;;  %v9232_v2 = vld [vmem:[%s20884_s16 + $0x39e] sm:$0xff] }
 0x659   : > { %18717 = vmatprep.mubr.msk.bf16.mxu0 %vm752_vm2, %v9309_v9  ;;  %v9233_v9 = vld [vmem:[%s20884_s16 + $0x3a6] sm:$0xff]  ;;  %v9314_v26 = vpack.c.bf16 %v9232_v2, %v9231_v38 }
 0x65a   : > { %v9315_v29 = vpack.c.bf16 %v9234_v47, %v9233_v9 }
 0x660   : > { %18718 = vmatmul.mubr.msk.bf16.gmra.mrb[96].mxu0 %vm752_vm2, %v9310_v45  ;;  %v9236_v45 = vld [vmem:[%s20884_s16 + $0x3be] sm:$0xff] }
 0x661   : > { %18721 = vmatprep.mubr.msk.bf16.mxu0 %vm752_vm2, %v9311_v50  ;;  %v9237_v50 = vld [vmem:[%s20884_s16 + $0x3c6] sm:$0xff]  ;;  %v9316_v16 = vpack.c.bf16 %v9236_v45, %v9235_v40 }
 0x662   : > { %v9317_v38 = vpack.c.bf16 %v9238_v57, %v9237_v50  ;;  %v9241_v57 = vld [vmem:[%s20884_s16 + $0x3e6] sm:$0xff] }
 0x668   : > { %18722 = vmatmul.mubr.msk.bf16.gmra.mrb[100].mxu0 %vm752_vm2, %v9312_v35 }
 0x669   : > { %18725 = vmatprep.mubr.msk.bf16.mxu0 %vm752_vm2, %v9313_v22 }
 0x670   : > { %18726 = vmatmul.mubr.msk.bf16.gmra.mrb[104].mxu0 %vm752_vm2, %v9314_v26  ;;  %v9242_v26 = vld [vmem:[%s20884_s16 + $0x3ee] sm:$0xff] }
 0x671   : > { %18729 = vmatprep.mubr.msk.bf16.mxu0 %vm752_vm2, %v9315_v29 }
 0x673   : > { %v18623_v60 = vpop.f32.mrb[0].mxu0 }
 0x674   : > { %v19121_v27 = vadd.f32 %v18623_v60, %v22190_v52  ;;  %v9571_v17 = vpop.f32.mrb[1].mxu0  ;;  %v9239_v52 = vld [vmem:[%s20884_s16 + $0x3d6] sm:$0xff]  ;;  %v9319_v60 = vpack.c.bf16 %v9242_v26, %v9241_v57 }
 0x675   : > { %v19122_v35 = vadd.f32 %v9571_v17, %v22198_v59  ;;  %v18624_v22 = vpop.f32.mrb[2].mxu0  ;;  %v9240_v59 = vld [vmem:[%s20884_s16 + $0x3de] sm:$0xff] }
 0x676   : > { %10253 = vst.msk [vmem:[#allocation2 + $0x10] sm:$0xff] %vm10250_vm3, %v19121_v27  ;;  %v19123_v2 = vadd.f32 %v18624_v22, %v22203_v63  ;;  %v9574_v9 = vpop.f32.mrb[3].mxu0  ;;  %v9246_v22 = vld [vmem:[%s20884_s16 + $0x40e] sm:$0xff] }
 0x677   : > { %10251 = vst.msk [vmem:[#allocation2] sm:$0xff] %vm10250_vm3, %v19122_v35  ;;  %v19124_v47 = vadd.f32 %v9574_v9, %v22205_v1  ;;  %v9318_v1 = vpack.c.bf16 %v9240_v59, %v9239_v52  ;;  %v9245_v35 = vld [vmem:[%s20884_s16 + $0x406] sm:$0xff] }
 0x678   : > { %10254 = vst.msk [vmem:[#allocation2 + $0x18] sm:$0xff] %vm10250_vm3, %v19123_v2  ;;  %18730 = vmatmul.mubr.msk.bf16.gmra.mrb[108].mxu0 %vm752_vm2, %v9316_v16  ;;  %v9321_v52 = vpack.c.bf16 %v9246_v22, %v9245_v35 }
 0x679   : > { %10252 = vst.msk [vmem:[#allocation2 + $0x8] sm:$0xff] %vm10250_vm3, %v19124_v47  ;;  %18733 = vmatprep.mubr.msk.bf16.mxu0 %vm752_vm2, %v9317_v38 }
 0x67b   : > { %v18627_v29 = vpop.f32.mrb[4].mxu0 }
 0x67c   : > { %v19125_v63 = vadd.f32 %v18627_v29, %v22210_v5  ;;  %v9587_v40 = vpop.f32.mrb[5].mxu0  ;;  %v9243_v5 = vld [vmem:[%s20884_s16 + $0x3f6] sm:$0xff] }
 0x67d   : > { %v19126_v45 = vadd.f32 %v9587_v40, %v22218_v13  ;;  %v18628_v50 = vpop.f32.mrb[6].mxu0  ;;  %v9244_v13 = vld [vmem:[%s20884_s16 + $0x3fe] sm:$0xff] }
 0x67e   : > { %10257 = vst.msk [vmem:[#allocation2 + $0x30] sm:$0xff] %vm10250_vm3, %v19125_v63  ;;  %v19127_v27 = vadd.f32 %v18628_v50, %v22223_v18  ;;  %v9590_v17 = vpop.f32.mrb[7].mxu0  ;;  %v9320_v9 = vpack.c.bf16 %v9244_v13, %v9243_v5  ;;  %v23114_v50 = vld [vmem:[%s24220_s2] ss:$0 sm:$0xff] }
 0x67f   : > { %10255 = vst.msk [vmem:[#allocation2 + $0x20] sm:$0xff] %vm10250_vm3, %v19126_v45  ;;  %v19128_v16 = vadd.f32 %v9590_v17, %v22225_v20  ;;  %v9247_v45 = vld [vmem:[%s20884_s16 + $0x416] sm:$0xff] }
 0x680   : > { %10258 = vst.msk [vmem:[#allocation2 + $0x38] sm:$0xff] %vm10250_vm3, %v19127_v27  ;;  %18734 = vmatmul.mubr.msk.bf16.gmra.mrb[112].mxu0 %vm752_vm2, %v9318_v1  ;;  %v10429_v59 = vld [vmem:[#allocation2] ss:$2 sm:$0xff]  ;;  %v10433_v57 = vld [vmem:[#allocation2 + $0x1] ss:$2 sm:$0xff] }
 0x681   : > { %10256 = vst.msk [vmem:[#allocation2 + $0x28] sm:$0xff] %vm10250_vm3, %v19128_v16  ;;  %18737 = vmatprep.mubr.msk.bf16.mxu0 %vm752_vm2, %v9319_v60  ;;  %v9250_v60 = vld [vmem:[%s20884_s16 + $0x42e] sm:$0xff] }
 0x682   : > { %v10431_v16 = vld [vmem:[#allocation2 + $0x10] ss:$2 sm:$0xff]  ;;  %v10435_v5 = vld [vmem:[#allocation2 + $0x11] ss:$2 sm:$0xff] }
 0x683   : > { %v18631_v38 = vpop.f32.mrb[8].mxu0 }
 0x684   : > { %v19129_v18 = vadd.f32 %v18631_v38, %v22235_v25  ;;  %v9603_v2 = vpop.f32.mrb[9].mxu0 }
 0x685   : > { %v19130_v47 = vadd.f32 %v9603_v2, %v22241_v28  ;;  %v18632_v20 = vpop.f32.mrb[10].mxu0  ;;  %v10444_v28 = vmax.f32 %v10429_v59, %v10433_v57 }
 0x686   : > { %10261 = vst.msk [vmem:[#allocation2 + $0x50] sm:$0xff] %vm10250_vm3, %v19129_v18  ;;  %v19131_v26 = vadd.f32 %v18632_v20, %v22248_v34  ;;  %v9606_v29 = vpop.f32.mrb[11].mxu0  ;;  %v9248_v34 = vld [vmem:[%s20884_s16 + $0x41e] sm:$0xff] }
 0x687   : > { %10259 = vst.msk [vmem:[#allocation2 + $0x40] sm:$0xff] %vm10250_vm3, %v19130_v47  ;;  %v19132_v25 = vadd.f32 %v9606_v29, %v22252_v3  ;;  %v9249_v3 = vld [vmem:[%s20884_s16 + $0x426] sm:$0xff]  ;;  %v9322_v22 = vpack.c.bf16 %v9248_v34, %v9247_v45 }
 0x688   : > { %v10437_v63 = vld [vmem:[#allocation2 + $0x22] ss:$2 sm:$0xff]  ;;  %v10441_v40 = vld [vmem:[#allocation2 + $0x23] ss:$2 sm:$0xff]  ;;  %10262 = vst.msk [vmem:[#allocation2 + $0x58] sm:$0xff] %vm10250_vm3, %v19131_v26  ;;  %18738 = vmatmul.mubr.msk.bf16.gmra.mrb[116].mxu0 %vm752_vm2, %v9320_v9  ;;  %v9323_v9 = vpack.c.bf16 %v9250_v60, %v9249_v3 }
 0x689   : > { %v10446_v1 = vmax.f32 %v10437_v63, %v10441_v40  ;;  %10260 = vst.msk [vmem:[#allocation2 + $0x48] sm:$0xff] %vm10250_vm3, %v19132_v25  ;;  %18741 = vmatprep.mubr.msk.bf16.mxu0 %vm752_vm2, %v9321_v52  ;;  %v9252_v25 = vld [vmem:[%s20884_s16 + $0x43e] sm:$0xff]  ;;  %v9253_v63 = vld [vmem:[%s20884_s16 + $0x446] sm:$0xff]  ;;  %v9254_v40 = vld [vmem:[%s20884_s16 + $0x44e] sm:$0xff] }
 0x68b   : > { %v10448_v27 = vmax.f32 %v10444_v28, %v10446_v1  ;;  %v18635_v17 = vpop.f32.mrb[12].mxu0 }
 0x68c   : > { %v19133_v13 = vadd.f32 %v18635_v17, %v22257_v39  ;;  %v9619_v35 = vpop.f32.mrb[13].mxu0  ;;  %v10445_v39 = vmax.f32 %v10431_v16, %v10435_v5  ;;  %v9325_v17 = vpack.c.bf16 %v9254_v40, %v9253_v63 }
 0x68d   : > { %v10456_v38 = vadd.f32 %v23114_v50, %v10448_v27  ;;  %v19134_v18 = vadd.f32 %v9619_v35, %v22265_v44  ;;  %v18636_v2 = vpop.f32.mrb[14].mxu0 }
 0x68e   : > { %v10439_v47 = vld [vmem:[#allocation2 + $0x32] ss:$2 sm:$0xff]  ;;  %v10443_v20 = vld [vmem:[#allocation2 + $0x33] ss:$2 sm:$0xff]  ;;  %10265 = vst.msk [vmem:[#allocation2 + $0x70] sm:$0xff] %vm10250_vm3, %v19133_v13  ;;  %v19135_v52 = vadd.f32 %v18636_v2, %v22270_v49  ;;  %v9622_v59 = vpop.f32.mrb[15].mxu0 }
 0x68f   : > { %v10458_v57 = vmax.f32 %v10456_v38, 0.0  ;;  %v10447_v26 = vmax.f32 %v10439_v47, %v10443_v20  ;;  %10263 = vst.msk [vmem:[#allocation2 + $0x60] sm:$0xff] %vm10250_vm3, %v19134_v18  ;;  %v19136_v44 = vadd.f32 %v9622_v59, %v22272_v51  ;;  %v9251_v49 = vld [vmem:[%s20884_s16 + $0x436] sm:$0xff]  ;;  %v9256_v2 = vld [vmem:[%s20884_s16 + $0x45e] sm:$0xff]  ;;  %v9258_v47 = vld [vmem:[%s20884_s16 + $0x46e] sm:$0xff] }
 0x690   : > { %10266 = vst.msk [vmem:[#allocation2 + $0x78] sm:$0xff] %vm10250_vm3, %v19135_v52  ;;  %18742 = vmatmul.mubr.msk.bf16.gmra.mrb[120].mxu0 %vm752_vm2, %v9322_v22  ;;  %v9324_v34 = vpack.c.bf16 %v9252_v25, %v9251_v49  ;;  %v10463_v16 = vld [vmem:[#allocation2 + $0x44] ss:$2 sm:$0xff]  ;;  %v10467_v5 = vld [vmem:[#allocation2 + $0x45] ss:$2 sm:$0xff] }
 0x691   : > { %v10449_v29 = vmax.f32 %v10445_v39, %v10447_v26  ;;  %10460 = vst.msk [vmem:[#allocation3 + $0x13] sm:$0xff] %vm10250_vm3, %v10458_v57  ;;  %10264 = vst.msk [vmem:[#allocation2 + $0x68] sm:$0xff] %vm10250_vm3, %v19136_v44  ;;  %18745 = vmatprep.mubr.msk.bf16.mxu0 %vm752_vm2, %v9323_v9  ;;  %v10478_v38 = vmax.f32 %v10463_v16, %v10467_v5  ;;  %v9257_v9 = vld [vmem:[%s20884_s16 + $0x466] sm:$0xff] }
 0x692   : > { %v9327_v63 = vpack.c.bf16 %v9258_v47, %v9257_v9 }
 0x693   : > { %v10457_v28 = vadd.f32 %v23114_v50, %v10449_v29  ;;  %v18639_v1 = vpop.f32.mrb[16].mxu0 }
 0x694   : > { %v19137_v51 = vadd.f32 %v18639_v1, %v22277_v56  ;;  %v9635_v45 = vpop.f32.mrb[17].mxu0 }
 0x695   : > { %v10459_v3 = vmax.f32 %v10457_v28, 0.0  ;;  %v19138_v60 = vadd.f32 %v9635_v45, %v22285_v62  ;;  %v18640_v27 = vpop.f32.mrb[18].mxu0 }
 0x696   : > { %10269 = vst.msk [vmem:[#allocation2 + $0x90] sm:$0xff] %vm10250_vm3, %v19137_v51  ;;  %v19139_v13 = vadd.f32 %v18640_v27, %v22290_v8  ;;  %v9638_v35 = vpop.f32.mrb[19].mxu0  ;;  %v9255_v8 = vld [vmem:[%s20884_s16 + $0x456] sm:$0xff] }
 0x697   : > { %10461 = vst.msk [vmem:[#allocation3 + $0x1b] sm:$0xff] %vm10250_vm3, %v10459_v3  ;;  %10267 = vst.msk [vmem:[#allocation2 + $0x80] sm:$0xff] %vm10250_vm3, %v19138_v60  ;;  %v19140_v56 = vadd.f32 %v9638_v35, %v22292_v10  ;;  %v10465_v20 = vld [vmem:[#allocation2 + $0x54] ss:$2 sm:$0xff]  ;;  %v10469_v52 = vld [vmem:[#allocation2 + $0x55] ss:$2 sm:$0xff]  ;;  %v9326_v26 = vpack.c.bf16 %v9256_v2, %v9255_v8 }
 0x698   : > { %v10471_v62 = vld [vmem:[#allocation2 + $0x66] ss:$2 sm:$0xff]  ;;  %v10475_v22 = vld [vmem:[#allocation2 + $0x67] ss:$2 sm:$0xff]  ;;  %10270 = vst.msk [vmem:[#allocation2 + $0x98] sm:$0xff] %vm10250_vm3, %v19139_v13  ;;  %18746 = vmatmul.mubr.msk.bf16.gmra.mrb[124].mxu0 %vm752_vm2, %v9324_v34  ;;  %v10479_v40 = vmax.f32 %v10465_v20, %v10469_v52 }
 0x699   : > { %v10480_v18 = vmax.f32 %v10471_v62, %v10475_v22  ;;  %10268 = vst.msk [vmem:[#allocation2 + $0x88] sm:$0xff] %vm10250_vm3, %v19140_v56  ;;  %18749 = vmatprep.mubr.msk.bf16.mxu0 %vm752_vm2, %v9325_v17  ;;  %v10940_v25 = vld [vmem:[#allocation3 + $0x11] sm:$0xff]  ;;  %v9260_v17 = vld [vmem:[%s20884_s16 + $0x47e] sm:$0xff] }
 0x69b   : > { %v10482_v59 = vmax.f32 %v10478_v38, %v10480_v18  ;;  %v18643_v10 = vpop.f32.mrb[20].mxu0 }
 0x69c   : > { %v19141_v39 = vadd.f32 %v18643_v10, %v22297_v15  ;;  %v9651_v57 = vpop.f32.mrb[21].mxu0 }
 0x69d   : > { %v10484_v44 = vadd.f32 %v23114_v50, %v10482_v59  ;;  %v19142_v29 = vadd.f32 %v9651_v57, %v22305_v23  ;;  %v18644_v49 = vpop.f32.mrb[22].mxu0 }
 0x69e   : > { %v10473_v28 = vld [vmem:[#allocation2 + $0x76] ss:$2 sm:$0xff]  ;;  %v10477_v1 = vld [vmem:[#allocation2 + $0x77] ss:$2 sm:$0xff]  ;;  %10273 = vst.msk [vmem:[#allocation2 + $0xb0] sm:$0xff] %vm10250_vm3, %v19141_v39  ;;  %v19143_v51 = vadd.f32 %v18644_v49, %v22310_v31  ;;  %v9654_v45 = vpop.f32.mrb[23].mxu0 }
 0x69f   : > { %v10941_v15 = vld [vmem:[#allocation3 + $0x19] sm:$0xff]  ;;  %v10486_v34 = vmax.f32 %v10484_v44, 0.0  ;;  %v10481_v3 = vmax.f32 %v10473_v28, %v10477_v1  ;;  %10271 = vst.msk [vmem:[#allocation2 + $0xa0] sm:$0xff] %vm10250_vm3, %v19142_v29  ;;  %v19144_v23 = vadd.f32 %v9654_v45, %v22312_v33 }
 0x6a0   : > { %v10975_v60 = vpack.c.bf16 %v10941_v15, %v10940_v25  ;;  %10274 = vst.msk [vmem:[#allocation2 + $0xb8] sm:$0xff] %vm10250_vm3, %v19143_v51  ;;  %18750 = vmatmul.mubr.msk.bf16.gmra.mrb[128].mxu0 %vm752_vm2, %v9326_v26  ;;  %v9259_v31 = vld [vmem:[%s20884_s16 + $0x476] sm:$0xff]  ;;  %s20762_s16 = smov 32  }
 0x6a1   : > { %10488 = vst.msk [vmem:[#allocation3 + $0x25] sm:$0xff] %vm10250_vm3, %v10486_v34  ;;  %v10483_v27 = vmax.f32 %v10479_v40, %v10481_v3  ;;  %10272 = vst.msk [vmem:[#allocation2 + $0xa8] sm:$0xff] %vm10250_vm3, %v19144_v23  ;;  %18753 = vmatprep.mubr.msk.bf16.mxu0 %vm752_vm2, %v9327_v63  ;;  %v9328_v35 = vpack.c.bf16 %v9260_v17, %v9259_v31  ;;  %v10491_v38 = vld [vmem:[#allocation2 + $0x88] ss:$2 sm:$0xff]  ;;  %v10495_v18 = vld [vmem:[#allocation2 + $0x89] ss:$2 sm:$0xff] }
 0x6a2   : > { %18760 = vmatmul.mubr.msk.bf16.vlgmr.msra.gmra.mrb[136].mxu1 %vm10250_vm3, %v10975_v60 }
 0x6a3   : > { %v10485_v16 = vadd.f32 %v23114_v50, %v10483_v27  ;;  %v18647_v5 = vpop.f32.mrb[24].mxu0 }
 0x6a4   : > { %v19145_v33 = vadd.f32 %v18647_v5, %v22317_v36  ;;  %v9667_v13 = vpop.f32.mrb[25].mxu0 }
 0x6a5   : > { %v10487_v56 = vmax.f32 %v10485_v16, 0.0  ;;  %v19146_v62 = vadd.f32 %v9667_v13, %v22325_v43  ;;  %v18648_v22 = vpop.f32.mrb[26].mxu0  ;;  %v10506_v43 = vmax.f32 %v10491_v38, %v10495_v18 }
 0x6a6   : > { %10277 = vst.msk [vmem:[#allocation2 + $0xd0] sm:$0xff] %vm10250_vm3, %v19145_v33  ;;  %v19147_v8 = vadd.f32 %v18648_v22, %v22330_v48  ;;  %v9670_v2 = vpop.f32.mrb[27].mxu0  ;;  %v10493_v39 = vld [vmem:[#allocation2 + $0x98] ss:$2 sm:$0xff]  ;;  %v10497_v44 = vld [vmem:[#allocation2 + $0x99] ss:$2 sm:$0xff] }
 0x6a7   : > { %10489 = vst.msk [vmem:[#allocation3 + $0x2d] sm:$0xff] %vm10250_vm3, %v10487_v56  ;;  %10275 = vst.msk [vmem:[#allocation2 + $0xc0] sm:$0xff] %vm10250_vm3, %v19146_v62  ;;  %v19148_v9 = vadd.f32 %v9670_v2, %v22332_v53 }
 0x6a8   : > { %v10499_v36 = vld [vmem:[#allocation2 + $0xaa] ss:$2 sm:$0xff]  ;;  %v10503_v47 = vld [vmem:[#allocation2 + $0xab] ss:$2 sm:$0xff]  ;;  %10278 = vst.msk [vmem:[#allocation2 + $0xd8] sm:$0xff] %vm10250_vm3, %v19147_v8  ;;  %18754 = vmatmul.mubr.msk.bf16.gmra.mrb[132].mxu0 %vm752_vm2, %v9328_v35  ;;  %v10942_v25 = vld [vmem:[#allocation3 + $0x21] sm:$0xff] }
 0x6a9   : > { %v10508_v20 = vmax.f32 %v10499_v36, %v10503_v47  ;;  %10276 = vst.msk [vmem:[#allocation2 + $0xc8] sm:$0xff] %vm10250_vm3, %v19148_v9 }
 0x6ab   : > { %v10510_v52 = vmax.f32 %v10506_v43, %v10508_v20  ;;  %v18651_v59 = vpop.f32.mrb[28].mxu0 }
 0x6ac   : > { %v19149_v48 = vadd.f32 %v18651_v59, %v22337_v58  ;;  %v9683_v10 = vpop.f32.mrb[29].mxu0 }
 0x6ad   : > { %v10512_v57 = vadd.f32 %v23114_v50, %v10510_v52  ;;  %v19150_v53 = vadd.f32 %v9683_v10, %v22342_v55  ;;  %v18652_v26 = vpop.f32.mrb[30].mxu0  ;;  %v10507_v55 = vmax.f32 %v10493_v39, %v10497_v44 }
 0x6ae   : > { %10281 = vst.msk [vmem:[#allocation2 + $0xf0] sm:$0xff] %vm10250_vm3, %v19149_v48  ;;  %v19151_v29 = vadd.f32 %v18652_v26, %v22346_v4  ;;  %v9686_v49 = vpop.f32.mrb[31].mxu0  ;;  %v10943_v63 = vld [vmem:[#allocation3 + $0x29] sm:$0xff] }
 0x6af   : > { %v10514_v40 = vmax.f32 %v10512_v57, 0.0  ;;  %10279 = vst.msk [vmem:[#allocation2 + $0xe0] sm:$0xff] %vm10250_vm3, %v19150_v53  ;;  %v19152_v58 = vadd.f32 %v9686_v49, %v22348_v6  ;;  %v10976_v28 = vpack.c.bf16 %v10943_v63, %v10942_v25 }
 0x6b0   : > { %v10501_v1 = vld [vmem:[#allocation2 + $0xba] ss:$2 sm:$0xff]  ;;  %v10505_v51 = vld [vmem:[#allocation2 + $0xbb] ss:$2 sm:$0xff]  ;;  %10282 = vst.msk [vmem:[#allocation2 + $0xf8] sm:$0xff] %vm10250_vm3, %v19151_v29 }
 0x6b1   : > { %10516 = vst.msk [vmem:[#allocation3 + $0x37] sm:$0xff] %vm10250_vm3, %v10514_v40  ;;  %v10509_v45 = vmax.f32 %v10501_v1, %v10505_v51  ;;  %10280 = vst.msk [vmem:[#allocation2 + $0xe8] sm:$0xff] %vm10250_vm3, %v19152_v58  ;;  %18763 = vmatprep.mubr.msk.bf16.mxu1 %vm10250_vm3, %v10976_v28  ;;  %v10519_v16 = vld [vmem:[#allocation2 + $0xcc] ss:$2 sm:$0xff]  ;;  %v10523_v5 = vld [vmem:[#allocation2 + $0xcd] ss:$2 sm:$0xff] }
 0x6b3   : > { %v10511_v4 = vmax.f32 %v10507_v55, %v10509_v45  ;;  %v18655_v15 = vpop.f32.mrb[32].mxu0 }
 0x6b4   : > { %v19153_v34 = vadd.f32 %v18655_v15, %v22351_v14  ;;  %v9699_v3 = vpop.f32.mrb[33].mxu0 }
 0x6b5   : > { %v10513_v6 = vadd.f32 %v23114_v50, %v10511_v4  ;;  %v19154_v23 = vadd.f32 %v9699_v3, %v22356_v19  ;;  %v18656_v60 = vpop.f32.mrb[34].mxu0  ;;  %v10534_v19 = vmax.f32 %v10519_v16, %v10523_v5 }
 0x6b6   : > { %10285 = vst.msk [vmem:[#allocation2 + $0x110] sm:$0xff] %vm10250_vm3, %v19153_v34  ;;  %v19155_v27 = vadd.f32 %v18656_v60, %v22360_v12  ;;  %v9702_v31 = vpop.f32.mrb[35].mxu0 }
 0x6b7   : > { %v10515_v17 = vmax.f32 %v10513_v6, 0.0  ;;  %10283 = vst.msk [vmem:[#allocation2 + $0x100] sm:$0xff] %vm10250_vm3, %v19154_v23  ;;  %v19156_v33 = vadd.f32 %v9702_v31, %v22362_v24 }
 0x6b8   : > { %v10527_v13 = vld [vmem:[#allocation2 + $0xee] ss:$2 sm:$0xff]  ;;  %10286 = vst.msk [vmem:[#allocation2 + $0x118] sm:$0xff] %vm10250_vm3, %v19155_v27  ;;  %v10531_v14 = vld [vmem:[#allocation2 + $0xef] ss:$2 sm:$0xff] }
 0x6b9   : > { %10517 = vst.msk [vmem:[#allocation3 + $0x3f] sm:$0xff] %vm10250_vm3, %v10515_v17  ;;  %10284 = vst.msk [vmem:[#allocation2 + $0x108] sm:$0xff] %vm10250_vm3, %v19156_v33  ;;  %v10536_v35 = vmax.f32 %v10527_v13, %v10531_v14  ;;  %v10521_v8 = vld [vmem:[#allocation2 + $0xdc] ss:$2 sm:$0xff]  ;;  %v10525_v24 = vld [vmem:[#allocation2 + $0xdd] ss:$2 sm:$0xff] }
 0x6ba   : > { %v10944_v43 = vld [vmem:[#allocation3 + $0x31] sm:$0xff]  ;;  %v10535_v59 = vmax.f32 %v10521_v8, %v10525_v24  ;;  %v24320_v13 = vld [vmem:[#allocation9_spill] sm:$0xff] }
 0x6bb   : > { %v18659_v56 = vpop.f32.mrb[36].mxu0  ;;  %v10538_v12 = vmax.f32 %v10534_v19, %v10536_v35  ;;  %v24323_v24 = vld [vmem:[#allocation12_spill] sm:$0xff] }
 0x6bc   : > { %v19157_v62 = vadd.f32 %v18659_v56, %v22365_v32  ;;  %v9715_v22 = vpop.f32.mrb[37].mxu0 }
 0x6bd   : > { %v19158_v38 = vadd.f32 %v9715_v22, %v22370_v37  ;;  %v18660_v18 = vpop.f32.mrb[38].mxu0  ;;  %v10540_v2 = vadd.f32 %v23114_v50, %v10538_v12  ;;  %v24322_v22 = vld [vmem:[#allocation11_spill] sm:$0xff] }
 0x6be   : > { %10289 = vst.msk [vmem:[#allocation2 + $0x130] sm:$0xff] %vm10250_vm3, %v19157_v62  ;;  %v19159_v9 = vadd.f32 %v18660_v18, %v22374_v41  ;;  %v9718_v36 = vpop.f32.mrb[39].mxu0 }
 0x6bf   : > { %10287 = vst.msk [vmem:[#allocation2 + $0x120] sm:$0xff] %vm10250_vm3, %v19158_v38  ;;  %v19160_v47 = vadd.f32 %v9718_v36, %v22376_v42  ;;  %v10542_v20 = vmax.f32 %v10540_v2, 0.0  ;;  %v10547_v28 = vld [vmem:[#allocation2 + $0x110] ss:$2 sm:$0xff]  ;;  %v10551_v1 = vld [vmem:[#allocation2 + $0x111] ss:$2 sm:$0xff] }
 0x6c0   : > { %v10529_v32 = vld [vmem:[#allocation2 + $0xfe] ss:$2 sm:$0xff]  ;;  %v10533_v52 = vld [vmem:[#allocation2 + $0xff] ss:$2 sm:$0xff]  ;;  %10290 = vst.msk [vmem:[#allocation2 + $0x138] sm:$0xff] %vm10250_vm3, %v19159_v9  ;;  %v10562_v23 = vmax.f32 %v10547_v28, %v10551_v1 }
 0x6c1   : > { %v10945_v37 = vld [vmem:[#allocation3 + $0x39] sm:$0xff]  ;;  %v10537_v48 = vmax.f32 %v10529_v32, %v10533_v52  ;;  %10288 = vst.msk [vmem:[#allocation2 + $0x128] sm:$0xff] %vm10250_vm3, %v19160_v47  ;;  %10544 = vst.msk [vmem:[#allocation3 + $0x49] sm:$0xff] %vm10250_vm3, %v10542_v20 }
 0x6c2   : > { %v10977_v10 = vpack.c.bf16 %v10945_v37, %v10944_v43  ;;  %v24324_v43 = vld [vmem:[#allocation13_spill] sm:$0xff] }
 0x6c3   : > { %v10539_v41 = vmax.f32 %v10535_v59, %v10537_v48  ;;  %v18663_v39 = vpop.f32.mrb[40].mxu0  ;;  %v24325_v59 = vld [vmem:[#allocation14_spill] sm:$0xff] }
 0x6c4   : > { %18764 = vmatmul.mubr.msk.bf16.gmra.mrb[140].mxu1 %vm10250_vm3, %v10977_v10  ;;  %v19161_v42 = vadd.f32 %v18663_v39, %v22379_v46  ;;  %v9731_v57 = vpop.f32.mrb[41].mxu0  ;;  %v10946_v46 = vld [vmem:[#allocation3 + $0x41] sm:$0xff] }
 0x6c5   : > { %v10541_v53 = vadd.f32 %v23114_v50, %v10539_v41  ;;  %v19162_v26 = vadd.f32 %v9731_v57, %v22384_v54  ;;  %v18664_v44 = vpop.f32.mrb[42].mxu0  ;;  %v24326_v57 = vld [vmem:[#allocation15_spill] sm:$0xff] }
 0x6c6   : > { %10293 = vst.msk [vmem:[#allocation2 + $0x150] sm:$0xff] %vm10250_vm3, %v19161_v42  ;;  %v19163_v29 = vadd.f32 %v18664_v44, %v22388_v61  ;;  %v9734_v49 = vpop.f32.mrb[43].mxu0 }
 0x6c7   : > { %v10543_v25 = vmax.f32 %v10541_v53, 0.0  ;;  %10291 = vst.msk [vmem:[#allocation2 + $0x140] sm:$0xff] %vm10250_vm3, %v19162_v26  ;;  %v19164_v63 = vadd.f32 %v9734_v49, %v22390_v0 }
 0x6c8   : > { %10294 = vst.msk [vmem:[#allocation2 + $0x158] sm:$0xff] %vm10250_vm3, %v19163_v29  ;;  %v10947_v40 = vld [vmem:[#allocation3 + $0x49] sm:$0xff] }
 0x6c9   : > { %10545 = vst.msk [vmem:[#allocation3 + $0x51] sm:$0xff] %vm10250_vm3, %v10543_v25  ;;  %10292 = vst.msk [vmem:[#allocation2 + $0x148] sm:$0xff] %vm10250_vm3, %v19164_v63  ;;  %v10978_v54 = vpack.c.bf16 %v10947_v40, %v10946_v46  ;;  %v10549_v55 = vld [vmem:[#allocation2 + $0x120] ss:$2 sm:$0xff]  ;;  %v10553_v45 = vld [vmem:[#allocation2 + $0x121] ss:$2 sm:$0xff] }
 0x6ca   : > { %v10563_v17 = vmax.f32 %v10549_v55, %v10553_v45  ;;  %v24327_v25 = vld [vmem:[#allocation16_spill] sm:$0xff]  ;;  %v20551_v40 = vld [vmem:[%s24221_s3] sm:$0xff]  }
 0x6cb   : > { %v18667_v58 = vpop.f32.mrb[44].mxu0  ;;  %18767 = vmatprep.mubr.msk.bf16.mxu1 %vm10250_vm3, %v10978_v54  ;;  %18795 = vmatprep.subr.bf16.mxu1 %v20551_v40 }
 0x6cc   : > { %v19165_v61 = vadd.f32 %v18667_v58, %v22393_v11  ;;  %v9747_v51 = vpop.f32.mrb[45].mxu0  ;;  %18796 = vmatpush3.bf16.msra.mxu1 %v20551_v40 }
 0x6cd   : > { %v19166_v0 = vadd.f32 %v9747_v51, %v22398_v21  ;;  %v18668_v4 = vpop.f32.mrb[46].mxu0 }
 0x6ce   : > { %v10555_v15 = vld [vmem:[#allocation2 + $0x132] ss:$2 sm:$0xff]  ;;  %v10559_v34 = vld [vmem:[#allocation2 + $0x133] ss:$2 sm:$0xff]  ;;  %10297 = vst.msk [vmem:[#allocation2 + $0x170] sm:$0xff] %vm10250_vm3, %v19165_v61  ;;  %v19167_v3 = vadd.f32 %v18668_v4, %v22402_v30  ;;  %v9750_v6 = vpop.f32.mrb[47].mxu0 }
 0x6cf   : > { %v10564_v60 = vmax.f32 %v10555_v15, %v10559_v34  ;;  %10295 = vst.msk [vmem:[#allocation2 + $0x160] sm:$0xff] %vm10250_vm3, %v19166_v0  ;;  %v19168_v11 = vadd.f32 %v9750_v6, %v22404_v7  ;;  %v24321_v7 = vld [vmem:[#allocation10_spill] sm:$0xff]  ;;  %v24328_v0 = vld [vmem:[#allocation17_spill] sm:$0xff] }
 0x6d0   : > { %v10557_v27 = vld [vmem:[#allocation2 + $0x142] ss:$2 sm:$0xff]  ;;  %v10561_v31 = vld [vmem:[#allocation2 + $0x143] ss:$2 sm:$0xff]  ;;  %10298 = vst.msk [vmem:[#allocation2 + $0x178] sm:$0xff] %vm10250_vm3, %v19167_v3 }
 0x6d1   : > { %v10566_v21 = vmax.f32 %v10562_v23, %v10564_v60  ;;  %v10565_v16 = vmax.f32 %v10557_v27, %v10561_v31  ;;  %10296 = vst.msk [vmem:[#allocation2 + $0x168] sm:$0xff] %vm10250_vm3, %v19168_v11  ;;  %v10948_v41 = vld [vmem:[#allocation3 + $0x51] sm:$0xff]  ;;  %v24329_v6 = vld [vmem:[#allocation18_spill] sm:$0xff] }
 0x6d2   : > { %v24330_v11 = vld [vmem:[#allocation19_spill] sm:$0xff] }
 0x6d3   : > { %v10568_v5 = vadd.f32 %v23114_v50, %v10566_v21  ;;  %v10567_v33 = vmax.f32 %v10563_v17, %v10565_v16  ;;  %v18671_v30 = vpop.f32.mrb[48].mxu0  ;;  %v24331_v21 = vld [vmem:[#allocation20_spill] sm:$0xff] }
 0x6d4   : > { %v19169_v14 = vadd.f32 %v18671_v30, %v24320_v13  ;;  %v9763_v19 = vpop.f32.mrb[49].mxu0 }
 0x6d5   : > { %v10570_v35 = vmax.f32 %v10568_v5, 0.0  ;;  %v10569_v56 = vadd.f32 %v23114_v50, %v10567_v33  ;;  %v19170_v12 = vadd.f32 %v9763_v19, %v24321_v7  ;;  %v18672_v62 = vpop.f32.mrb[50].mxu0  ;;  %v24332_v33 = vld [vmem:[#allocation21_spill] sm:$0xff] }
 0x6d6   : > { %10301 = vst.msk [vmem:[#allocation2 + $0x190] sm:$0xff] %vm10250_vm3, %v19169_v14  ;;  %v19171_v38 = vadd.f32 %v18672_v62, %v24322_v22  ;;  %v9766_v18 = vpop.f32.mrb[51].mxu0  ;;  %v10575_v36 = vld [vmem:[#allocation2 + $0x154] ss:$2 sm:$0xff]  ;;  %v10579_v47 = vld [vmem:[#allocation2 + $0x155] ss:$2 sm:$0xff] }
 0x6d7   : > { %10572 = vst.msk [vmem:[#allocation3 + $0x5b] sm:$0xff] %vm10250_vm3, %v10570_v35  ;;  %v10571_v8 = vmax.f32 %v10569_v56, 0.0  ;;  %10299 = vst.msk [vmem:[#allocation2 + $0x180] sm:$0xff] %vm10250_vm3, %v19170_v12  ;;  %v19172_v2 = vadd.f32 %v9766_v18, %v24323_v24  ;;  %v10590_v29 = vmax.f32 %v10575_v36, %v10579_v47  ;;  %v24333_v14 = vld [vmem:[#allocation22_spill] sm:$0xff]  ;;  %v24334_v62 = vld [vmem:[#allocation23_spill] sm:$0xff] }
 0x6d8   : > { %10302 = vst.msk [vmem:[#allocation2 + $0x198] sm:$0xff] %vm10250_vm3, %v19171_v38  ;;  %v10577_v52 = vld [vmem:[#allocation2 + $0x164] ss:$2 sm:$0xff]  ;;  %v10581_v37 = vld [vmem:[#allocation2 + $0x165] ss:$2 sm:$0xff] }
 0x6d9   : > { %10573 = vst.msk [vmem:[#allocation3 + $0x63] sm:$0xff] %vm10250_vm3, %v10571_v8  ;;  %10300 = vst.msk [vmem:[#allocation2 + $0x188] sm:$0xff] %vm10250_vm3, %v19172_v2  ;;  %v10591_v28 = vmax.f32 %v10577_v52, %v10581_v37  ;;  %v24335_v2 = vld [vmem:[#allocation24_spill] sm:$0xff] }
 0x6db   : > { %v18675_v9 = vpop.f32.mrb[52].mxu0 }
 0x6dc   : > { %v19173_v20 = vadd.f32 %v18675_v9, %v24324_v43  ;;  %v9779_v32 = vpop.f32.mrb[53].mxu0 }
 0x6dd   : > { %v19174_v48 = vadd.f32 %v9779_v32, %v24325_v59  ;;  %v18676_v10 = vpop.f32.mrb[54].mxu0 }
 0x6de   : > { %v10583_v39 = vld [vmem:[#allocation2 + $0x176] ss:$2 sm:$0xff]  ;;  %v10587_v42 = vld [vmem:[#allocation2 + $0x177] ss:$2 sm:$0xff]  ;;  %10305 = vst.msk [vmem:[#allocation2 + $0x1b0] sm:$0xff] %vm10250_vm3, %v19173_v20  ;;  %v19175_v53 = vadd.f32 %v18676_v10, %v24326_v57  ;;  %v9782_v26 = vpop.f32.mrb[55].mxu0 }
 0x6df   : > { %v10949_v44 = vld [vmem:[#allocation3 + $0x59] sm:$0xff]  ;;  %v10592_v49 = vmax.f32 %v10583_v39, %v10587_v42  ;;  %10303 = vst.msk [vmem:[#allocation2 + $0x1a0] sm:$0xff] %vm10250_vm3, %v19174_v48  ;;  %v19176_v63 = vadd.f32 %v9782_v26, %v24327_v25 }
 0x6e0   : > { %v10979_v46 = vpack.c.bf16 %v10949_v44, %v10948_v41  ;;  %v10585_v54 = vld [vmem:[#allocation2 + $0x186] ss:$2 sm:$0xff]  ;;  %v10589_v58 = vld [vmem:[#allocation2 + $0x187] ss:$2 sm:$0xff]  ;;  %10306 = vst.msk [vmem:[#allocation2 + $0x1b8] sm:$0xff] %vm10250_vm3, %v19175_v53  ;;  %v24336_v42 = vld [vmem:[#allocation25_spill] sm:$0xff] }
 0x6e1   : > { %v10594_v1 = vmax.f32 %v10590_v29, %v10592_v49  ;;  %v10593_v61 = vmax.f32 %v10585_v54, %v10589_v58  ;;  %10304 = vst.msk [vmem:[#allocation2 + $0x1a8] sm:$0xff] %vm10250_vm3, %v19176_v63  ;;  %v10950_v56 = vld [vmem:[#allocation3 + $0x61] sm:$0xff]  ;;  %v24338_v63 = vld [vmem:[#allocation27_spill] sm:$0xff]  ;;  %v24339_v58 = vld [vmem:[#allocation28_spill] sm:$0xff] }
 0x6e2   : > { %18768 = vmatmul.mubr.msk.bf16.gmra.mrb[144].mxu1 %vm10250_vm3, %v10979_v46  ;;  %v24337_v44 = vld [vmem:[#allocation26_spill] sm:$0xff] }
 0x6e3   : > { %v10596_v51 = vadd.f32 %v23114_v50, %v10594_v1  ;;  %v10595_v55 = vmax.f32 %v10591_v28, %v10593_v61  ;;  %v18679_v45 = vpop.f32.mrb[56].mxu0 }
 0x6e4   : > { %v19177_v4 = vadd.f32 %v18679_v45, %v24328_v0  ;;  %v9795_v15 = vpop.f32.mrb[57].mxu0  ;;  %v24341_v0 = vld [vmem:[#allocation30_spill] sm:$0xff] }
 0x6e5   : > { %v10598_v34 = vmax.f32 %v10596_v51, 0.0  ;;  %v10597_v3 = vadd.f32 %v23114_v50, %v10595_v55  ;;  %v19178_v23 = vadd.f32 %v9795_v15, %v24329_v6  ;;  %v18680_v60 = vpop.f32.mrb[58].mxu0  ;;  %v24340_v51 = vld [vmem:[#allocation29_spill] sm:$0xff]  ;;  %v24342_v6 = vld [vmem:[#allocation31_spill] sm:$0xff] }
 0x6e6   : > { %10309 = vst.msk [vmem:[#allocation2 + $0x1d0] sm:$0xff] %vm10250_vm3, %v19177_v4  ;;  %v19179_v27 = vadd.f32 %v18680_v60, %v24330_v11  ;;  %v9798_v31 = vpop.f32.mrb[59].mxu0  ;;  %v10603_v7 = vld [vmem:[#allocation2 + $0x198] ss:$2 sm:$0xff]  ;;  %v10607_v12 = vld [vmem:[#allocation2 + $0x199] ss:$2 sm:$0xff] }
 0x6e7   : > { %10600 = vst.msk [vmem:[#allocation3 + $0x6d] sm:$0xff] %vm10250_vm3, %v10598_v34  ;;  %v10599_v17 = vmax.f32 %v10597_v3, 0.0  ;;  %10307 = vst.msk [vmem:[#allocation2 + $0x1c0] sm:$0xff] %vm10250_vm3, %v19178_v23  ;;  %v19180_v16 = vadd.f32 %v9798_v31, %v24331_v21  ;;  %v10618_v32 = vmax.f32 %v10603_v7, %v10607_v12  ;;  %v24343_v31 = vld [vmem:[#allocation32_spill] sm:$0xff] }
 0x6e8   : > { %10310 = vst.msk [vmem:[#allocation2 + $0x1d8] sm:$0xff] %vm10250_vm3, %v19179_v27  ;;  %v10605_v8 = vld [vmem:[#allocation2 + $0x1a8] ss:$2 sm:$0xff]  ;;  %v10609_v24 = vld [vmem:[#allocation2 + $0x1a9] ss:$2 sm:$0xff] }
 0x6e9   : > { %10601 = vst.msk [vmem:[#allocation3 + $0x75] sm:$0xff] %vm10250_vm3, %v10599_v17  ;;  %10308 = vst.msk [vmem:[#allocation2 + $0x1c8] sm:$0xff] %vm10250_vm3, %v19180_v16  ;;  %v10619_v59 = vmax.f32 %v10605_v8, %v10609_v24  ;;  %v24344_v24 = vld [vmem:[#allocation33_spill] sm:$0xff] }
 0x6eb   : > { %v18683_v5 = vpop.f32.mrb[60].mxu0 }
 0x6ec   : > { %v19181_v30 = vadd.f32 %v18683_v5, %v24332_v33  ;;  %v9811_v13 = vpop.f32.mrb[61].mxu0 }
 0x6ed   : > { %v19182_v19 = vadd.f32 %v9811_v13, %v24333_v14  ;;  %v18684_v35 = vpop.f32.mrb[62].mxu0 }
 0x6ee   : > { %10313 = vst.msk [vmem:[#allocation2 + $0x1f0] sm:$0xff] %vm10250_vm3, %v19181_v30  ;;  %v19183_v22 = vadd.f32 %v18684_v35, %v24334_v62  ;;  %v9814_v38 = vpop.f32.mrb[63].mxu0  ;;  %v10951_v18 = vld [vmem:[#allocation3 + $0x69] sm:$0xff] }
 0x6ef   : > { %10311 = vst.msk [vmem:[#allocation2 + $0x1e0] sm:$0xff] %vm10250_vm3, %v19182_v19  ;;  %v19184_v9 = vadd.f32 %v9814_v38, %v24335_v2  ;;  %v10980_v36 = vpack.c.bf16 %v10951_v18, %v10950_v56 }
 0x6f0   : > { %v10611_v47 = vld [vmem:[#allocation2 + $0x1ba] ss:$2 sm:$0xff]  ;;  %v10613_v43 = vld [vmem:[#allocation2 + $0x1ca] ss:$2 sm:$0xff]  ;;  %v10615_v20 = vld [vmem:[#allocation2 + $0x1bb] ss:$2 sm:$0xff] }
 0x6f1   : > { %10314 = vst.msk [vmem:[#allocation2 + $0x1f8] sm:$0xff] %vm10250_vm3, %v19183_v22  ;;  %v10617_v52 = vld [vmem:[#allocation2 + $0x1cb] ss:$2 sm:$0xff]  ;;  %v10620_v37 = vmax.f32 %v10611_v47, %v10615_v20  ;;  %10312 = vst.msk [vmem:[#allocation2 + $0x1e8] sm:$0xff] %vm10250_vm3, %v19184_v9  ;;  %18771 = vmatprep.mubr.msk.bf16.mxu1 %vm10250_vm3, %v10980_v36  ;;  %v24345_v47 = vld [vmem:[#allocation34_spill] sm:$0xff] }
 0x6f2   : > { %v10621_v48 = vmax.f32 %v10613_v43, %v10617_v52  ;;  %v10952_v21 = vld [vmem:[#allocation3 + $0x71] sm:$0xff] }
 0x6f3   : > { %v10622_v10 = vmax.f32 %v10618_v32, %v10620_v37  ;;  %v18687_v41 = vpop.f32.mrb[64].mxu0  ;;  %v24346_v52 = vld [vmem:[#allocation35_spill] sm:$0xff] }
 0x6f4   : > { %v10623_v39 = vmax.f32 %v10619_v59, %v10621_v48  ;;  %v19185_v57 = vadd.f32 %v18687_v41, %v24336_v42  ;;  %v9827_v53 = vpop.f32.mrb[65].mxu0 }
 0x6f5   : > { %v10624_v26 = vadd.f32 %v23114_v50, %v10622_v10  ;;  %v19186_v29 = vadd.f32 %v9827_v53, %v24337_v44  ;;  %v18688_v49 = vpop.f32.mrb[66].mxu0  ;;  %v24347_v10 = vld [vmem:[#allocation36_spill] sm:$0xff]  ;;  %v24349_v44 = vld [vmem:[#allocation38_spill] sm:$0xff] }
 0x6f6   : > { %v10625_v25 = vadd.f32 %v23114_v50, %v10623_v39  ;;  %10317 = vst.msk [vmem:[#allocation2 + $0x210] sm:$0xff] %vm10250_vm3, %v19185_v57  ;;  %v19187_v46 = vadd.f32 %v18688_v49, %v24338_v63  ;;  %v9830_v40 = vpop.f32.mrb[67].mxu0  ;;  %v24348_v57 = vld [vmem:[#allocation37_spill] sm:$0xff] }
 0x6f7   : > { %v10626_v54 = vmax.f32 %v10624_v26, 0.0  ;;  %10315 = vst.msk [vmem:[#allocation2 + $0x200] sm:$0xff] %vm10250_vm3, %v19186_v29  ;;  %v19188_v28 = vadd.f32 %v9830_v40, %v24339_v58  ;;  %v24351_v58 = vld [vmem:[#allocation40_spill] sm:$0xff] }
 0x6f8   : > { %v10627_v1 = vmax.f32 %v10625_v25, 0.0  ;;  %10318 = vst.msk [vmem:[#allocation2 + $0x218] sm:$0xff] %vm10250_vm3, %v19187_v46  ;;  %v10631_v34 = vld [vmem:[#allocation2 + $0x1dc] ss:$2 sm:$0xff]  ;;  %v10635_v3 = vld [vmem:[#allocation2 + $0x1dd] ss:$2 sm:$0xff] }
 0x6f9   : > { %10628 = vst.msk [vmem:[#allocation3 + $0x7f] sm:$0xff] %vm10250_vm3, %v10626_v54  ;;  %10316 = vst.msk [vmem:[#allocation2 + $0x208] sm:$0xff] %vm10250_vm3, %v19188_v28  ;;  %v10633_v11 = vld [vmem:[#allocation2 + $0x1ec] ss:$2 sm:$0xff]  ;;  %v10637_v27 = vld [vmem:[#allocation2 + $0x1ed] ss:$2 sm:$0xff]  ;;  %v10646_v30 = vmax.f32 %v10631_v34, %v10635_v3 }
 0x6fa   : > { %10629 = vst.msk [vmem:[#allocation3 + $0x87] sm:$0xff] %vm10250_vm3, %v10627_v1  ;;  %v10647_v56 = vmax.f32 %v10633_v11, %v10637_v27  ;;  %v24350_v46 = vld [vmem:[#allocation39_spill] sm:$0xff] }
 0x6fb   : > { %v18691_v61 = vpop.f32.mrb[68].mxu0 }
 0x6fc   : > { %v19189_v55 = vadd.f32 %v18691_v61, %v24340_v51  ;;  %v9843_v45 = vpop.f32.mrb[69].mxu0 }
 0x6fd   : > { %v19190_v4 = vadd.f32 %v9843_v45, %v24341_v0  ;;  %v18692_v15 = vpop.f32.mrb[70].mxu0 }
 0x6fe   : > { %10321 = vst.msk [vmem:[#allocation2 + $0x230] sm:$0xff] %vm10250_vm3, %v19189_v55  ;;  %v19191_v23 = vadd.f32 %v18692_v15, %v24342_v6  ;;  %v9846_v60 = vpop.f32.mrb[71].mxu0 }
 0x6ff   : > { %10319 = vst.msk [vmem:[#allocation2 + $0x220] sm:$0xff] %vm10250_vm3, %v19190_v4  ;;  %v19192_v17 = vadd.f32 %v9846_v60, %v24343_v31  ;;  %v24353_v31 = vld [vmem:[#allocation42_spill] sm:$0xff] }
 0x700   : > { %v10639_v16 = vld [vmem:[#allocation2 + $0x1fe] ss:$2 sm:$0xff]  ;;  %v10641_v5 = vld [vmem:[#allocation2 + $0x20e] ss:$2 sm:$0xff]  ;;  %v10643_v33 = vld [vmem:[#allocation2 + $0x1ff] ss:$2 sm:$0xff] }
 0x701   : > { %10322 = vst.msk [vmem:[#allocation2 + $0x238] sm:$0xff] %vm10250_vm3, %v19191_v23  ;;  %v10645_v13 = vld [vmem:[#allocation2 + $0x20f] ss:$2 sm:$0xff]  ;;  %v10648_v14 = vmax.f32 %v10639_v16, %v10643_v33  ;;  %10320 = vst.msk [vmem:[#allocation2 + $0x228] sm:$0xff] %vm10250_vm3, %v19192_v17  ;;  %v10954_v35 = vld [vmem:[#allocation3 + $0x81] sm:$0xff] }
 0x702   : > { %v10953_v19 = vld [vmem:[#allocation3 + $0x79] sm:$0xff]  ;;  %v10649_v7 = vmax.f32 %v10641_v5, %v10645_v13  ;;  %v10955_v62 = vld [vmem:[#allocation3 + $0x89] sm:$0xff] }
 0x703   : > { %v10981_v12 = vpack.c.bf16 %v10953_v19, %v10952_v21  ;;  %v10650_v22 = vmax.f32 %v10646_v30, %v10648_v14  ;;  %v18695_v38 = vpop.f32.mrb[72].mxu0  ;;  %v10982_v18 = vpack.c.bf16 %v10955_v62, %v10954_v35  ;;  %v24352_v23 = vld [vmem:[#allocation41_spill] sm:$0xff]  ;;  %v23321_v16 = vld [vmem:[%s24221_s3 + $0x10] sm:$0xff]  }
 0x704   : > { %v10651_v8 = vmax.f32 %v10647_v56, %v10649_v7  ;;  %v19193_v2 = vadd.f32 %v18695_v38, %v24344_v24  ;;  %v9859_v9 = vpop.f32.mrb[73].mxu0  ;;  %v24354_v30 = vld [vmem:[#allocation43_spill] sm:$0xff]  ;;  %v24355_v7 = vld [vmem:[#allocation44_spill] sm:$0xff]  ;;  %18833 = vmatprep.subr.bf16.mxu1 %v23321_v16 }
 0x705   : > { %18772 = vmatmul.mubr.msk.bf16.gmra.mrb[148].mxu1 %vm10250_vm3, %v10981_v12  ;;  %v10652_v36 = vadd.f32 %v23114_v50, %v10650_v22  ;;  %v19194_v43 = vadd.f32 %v9859_v9, %v24345_v47  ;;  %v18696_v20 = vpop.f32.mrb[74].mxu0  ;;  %v24357_v9 = vld [vmem:[#allocation46_spill] sm:$0xff] }
 0x706   : > { %18775 = vmatprep.mubr.msk.bf16.mxu1 %vm10250_vm3, %v10982_v18  ;;  %v10653_v32 = vadd.f32 %v23114_v50, %v10651_v8  ;;  %10325 = vst.msk [vmem:[#allocation2 + $0x250] sm:$0xff] %vm10250_vm3, %v19193_v2  ;;  %v19195_v37 = vadd.f32 %v18696_v20, %v24346_v52  ;;  %v9862_v59 = vpop.f32.mrb[75].mxu0  ;;  %v24356_v18 = vld [vmem:[#allocation45_spill] sm:$0xff] }
 0x707   : > { %v10654_v48 = vmax.f32 %v10652_v36, 0.0  ;;  %10323 = vst.msk [vmem:[#allocation2 + $0x240] sm:$0xff] %vm10250_vm3, %v19194_v43  ;;  %v19196_v41 = vadd.f32 %v9862_v59, %v24347_v10  ;;  %v24359_v59 = vld [vmem:[#allocation48_spill] sm:$0xff] }
 0x708   : > { %v10655_v39 = vmax.f32 %v10653_v32, 0.0  ;;  %10326 = vst.msk [vmem:[#allocation2 + $0x258] sm:$0xff] %vm10250_vm3, %v19195_v37  ;;  %v10659_v25 = vld [vmem:[#allocation2 + $0x220] ss:$2 sm:$0xff]  ;;  %v10663_v63 = vld [vmem:[#allocation2 + $0x221] ss:$2 sm:$0xff] }
 0x709   : > { %10656 = vst.msk [vmem:[#allocation3 + $0x91] sm:$0xff] %vm10250_vm3, %v10654_v48  ;;  %10324 = vst.msk [vmem:[#allocation2 + $0x248] sm:$0xff] %vm10250_vm3, %v19196_v41  ;;  %v10674_v55 = vmax.f32 %v10659_v25, %v10663_v63  ;;  %v10661_v3 = vld [vmem:[#allocation2 + $0x230] ss:$2 sm:$0xff]  ;;  %v10665_v6 = vld [vmem:[#allocation2 + $0x231] ss:$2 sm:$0xff] }
 0x70a   : > { %10657 = vst.msk [vmem:[#allocation3 + $0x99] sm:$0xff] %vm10250_vm3, %v10655_v39  ;;  %v10675_v19 = vmax.f32 %v10661_v3, %v10665_v6  ;;  %v24358_v32 = vld [vmem:[#allocation47_spill] sm:$0xff] }
 0x70b   : > { %v18699_v42 = vpop.f32.mrb[76].mxu0 }
 0x70c   : > { %v19197_v53 = vadd.f32 %v18699_v42, %v24348_v57  ;;  %v9875_v26 = vpop.f32.mrb[77].mxu0 }
 0x70d   : > { %v19198_v29 = vadd.f32 %v9875_v26, %v24349_v44  ;;  %v18700_v49 = vpop.f32.mrb[78].mxu0 }
 0x70e   : > { %10329 = vst.msk [vmem:[#allocation2 + $0x270] sm:$0xff] %vm10250_vm3, %v19197_v53  ;;  %v19199_v40 = vadd.f32 %v18700_v49, %v24350_v46  ;;  %v9878_v54 = vpop.f32.mrb[79].mxu0  ;;  %v24361_v46 = vld [vmem:[#allocation50_spill] sm:$0xff] }
 0x70f   : > { %10327 = vst.msk [vmem:[#allocation2 + $0x260] sm:$0xff] %vm10250_vm3, %v19198_v29  ;;  %v19200_v28 = vadd.f32 %v9878_v54, %v24351_v58  ;;  %v24360_v29 = vld [vmem:[#allocation49_spill] sm:$0xff] }
 0x710   : > { %v10667_v1 = vld [vmem:[#allocation2 + $0x242] ss:$2 sm:$0xff]  ;;  %v10671_v61 = vld [vmem:[#allocation2 + $0x243] ss:$2 sm:$0xff]  ;;  %10330 = vst.msk [vmem:[#allocation2 + $0x278] sm:$0xff] %vm10250_vm3, %v19199_v40 }
 0x711   : > { %v10956_v51 = vld [vmem:[#allocation3 + $0x91] sm:$0xff]  ;;  %v10676_v45 = vmax.f32 %v10667_v1, %v10671_v61  ;;  %10328 = vst.msk [vmem:[#allocation2 + $0x268] sm:$0xff] %vm10250_vm3, %v19200_v28  ;;  %v10957_v0 = vld [vmem:[#allocation3 + $0x99] sm:$0xff] }
 0x712   : > { %v10983_v4 = vpack.c.bf16 %v10957_v0, %v10956_v51  ;;  %v24362_v51 = vld [vmem:[#allocation51_spill] sm:$0xff] }
 0x713   : > { %v10678_v15 = vmax.f32 %v10674_v55, %v10676_v45  ;;  %v18703_v34 = vpop.f32.mrb[80].mxu0 }
 0x714   : > { %v19201_v60 = vadd.f32 %v18703_v34, %v24352_v23  ;;  %18776 = vmatmul.mubr.msk.bf16.gmra.mrb[152].mxu1 %vm10250_vm3, %v10983_v4  ;;  %v9891_v11 = vpop.f32.mrb[81].mxu0  ;;  %v24363_v34 = vld [vmem:[#allocation52_spill] sm:$0xff] }
 0x715   : > { %v10680_v27 = vadd.f32 %v23114_v50, %v10678_v15  ;;  %v19202_v17 = vadd.f32 %v9891_v11, %v24353_v31  ;;  %v18704_v21 = vpop.f32.mrb[82].mxu0 }
 0x716   : > { %v10669_v5 = vld [vmem:[#allocation2 + $0x252] ss:$2 sm:$0xff]  ;;  %v10673_v33 = vld [vmem:[#allocation2 + $0x253] ss:$2 sm:$0xff]  ;;  %10333 = vst.msk [vmem:[#allocation2 + $0x290] sm:$0xff] %vm10250_vm3, %v19201_v60  ;;  %v19203_v13 = vadd.f32 %v18704_v21, %v24354_v30  ;;  %v9894_v14 = vpop.f32.mrb[83].mxu0 }
 0x717   : > { %v10682_v35 = vmax.f32 %v10680_v27, 0.0  ;;  %v10677_v56 = vmax.f32 %v10669_v5, %v10673_v33  ;;  %10331 = vst.msk [vmem:[#allocation2 + $0x280] sm:$0xff] %vm10250_vm3, %v19202_v17  ;;  %v19204_v12 = vadd.f32 %v9894_v14, %v24355_v7  ;;  %v24364_v27 = vld [vmem:[#allocation53_spill] sm:$0xff]  ;;  %v24365_v5 = vld [vmem:[#allocation54_spill] sm:$0xff] }
 0x718   : > { %10334 = vst.msk [vmem:[#allocation2 + $0x298] sm:$0xff] %vm10250_vm3, %v19203_v13  ;;  %v10687_v43 = vld [vmem:[#allocation2 + $0x264] ss:$2 sm:$0xff]  ;;  %v10691_v20 = vld [vmem:[#allocation2 + $0x265] ss:$2 sm:$0xff] }
 0x719   : > { %10684 = vst.msk [vmem:[#allocation3 + $0xa3] sm:$0xff] %vm10250_vm3, %v10682_v35  ;;  %v10679_v62 = vmax.f32 %v10675_v19, %v10677_v56  ;;  %10332 = vst.msk [vmem:[#allocation2 + $0x288] sm:$0xff] %vm10250_vm3, %v19204_v12  ;;  %v10702_v39 = vmax.f32 %v10687_v43, %v10691_v20  ;;  %v24366_v19 = vld [vmem:[#allocation55_spill] sm:$0xff]  ;;  %v24369_v20 = vld [vmem:[#allocation58_spill] sm:$0xff] }
 0x71b   : > { %v10681_v22 = vadd.f32 %v23114_v50, %v10679_v62  ;;  %v18707_v38 = vpop.f32.mrb[84].mxu0 }
 0x71c   : > { %v19205_v8 = vadd.f32 %v18707_v38, %v24356_v18  ;;  %v9907_v24 = vpop.f32.mrb[85].mxu0 }
 0x71d   : > { %v10683_v2 = vmax.f32 %v10681_v22, 0.0  ;;  %v19206_v36 = vadd.f32 %v9907_v24, %v24357_v9  ;;  %v18708_v47 = vpop.f32.mrb[86].mxu0  ;;  %v24368_v24 = vld [vmem:[#allocation57_spill] sm:$0xff] }
 0x71e   : > { %10337 = vst.msk [vmem:[#allocation2 + $0x2b0] sm:$0xff] %vm10250_vm3, %v19205_v8  ;;  %v19207_v52 = vadd.f32 %v18708_v47, %v24358_v32  ;;  %v9910_v37 = vpop.f32.mrb[87].mxu0  ;;  %v10689_v57 = vld [vmem:[#allocation2 + $0x274] ss:$2 sm:$0xff]  ;;  %v10693_v53 = vld [vmem:[#allocation2 + $0x275] ss:$2 sm:$0xff] }
 0x71f   : > { %10685 = vst.msk [vmem:[#allocation3 + $0xab] sm:$0xff] %vm10250_vm3, %v10683_v2  ;;  %10335 = vst.msk [vmem:[#allocation2 + $0x2a0] sm:$0xff] %vm10250_vm3, %v19206_v36  ;;  %v19208_v48 = vadd.f32 %v9910_v37, %v24359_v59  ;;  %v10703_v28 = vmax.f32 %v10689_v57, %v10693_v53  ;;  %v23366_v47 = vld [vmem:[%s24220_s2] ss:$0 sm:$0xff]  ;;  %v24370_v59 = vld [vmem:[#allocation59_spill] sm:$0xff] }
 0x720   : > { %v10695_v10 = vld [vmem:[#allocation2 + $0x286] ss:$2 sm:$0xff]  ;;  %v10699_v41 = vld [vmem:[#allocation2 + $0x287] ss:$2 sm:$0xff]  ;;  %10338 = vst.msk [vmem:[#allocation2 + $0x2b8] sm:$0xff] %vm10250_vm3, %v19207_v52 }
 0x721   : > { %v10704_v42 = vmax.f32 %v10695_v10, %v10699_v41  ;;  %10336 = vst.msk [vmem:[#allocation2 + $0x2a8] sm:$0xff] %vm10250_vm3, %v19208_v48  ;;  %v10958_v58 = vld [vmem:[#allocation3 + $0xa1] sm:$0xff]  ;;  %v24371_v57 = vld [vmem:[#allocation60_spill] sm:$0xff] }
 0x723   : > { %v10706_v26 = vmax.f32 %v10702_v39, %v10704_v42  ;;  %v18711_v44 = vpop.f32.mrb[88].mxu0 }
 0x724   : > { %v19209_v49 = vadd.f32 %v18711_v44, %v24360_v29  ;;  %v9923_v25 = vpop.f32.mrb[89].mxu0 }
 0x725   : > { %v10708_v63 = vadd.f32 %v23114_v50, %v10706_v26  ;;  %v19210_v40 = vadd.f32 %v9923_v25, %v24361_v46  ;;  %v18712_v54 = vpop.f32.mrb[90].mxu0 }
 0x726   : > { %v10697_v1 = vld [vmem:[#allocation2 + $0x296] ss:$2 sm:$0xff]  ;;  %v10701_v61 = vld [vmem:[#allocation2 + $0x297] ss:$2 sm:$0xff]  ;;  %10341 = vst.msk [vmem:[#allocation2 + $0x2d0] sm:$0xff] %vm10250_vm3, %v19209_v49  ;;  %v19211_v55 = vadd.f32 %v18712_v54, %v24362_v51  ;;  %v9926_v45 = vpop.f32.mrb[91].mxu0 }
 0x727   : > { %v10959_v0 = vld [vmem:[#allocation3 + $0xa9] sm:$0xff]  ;;  %v10710_v4 = vmax.f32 %v10708_v63, 0.0  ;;  %v10705_v15 = vmax.f32 %v10697_v1, %v10701_v61  ;;  %10339 = vst.msk [vmem:[#allocation2 + $0x2c0] sm:$0xff] %vm10250_vm3, %v19210_v40  ;;  %v19212_v3 = vadd.f32 %v9926_v45, %v24363_v34  ;;  %v24372_v40 = vld [vmem:[#allocation61_spill] sm:$0xff] }
 0x728   : > { %v10984_v6 = vpack.c.bf16 %v10959_v0, %v10958_v58  ;;  %10342 = vst.msk [vmem:[#allocation2 + $0x2d8] sm:$0xff] %vm10250_vm3, %v19211_v55  ;;  %v10715_v13 = vld [vmem:[#allocation2 + $0x2a8] ss:$2 sm:$0xff]  ;;  %v10719_v14 = vld [vmem:[#allocation2 + $0x2a9] ss:$2 sm:$0xff] }
 0x729   : > { %10712 = vst.msk [vmem:[#allocation3 + $0xb5] sm:$0xff] %vm10250_vm3, %v10710_v4  ;;  %v10707_v23 = vmax.f32 %v10703_v28, %v10705_v15  ;;  %10340 = vst.msk [vmem:[#allocation2 + $0x2c8] sm:$0xff] %vm10250_vm3, %v19212_v3  ;;  %v10730_v22 = vmax.f32 %v10715_v13, %v10719_v14  ;;  %v24373_v1 = vld [vmem:[#allocation62_spill] sm:$0xff]  ;;  %v24374_v55 = vld [vmem:[#allocation63_spill] sm:$0xff] }
 0x72a   : > { %18779 = vmatprep.mubr.msk.bf16.mxu1 %vm10250_vm3, %v10984_v6  ;;  %v24375_v3 = vld [vmem:[#allocation64_spill] sm:$0xff] }
 0x72b   : > { %v10709_v60 = vadd.f32 %v23114_v50, %v10707_v23  ;;  %v18715_v11 = vpop.f32.mrb[92].mxu0  ;;  %v24367_v50 = vld [vmem:[#allocation56_spill] sm:$0xff] }
 0x72c   : > { %v19213_v31 = vadd.f32 %v18715_v11, %v24364_v27  ;;  %v9939_v17 = vpop.f32.mrb[93].mxu0 }
 0x72d   : > { %v10711_v21 = vmax.f32 %v10709_v60, 0.0  ;;  %v19214_v33 = vadd.f32 %v9939_v17, %v24365_v5  ;;  %v18716_v30 = vpop.f32.mrb[94].mxu0 }
 0x72e   : > { %10345 = vst.msk [vmem:[#allocation2 + $0x2f0] sm:$0xff] %vm10250_vm3, %v19213_v31  ;;  %v19215_v35 = vadd.f32 %v18716_v30, %v24366_v19  ;;  %v9942_v56 = vpop.f32.mrb[95].mxu0  ;;  %v10717_v36 = vld [vmem:[#allocation2 + $0x2b8] ss:$2 sm:$0xff]  ;;  %v10721_v37 = vld [vmem:[#allocation2 + $0x2b9] ss:$2 sm:$0xff] }
 0x72f   : > { %10713 = vst.msk [vmem:[#allocation3 + $0xbd] sm:$0xff] %vm10250_vm3, %v10711_v21  ;;  %10343 = vst.msk [vmem:[#allocation2 + $0x2e0] sm:$0xff] %vm10250_vm3, %v19214_v33  ;;  %v19216_v7 = vadd.f32 %v9942_v56, %v24367_v50  ;;  %v10731_v49 = vmax.f32 %v10717_v36, %v10721_v37  ;;  %v24376_v21 = vld [vmem:[#allocation65_spill] sm:$0xff]  ;;  %v24377_v30 = vld [vmem:[#allocation66_spill] sm:$0xff] }
 0x730   : > { %v10723_v12 = vld [vmem:[#allocation2 + $0x2ca] ss:$2 sm:$0xff]  ;;  %v10727_v62 = vld [vmem:[#allocation2 + $0x2cb] ss:$2 sm:$0xff]  ;;  %10346 = vst.msk [vmem:[#allocation2 + $0x2f8] sm:$0xff] %vm10250_vm3, %v19215_v35 }
 0x731   : > { %v10732_v38 = vmax.f32 %v10723_v12, %v10727_v62  ;;  %10344 = vst.msk [vmem:[#allocation2 + $0x2e8] sm:$0xff] %vm10250_vm3, %v19216_v7  ;;  %v10960_v41 = vld [vmem:[#allocation3 + $0xb1] sm:$0xff] }
 0x732   : > { %v24378_v50 = vld [vmem:[#allocation67_spill] sm:$0xff]  ;;  %v24379_v62 = vld [vmem:[#allocation68_spill] sm:$0xff] }
 0x733   : > { %v10734_v18 = vmax.f32 %v10730_v22, %v10732_v38  ;;  %v18719_v8 = vpop.f32.mrb[96].mxu0 }
 0x734   : > { %v19217_v2 = vadd.f32 %v18719_v8, %v24368_v24  ;;  %v9955_v9 = vpop.f32.mrb[97].mxu0 }
 0x735   : > { %v10736_v43 = vadd.f32 %v23366_v47, %v10734_v18  ;;  %v19218_v32 = vadd.f32 %v9955_v9, %v24369_v20  ;;  %v18720_v52 = vpop.f32.mrb[98].mxu0 }
 0x736   : > { %10349 = vst.msk [vmem:[#allocation2 + $0x310] sm:$0xff] %vm10250_vm3, %v19217_v2  ;;  %v19219_v48 = vadd.f32 %v18720_v52, %v24370_v59  ;;  %v9958_v10 = vpop.f32.mrb[99].mxu0  ;;  %v10961_v39 = vld [vmem:[#allocation3 + $0xb9] sm:$0xff] }
 0x737   : > { %v10738_v42 = vmax.f32 %v10736_v43, 0.0  ;;  %10347 = vst.msk [vmem:[#allocation2 + $0x300] sm:$0xff] %vm10250_vm3, %v19218_v32  ;;  %v19220_v53 = vadd.f32 %v9958_v10, %v24371_v57  ;;  %v10985_v26 = vpack.c.bf16 %v10961_v39, %v10960_v41  ;;  %v24380_v52 = vld [vmem:[#allocation69_spill] sm:$0xff]  ;;  %v24381_v10 = vld [vmem:[#allocation70_spill] sm:$0xff] }
 0x738   : > { %v10725_v44 = vld [vmem:[#allocation2 + $0x2da] ss:$2 sm:$0xff]  ;;  %v10729_v29 = vld [vmem:[#allocation2 + $0x2db] ss:$2 sm:$0xff]  ;;  %10350 = vst.msk [vmem:[#allocation2 + $0x318] sm:$0xff] %vm10250_vm3, %v19219_v48 }
 0x739   : > { %10740 = vst.msk [vmem:[#allocation3 + $0xc7] sm:$0xff] %vm10250_vm3, %v10738_v42  ;;  %v10733_v25 = vmax.f32 %v10725_v44, %v10729_v29  ;;  %10348 = vst.msk [vmem:[#allocation2 + $0x308] sm:$0xff] %vm10250_vm3, %v19220_v53  ;;  %18780 = vmatmul.mubr.msk.bf16.gmra.mrb[156].mxu1 %vm10250_vm3, %v10985_v26  ;;  %v10743_v15 = vld [vmem:[#allocation2 + $0x2ec] ss:$2 sm:$0xff]  ;;  %v10747_v34 = vld [vmem:[#allocation2 + $0x2ed] ss:$2 sm:$0xff] }
 0x73a   : > { %v10758_v11 = vmax.f32 %v10743_v15, %v10747_v34  ;;  %v24382_v42 = vld [vmem:[#allocation71_spill] sm:$0xff]  ;;  %v24383_v44 = vld [vmem:[#allocation72_spill] sm:$0xff] }
 0x73b   : > { %v10735_v63 = vmax.f32 %v10731_v49, %v10733_v25  ;;  %v18723_v46 = vpop.f32.mrb[100].mxu0  ;;  %v24386_v34 = vld [vmem:[#allocation75_spill] sm:$0xff] }
 0x73c   : > { %v19221_v54 = vadd.f32 %v18723_v46, %v24372_v40  ;;  %v9971_v58 = vpop.f32.mrb[101].mxu0 }
 0x73d   : > { %v10737_v28 = vadd.f32 %v23366_v47, %v10735_v63  ;;  %v19222_v61 = vadd.f32 %v9971_v58, %v24373_v1  ;;  %v18724_v51 = vpop.f32.mrb[102].mxu0  ;;  %v24384_v58 = vld [vmem:[#allocation73_spill] sm:$0xff] }
 0x73e   : > { %10353 = vst.msk [vmem:[#allocation2 + $0x330] sm:$0xff] %vm10250_vm3, %v19221_v54  ;;  %v19223_v45 = vadd.f32 %v18724_v51, %v24374_v55  ;;  %v9974_v0 = vpop.f32.mrb[103].mxu0  ;;  %v24385_v55 = vld [vmem:[#allocation74_spill] sm:$0xff] }
 0x73f   : > { %v10739_v4 = vmax.f32 %v10737_v28, 0.0  ;;  %10351 = vst.msk [vmem:[#allocation2 + $0x320] sm:$0xff] %vm10250_vm3, %v19222_v61  ;;  %v19224_v6 = vadd.f32 %v9974_v0, %v24375_v3 }
 0x740   : > { %v10751_v23 = vld [vmem:[#allocation2 + $0x30e] ss:$2 sm:$0xff]  ;;  %10354 = vst.msk [vmem:[#allocation2 + $0x338] sm:$0xff] %vm10250_vm3, %v19223_v45  ;;  %v10755_v60 = vld [vmem:[#allocation2 + $0x30f] ss:$2 sm:$0xff]  ;;  %v10962_v38 = vld [vmem:[#allocation3 + $0xc1] sm:$0xff] }
 0x741   : > { %10741 = vst.msk [vmem:[#allocation3 + $0xcf] sm:$0xff] %vm10250_vm3, %v10739_v4  ;;  %10352 = vst.msk [vmem:[#allocation2 + $0x328] sm:$0xff] %vm10250_vm3, %v19224_v6  ;;  %v10760_v27 = vmax.f32 %v10751_v23, %v10755_v60  ;;  %v10745_v19 = vld [vmem:[#allocation2 + $0x2fc] ss:$2 sm:$0xff]  ;;  %v10749_v35 = vld [vmem:[#allocation2 + $0x2fd] ss:$2 sm:$0xff] }
 0x742   : > { %v10759_v9 = vmax.f32 %v10745_v19, %v10749_v35  ;;  %v24388_v19 = vld [vmem:[#allocation77_spill] sm:$0xff] }
 0x743   : > { %v18727_v31 = vpop.f32.mrb[104].mxu0  ;;  %v10762_v17 = vmax.f32 %v10758_v11, %v10760_v27  ;;  %v24387_v11 = vld [vmem:[#allocation76_spill] sm:$0xff] }
 0x744   : > { %v19225_v5 = vadd.f32 %v18727_v31, %v24376_v21  ;;  %v9987_v33 = vpop.f32.mrb[105].mxu0 }
 0x745   : > { %v19226_v13 = vadd.f32 %v9987_v33, %v24377_v30  ;;  %v18728_v14 = vpop.f32.mrb[106].mxu0  ;;  %v10764_v56 = vadd.f32 %v23366_v47, %v10762_v17 }
 0x746   : > { %10357 = vst.msk [vmem:[#allocation2 + $0x350] sm:$0xff] %vm10250_vm3, %v19225_v5  ;;  %v19227_v7 = vadd.f32 %v18728_v14, %v24378_v50  ;;  %v9990_v12 = vpop.f32.mrb[107].mxu0 }
 0x747   : > { %10355 = vst.msk [vmem:[#allocation2 + $0x340] sm:$0xff] %vm10250_vm3, %v19226_v13  ;;  %v19228_v22 = vadd.f32 %v9990_v12, %v24379_v62  ;;  %v10766_v18 = vmax.f32 %v10764_v56, 0.0  ;;  %v10771_v40 = vld [vmem:[#allocation2 + $0x330] ss:$2 sm:$0xff]  ;;  %v10775_v54 = vld [vmem:[#allocation2 + $0x331] ss:$2 sm:$0xff] }
 0x748   : > { %v10753_v8 = vld [vmem:[#allocation2 + $0x31e] ss:$2 sm:$0xff]  ;;  %v10757_v24 = vld [vmem:[#allocation2 + $0x31f] ss:$2 sm:$0xff]  ;;  %10358 = vst.msk [vmem:[#allocation2 + $0x358] sm:$0xff] %vm10250_vm3, %v19227_v7  ;;  %v10964_v49 = vld [vmem:[#allocation3 + $0xd1] sm:$0xff]  ;;  %v10786_v23 = vmax.f32 %v10771_v40, %v10775_v54 }
 0x749   : > { %v10963_v2 = vld [vmem:[#allocation3 + $0xc9] sm:$0xff]  ;;  %v10761_v36 = vmax.f32 %v10753_v8, %v10757_v24  ;;  %10356 = vst.msk [vmem:[#allocation2 + $0x348] sm:$0xff] %vm10250_vm3, %v19228_v22  ;;  %10768 = vst.msk [vmem:[#allocation3 + $0xd9] sm:$0xff] %vm10250_vm3, %v10766_v18 }
 0x74a   : > { %v10986_v43 = vpack.c.bf16 %v10963_v2, %v10962_v38  ;;  %v24389_v12 = vld [vmem:[#allocation78_spill] sm:$0xff]  ;;  %v24390_v38 = vld [vmem:[#allocation79_spill] sm:$0xff]  ;;  %v24391_v2 = vld [vmem:[#allocation80_spill] sm:$0xff] }
 0x74b   : > { %v10763_v20 = vmax.f32 %v10759_v9, %v10761_v36  ;;  %v18731_v32 = vpop.f32.mrb[108].mxu0 }
 0x74c   : > { %18783 = vmatprep.mubr.msk.bf16.mxu1 %vm10250_vm3, %v10986_v43  ;;  %v19229_v37 = vadd.f32 %v18731_v32, %v24380_v52  ;;  %v10003_v59 = vpop.f32.mrb[109].mxu0  ;;  %v24392_v32 = vld [vmem:[#allocation81_spill] sm:$0xff] }
 0x74d   : > { %v10765_v48 = vadd.f32 %v23366_v47, %v10763_v20  ;;  %v19230_v41 = vadd.f32 %v10003_v59, %v24381_v10  ;;  %v18732_v39 = vpop.f32.mrb[110].mxu0  ;;  %v24393_v10 = vld [vmem:[#allocation82_spill] sm:$0xff] }
 0x74e   : > { %10361 = vst.msk [vmem:[#allocation2 + $0x370] sm:$0xff] %vm10250_vm3, %v19229_v37  ;;  %v19231_v57 = vadd.f32 %v18732_v39, %v24382_v42  ;;  %v10006_v53 = vpop.f32.mrb[111].mxu0 }
 0x74f   : > { %v10767_v26 = vmax.f32 %v10765_v48, 0.0  ;;  %10359 = vst.msk [vmem:[#allocation2 + $0x360] sm:$0xff] %vm10250_vm3, %v19230_v41  ;;  %v19232_v29 = vadd.f32 %v10006_v53, %v24383_v44 }
 0x750   : > { %10362 = vst.msk [vmem:[#allocation2 + $0x378] sm:$0xff] %vm10250_vm3, %v19231_v57  ;;  %v10965_v25 = vld [vmem:[#allocation3 + $0xd9] sm:$0xff]  ;;  %v10777_v51 = vld [vmem:[#allocation2 + $0x341] ss:$2 sm:$0xff] }
 0x751   : > { %10769 = vst.msk [vmem:[#allocation3 + $0xe1] sm:$0xff] %vm10250_vm3, %v10767_v26  ;;  %10360 = vst.msk [vmem:[#allocation2 + $0x368] sm:$0xff] %vm10250_vm3, %v19232_v29  ;;  %v10987_v63 = vpack.c.bf16 %v10965_v25, %v10964_v49  ;;  %v10773_v61 = vld [vmem:[#allocation2 + $0x340] ss:$2 sm:$0xff] }
 0x752   : > { %v10787_v21 = vmax.f32 %v10773_v61, %v10777_v51  ;;  %v24394_v26 = vld [vmem:[#allocation83_spill] sm:$0xff] }
 0x753   : > { %v18735_v46 = vpop.f32.mrb[112].mxu0  ;;  %18784 = vmatmul.mubr.msk.bf16.gmra.mrb[160].mxu1 %vm10250_vm3, %v10987_v63 }
 0x754   : > { %v19233_v28 = vadd.f32 %v18735_v46, %v24384_v58  ;;  %v10019_v1 = vpop.f32.mrb[113].mxu0  ;;  %v24395_v46 = vld [vmem:[#allocation84_spill] sm:$0xff] }
 0x755   : > { %v19234_v45 = vadd.f32 %v10019_v1, %v24385_v55  ;;  %v18736_v0 = vpop.f32.mrb[114].mxu0 }
 0x756   : > { %v10779_v4 = vld [vmem:[#allocation2 + $0x352] ss:$2 sm:$0xff]  ;;  %v10783_v15 = vld [vmem:[#allocation2 + $0x353] ss:$2 sm:$0xff]  ;;  %10365 = vst.msk [vmem:[#allocation2 + $0x390] sm:$0xff] %vm10250_vm3, %v19233_v28  ;;  %v19235_v3 = vadd.f32 %v18736_v0, %v24386_v34  ;;  %v10022_v6 = vpop.f32.mrb[115].mxu0 }
 0x757   : > { %v10788_v60 = vmax.f32 %v10779_v4, %v10783_v15  ;;  %10363 = vst.msk [vmem:[#allocation2 + $0x380] sm:$0xff] %vm10250_vm3, %v19234_v45  ;;  %v19236_v27 = vadd.f32 %v10022_v6, %v24387_v11  ;;  %v24396_v4 = vld [vmem:[#allocation85_spill] sm:$0xff] }
 0x758   : > { %v10781_v31 = vld [vmem:[#allocation2 + $0x362] ss:$2 sm:$0xff]  ;;  %v10785_v17 = vld [vmem:[#allocation2 + $0x363] ss:$2 sm:$0xff]  ;;  %10366 = vst.msk [vmem:[#allocation2 + $0x398] sm:$0xff] %vm10250_vm3, %v19235_v3 }
 0x759   : > { %v10790_v5 = vmax.f32 %v10786_v23, %v10788_v60  ;;  %v10789_v33 = vmax.f32 %v10781_v31, %v10785_v17  ;;  %10364 = vst.msk [vmem:[#allocation2 + $0x388] sm:$0xff] %vm10250_vm3, %v19236_v27  ;;  %v10966_v42 = vld [vmem:[#allocation3 + $0xe1] sm:$0xff]  ;;  %v24398_v27 = vld [vmem:[#allocation87_spill] sm:$0xff] }
 0x75a   : > { %v24397_v23 = vld [vmem:[#allocation86_spill] sm:$0xff] }
 0x75b   : > { %v10792_v30 = vadd.f32 %v23366_v47, %v10790_v5  ;;  %v10791_v13 = vmax.f32 %v10787_v21, %v10789_v33  ;;  %v18739_v14 = vpop.f32.mrb[116].mxu0  ;;  %v24399_v5 = vld [vmem:[#allocation88_spill] sm:$0xff] }
 0x75c   : > { %v19237_v35 = vadd.f32 %v18739_v14, %v24388_v19  ;;  %v10035_v56 = vpop.f32.mrb[117].mxu0 }
 0x75d   : > { %v10794_v50 = vmax.f32 %v10792_v30, 0.0  ;;  %v10793_v7 = vadd.f32 %v23366_v47, %v10791_v13  ;;  %v19238_v62 = vadd.f32 %v10035_v56, %v24389_v12  ;;  %v18740_v22 = vpop.f32.mrb[118].mxu0  ;;  %v24400_v13 = vld [vmem:[#allocation89_spill] sm:$0xff] }
 0x75e   : > { %10369 = vst.msk [vmem:[#allocation2 + $0x3b0] sm:$0xff] %vm10250_vm3, %v19237_v35  ;;  %v19239_v18 = vadd.f32 %v18740_v22, %v24390_v38  ;;  %v10038_v8 = vpop.f32.mrb[119].mxu0  ;;  %v10799_v43 = vld [vmem:[#allocation2 + $0x374] ss:$2 sm:$0xff]  ;;  %v10803_v20 = vld [vmem:[#allocation2 + $0x375] ss:$2 sm:$0xff] }
 0x75f   : > { %10796 = vst.msk [vmem:[#allocation3 + $0xeb] sm:$0xff] %vm10250_vm3, %v10794_v50  ;;  %v10795_v24 = vmax.f32 %v10793_v7, 0.0  ;;  %10367 = vst.msk [vmem:[#allocation2 + $0x3a0] sm:$0xff] %vm10250_vm3, %v19238_v62  ;;  %v19240_v9 = vadd.f32 %v10038_v8, %v24391_v2  ;;  %v10814_v25 = vmax.f32 %v10799_v43, %v10803_v20  ;;  %v24401_v35 = vld [vmem:[#allocation90_spill] sm:$0xff]  ;;  %v24402_v22 = vld [vmem:[#allocation91_spill] sm:$0xff] }
 0x760   : > { %10370 = vst.msk [vmem:[#allocation2 + $0x3b8] sm:$0xff] %vm10250_vm3, %v19239_v18  ;;  %v10801_v59 = vld [vmem:[#allocation2 + $0x384] ss:$2 sm:$0xff]  ;;  %v10805_v48 = vld [vmem:[#allocation2 + $0x385] ss:$2 sm:$0xff] }
 0x761   : > { %10797 = vst.msk [vmem:[#allocation3 + $0xf3] sm:$0xff] %vm10250_vm3, %v10795_v24  ;;  %10368 = vst.msk [vmem:[#allocation2 + $0x3a8] sm:$0xff] %vm10250_vm3, %v19240_v9  ;;  %v10815_v1 = vmax.f32 %v10801_v59, %v10805_v48  ;;  %v24403_v9 = vld [vmem:[#allocation92_spill] sm:$0xff] }
 0x763   : > { %v18743_v36 = vpop.f32.mrb[120].mxu0 }
 0x764   : > { %v19241_v52 = vadd.f32 %v18743_v36, %v24392_v32  ;;  %v10051_v37 = vpop.f32.mrb[121].mxu0 }
 0x765   : > { %v19242_v41 = vadd.f32 %v10051_v37, %v24393_v10  ;;  %v18744_v39 = vpop.f32.mrb[122].mxu0 }
 0x766   : > { %v10807_v57 = vld [vmem:[#allocation2 + $0x396] ss:$2 sm:$0xff]  ;;  %v10811_v53 = vld [vmem:[#allocation2 + $0x397] ss:$2 sm:$0xff]  ;;  %10373 = vst.msk [vmem:[#allocation2 + $0x3d0] sm:$0xff] %vm10250_vm3, %v19241_v52  ;;  %v19243_v44 = vadd.f32 %v18744_v39, %v24394_v26  ;;  %v10054_v29 = vpop.f32.mrb[123].mxu0 }
 0x767   : > { %v10967_v49 = vld [vmem:[#allocation3 + $0xe9] sm:$0xff]  ;;  %v10816_v63 = vmax.f32 %v10807_v57, %v10811_v53  ;;  %10371 = vst.msk [vmem:[#allocation2 + $0x3c0] sm:$0xff] %vm10250_vm3, %v19242_v41  ;;  %v19244_v40 = vadd.f32 %v10054_v29, %v24395_v46  ;;  %v24404_v53 = vld [vmem:[#allocation93_spill] sm:$0xff] }
 0x768   : > { %v10988_v54 = vpack.c.bf16 %v10967_v49, %v10966_v42  ;;  %v10809_v58 = vld [vmem:[#allocation2 + $0x3a6] ss:$2 sm:$0xff]  ;;  %v10813_v28 = vld [vmem:[#allocation2 + $0x3a7] ss:$2 sm:$0xff]  ;;  %10374 = vst.msk [vmem:[#allocation2 + $0x3d8] sm:$0xff] %vm10250_vm3, %v19243_v44 }
 0x769   : > { %v10818_v61 = vmax.f32 %v10814_v25, %v10816_v63  ;;  %v10817_v51 = vmax.f32 %v10809_v58, %v10813_v28  ;;  %10372 = vst.msk [vmem:[#allocation2 + $0x3c8] sm:$0xff] %vm10250_vm3, %v19244_v40  ;;  %v10968_v7 = vld [vmem:[#allocation3 + $0xf1] sm:$0xff]  ;;  %v24405_v49 = vld [vmem:[#allocation94_spill] sm:$0xff] }
 0x76a   : > { %18787 = vmatprep.mubr.msk.bf16.mxu1 %vm10250_vm3, %v10988_v54  ;;  %v24406_v40 = vld [vmem:[#allocation95_spill] sm:$0xff] }
 0x76b   : > { %v10820_v55 = vadd.f32 %v23366_v47, %v10818_v61  ;;  %v10819_v45 = vmax.f32 %v10815_v1, %v10817_v51  ;;  %v18747_v0 = vpop.f32.mrb[124].mxu0  ;;  %v24407_v1 = vld [vmem:[#allocation96_spill] sm:$0xff] }
 0x76c   : > { %v19245_v15 = vadd.f32 %v18747_v0, %v24396_v4  ;;  %v10067_v34 = vpop.f32.mrb[125].mxu0  ;;  %v10883_v4 = vld [vmem:[#allocation3 + $0x8] sm:$0xff] }
 0x76d   : > { %v10822_v3 = vmax.f32 %v10820_v55, 0.0  ;;  %v10821_v6 = vadd.f32 %v23366_v47, %v10819_v45  ;;  %v19246_v60 = vadd.f32 %v10067_v34, %v24397_v23  ;;  %v18748_v11 = vpop.f32.mrb[126].mxu0  ;;  %v10882_v55 = vld [vmem:[#allocation3] sm:$0xff] }
 0x76e   : > { %10377 = vst.msk [vmem:[#allocation2 + $0x3f0] sm:$0xff] %vm10250_vm3, %v19245_v15  ;;  %v19247_v31 = vadd.f32 %v18748_v11, %v24398_v27  ;;  %v10070_v17 = vpop.f32.mrb[127].mxu0  ;;  %v10827_v12 = vld [vmem:[#allocation2 + $0x3b8] ss:$2 sm:$0xff]  ;;  %v10831_v62 = vld [vmem:[#allocation2 + $0x3b9] ss:$2 sm:$0xff] }
 0x76f   : > { %10824 = vst.msk [vmem:[#allocation3 + $0xfd] sm:$0xff] %vm10250_vm3, %v10822_v3  ;;  %v10823_v21 = vmax.f32 %v10821_v6, 0.0  ;;  %10375 = vst.msk [vmem:[#allocation2 + $0x3e0] sm:$0xff] %vm10250_vm3, %v19246_v60  ;;  %v19248_v33 = vadd.f32 %v10070_v17, %v24399_v5  ;;  %v10842_v37 = vmax.f32 %v10827_v12, %v10831_v62 }
 0x770   : > { %10378 = vst.msk [vmem:[#allocation2 + $0x3f8] sm:$0xff] %vm10250_vm3, %v19247_v31  ;;  %v10829_v24 = vld [vmem:[#allocation2 + $0x3c8] ss:$2 sm:$0xff]  ;;  %v10833_v2 = vld [vmem:[#allocation2 + $0x3c9] ss:$2 sm:$0xff] }
 0x771   : > { %10825 = vst.msk [vmem:[#allocation3 + $0x105] sm:$0xff] %vm10250_vm3, %v10823_v21  ;;  %10376 = vst.msk [vmem:[#allocation2 + $0x3e8] sm:$0xff] %vm10250_vm3, %v19248_v33  ;;  %v10843_v10 = vmax.f32 %v10829_v24, %v10833_v2  ;;  %v10886_v24 = vld [vmem:[#allocation3 + $0x20] sm:$0xff]  ;;  %v23482_v2 = vld [vmem:[%s24221_s3 + $0x18] sm:$0xff]  }
 0x773   : > { %v18751_v30 = vpop.f32.mrb[128].mxu0 }
 0x774   : > { %v19249_v14 = vadd.f32 %v18751_v30, %v24400_v13  ;;  %v10083_v19 = vpop.f32.mrb[129].mxu0 }
 0x775   : > { %v19250_v56 = vadd.f32 %v10083_v19, %v24401_v35  ;;  %v18752_v50 = vpop.f32.mrb[130].mxu0 }
 0x776   : > { %10381 = vst.msk [vmem:[#allocation2 + $0x410] sm:$0xff] %vm10250_vm3, %v19249_v14  ;;  %v19251_v38 = vadd.f32 %v18752_v50, %v24402_v22  ;;  %v10086_v18 = vpop.f32.mrb[131].mxu0  ;;  %v10969_v8 = vld [vmem:[#allocation3 + $0xf9] sm:$0xff]  ;;  %v10918_v14 = vpack.c.bf16 %v10883_v4, %v10882_v55 }
 0x777   : > { %10379 = vst.msk [vmem:[#allocation2 + $0x400] sm:$0xff] %vm10250_vm3, %v19250_v56  ;;  %v19252_v36 = vadd.f32 %v10086_v18, %v24403_v9  ;;  %v10989_v43 = vpack.c.bf16 %v10969_v8, %v10968_v7  ;;  %v10885_v22 = vld [vmem:[#allocation3 + $0x18] sm:$0xff]  ;;  %v10884_v18 = vld [vmem:[#allocation3 + $0x10] sm:$0xff] }
 0x778   : > { %v10835_v20 = vld [vmem:[#allocation2 + $0x3da] ss:$2 sm:$0xff]  ;;  %v10837_v32 = vld [vmem:[#allocation2 + $0x3ea] ss:$2 sm:$0xff]  ;;  %v10839_v52 = vld [vmem:[#allocation2 + $0x3db] ss:$2 sm:$0xff]  ;;  %v10919_v8 = vpack.c.bf16 %v10885_v22, %v10884_v18 }
 0x779   : > { %10382 = vst.msk [vmem:[#allocation2 + $0x418] sm:$0xff] %vm10250_vm3, %v19251_v38  ;;  %v10841_v59 = vld [vmem:[#allocation2 + $0x3eb] ss:$2 sm:$0xff]  ;;  %v10844_v48 = vmax.f32 %v10835_v20, %v10839_v52  ;;  %10380 = vst.msk [vmem:[#allocation2 + $0x408] sm:$0xff] %vm10250_vm3, %v19252_v36  ;;  %18788 = vmatmul.mubr.msk.bf16.gmra.mrb[164].mxu1 %vm10250_vm3, %v10989_v43  ;;  %v10970_v3 = vld [vmem:[#allocation3 + $0x101] sm:$0xff] }
 0x77a   : > { %v10845_v41 = vmax.f32 %v10837_v32, %v10841_v59  ;;  %v10887_v38 = vld [vmem:[#allocation3 + $0x28] sm:$0xff]  ;;  %v10888_v43 = vld [vmem:[#allocation3 + $0x30] sm:$0xff]  ;;  %v10890_v32 = vld [vmem:[#allocation3 + $0x40] sm:$0xff] }
 0x77b   : > { %v10846_v39 = vmax.f32 %v10842_v37, %v10844_v48  ;;  %v18755_v42 = vpop.f32.mrb[132].mxu0  ;;  %v10920_v9 = vpack.c.bf16 %v10887_v38, %v10886_v24  ;;  %v10891_v36 = vld [vmem:[#allocation3 + $0x48] sm:$0xff]  ;;  %v10893_v37 = vld [vmem:[#allocation3 + $0x58] sm:$0xff]  ;;  %v10892_v48 = vld [vmem:[#allocation3 + $0x50] sm:$0xff] }
 0x77c   : > { %v10847_v57 = vmax.f32 %v10843_v10, %v10845_v41  ;;  %v19253_v26 = vadd.f32 %v18755_v42, %v24404_v53  ;;  %v10099_v44 = vpop.f32.mrb[133].mxu0  ;;  %v10922_v52 = vpack.c.bf16 %v10891_v36, %v10890_v32  ;;  %v10895_v59 = vld [vmem:[#allocation3 + $0x68] sm:$0xff]  ;;  %v10923_v10 = vpack.c.bf16 %v10893_v37, %v10892_v48  ;;  %v10894_v41 = vld [vmem:[#allocation3 + $0x60] sm:$0xff]  ;;  %v10896_v53 = vld [vmem:[#allocation3 + $0x70] sm:$0xff] }
 0x77d   : > { %v10848_v29 = vadd.f32 %v23366_v47, %v10846_v39  ;;  %v19254_v25 = vadd.f32 %v10099_v44, %v24405_v49  ;;  %v18756_v63 = vpop.f32.mrb[134].mxu0  ;;  %v10924_v39 = vpack.c.bf16 %v10895_v59, %v10894_v41  ;;  %v10898_v42 = vld [vmem:[#allocation3 + $0x80] sm:$0xff]  ;;  %v10901_v49 = vld [vmem:[#allocation3 + $0x98] sm:$0xff]  ;;  %v11485_v32 = vld [vmem:[#allocation3 + $0x8a] sm:$0xff] }
 0x77e   : > { %v10849_v46 = vadd.f32 %v23366_v47, %v10847_v57  ;;  %10385 = vst.msk [vmem:[#allocation2 + $0x430] sm:$0xff] %vm10250_vm3, %v19253_v26  ;;  %v19255_v54 = vadd.f32 %v18756_v63, %v24406_v40  ;;  %v10102_v58 = vpop.f32.mrb[135].mxu0  ;;  %v10899_v57 = vld [vmem:[#allocation3 + $0x88] sm:$0xff]  ;;  %v10909_v55 = vld [vmem:[#allocation3 + $0xd8] sm:$0xff] }
 0x77f   : > { %v10850_v28 = vmax.f32 %v10848_v29, 0.0  ;;  %10383 = vst.msk [vmem:[#allocation2 + $0x420] sm:$0xff] %vm10250_vm3, %v19254_v25  ;;  %v19256_v61 = vadd.f32 %v10102_v58, %v24407_v1  ;;  %v10926_v44 = vpack.c.bf16 %v10899_v57, %v10898_v42  ;;  %v10900_v29 = vld [vmem:[#allocation3 + $0x90] sm:$0xff]  ;;  %v10903_v25 = vld [vmem:[#allocation3 + $0xa8] sm:$0xff]  ;;  %v11479_v24 = vld [vmem:[#allocation3 + $0x5a] sm:$0xff] }
 0x780   : > { %v10851_v51 = vmax.f32 %v10849_v46, 0.0  ;;  %10386 = vst.msk [vmem:[#allocation2 + $0x438] sm:$0xff] %vm10250_vm3, %v19255_v54  ;;  %v10855_v45 = vld [vmem:[#allocation2 + $0x3fc] ss:$2 sm:$0xff]  ;;  %v10859_v0 = vld [vmem:[#allocation2 + $0x3fd] ss:$2 sm:$0xff]  ;;  %v10927_v63 = vpack.c.bf16 %v10901_v49, %v10900_v29 }
 0x781   : > { %10852 = vst.msk [vmem:[#allocation3 + $0x10f] sm:$0xff] %vm10250_vm3, %v10850_v28  ;;  %10384 = vst.msk [vmem:[#allocation2 + $0x428] sm:$0xff] %vm10250_vm3, %v19256_v61  ;;  %v10857_v15 = vld [vmem:[#allocation2 + $0x40c] ss:$2 sm:$0xff]  ;;  %v10861_v34 = vld [vmem:[#allocation2 + $0x40d] ss:$2 sm:$0xff]  ;;  %v10870_v11 = vmax.f32 %v10855_v45, %v10859_v0 }
 0x782   : > { %10853 = vst.msk [vmem:[#allocation3 + $0x117] sm:$0xff] %vm10250_vm3, %v10851_v51  ;;  %v10871_v5 = vmax.f32 %v10857_v15, %v10861_v34  ;;  %v10902_v46 = vld [vmem:[#allocation3 + $0xa0] sm:$0xff]  ;;  %v10905_v54 = vld [vmem:[#allocation3 + $0xb8] sm:$0xff]  ;;  %v10907_v58 = vld [vmem:[#allocation3 + $0xc8] sm:$0xff] }
 0x783   : > { %v10928_v40 = vpack.c.bf16 %v10903_v25, %v10902_v46  ;;  %v10904_v28 = vld [vmem:[#allocation3 + $0xb0] sm:$0xff]  ;;  %v10906_v61 = vld [vmem:[#allocation3 + $0xc0] sm:$0xff]  ;;  %v10911_v45 = vld [vmem:[#allocation3 + $0xe8] sm:$0xff] }
 0x784   : > { %v10929_v1 = vpack.c.bf16 %v10905_v54, %v10904_v28  ;;  %v10930_v51 = vpack.c.bf16 %v10907_v58, %v10906_v61  ;;  %v10908_v0 = vld [vmem:[#allocation3 + $0xd0] sm:$0xff]  ;;  %v10910_v15 = vld [vmem:[#allocation3 + $0xe0] sm:$0xff] }
 0x785   : > { %v10931_v4 = vpack.c.bf16 %v10909_v55, %v10908_v0  ;;  %v10932_v34 = vpack.c.bf16 %v10911_v45, %v10910_v15  ;;  %v11474_v22 = vld [vmem:[#allocation3 + $0x32] sm:$0xff]  ;;  %v11476_v18 = vld [vmem:[#allocation3 + $0x42] sm:$0xff]  ;;  %v11487_v41 = vld [vmem:[#allocation3 + $0x9a] sm:$0xff] }
 0x786   : > { %v11484_v59 = vld [vmem:[#allocation3 + $0x82] sm:$0xff]  ;;  %v11497_v46 = vld [vmem:[#allocation3 + $0xea] sm:$0xff] }
 0x787   : > { %v11512_v48 = vpack.c.bf16 %v11485_v32, %v11484_v59  ;;  %v11488_v42 = vld [vmem:[#allocation3 + $0xa2] sm:$0xff]  ;;  %v12145_v32 = vld [vmem:[#allocation3 + $0xab] sm:$0xff] }
 0x788   : > { %v10863_v6 = vld [vmem:[#allocation2 + $0x41e] ss:$2 sm:$0xff]  ;;  %v10865_v23 = vld [vmem:[#allocation2 + $0x42e] ss:$2 sm:$0xff]  ;;  %v10867_v60 = vld [vmem:[#allocation2 + $0x41f] ss:$2 sm:$0xff] }
 0x789   : > { %v10869_v27 = vld [vmem:[#allocation2 + $0x42f] ss:$2 sm:$0xff]  ;;  %v10872_v31 = vmax.f32 %v10863_v6, %v10867_v60  ;;  %v11492_v49 = vld [vmem:[#allocation3 + $0xc2] sm:$0xff] }
 0x78a   : > { %v10971_v17 = vld [vmem:[#allocation3 + $0x109] sm:$0xff]  ;;  %v10972_v21 = vld [vmem:[#allocation3 + $0x111] sm:$0xff]  ;;  %v10873_v33 = vmax.f32 %v10865_v23, %v10869_v27  ;;  %v10973_v13 = vld [vmem:[#allocation3 + $0x119] sm:$0xff] }
 0x78b   : > { %v10990_v30 = vpack.c.bf16 %v10971_v17, %v10970_v3  ;;  %v10874_v19 = vmax.f32 %v10870_v11, %v10872_v31  ;;  %v10991_v35 = vpack.c.bf16 %v10973_v13, %v10972_v21  ;;  %v10913_v3 = vld [vmem:[#allocation3 + $0xf8] sm:$0xff]  ;;  %v10915_v6 = vld [vmem:[#allocation3 + $0x108] sm:$0xff]  ;;  %v10912_v23 = vld [vmem:[#allocation3 + $0xf0] sm:$0xff] }
 0x78c   : > { %v10875_v56 = vmax.f32 %v10871_v5, %v10873_v33  ;;  %v10933_v60 = vpack.c.bf16 %v10913_v3, %v10912_v23  ;;  %v10914_v11 = vld [vmem:[#allocation3 + $0x100] sm:$0xff]  ;;  %v11469_v17 = vld [vmem:[#allocation3 + $0xa] sm:$0xff]  ;;  %v10917_v5 = vld [vmem:[#allocation3 + $0x118] sm:$0xff] }
 0x78d   : > { %18791 = vmatprep.mubr.msk.bf16.mxu1 %vm10250_vm3, %v10990_v30  ;;  %v10876_v50 = vadd.f32 %v23366_v47, %v10874_v19  ;;  %v10934_v27 = vpack.c.bf16 %v10915_v6, %v10914_v11  ;;  %v11468_v31 = vld [vmem:[#allocation3 + $0x2] sm:$0xff]  ;;  %v10916_v21 = vld [vmem:[#allocation3 + $0x110] sm:$0xff]  ;;  %v11471_v13 = vld [vmem:[#allocation3 + $0x1a] sm:$0xff] }
 0x78e   : > { %18792 = vmatmul.mubr.msk.bf16.gmra.mrb[168].mxu1 %vm10250_vm3, %v10991_v35  ;;  %v10877_v7 = vadd.f32 %v23366_v47, %v10875_v56  ;;  %v10889_v47 = vld [vmem:[#allocation3 + $0x38] sm:$0xff]  ;;  %v11504_v33 = vpack.c.bf16 %v11469_v17, %v11468_v31  ;;  %v10935_v30 = vpack.c.bf16 %v10917_v5, %v10916_v21  ;;  %v11472_v56 = vld [vmem:[#allocation3 + $0x22] sm:$0xff]  ;;  %v11501_v61 = vld [vmem:[#allocation3 + $0x10a] sm:$0xff] }
 0x78f   : > { %18797 = vmatprep.mubr.msk.bf16.mxu1 %vm10250_vm3, %v10918_v14  ;;  %v10878_v12 = vmax.f32 %v10876_v50, 0.0  ;;  %v10921_v20 = vpack.c.bf16 %v10889_v47, %v10888_v43  ;;  %v11473_v14 = vld [vmem:[#allocation3 + $0x2a] sm:$0xff]  ;;  %v11470_v19 = vld [vmem:[#allocation3 + $0x12] sm:$0xff]  ;;  %v23509_v50 = vld [vmem:[%s24221_s3 + $0x20] sm:$0xff]  }
 0x790   : > { %v10879_v62 = vmax.f32 %v10877_v7, 0.0  ;;  %v23504_v35 = vpack.c.bf16 %v11471_v13, %v11470_v19  ;;  %v23511_v7 = vpack.c.bf16 %v11473_v14, %v11472_v56  ;;  %v11478_v47 = vld [vmem:[#allocation3 + $0x52] sm:$0xff]  ;;  %v11480_v43 = vld [vmem:[#allocation3 + $0x62] sm:$0xff] }
 0x791   : > { %10880 = vst.msk [vmem:[#allocation3 + $0x121] sm:$0xff] %vm10250_vm3, %v10878_v12  ;;  %v11475_v12 = vld [vmem:[#allocation3 + $0x3a] sm:$0xff]  ;;  %v11509_v36 = vpack.c.bf16 %v11479_v24, %v11478_v47  ;;  %v11496_v58 = vld [vmem:[#allocation3 + $0xe2] sm:$0xff]  ;;  %v11502_v15 = vld [vmem:[#allocation3 + $0x112] sm:$0xff] }
 0x792   : > { %10881 = vst.msk [vmem:[#allocation3 + $0x129] sm:$0xff] %vm10250_vm3, %v10879_v62  ;;  %v11477_v62 = vld [vmem:[#allocation3 + $0x4a] sm:$0xff]  ;;  %v11507_v38 = vpack.c.bf16 %v11475_v12, %v11474_v22  ;;  %v11518_v28 = vpack.c.bf16 %v11497_v46, %v11496_v58  ;;  %v11500_v45 = vld [vmem:[#allocation3 + $0x102] sm:$0xff]  ;;  %v12142_v47 = vld [vmem:[#allocation3 + $0x93] sm:$0xff] }
 0x793   : > { %v11520_v0 = vpack.c.bf16 %v11501_v61, %v11500_v45  ;;  %v20555_v3 = vld [vmem:[%s24221_s3 + $0x28] sm:$0xff]   ;;  %v12131_v21 = vld [vmem:[#allocation3 + $0x3b] sm:$0xff]  ;;  %v23562_v13 = vld [vmem:[%s24221_s3 + $0x30] sm:$0xff]  }
 0x794   : > { %v12129_v17 = vld [vmem:[#allocation3 + $0x2b] sm:$0xff]  ;;  %v12128_v5 = vld [vmem:[#allocation3 + $0x23] sm:$0xff]  ;;  %v12139_v22 = vld [vmem:[#allocation3 + $0x7b] sm:$0xff] }
 0x795   : > { %v12133_v19 = vld [vmem:[#allocation3 + $0x4b] sm:$0xff]  ;;  %v12132_v56 = vld [vmem:[#allocation3 + $0x43] sm:$0xff] }
 0x796   : > { %18798 = vmatmul.mubr.msk.bf16.vlgmr.msra.gmra.mrb[136].mxu1 %vm10250_vm3, %v10919_v8  ;;  %v11508_v8 = vpack.c.bf16 %v11477_v62, %v11476_v18  ;;  %v12137_v62 = vld [vmem:[#allocation3 + $0x6b] sm:$0xff]  ;;  %v12456_v45 = vld [vmem:[#allocation3 + $0x1c] sm:$0xff] }
 0x797   : > { %18801 = vmatprep.mubr.msk.bf16.mxu1 %vm10250_vm3, %v10920_v9  ;;  %18834 = vmatpush3.bf16.msra.mxu1 %v23321_v16  ;;  %v10897_v16 = vld [vmem:[#allocation3 + $0x78] sm:$0xff]  ;;  %v11481_v9 = vld [vmem:[#allocation3 + $0x6a] sm:$0xff] }
 0x798   : > { %18871 = vmatprep.subr.bf16.mxu1 %v23482_v2  ;;  %v10925_v26 = vpack.c.bf16 %v10897_v16, %v10896_v53  ;;  %v11491_v53 = vld [vmem:[#allocation3 + $0xba] sm:$0xff]  ;;  %v12157_v46 = vld [vmem:[#allocation3 + $0x10b] sm:$0xff] }
 0x799   : > { %v11831_v6 = vld [vmem:[#allocation3 + $0x122] sm:$0xff]  ;;  %v11832_v23 = vld [vmem:[#allocation3 + $0x12a] sm:$0xff] }
 0x79a   : > { %v11850_v11 = vpack.c.bf16 %v11832_v23, %v11831_v6  ;;  %v12160_v61 = vld [vmem:[#allocation3 + $0x123] sm:$0xff]  ;;  %v12459_v23 = vld [vmem:[#allocation3 + $0x34] sm:$0xff] }
 0x79e   : > { %18802 = vmatmul.mubr.msk.bf16.gmra.mrb[140].mxu1 %vm10250_vm3, %v10921_v20  ;;  %v11510_v20 = vpack.c.bf16 %v11481_v9, %v11480_v43  ;;  %v12141_v9 = vld [vmem:[#allocation3 + $0x8b] sm:$0xff]  ;;  %v12140_v43 = vld [vmem:[#allocation3 + $0x83] sm:$0xff] }
 0x79f   : > { %18805 = vmatprep.mubr.msk.bf16.mxu1 %vm10250_vm3, %v10922_v52  ;;  %v11482_v52 = vld [vmem:[#allocation3 + $0x72] sm:$0xff] }
 0x7a6   : > { %18806 = vmatmul.mubr.msk.bf16.gmra.mrb[144].mxu1 %vm10250_vm3, %v10923_v10  ;;  %v11486_v10 = vld [vmem:[#allocation3 + $0x92] sm:$0xff] }
 0x7a7   : > { %18809 = vmatprep.mubr.msk.bf16.mxu1 %vm10250_vm3, %v10924_v39  ;;  %v11489_v39 = vld [vmem:[#allocation3 + $0xaa] sm:$0xff]  ;;  %v11513_v16 = vpack.c.bf16 %v11487_v41, %v11486_v10 }
 0x7a8   : > { %v11514_v57 = vpack.c.bf16 %v11489_v39, %v11488_v42  ;;  %v12149_v41 = vld [vmem:[#allocation3 + $0xcb] sm:$0xff]  ;;  %v12151_v39 = vld [vmem:[#allocation3 + $0xdb] sm:$0xff] }
 0x7ae   : > { %18810 = vmatmul.mubr.msk.bf16.gmra.mrb[148].mxu1 %vm10250_vm3, %v10925_v26  ;;  %v11493_v26 = vld [vmem:[#allocation3 + $0xca] sm:$0xff] }
 0x7af   : > { %18813 = vmatprep.mubr.msk.bf16.mxu1 %vm10250_vm3, %v10926_v44  ;;  %v11490_v44 = vld [vmem:[#allocation3 + $0xb2] sm:$0xff]  ;;  %v11516_v25 = vpack.c.bf16 %v11493_v26, %v11492_v49 }
 0x7b0   : > { %v11515_v29 = vpack.c.bf16 %v11491_v53, %v11490_v44  ;;  %v12153_v26 = vld [vmem:[#allocation3 + $0xeb] sm:$0xff]  ;;  %v12155_v44 = vld [vmem:[#allocation3 + $0xfb] sm:$0xff] }
 0x7b6   : > { %18814 = vmatmul.mubr.msk.bf16.gmra.mrb[152].mxu1 %vm10250_vm3, %v10927_v63  ;;  %v11495_v63 = vld [vmem:[#allocation3 + $0xda] sm:$0xff] }
 0x7b7   : > { %18817 = vmatprep.mubr.msk.bf16.mxu1 %vm10250_vm3, %v10928_v40  ;;  %v11494_v40 = vld [vmem:[#allocation3 + $0xd2] sm:$0xff] }
 0x7b8   : > { %v11517_v54 = vpack.c.bf16 %v11495_v63, %v11494_v40  ;;  %v12159_v40 = vld [vmem:[#allocation3 + $0x11b] sm:$0xff] }
 0x7be   : > { %18818 = vmatmul.mubr.msk.bf16.gmra.mrb[156].mxu1 %vm10250_vm3, %v10929_v1  ;;  %v11499_v1 = vld [vmem:[#allocation3 + $0xfa] sm:$0xff] }
 0x7bf   : > { %18821 = vmatprep.mubr.msk.bf16.mxu1 %vm10250_vm3, %v10930_v51  ;;  %v11498_v51 = vld [vmem:[#allocation3 + $0xf2] sm:$0xff] }
 0x7c0   : > { %v11519_v55 = vpack.c.bf16 %v11499_v1, %v11498_v51  ;;  %v12161_v51 = vld [vmem:[#allocation3 + $0x12b] sm:$0xff] }
 0x7c6   : > { %18822 = vmatmul.mubr.msk.bf16.gmra.mrb[160].mxu1 %vm10250_vm3, %v10931_v4  ;;  %v11503_v4 = vld [vmem:[#allocation3 + $0x11a] sm:$0xff] }
 0x7c7   : > { %18825 = vmatprep.mubr.msk.bf16.mxu1 %vm10250_vm3, %v10932_v34  ;;  %v11521_v34 = vpack.c.bf16 %v11503_v4, %v11502_v15  ;;  %v12458_v15 = vld [vmem:[#allocation3 + $0x2c] sm:$0xff] }
 0x7ce   : > { %18826 = vmatmul.mubr.msk.bf16.gmra.mrb[164].mxu1 %vm10250_vm3, %v10933_v60  ;;  %v12127_v60 = vld [vmem:[#allocation3 + $0x1b] sm:$0xff] }
 0x7cf   : > { %18829 = vmatprep.mubr.msk.bf16.mxu1 %vm10250_vm3, %v10934_v27  ;;  %v12126_v27 = vld [vmem:[#allocation3 + $0x13] sm:$0xff] }
 0x7d0   : > { %v12162_v31 = vpack.c.bf16 %v12127_v60, %v12126_v27  ;;  %v23588_v60 = vld [vmem:[%s24221_s3 + $0x38] sm:$0xff]   ;;  %v12462_v27 = vld [vmem:[#allocation3 + $0x4c] sm:$0xff] }
 0x7d6   : > { %18830 = vmatmul.mubr.msk.bf16.gmra.mrb[168].mxu1 %vm10250_vm3, %v10935_v30  ;;  %v12130_v30 = vld [vmem:[#allocation3 + $0x33] sm:$0xff] }
 0x7d7   : > { %18835 = vmatprep.mubr.msk.bf16.mxu1 %vm10250_vm3, %v11504_v33  ;;  %v12163_v33 = vpack.c.bf16 %v12129_v17, %v12128_v5  ;;  %v12164_v14 = vpack.c.bf16 %v12131_v21, %v12130_v30  ;;  %v12461_v17 = vld [vmem:[#allocation3 + $0x44] sm:$0xff]  ;;  %v12463_v5 = vld [vmem:[#allocation3 + $0x54] sm:$0xff]  ;;  %v12466_v30 = vld [vmem:[#allocation3 + $0x6c] sm:$0xff] }
 0x7d8   : > { %v12494_v21 = vpack.c.bf16 %v12462_v27, %v12461_v17  ;;  %v13124_v27 = vld [vmem:[#allocation3 + $0x7d] sm:$0xff]  ;;  %v13123_v17 = vld [vmem:[#allocation3 + $0x75] sm:$0xff] }
 0x7de   : > { %18836 = vmatmul.mubr.msk.bf16.vlgmr.msra.gmra.mrb[136].mxu1 %vm10250_vm3, %v23504_v35 }
 0x7df   : > { %18839 = vmatprep.mubr.msk.bf16.mxu1 %vm10250_vm3, %v23511_v7  ;;  %18872 = vmatpush3.bf16.msra.mxu1 %v23482_v2  ;;  %v11483_v2 = vld [vmem:[#allocation3 + $0x7a] sm:$0xff] }
 0x7e0   : > { %18909 = vmatprep.subr.bf16.mxu1 %v23509_v50  ;;  %v11511_v37 = vpack.c.bf16 %v11483_v2, %v11482_v52  ;;  %v12147_v52 = vld [vmem:[#allocation3 + $0xbb] sm:$0xff] }
 0x7e6   : > { %18840 = vmatmul.mubr.msk.bf16.gmra.mrb[140].mxu1 %vm10250_vm3, %v11507_v38 }
 0x7e7   : > { %18843 = vmatprep.mubr.msk.bf16.mxu1 %vm10250_vm3, %v11508_v8 }
 0x7ee   : > { %18844 = vmatmul.mubr.msk.bf16.gmra.mrb[144].mxu1 %vm10250_vm3, %v11509_v36 }
 0x7ef   : > { %18847 = vmatprep.mubr.msk.bf16.mxu1 %vm10250_vm3, %v11510_v20 }
 0x7f6   : > { %18848 = vmatmul.mubr.msk.bf16.gmra.mrb[148].mxu1 %vm10250_vm3, %v11511_v37 }
 0x7f7   : > { %18851 = vmatprep.mubr.msk.bf16.mxu1 %vm10250_vm3, %v11512_v48 }
 0x7fe   : > { %18852 = vmatmul.mubr.msk.bf16.gmra.mrb[152].mxu1 %vm10250_vm3, %v11513_v16 }
 0x7ff   : > { %18855 = vmatprep.mubr.msk.bf16.mxu1 %vm10250_vm3, %v11514_v57 }
 0x806   : > { %18856 = vmatmul.mubr.msk.bf16.gmra.mrb[156].mxu1 %vm10250_vm3, %v11515_v29 }
 0x807   : > { %18859 = vmatprep.mubr.msk.bf16.mxu1 %vm10250_vm3, %v11516_v25 }
 0x80e   : > { %18860 = vmatmul.mubr.msk.bf16.gmra.mrb[160].mxu1 %vm10250_vm3, %v11517_v54 }
 0x80f   : > { %18863 = vmatprep.mubr.msk.bf16.mxu1 %vm10250_vm3, %v11518_v28 }
 0x816   : > { %18864 = vmatmul.mubr.msk.bf16.gmra.mrb[164].mxu1 %vm10250_vm3, %v11519_v55 }
 0x817   : > { %18867 = vmatprep.mubr.msk.bf16.mxu1 %vm10250_vm3, %v11520_v0 }
 0x81e   : > { %18868 = vmatmul.mubr.msk.bf16.gmra.mrb[168].mxu1 %vm10250_vm3, %v11521_v34 }
 0x81f   : > { %18873 = vmatprep.mubr.msk.bf16.mxu1 %vm10250_vm3, %v23504_v35  ;;  %v12135_v35 = vld [vmem:[#allocation3 + $0x5b] sm:$0xff] }
 0x826   : > { %18874 = vmatmul.mubr.msk.bf16.vlgmr.msra.gmra.mrb[136].mxu1 %vm10250_vm3, %v23511_v7  ;;  %v12134_v7 = vld [vmem:[#allocation3 + $0x53] sm:$0xff] }
 0x827   : > { %18877 = vmatprep.mubr.msk.bf16.mxu1 %vm10250_vm3, %v11507_v38  ;;  %18910 = vmatpush3.bf16.msra.mxu1 %v23509_v50  ;;  %v12165_v50 = vpack.c.bf16 %v12133_v19, %v12132_v56  ;;  %v12166_v12 = vpack.c.bf16 %v12135_v35, %v12134_v7  ;;  %v12136_v38 = vld [vmem:[#allocation3 + $0x63] sm:$0xff]  ;;  %v12467_v56 = vld [vmem:[#allocation3 + $0x74] sm:$0xff] }
 0x828   : > { %18947 = vmatprep.subr.bf16.mxu1 %v20555_v3  ;;  %v12167_v18 = vpack.c.bf16 %v12137_v62, %v12136_v38  ;;  %v12465_v19 = vld [vmem:[#allocation3 + $0x64] sm:$0xff]  ;;  %v12472_v7 = vld [vmem:[#allocation3 + $0x9c] sm:$0xff] }
 0x829   : > { %v12496_v35 = vpack.c.bf16 %v12466_v30, %v12465_v19  ;;  %v13128_v30 = vld [vmem:[#allocation3 + $0x9d] sm:$0xff]  ;;  %v13130_v19 = vld [vmem:[#allocation3 + $0xad] sm:$0xff] }
 0x82e   : > { %18878 = vmatmul.mubr.msk.bf16.gmra.mrb[140].mxu1 %vm10250_vm3, %v11508_v8  ;;  %v12138_v8 = vld [vmem:[#allocation3 + $0x73] sm:$0xff] }
 0x82f   : > { %18881 = vmatprep.mubr.msk.bf16.mxu1 %vm10250_vm3, %v11509_v36  ;;  %v12168_v24 = vpack.c.bf16 %v12139_v22, %v12138_v8  ;;  %v12143_v36 = vld [vmem:[#allocation3 + $0x9b] sm:$0xff]  ;;  %v12474_v8 = vld [vmem:[#allocation3 + $0xac] sm:$0xff] }
 0x830   : > { %v12170_v2 = vpack.c.bf16 %v12143_v36, %v12142_v47  ;;  %v12471_v22 = vld [vmem:[#allocation3 + $0x94] sm:$0xff] }
 0x831   : > { %v12499_v38 = vpack.c.bf16 %v12472_v7, %v12471_v22  ;;  %v12475_v47 = vld [vmem:[#allocation3 + $0xb4] sm:$0xff]  ;;  %v13133_v22 = vld [vmem:[#allocation3 + $0xc5] sm:$0xff] }
 0x832   : > { %v13134_v7 = vld [vmem:[#allocation3 + $0xcd] sm:$0xff] }
 0x836   : > { %18882 = vmatmul.mubr.msk.bf16.gmra.mrb[144].mxu1 %vm10250_vm3, %v11510_v20  ;;  %v12169_v20 = vpack.c.bf16 %v12141_v9, %v12140_v43  ;;  %v12478_v43 = vld [vmem:[#allocation3 + $0xcc] sm:$0xff] }
 0x837   : > { %18885 = vmatprep.mubr.msk.bf16.mxu1 %vm10250_vm3, %v11511_v37  ;;  %v12144_v37 = vld [vmem:[#allocation3 + $0xa3] sm:$0xff] }
 0x838   : > { %v12171_v59 = vpack.c.bf16 %v12145_v32, %v12144_v37 }
 0x83e   : > { %18886 = vmatmul.mubr.msk.bf16.gmra.mrb[148].mxu1 %vm10250_vm3, %v11512_v48  ;;  %v12146_v48 = vld [vmem:[#allocation3 + $0xb3] sm:$0xff] }
 0x83f   : > { %18889 = vmatprep.mubr.msk.bf16.mxu1 %vm10250_vm3, %v11513_v16  ;;  %v12172_v10 = vpack.c.bf16 %v12147_v52, %v12146_v48  ;;  %v12148_v16 = vld [vmem:[#allocation3 + $0xc3] sm:$0xff]  ;;  %v12479_v52 = vld [vmem:[#allocation3 + $0xd4] sm:$0xff] }
 0x840   : > { %v12173_v42 = vpack.c.bf16 %v12149_v41, %v12148_v16  ;;  %v12484_v48 = vld [vmem:[#allocation3 + $0xfc] sm:$0xff] }
 0x846   : > { %18890 = vmatmul.mubr.msk.bf16.gmra.mrb[152].mxu1 %vm10250_vm3, %v11514_v57  ;;  %v12150_v57 = vld [vmem:[#allocation3 + $0xd3] sm:$0xff] }
 0x847   : > { %18893 = vmatprep.mubr.msk.bf16.mxu1 %vm10250_vm3, %v11515_v29  ;;  %v12174_v53 = vpack.c.bf16 %v12151_v39, %v12150_v57  ;;  %v12152_v29 = vld [vmem:[#allocation3 + $0xe3] sm:$0xff]  ;;  %v12483_v39 = vld [vmem:[#allocation3 + $0xf4] sm:$0xff] }
 0x848   : > { %v12175_v49 = vpack.c.bf16 %v12153_v26, %v12152_v29  ;;  %v12505_v16 = vpack.c.bf16 %v12484_v48, %v12483_v39  ;;  %v12488_v57 = vld [vmem:[#allocation3 + $0x11c] sm:$0xff]  ;;  %v13145_v48 = vld [vmem:[#allocation3 + $0x125] sm:$0xff] }
 0x84e   : > { %18894 = vmatmul.mubr.msk.bf16.gmra.mrb[156].mxu1 %vm10250_vm3, %v11516_v25  ;;  %v12154_v25 = vld [vmem:[#allocation3 + $0xf3] sm:$0xff] }
 0x84f   : > { %18897 = vmatprep.mubr.msk.bf16.mxu1 %vm10250_vm3, %v11517_v54  ;;  %v12176_v63 = vpack.c.bf16 %v12155_v44, %v12154_v25  ;;  %v12156_v54 = vld [vmem:[#allocation3 + $0x103] sm:$0xff]  ;;  %v12487_v44 = vld [vmem:[#allocation3 + $0x114] sm:$0xff]  ;;  %v12490_v25 = vld [vmem:[#allocation3 + $0x12c] sm:$0xff] }
 0x850   : > { %v12177_v58 = vpack.c.bf16 %v12157_v46, %v12156_v54  ;;  %v12507_v29 = vpack.c.bf16 %v12488_v57, %v12487_v44  ;;  %v20558_v46 = vld [vmem:[%s24221_s3 + $0x40] sm:$0xff]   ;;  %v13443_v44 = vld [vmem:[#allocation3 + $0x2e] sm:$0xff] }
 0x851   : > { %v12819_v54 = vld [vmem:[#allocation3 + $0x13c] sm:$0xff] }
 0x852   : > { %v13148_v57 = vld [vmem:[#allocation3 + $0x13d] sm:$0xff] }
 0x856   : > { %18898 = vmatmul.mubr.msk.bf16.gmra.mrb[160].mxu1 %vm10250_vm3, %v11518_v28  ;;  %v12158_v28 = vld [vmem:[#allocation3 + $0x113] sm:$0xff] }
 0x857   : > { %18901 = vmatprep.mubr.msk.bf16.mxu1 %vm10250_vm3, %v11519_v55  ;;  %v12178_v1 = vpack.c.bf16 %v12159_v40, %v12158_v28  ;;  %v12455_v55 = vld [vmem:[#allocation3 + $0x14] sm:$0xff] }
 0x858   : > { %v12491_v4 = vpack.c.bf16 %v12456_v45, %v12455_v55  ;;  %v12818_v40 = vld [vmem:[#allocation3 + $0x134] sm:$0xff] }
 0x859   : > { %v13114_v28 = vld [vmem:[#allocation3 + $0x2d] sm:$0xff]  ;;  %v13115_v45 = vld [vmem:[#allocation3 + $0x35] sm:$0xff] }
 0x85a   : > { %v13118_v55 = vld [vmem:[#allocation3 + $0x4d] sm:$0xff] }
 0x85e   : > { %18902 = vmatmul.mubr.msk.bf16.gmra.mrb[164].mxu1 %vm10250_vm3, %v11520_v0  ;;  %v12179_v0 = vpack.c.bf16 %v12161_v51, %v12160_v61  ;;  %v13116_v51 = vld [vmem:[#allocation3 + $0x3d] sm:$0xff] }
 0x85f   : > { %18905 = vmatprep.mubr.msk.bf16.mxu1 %vm10250_vm3, %v11521_v34  ;;  %v12460_v34 = vld [vmem:[#allocation3 + $0x3c] sm:$0xff] }
 0x866   : > { %18906 = vmatmul.mubr.msk.bf16.gmra.mrb[168].mxu1 %vm10250_vm3, %v11850_v11  ;;  %v23590_v11 = vpack.c.bf16 %v12460_v34, %v12459_v23  ;;  %v13120_v34 = vld [vmem:[#allocation3 + $0x5d] sm:$0xff] }
 0x867   : > { %18911 = vmatprep.mubr.msk.bf16.mxu1 %vm10250_vm3, %v12162_v31  ;;  %v12464_v31 = vld [vmem:[#allocation3 + $0x5c] sm:$0xff] }
 0x86e   : > { %18912 = vmatmul.mubr.msk.bf16.vlgmr.msra.gmra.mrb[136].mxu1 %vm10250_vm3, %v12163_v33  ;;  %v12495_v33 = vpack.c.bf16 %v12464_v31, %v12463_v5  ;;  %v13126_v31 = vld [vmem:[#allocation3 + $0x8d] sm:$0xff]  ;;  %v13125_v5 = vld [vmem:[#allocation3 + $0x85] sm:$0xff] }
 0x86f   : > { %18915 = vmatprep.mubr.msk.bf16.mxu1 %vm10250_vm3, %v12164_v14  ;;  %18948 = vmatpush3.bf16.msra.mxu1 %v20555_v3  ;;  %v12457_v3 = vld [vmem:[#allocation3 + $0x24] sm:$0xff]  ;;  %v12468_v14 = vld [vmem:[#allocation3 + $0x7c] sm:$0xff] }
 0x870   : > { %18985 = vmatprep.subr.bf16.mxu1 %v23562_v13  ;;  %v23583_v6 = vpack.c.bf16 %v12458_v15, %v12457_v3  ;;  %v13122_v3 = vld [vmem:[#allocation3 + $0x6d] sm:$0xff] }
 0x876   : > { %18916 = vmatmul.mubr.msk.bf16.gmra.mrb[140].mxu1 %vm10250_vm3, %v12165_v50  ;;  %v12497_v50 = vpack.c.bf16 %v12468_v14, %v12467_v56  ;;  %v13129_v14 = vld [vmem:[#allocation3 + $0xa5] sm:$0xff] }
 0x877   : > { %18919 = vmatprep.mubr.msk.bf16.mxu1 %vm10250_vm3, %v12166_v12  ;;  %v12469_v12 = vld [vmem:[#allocation3 + $0x84] sm:$0xff] }
 0x87e   : > { %18920 = vmatmul.mubr.msk.bf16.gmra.mrb[144].mxu1 %vm10250_vm3, %v12167_v18  ;;  %v12473_v18 = vld [vmem:[#allocation3 + $0xa4] sm:$0xff] }
 0x87f   : > { %18923 = vmatprep.mubr.msk.bf16.mxu1 %vm10250_vm3, %v12168_v24  ;;  %v12476_v24 = vld [vmem:[#allocation3 + $0xbc] sm:$0xff]  ;;  %v12500_v9 = vpack.c.bf16 %v12474_v8, %v12473_v18  ;;  %v13138_v8 = vld [vmem:[#allocation3 + $0xed] sm:$0xff] }
 0x880   : > { %v12501_v36 = vpack.c.bf16 %v12476_v24, %v12475_v47  ;;  %v13136_v18 = vld [vmem:[#allocation3 + $0xdd] sm:$0xff]  ;;  %v13135_v24 = vld [vmem:[#allocation3 + $0xd5] sm:$0xff]  ;;  %v13137_v47 = vld [vmem:[#allocation3 + $0xe5] sm:$0xff] }
 0x886   : > { %18924 = vmatmul.mubr.msk.bf16.gmra.mrb[148].mxu1 %vm10250_vm3, %v12169_v20  ;;  %v12480_v20 = vld [vmem:[#allocation3 + $0xdc] sm:$0xff] }
 0x887   : > { %18927 = vmatprep.mubr.msk.bf16.mxu1 %vm10250_vm3, %v12170_v2  ;;  %v12477_v2 = vld [vmem:[#allocation3 + $0xc4] sm:$0xff]  ;;  %v12503_v37 = vpack.c.bf16 %v12480_v20, %v12479_v52  ;;  %v13142_v20 = vld [vmem:[#allocation3 + $0x10d] sm:$0xff] }
 0x888   : > { %v12502_v32 = vpack.c.bf16 %v12478_v43, %v12477_v2  ;;  %v13140_v43 = vld [vmem:[#allocation3 + $0xfd] sm:$0xff]  ;;  %v13139_v2 = vld [vmem:[#allocation3 + $0xf5] sm:$0xff]  ;;  %v13141_v52 = vld [vmem:[#allocation3 + $0x105] sm:$0xff] }
 0x88e   : > { %18928 = vmatmul.mubr.msk.bf16.gmra.mrb[152].mxu1 %vm10250_vm3, %v12171_v59  ;;  %v12482_v59 = vld [vmem:[#allocation3 + $0xec] sm:$0xff] }
 0x88f   : > { %18931 = vmatprep.mubr.msk.bf16.mxu1 %vm10250_vm3, %v12172_v10  ;;  %v12481_v10 = vld [vmem:[#allocation3 + $0xe4] sm:$0xff] }
 0x890   : > { %v12504_v41 = vpack.c.bf16 %v12482_v59, %v12481_v10  ;;  %v13144_v59 = vld [vmem:[#allocation3 + $0x11d] sm:$0xff]  ;;  %v13146_v10 = vld [vmem:[#allocation3 + $0x12d] sm:$0xff] }
 0x896   : > { %18932 = vmatmul.mubr.msk.bf16.gmra.mrb[156].mxu1 %vm10250_vm3, %v12173_v42  ;;  %v12486_v42 = vld [vmem:[#allocation3 + $0x10c] sm:$0xff] }
 0x897   : > { %18935 = vmatprep.mubr.msk.bf16.mxu1 %vm10250_vm3, %v12174_v53  ;;  %v12485_v53 = vld [vmem:[#allocation3 + $0x104] sm:$0xff] }
 0x898   : > { %v12506_v26 = vpack.c.bf16 %v12486_v42, %v12485_v53  ;;  %v13147_v42 = vld [vmem:[#allocation3 + $0x135] sm:$0xff] }
 0x899   : > { %v13166_v53 = vpack.c.bf16 %v13148_v57, %v13147_v42 }
 0x89e   : > { %18936 = vmatmul.mubr.msk.bf16.gmra.mrb[160].mxu1 %vm10250_vm3, %v12175_v49  ;;  %v12489_v49 = vld [vmem:[#allocation3 + $0x124] sm:$0xff] }
 0x89f   : > { %18939 = vmatprep.mubr.msk.bf16.mxu1 %vm10250_vm3, %v12176_v63  ;;  %v12508_v63 = vpack.c.bf16 %v12490_v25, %v12489_v49  ;;  %v13445_v49 = vld [vmem:[#allocation3 + $0x3e] sm:$0xff]  ;;  %v13447_v25 = vld [vmem:[#allocation3 + $0x4e] sm:$0xff] }
 0x8a6   : > { %18940 = vmatmul.mubr.msk.bf16.gmra.mrb[164].mxu1 %vm10250_vm3, %v12177_v58  ;;  %v12837_v58 = vpack.c.bf16 %v12819_v54, %v12818_v40  ;;  %v13446_v40 = vld [vmem:[#allocation3 + $0x46] sm:$0xff] }
 0x8a7   : > { %18943 = vmatprep.mubr.msk.bf16.mxu1 %vm10250_vm3, %v12178_v1  ;;  %v13113_v1 = vld [vmem:[#allocation3 + $0x25] sm:$0xff]  ;;  %v13480_v54 = vpack.c.bf16 %v13447_v25, %v13446_v40 }
 0x8a8   : > { %v13149_v61 = vpack.c.bf16 %v13114_v28, %v13113_v1  ;;  %v13451_v28 = vld [vmem:[#allocation3 + $0x6e] sm:$0xff]  ;;  %v13448_v1 = vld [vmem:[#allocation3 + $0x56] sm:$0xff] }
 0x8ae   : > { %18944 = vmatmul.mubr.msk.bf16.gmra.mrb[168].mxu1 %vm10250_vm3, %v12179_v0  ;;  %v13150_v0 = vpack.c.bf16 %v13116_v51, %v13115_v45  ;;  %v13450_v51 = vld [vmem:[#allocation3 + $0x66] sm:$0xff]  ;;  %v13453_v45 = vld [vmem:[#allocation3 + $0x7e] sm:$0xff] }
 0x8af   : > { %18949 = vmatprep.mubr.msk.bf16.mxu1 %vm10250_vm3, %v12491_v4  ;;  %v13117_v4 = vld [vmem:[#allocation3 + $0x45] sm:$0xff] }
 0x8b0   : > { %v13151_v15 = vpack.c.bf16 %v13118_v55, %v13117_v4  ;;  %v13482_v55 = vpack.c.bf16 %v13451_v28, %v13450_v51  ;;  %v13452_v4 = vld [vmem:[#allocation3 + $0x76] sm:$0xff]  ;;  %v23693_v28 = vld [vmem:[%s24222_s4] ss:$0 sm:$0xff]  ;;  %v20562_v51 = vld [vmem:[%s24223_s5 + $0x8] sm:$0xff]  }
 0x8b6   : > { %18950 = vmatmul.mubr.msk.bf16.vlgmr.msra.gmra.mrb[136].mxu1 %vm10250_vm3, %v23583_v6 }
 0x8b7   : > { %18953 = vmatprep.mubr.msk.bf16.mxu1 %vm10250_vm3, %v23590_v11  ;;  %18986 = vmatpush3.bf16.msra.mxu1 %v23562_v13  ;;  %v12470_v13 = vld [vmem:[#allocation3 + $0x8c] sm:$0xff] }
 0x8b8   : > { %19023 = vmatprep.subr.bf16.mxu1 %v23588_v60  ;;  %v12498_v62 = vpack.c.bf16 %v12470_v13, %v12469_v12  ;;  %v13132_v13 = vld [vmem:[#allocation3 + $0xbd] sm:$0xff]  ;;  %v13131_v12 = vld [vmem:[#allocation3 + $0xb5] sm:$0xff] }
 0x8be   : > { %18954 = vmatmul.mubr.msk.bf16.gmra.mrb[140].mxu1 %vm10250_vm3, %v12494_v21 }
 0x8bf   : > { %18957 = vmatprep.mubr.msk.bf16.mxu1 %vm10250_vm3, %v12495_v33 }
 0x8c6   : > { %18958 = vmatmul.mubr.msk.bf16.gmra.mrb[144].mxu1 %vm10250_vm3, %v12496_v35 }
 0x8c7   : > { %18961 = vmatprep.mubr.msk.bf16.mxu1 %vm10250_vm3, %v12497_v50 }
 0x8ce   : > { %18962 = vmatmul.mubr.msk.bf16.gmra.mrb[148].mxu1 %vm10250_vm3, %v12498_v62 }
 0x8cf   : > { %18965 = vmatprep.mubr.msk.bf16.mxu1 %vm10250_vm3, %v12499_v38 }
 0x8d6   : > { %18966 = vmatmul.mubr.msk.bf16.gmra.mrb[152].mxu1 %vm10250_vm3, %v12500_v9 }
 0x8d7   : > { %18969 = vmatprep.mubr.msk.bf16.mxu1 %vm10250_vm3, %v12501_v36 }
 0x8de   : > { %18970 = vmatmul.mubr.msk.bf16.gmra.mrb[156].mxu1 %vm10250_vm3, %v12502_v32 }
 0x8df   : > { %18973 = vmatprep.mubr.msk.bf16.mxu1 %vm10250_vm3, %v12503_v37 }
 0x8e6   : > { %18974 = vmatmul.mubr.msk.bf16.gmra.mrb[160].mxu1 %vm10250_vm3, %v12504_v41 }
 0x8e7   : > { %18977 = vmatprep.mubr.msk.bf16.mxu1 %vm10250_vm3, %v12505_v16 }
 0x8ee   : > { %18978 = vmatmul.mubr.msk.bf16.gmra.mrb[164].mxu1 %vm10250_vm3, %v12506_v26 }
 0x8ef   : > { %18981 = vmatprep.mubr.msk.bf16.mxu1 %vm10250_vm3, %v12507_v29 }
 0x8f6   : > { %18982 = vmatmul.mubr.msk.bf16.gmra.mrb[168].mxu1 %vm10250_vm3, %v12508_v63 }
 0x8f7   : > { %18987 = vmatprep.mubr.msk.bf16.mxu1 %vm10250_vm3, %v23583_v6  ;;  %v13119_v6 = vld [vmem:[#allocation3 + $0x55] sm:$0xff] }
 0x8f8   : > { %v13152_v23 = vpack.c.bf16 %v13120_v34, %v13119_v6  ;;  %v13454_v34 = vld [vmem:[#allocation3 + $0x86] sm:$0xff]  ;;  %v13457_v6 = vld [vmem:[#allocation3 + $0x9e] sm:$0xff] }
 0x8fe   : > { %18988 = vmatmul.mubr.msk.bf16.vlgmr.msra.gmra.mrb[136].mxu1 %vm10250_vm3, %v23590_v11 }
 0x8ff   : > { %18991 = vmatprep.mubr.msk.bf16.mxu1 %vm10250_vm3, %v12494_v21  ;;  %19024 = vmatpush3.bf16.msra.mxu1 %v23588_v60  ;;  %v13121_v60 = vld [vmem:[#allocation3 + $0x65] sm:$0xff]  ;;  %v13154_v21 = vpack.c.bf16 %v13124_v27, %v13123_v17  ;;  %v13460_v17 = vld [vmem:[#allocation3 + $0xb6] sm:$0xff] }
 0x900   : > { %19061 = vmatprep.subr.bf16.mxu1 %v20558_v46  ;;  %v13153_v11 = vpack.c.bf16 %v13122_v3, %v13121_v60  ;;  %v13456_v60 = vld [vmem:[#allocation3 + $0x96] sm:$0xff]  ;;  %v13458_v27 = vld [vmem:[#allocation3 + $0xa6] sm:$0xff] }
 0x906   : > { %18992 = vmatmul.mubr.msk.bf16.gmra.mrb[140].mxu1 %vm10250_vm3, %v12495_v33  ;;  %v13155_v33 = vpack.c.bf16 %v13126_v31, %v13125_v5  ;;  %v13463_v5 = vld [vmem:[#allocation3 + $0xce] sm:$0xff] }
 0x907   : > { %18995 = vmatprep.mubr.msk.bf16.mxu1 %vm10250_vm3, %v12496_v35  ;;  %v13127_v35 = vld [vmem:[#allocation3 + $0x95] sm:$0xff] }
 0x908   : > { %v13156_v56 = vpack.c.bf16 %v13128_v30, %v13127_v35  ;;  %v13462_v30 = vld [vmem:[#allocation3 + $0xc6] sm:$0xff]  ;;  %v13467_v35 = vld [vmem:[#allocation3 + $0xee] sm:$0xff] }
 0x90e   : > { %18996 = vmatmul.mubr.msk.bf16.gmra.mrb[144].mxu1 %vm10250_vm3, %v12497_v50  ;;  %v13157_v50 = vpack.c.bf16 %v13130_v19, %v13129_v14  ;;  %v13488_v14 = vpack.c.bf16 %v13463_v5, %v13462_v30  ;;  %v13465_v19 = vld [vmem:[#allocation3 + $0xde] sm:$0xff]  ;;  %v20564_v5 = vld [vmem:[%s24223_s5 + $0x10] sm:$0xff]  }
 0x90f   : > { %18999 = vmatprep.mubr.msk.bf16.mxu1 %vm10250_vm3, %v12498_v62  ;;  %v13158_v62 = vpack.c.bf16 %v13132_v13, %v13131_v12  ;;  %v13466_v13 = vld [vmem:[#allocation3 + $0xe6] sm:$0xff]  ;;  %v13469_v12 = vld [vmem:[#allocation3 + $0xfe] sm:$0xff] }
 0x916   : > { %19000 = vmatmul.mubr.msk.bf16.gmra.mrb[148].mxu1 %vm10250_vm3, %v12499_v38  ;;  %v13159_v38 = vpack.c.bf16 %v13134_v7, %v13133_v22  ;;  %v13490_v7 = vpack.c.bf16 %v13467_v35, %v13466_v13  ;;  %v13468_v22 = vld [vmem:[#allocation3 + $0xf6] sm:$0xff] }
 0x917   : > { %19003 = vmatprep.mubr.msk.bf16.mxu1 %vm10250_vm3, %v12500_v9  ;;  %v13160_v9 = vpack.c.bf16 %v13136_v18, %v13135_v24  ;;  %v13470_v18 = vld [vmem:[#allocation3 + $0x106] sm:$0xff]  ;;  %v13473_v24 = vld [vmem:[#allocation3 + $0x11e] sm:$0xff] }
 0x91e   : > { %19004 = vmatmul.mubr.msk.bf16.gmra.mrb[152].mxu1 %vm10250_vm3, %v12501_v36  ;;  %v13161_v36 = vpack.c.bf16 %v13138_v8, %v13137_v47  ;;  %v13475_v47 = vld [vmem:[#allocation3 + $0x12e] sm:$0xff] }
 0x91f   : > { %19007 = vmatprep.mubr.msk.bf16.mxu1 %vm10250_vm3, %v12502_v32  ;;  %v13162_v32 = vpack.c.bf16 %v13140_v43, %v13139_v2  ;;  %v13476_v2 = vld [vmem:[#allocation3 + $0x136] sm:$0xff] }
 0x926   : > { %19008 = vmatmul.mubr.msk.bf16.gmra.mrb[156].mxu1 %vm10250_vm3, %v12503_v37  ;;  %v13163_v37 = vpack.c.bf16 %v13142_v20, %v13141_v52 }
 0x927   : > { %19011 = vmatprep.mubr.msk.bf16.mxu1 %vm10250_vm3, %v12504_v41  ;;  %v13143_v41 = vld [vmem:[#allocation3 + $0x115] sm:$0xff] }
 0x928   : > { %v13164_v39 = vpack.c.bf16 %v13144_v59, %v13143_v41  ;;  %v20560_v59 = vld [vmem:[%s24223_s5] sm:$0xff]  }
 0x92e   : > { %19012 = vmatmul.mubr.msk.bf16.gmra.mrb[160].mxu1 %vm10250_vm3, %v12505_v16  ;;  %v13165_v16 = vpack.c.bf16 %v13146_v10, %v13145_v48 }
 0x92f   : > { %19015 = vmatprep.mubr.msk.bf16.mxu1 %vm10250_vm3, %v12506_v26  ;;  %v13442_v26 = vld [vmem:[#allocation3 + $0x26] sm:$0xff] }
 0x936   : > { %19016 = vmatmul.mubr.msk.bf16.gmra.mrb[164].mxu1 %vm10250_vm3, %v12507_v29  ;;  %v13478_v29 = vpack.c.bf16 %v13443_v44, %v13442_v26 }
 0x937   : > { %19019 = vmatprep.mubr.msk.bf16.mxu1 %vm10250_vm3, %v12508_v63  ;;  %v13444_v63 = vld [vmem:[#allocation3 + $0x36] sm:$0xff] }
 0x93e   : > { %19020 = vmatmul.mubr.msk.bf16.gmra.mrb[168].mxu1 %vm10250_vm3, %v12837_v58  ;;  %v13449_v58 = vld [vmem:[#allocation3 + $0x5e] sm:$0xff] }
 0x93f   : > { %19025 = vmatprep.mubr.msk.bf16.mxu1 %vm10250_vm3, %v13149_v61  ;;  %v13481_v61 = vpack.c.bf16 %v13449_v58, %v13448_v1 }
 0x946   : > { %19026 = vmatmul.mubr.msk.bf16.vlgmr.msra.gmra.mrb[136].mxu1 %vm10250_vm3, %v13150_v0  ;;  %v13455_v0 = vld [vmem:[#allocation3 + $0x8e] sm:$0xff] }
 0x947   : > { %19029 = vmatprep.mubr.msk.bf16.mxu1 %vm10250_vm3, %v13151_v15  ;;  %19062 = vmatpush3.bf16.msra.mxu1 %v20558_v46  ;;  %v13479_v46 = vpack.c.bf16 %v13445_v49, %v13444_v63  ;;  %v13483_v15 = vpack.c.bf16 %v13453_v45, %v13452_v4  ;;  %v13484_v3 = vpack.c.bf16 %v13455_v0, %v13454_v34 }
 0x94e   : > { %19030 = vmatmul.mubr.msk.bf16.gmra.mrb[140].mxu1 %vm10250_vm3, %v13152_v23  ;;  %v13459_v23 = vld [vmem:[#allocation3 + $0xae] sm:$0xff] }
 0x94f   : > { %19033 = vmatprep.mubr.msk.bf16.mxu1 %vm10250_vm3, %v13153_v11  ;;  %v13485_v11 = vpack.c.bf16 %v13457_v6, %v13456_v60  ;;  %v13486_v31 = vpack.c.bf16 %v13459_v23, %v13458_v27 }
 0x956   : > { %19034 = vmatmul.mubr.msk.bf16.gmra.mrb[144].mxu1 %vm10250_vm3, %v13154_v21  ;;  %v13461_v21 = vld [vmem:[#allocation3 + $0xbe] sm:$0xff] }
 0x957   : > { %19037 = vmatprep.mubr.msk.bf16.mxu1 %vm10250_vm3, %v13155_v33  ;;  %v13487_v33 = vpack.c.bf16 %v13461_v21, %v13460_v17 }
 0x95e   : > { %19038 = vmatmul.mubr.msk.bf16.gmra.mrb[148].mxu1 %vm10250_vm3, %v13156_v56  ;;  %v13464_v56 = vld [vmem:[#allocation3 + $0xd6] sm:$0xff] }
 0x95f   : > { %19041 = vmatprep.mubr.msk.bf16.mxu1 %vm10250_vm3, %v13157_v50  ;;  %v13489_v50 = vpack.c.bf16 %v13465_v19, %v13464_v56 }
 0x966   : > { %19042 = vmatmul.mubr.msk.bf16.gmra.mrb[152].mxu1 %vm10250_vm3, %v13158_v62  ;;  %v13471_v62 = vld [vmem:[#allocation3 + $0x10e] sm:$0xff] }
 0x967   : > { %19045 = vmatprep.mubr.msk.bf16.mxu1 %vm10250_vm3, %v13159_v38  ;;  %v13491_v38 = vpack.c.bf16 %v13469_v12, %v13468_v22  ;;  %v13492_v8 = vpack.c.bf16 %v13471_v62, %v13470_v18 }
 0x96e   : > { %19046 = vmatmul.mubr.msk.bf16.gmra.mrb[156].mxu1 %vm10250_vm3, %v13160_v9  ;;  %v13474_v9 = vld [vmem:[#allocation3 + $0x126] sm:$0xff] }
 0x96f   : > { %19049 = vmatprep.mubr.msk.bf16.mxu1 %vm10250_vm3, %v13161_v36  ;;  %v13472_v36 = vld [vmem:[#allocation3 + $0x116] sm:$0xff]  ;;  %v13494_v20 = vpack.c.bf16 %v13475_v47, %v13474_v9 }
 0x970   : > { %v13493_v43 = vpack.c.bf16 %v13473_v24, %v13472_v36 }
 0x976   : > { %19050 = vmatmul.mubr.msk.bf16.gmra.mrb[160].mxu1 %vm10250_vm3, %v13162_v32  ;;  %v13477_v32 = vld [vmem:[#allocation3 + $0x13e] sm:$0xff] }
 0x977   : > { %19053 = vmatprep.mubr.msk.bf16.mxu1 %vm10250_vm3, %v13163_v37  ;;  %v13495_v52 = vpack.c.bf16 %v13477_v32, %v13476_v2  ;;  %v20559_v37 = vld [vmem:[%s24223_s5 + $0x40] sm:$0xff]  }
 0x978   : > { %17330 = vmatprep.subr.bf16.mxu1 %v20559_v37 }
 0x97e   : > { %19054 = vmatmul.mubr.msk.bf16.gmra.mrb[164].mxu1 %vm10250_vm3, %v13164_v39 }
 0x97f   : > { %19057 = vmatprep.mubr.msk.bf16.mxu1 %vm10250_vm3, %v13165_v16 }
 0x986   : > { %19058 = vmatmul.mubr.msk.bf16.gmra.mrb[168].mxu1 %vm10250_vm3, %v13166_v53 }
 0x987   : > { %19063 = vmatprep.mubr.msk.bf16.mxu1 %vm10250_vm3, %v13478_v29 }
 0x98e   : > { %19064 = vmatmul.mubr.msk.bf16.vlgmr.msra.gmra.mrb[136].mxu1 %vm10250_vm3, %v13479_v46 }
 0x98f   : > { %19067 = vmatprep.mubr.msk.bf16.mxu1 %vm10250_vm3, %v13480_v54  ;;  %17331 = vmatpush3.bf16.msra.mxu1 %v20560_v59 }
 0x996   : > { %19068 = vmatmul.mubr.msk.bf16.gmra.mrb[140].mxu1 %vm10250_vm3, %v13481_v61  ;;  %v20561_v61 = vld [vmem:[%s24223_s5 + $0x48] sm:$0xff]  }
 0x997   : > { %19071 = vmatprep.mubr.msk.bf16.mxu1 %vm10250_vm3, %v13482_v55  ;;  %v20563_v55 = vld [vmem:[%s24223_s5 + $0x50] sm:$0xff]   ;;  %17332 = vmatprep.subr.bf16.mxu1 %v20561_v61 }
 0x998   : > { %17333 = vmatpush3.bf16.msra.mxu1 %v20562_v51 }
 0x999   : > { %17334 = vmatprep.subr.bf16.mxu1 %v20563_v55 }
 0x99c   : > { %17335 = vmatpush3.bf16.msra.mxu1 %v20564_v5 }
 0x99e   : > { %19072 = vmatmul.mubr.msk.bf16.gmra.mrb[144].mxu1 %vm10250_vm3, %v13483_v15 }
 0x99f   : > { %19075 = vmatprep.mubr.msk.bf16.mxu1 %vm10250_vm3, %v13484_v3 }
 0x9a6   : > { %19076 = vmatmul.mubr.msk.bf16.gmra.mrb[148].mxu1 %vm10250_vm3, %v13485_v11 }
 0x9a7   : > { %19079 = vmatprep.mubr.msk.bf16.mxu1 %vm10250_vm3, %v13486_v31 }
 0x9ae   : > { %19080 = vmatmul.mubr.msk.bf16.gmra.mrb[152].mxu1 %vm10250_vm3, %v13487_v33  ;;  %v20565_v33 = vld [vmem:[%s24223_s5 + $0x58] sm:$0xff]  }
 0x9af   : > { %19083 = vmatprep.mubr.msk.bf16.mxu1 %vm10250_vm3, %v13488_v14  ;;  %17336 = vmatprep.subr.bf16.mxu1 %v20565_v33 }
 0x9b6   : > { %19084 = vmatmul.mubr.msk.bf16.gmra.mrb[156].mxu1 %vm10250_vm3, %v13489_v50  ;;  %v20566_v50 = vld [vmem:[%s24223_s5 + $0x18] sm:$0xff]  }
 0x9b7   : > { %19087 = vmatprep.mubr.msk.bf16.mxu1 %vm10250_vm3, %v13490_v7  ;;  %v20567_v7 = vld [vmem:[%s24223_s5 + $0x60] sm:$0xff]   ;;  %17337 = vmatpush3.bf16.msra.mxu1 %v20566_v50 }
 0x9b8   : > { %17338 = vmatprep.subr.bf16.mxu1 %v20567_v7 }
 0x9be   : > { %19088 = vmatmul.mubr.msk.bf16.gmra.mrb[160].mxu1 %vm10250_vm3, %v13491_v38 }
 0x9bf   : > { %19091 = vmatprep.mubr.msk.bf16.mxu1 %vm10250_vm3, %v13492_v8  ;;  %v20568_v8 = vld [vmem:[%s24223_s5 + $0x20] sm:$0xff]  }
 0x9c0   : > { %17339 = vmatpush3.bf16.msra.mxu1 %v20568_v8 }
 0x9c6   : > { %19092 = vmatmul.mubr.msk.bf16.gmra.mrb[164].mxu1 %vm10250_vm3, %v13493_v43 }
 0x9c7   : > { %19095 = vmatprep.mubr.msk.bf16.mxu1 %vm10250_vm3, %v13494_v20 }
 0x9ce   : > { %19096 = vmatmul.mubr.msk.bf16.gmra.mrb[168].mxu1 %vm10250_vm3, %v13495_v52 }
 0xa61   : > { %v19065_v48 = vpop.f32.mrb[136].mxu1 }
 0xa62   : > { %13774 = vst.msk [vmem:[#allocation4 + $0x10] sm:$0xff] %vm13771_vm4, %v19065_v48  ;;  %v13592_v10 = vpop.f32.mrb[137].mxu1 }
 0xa63   : > { %13772 = vst.msk [vmem:[#allocation4] sm:$0xff] %vm13771_vm4, %v13592_v10  ;;  %v19066_v41 = vpop.f32.mrb[138].mxu1 }
 0xa64   : > { %13775 = vst.msk [vmem:[#allocation4 + $0x18] sm:$0xff] %vm13771_vm4, %v19066_v41  ;;  %v13595_v39 = vpop.f32.mrb[139].mxu1 }
 0xa65   : > { %13773 = vst.msk [vmem:[#allocation4 + $0x8] sm:$0xff] %vm13771_vm4, %v13595_v39 }
 0xa69   : > { %v19069_v16 = vpop.f32.mrb[140].mxu1 }
 0xa6a   : > { %13778 = vst.msk [vmem:[#allocation4 + $0x30] sm:$0xff] %vm13771_vm4, %v19069_v16  ;;  %v13608_v42 = vpop.f32.mrb[141].mxu1 }
 0xa6b   : > { %13776 = vst.msk [vmem:[#allocation4 + $0x20] sm:$0xff] %vm13771_vm4, %v13608_v42  ;;  %v19070_v57 = vpop.f32.mrb[142].mxu1 }
 0xa6c   : > { %13779 = vst.msk [vmem:[#allocation4 + $0x38] sm:$0xff] %vm13771_vm4, %v19070_v57  ;;  %v13611_v53 = vpop.f32.mrb[143].mxu1  ;;  %v13809_v26 = vld [vmem:[#allocation4] ss:$2 sm:$0xff]  ;;  %v13811_v44 = vld [vmem:[#allocation4 + $0x1] ss:$2 sm:$0xff] }
 0xa6d   : > { %13777 = vst.msk [vmem:[#allocation4 + $0x28] sm:$0xff] %vm13771_vm4, %v13611_v53  ;;  %v13816_v40 = vmax.f32 %v13809_v26, %v13811_v44  ;;  %v20569_v44 = vld [vmem:[%s24223_s5 + $0x68] sm:$0xff]  }
 0xa6e   : > { %17340 = vmatprep.subr.bf16.mxu1 %v20569_v44 }
 0xa71   : > { %v19073_v29 = vpop.f32.mrb[144].mxu1 }
 0xa72   : > { %13782 = vst.msk [vmem:[#allocation4 + $0x50] sm:$0xff] %vm13771_vm4, %v19073_v29  ;;  %v13624_v49 = vpop.f32.mrb[145].mxu1  ;;  %v13813_v25 = vld [vmem:[#allocation4 + $0x12] ss:$2 sm:$0xff]  ;;  %v13815_v63 = vld [vmem:[#allocation4 + $0x13] ss:$2 sm:$0xff] }
 0xa73   : > { %13780 = vst.msk [vmem:[#allocation4 + $0x40] sm:$0xff] %vm13771_vm4, %v13624_v49  ;;  %v19074_v46 = vpop.f32.mrb[146].mxu1  ;;  %v13817_v54 = vmax.f32 %v13813_v25, %v13815_v63  ;;  %v20570_v29 = vld [vmem:[%s24223_s5 + $0x28] sm:$0xff]  }
 0xa74   : > { %13783 = vst.msk [vmem:[#allocation4 + $0x58] sm:$0xff] %vm13771_vm4, %v19074_v46  ;;  %v13627_v58 = vpop.f32.mrb[147].mxu1  ;;  %v13829_v0 = vld [vmem:[#allocation4 + $0x24] ss:$2 sm:$0xff]  ;;  %v13831_v4 = vld [vmem:[#allocation4 + $0x25] ss:$2 sm:$0xff]  ;;  %17341 = vmatpush3.bf16.msra.mxu1 %v20570_v29 }
 0xa75   : > { %13781 = vst.msk [vmem:[#allocation4 + $0x48] sm:$0xff] %vm13771_vm4, %v13627_v58  ;;  %v13818_v1 = vmax.f32 %v13816_v40, %v13817_v54  ;;  %v13836_v11 = vmax.f32 %v13829_v0, %v13831_v4 }
 0xa77   : > { %v13825_v45 = vadd.f32 %v23693_v28, %v13818_v1 }
 0xa79   : > { %v19077_v15 = vpop.f32.mrb[148].mxu1  ;;  %v13826_v34 = vmax.f32 %v13825_v45, 0.0 }
 0xa7a   : > { %13786 = vst.msk [vmem:[#allocation4 + $0x70] sm:$0xff] %vm13771_vm4, %v19077_v15  ;;  %v13640_v3 = vpop.f32.mrb[149].mxu1  ;;  %v13833_v6 = vld [vmem:[#allocation4 + $0x36] ss:$2 sm:$0xff]  ;;  %v13835_v23 = vld [vmem:[#allocation4 + $0x37] ss:$2 sm:$0xff] }
 0xa7b   : > { %13784 = vst.msk [vmem:[#allocation4 + $0x60] sm:$0xff] %vm13771_vm4, %v13640_v3  ;;  %v19078_v60 = vpop.f32.mrb[150].mxu1  ;;  %v13837_v27 = vmax.f32 %v13833_v6, %v13835_v23  ;;  %13827 = vst.msk [vmem:[#allocation5] sm:$0xff] %vm13771_vm4, %v13826_v34  ;;  %v20571_v23 = vld [vmem:[%s24223_s5 + $0x70] sm:$0xff]  }
 0xa7c   : > { %13787 = vst.msk [vmem:[#allocation4 + $0x78] sm:$0xff] %vm13771_vm4, %v19078_v60  ;;  %v13643_v31 = vpop.f32.mrb[151].mxu1  ;;  %v13848_v35 = vld [vmem:[#allocation4 + $0x48] ss:$2 sm:$0xff]  ;;  %v13850_v56 = vld [vmem:[#allocation4 + $0x49] ss:$2 sm:$0xff]  ;;  %17342 = vmatprep.subr.bf16.mxu1 %v20571_v23 }
 0xa7d   : > { %13785 = vst.msk [vmem:[#allocation4 + $0x68] sm:$0xff] %vm13771_vm4, %v13643_v31  ;;  %v13838_v17 = vmax.f32 %v13836_v11, %v13837_v27  ;;  %v13855_v38 = vmax.f32 %v13848_v35, %v13850_v56  ;;  %v20572_v60 = vld [vmem:[%s24223_s5 + $0x30] sm:$0xff]   ;;  %v20590_v23 = vld [vmem:[%s24223_s5 + $0xb8] sm:$0xff]  }
 0xa7e   : > { %17343 = vmatpush3.bf16.msra.mxu1 %v20572_v60 }
 0xa7f   : > { %v13839_v21 = vadd.f32 %v23693_v28, %v13838_v17 }
 0xa81   : > { %v19081_v30 = vpop.f32.mrb[152].mxu1  ;;  %v13840_v14 = vmax.f32 %v13839_v21, 0.0 }
 0xa82   : > { %13790 = vst.msk [vmem:[#allocation4 + $0x90] sm:$0xff] %vm13771_vm4, %v19081_v30  ;;  %v13656_v19 = vpop.f32.mrb[153].mxu1 }
 0xa83   : > { %13788 = vst.msk [vmem:[#allocation4 + $0x80] sm:$0xff] %vm13771_vm4, %v13656_v19  ;;  %13842 = vrot.lane.b32.xlu0 %v13840_v14, %s20762_s16  ;;  %v19082_v13 = vpop.f32.mrb[154].mxu1 }
 0xa84   : > { %13791 = vst.msk [vmem:[#allocation4 + $0x98] sm:$0xff] %vm13771_vm4, %v19082_v13  ;;  %v13659_v12 = vpop.f32.mrb[155].mxu1  ;;  %v13852_v62 = vld [vmem:[#allocation4 + $0x5a] ss:$2 sm:$0xff]  ;;  %v13854_v22 = vld [vmem:[#allocation4 + $0x5b] ss:$2 sm:$0xff] }
 0xa85   : > { %13789 = vst.msk [vmem:[#allocation4 + $0x88] sm:$0xff] %vm13771_vm4, %v13659_v12  ;;  %v13856_v18 = vmax.f32 %v13852_v62, %v13854_v22  ;;  %v13867_v25 = vld [vmem:[#allocation4 + $0x6c] ss:$2 sm:$0xff]  ;;  %v13869_v63 = vld [vmem:[#allocation4 + $0x6d] ss:$2 sm:$0xff] }
 0xa86   : > { %v13874_v34 = vmax.f32 %v13867_v25, %v13869_v63  ;;  %v20573_v62 = vld [vmem:[%s24223_s5 + $0x78] sm:$0xff]   ;;  %v20576_v63 = vld [vmem:[%s24223_s5 + $0x80] sm:$0xff]  }
 0xa87   : > { %v13857_v24 = vmax.f32 %v13855_v38, %v13856_v18  ;;  %v20574_v22 = vld [vmem:[%s24223_s5 + $0x38] sm:$0xff]   ;;  %17344 = vmatprep.subr.bf16.mxu1 %v20573_v62  ;;  %v20604_v62 = vld [vmem:[%s24223_s5 + $0x130] sm:$0xff]  }
 0xa88   : > { %17345 = vmatpush3.bf16.msra.mxu1 %v20574_v22  ;;  %v20605_v22 = vld [vmem:[%s24223_s5 + $0x178] sm:$0xff]  }
 0xa89   : > { %v19085_v9 = vpop.f32.mrb[156].mxu1  ;;  %v13858_v47 = vadd.f32 %v23693_v28, %v13857_v24 }
 0xa8a   : > { %13794 = vst.msk [vmem:[#allocation4 + $0xb0] sm:$0xff] %vm13771_vm4, %v19085_v9  ;;  %v13672_v36 = vpop.f32.mrb[157].mxu1 }
 0xa8b   : > { %13792 = vst.msk [vmem:[#allocation4 + $0xa0] sm:$0xff] %vm13771_vm4, %v13672_v36  ;;  %v19086_v43 = vpop.f32.mrb[158].mxu1  ;;  %v13859_v20 = vmax.f32 %v13858_v47, 0.0  ;;  %v13886_v37 = vld [vmem:[#allocation4 + $0x90] ss:$2 sm:$0xff] }
 0xa8c   : > { %13795 = vst.msk [vmem:[#allocation4 + $0xb8] sm:$0xff] %vm13771_vm4, %v19086_v43  ;;  %v13675_v2 = vpop.f32.mrb[159].mxu1  ;;  %v13888_v59 = vld [vmem:[#allocation4 + $0x91] ss:$2 sm:$0xff]  ;;  %v13871_v57 = vld [vmem:[#allocation4 + $0x7e] ss:$2 sm:$0xff] }
 0xa8d   : > { %13793 = vst.msk [vmem:[#allocation4 + $0xa8] sm:$0xff] %vm13771_vm4, %v13675_v2  ;;  %13861 = vrot.lane.b32.xlu1 %v13859_v20, %s20763_s29  ;;  %v13893_v16 = vmax.f32 %v13886_v37, %v13888_v59  ;;  %v13873_v26 = vld [vmem:[#allocation4 + $0x7f] ss:$2 sm:$0xff] }
 0xa8e   : > { %v13875_v61 = vmax.f32 %v13871_v57, %v13873_v26 }
 0xa90   : > { %v13876_v6 = vmax.f32 %v13874_v34, %v13875_v61  ;;  %v20581_v61 = vld [vmem:[%s24223_s5 + $0xd8] sm:$0xff]   ;;  %v20588_v34 = vld [vmem:[%s24223_s5 + $0xb0] sm:$0xff]  }
 0xa91   : > { %v19089_v32 = vpop.f32.mrb[160].mxu1 }
 0xa92   : > { %13798 = vst.msk [vmem:[#allocation4 + $0xd0] sm:$0xff] %vm13771_vm4, %v19089_v32  ;;  %v13688_v52 = vpop.f32.mrb[161].mxu1  ;;  %v13877_v30 = vadd.f32 %v23693_v28, %v13876_v6  ;;  %v20575_v32 = vld [vmem:[%s24223_s5 + $0xc0] sm:$0xff]  }
 0xa93   : > { %13796 = vst.msk [vmem:[#allocation4 + $0xc0] sm:$0xff] %vm13771_vm4, %v13688_v52  ;;  %v19090_v48 = vpop.f32.mrb[162].mxu1  ;;  %17352 = vmatprep.subr.bf16.mxu1 %v20575_v32  ;;  %v20611_v32 = vld [vmem:[%s24223_s5 + $0x1d0] sm:$0xff]  }
 0xa94   : > { %13799 = vst.msk [vmem:[#allocation4 + $0xd8] sm:$0xff] %vm13771_vm4, %v19090_v48  ;;  %v13691_v10 = vpop.f32.mrb[163].mxu1  ;;  %v13890_v41 = vld [vmem:[#allocation4 + $0xa2] ss:$2 sm:$0xff]  ;;  %v13892_v39 = vld [vmem:[#allocation4 + $0xa3] ss:$2 sm:$0xff] }
 0xa95   : > { %13797 = vst.msk [vmem:[#allocation4 + $0xc8] sm:$0xff] %vm13771_vm4, %v13691_v10  ;;  %v13894_v42 = vmax.f32 %v13890_v41, %v13892_v39  ;;  %v13878_v13 = vmax.f32 %v13877_v30, 0.0  ;;  %v20595_v30 = vld [vmem:[%s24223_s5 + $0x150] sm:$0xff]  }
 0xa97   : > { %v13895_v53 = vmax.f32 %v13893_v16, %v13894_v42 }
 0xa99   : > { %v19093_v49 = vpop.f32.mrb[164].mxu1  ;;  %v13896_v46 = vadd.f32 %v23693_v28, %v13895_v53 }
 0xa9a   : > { %13802 = vst.msk [vmem:[#allocation4 + $0xf0] sm:$0xff] %vm13771_vm4, %v19093_v49  ;;  %v13704_v40 = vpop.f32.mrb[165].mxu1  ;;  %v13900_v54 = vld [vmem:[#allocation4 + $0xb4] ss:$2 sm:$0xff]  ;;  %v13902_v58 = vld [vmem:[#allocation4 + $0xb5] ss:$2 sm:$0xff] }
 0xa9b   : > { %13800 = vst.msk [vmem:[#allocation4 + $0xe0] sm:$0xff] %vm13771_vm4, %v13704_v40  ;;  %v19094_v1 = vpop.f32.mrb[166].mxu1  ;;  %v13897_v51 = vmax.f32 %v13896_v46, 0.0  ;;  %v13907_v4 = vmax.f32 %v13900_v54, %v13902_v58  ;;  %v20577_v46 = vld [vmem:[%s24223_s5 + $0xc8] sm:$0xff]   ;;  %v20579_v58 = vld [vmem:[%s24223_s5 + $0xd0] sm:$0xff]  }
 0xa9c   : > { %13803 = vst.msk [vmem:[#allocation4 + $0xf8] sm:$0xff] %vm13771_vm4, %v19094_v1  ;;  %v13707_v55 = vpop.f32.mrb[167].mxu1  ;;  %v13904_v45 = vld [vmem:[#allocation4 + $0xc6] ss:$2 sm:$0xff]  ;;  %v13906_v0 = vld [vmem:[#allocation4 + $0xc7] ss:$2 sm:$0xff] }
 0xa9d   : > { %13801 = vst.msk [vmem:[#allocation4 + $0xe8] sm:$0xff] %vm13771_vm4, %v13707_v55  ;;  %v13908_v15 = vmax.f32 %v13904_v45, %v13906_v0  ;;  %13898 = vst.msk [vmem:[#allocation5 + $0x8] sm:$0xff] %vm13771_vm4, %v13897_v51  ;;  %v20578_v54 = vld [vmem:[%s24223_s5 + $0x88] sm:$0xff]   ;;  %v20580_v1 = vld [vmem:[%s24223_s5 + $0x90] sm:$0xff]  }
 0xa9e   : > { %v20582_v51 = vld [vmem:[%s24223_s5 + $0x98] sm:$0xff]   ;;  %v20583_v55 = vld [vmem:[%s24223_s5 + $0xe0] sm:$0xff]   ;;  %v20585_v0 = vld [vmem:[%s24223_s5 + $0xe8] sm:$0xff]  }
 0xa9f   : > { %v13909_v3 = vmax.f32 %v13907_v4, %v13908_v15  ;;  %v20584_v45 = vld [vmem:[%s24223_s5 + $0xa0] sm:$0xff]   ;;  %v20586_v4 = vld [vmem:[%s24223_s5 + $0xa8] sm:$0xff]   ;;  %v20587_v15 = vld [vmem:[%s24223_s5 + $0xf0] sm:$0xff]  }
 0xaa1   : > { %v19097_v11 = vpop.f32.mrb[168].mxu1  ;;  %v13910_v27 = vadd.f32 %v23693_v28, %v13909_v3  ;;  %v20589_v3 = vld [vmem:[%s24223_s5 + $0xf8] sm:$0xff]  }
 0xaa2   : > { %13806 = vst.msk [vmem:[#allocation4 + $0x110] sm:$0xff] %vm13771_vm4, %v19097_v11  ;;  %v13720_v31 = vpop.f32.mrb[169].mxu1  ;;  %v13918_v17 = vld [vmem:[#allocation4 + $0xd8] ss:$2 sm:$0xff]  ;;  %v13920_v21 = vld [vmem:[#allocation4 + $0xd9] ss:$2 sm:$0xff] }
 0xaa3   : > { %13804 = vst.msk [vmem:[#allocation4 + $0x100] sm:$0xff] %vm13771_vm4, %v13720_v31  ;;  %v19098_v5 = vpop.f32.mrb[170].mxu1  ;;  %v13911_v33 = vmax.f32 %v13910_v27, 0.0  ;;  %v13925_v56 = vmax.f32 %v13918_v17, %v13920_v21  ;;  %v20591_v11 = vld [vmem:[%s24223_s5 + $0x140] sm:$0xff]   ;;  %v20593_v21 = vld [vmem:[%s24223_s5 + $0x148] sm:$0xff]  }
 0xaa4   : > { %13807 = vst.msk [vmem:[#allocation4 + $0x118] sm:$0xff] %vm13771_vm4, %v19098_v5  ;;  %v13723_v14 = vpop.f32.mrb[171].mxu1  ;;  %v13922_v19 = vld [vmem:[#allocation4 + $0xea] ss:$2 sm:$0xff]  ;;  %v13924_v35 = vld [vmem:[#allocation4 + $0xeb] ss:$2 sm:$0xff] }
 0xaa5   : > { %13805 = vst.msk [vmem:[#allocation4 + $0x108] sm:$0xff] %vm13771_vm4, %v13723_v14  ;;  %13913 = vrot.lane.b32.xlu0 %v13911_v33, %s20762_s16  ;;  %v13926_v50 = vmax.f32 %v13922_v19, %v13924_v35  ;;  %v20592_v31 = vld [vmem:[%s24223_s5 + $0x100] sm:$0xff]   ;;  %v20594_v33 = vld [vmem:[%s24223_s5 + $0x108] sm:$0xff]   ;;  %v20596_v14 = vld [vmem:[%s24223_s5 + $0x110] sm:$0xff]   ;;  %s20766_s16 = smov [#allocation6]  }
 0xaa6   : > { %v20597_v19 = vld [vmem:[%s24223_s5 + $0x158] sm:$0xff]   ;;  %s20700_s22 = sshll.u32 %s20766_s16, 4  ;;  %s20701_s22 = int_to_ptr.vmem [resolvable:$false] %s20700_s22 }
 0xaa7   : > { %v13927_v7 = vmax.f32 %v13925_v56, %v13926_v50  ;;  %v20598_v35 = vld [vmem:[%s24223_s5 + $0x118] sm:$0xff]   ;;  %v20599_v56 = vld [vmem:[%s24223_s5 + $0x160] sm:$0xff]   ;;  %s20702_s23 = scalar_lea.vmem %s20701_s22, 32 }
 0xaa8   : > { %v20600_v50 = vld [vmem:[%s24223_s5 + $0x120] sm:$0xff]  }
 0xaa9   : > { %13880 = vrot.lane.b32.xlu0 %v13878_v13, %s20764_s27  ;;  %v13928_v12 = vadd.f32 %v23693_v28, %v13927_v7  ;;  %v20601_v13 = vld [vmem:[%s24223_s5 + $0x168] sm:$0xff]  }
 0xaaa   : > { %v20602_v7 = vld [vmem:[%s24223_s5 + $0x128] sm:$0xff]  }
 0xaab   : > { %v13929_v38 = vmax.f32 %v13928_v12, 0.0  ;;  %v20603_v12 = vld [vmem:[%s24223_s5 + $0x170] sm:$0xff]  }
 0xaac   : > { %v13936_v18 = vld [vmem:[#allocation4 + $0xfc] ss:$2 sm:$0xff]  ;;  %v13938_v8 = vld [vmem:[#allocation4 + $0xfd] ss:$2 sm:$0xff] }
 0xaad   : > { %v13940_v24 = vld [vmem:[#allocation4 + $0x10e] ss:$2 sm:$0xff]  ;;  %13931 = vrot.lane.b32.xlu1 %v13929_v38, %s20763_s29  ;;  %v13942_v9 = vld [vmem:[#allocation4 + $0x10f] ss:$2 sm:$0xff]  ;;  %v13943_v47 = vmax.f32 %v13936_v18, %v13938_v8  ;;  %s323_s29 = sand.u32 1, %s20750_s10  }
 0xaae   : > { %v13944_v36 = vmax.f32 %v13940_v24, %v13942_v9  ;;  %v20606_v18 = vld [vmem:[%s24223_s5 + $0x138] sm:$0xff]   ;;  %v20607_v24 = vld [vmem:[%s24223_s5 + $0x1c0] sm:$0xff]   ;;  %s324_s26 = scalar_lea.vmem [#allocation6], %s323_s29  ;;  %s15535_s13 = scalar_lea.sflag [#allocation7], %s323_s29 }
 0xab0   : > { %v13945_v43 = vmax.f32 %v13943_v47, %v13944_v36  ;;  %v20608_v47 = vld [vmem:[%s24223_s5 + $0x180] sm:$0xff]  }
 0xab2   : > { %v13946_v20 = vadd.f32 %v23693_v28, %v13945_v43  ;;  %v13956_v28 = vlaneseq  ;;  %v20609_v43 = vld [vmem:[%s24223_s5 + $0x1c8] sm:$0xff]  }
 0xab4   : > { %v13947_v2 = vmax.f32 %v13946_v20, 0.0  ;;  %v13957_v39 = vshrl.u32 %v13956_v28, 7  ;;  %v20617_v28 = vld [vmem:[%s24223_s5 + $0x1e8] sm:$0xff]  }
 0xab6   : > { %13949 = vrot.lane.b32.xlu1 %v13947_v2, %s20764_s27  ;;  %v23779_v16 = vsub.s32 0, %v13957_v39  ;;  %v23781_v42 = vsub.s32 1, %v13957_v39  ;;  %v20610_v2 = vld [vmem:[%s24223_s5 + $0x188] sm:$0xff]   ;;  %v20619_v39 = vld [vmem:[%s24223_s5 + $0x1f0] sm:$0xff]   ;;  %s15547_s27 = sshll.u32 %s324_s26, 4  ;;  %s24178_s27 = int_to_ptr.vmem [resolvable:$true] %s15547_s27 }
 0xab7   : > { %s20696_s21 = scalar_lea.vmem %s24178_s27, 16  ;;  %p20703_p0 = scmp.lt.s32.totalorder %s24178_s27, %s20701_s22 }
 0xab8   : > { %p20697_p11 = scmp.ne.s32.totalorder %s24178_s27, %s20696_s21  ;;  %p20704_p1 = scmp.lt.s32.totalorder %s20702_s23, %s20696_s21 }
 0xaba   : > { %p20698_p12 = pnand %p20697_p11, %p20855_p5  ;;  %p20705_p2 = por %p20704_p1, %p20703_p0 }
 0xabc   : > { %p20699_p13 = pneg %p20698_p12 }
 0xabe   : > { %p20706_p3 = pnand %p20705_p2, %p20699_p13 }
 0xaf5   : > { %v13843_v52 = vpop.permute.xlu0 %13842 }
 0xaf6   : > { %13846 = vst.msk [vmem:[#allocation5] sm:$0xff] %vm13845_vm5, %v13843_v52  ;;  %v20612_v52 = vld [vmem:[%s24223_s5 + $0x190] sm:$0xff]  }
 0xaff   : > { %v13862_v37 = vpop.permute.xlu1 %13861 }
 0xb00   : > { %13865 = vst.msk [vmem:[#allocation5] sm:$0xff] %vm13864_vm6, %v13862_v37  ;;  %v20613_v37 = vld [vmem:[%s24223_s5 + $0x1d8] sm:$0xff]  }
 0xb17   : > { %v13914_v59 = vpop.permute.xlu0 %13913 }
 0xb18   : > { %13916 = vst.msk [vmem:[#allocation5 + $0x8] sm:$0xff] %vm13845_vm5, %v13914_v59  ;;  %v20614_v59 = vld [vmem:[%s24223_s5 + $0x198] sm:$0xff]  }
 0xb1b   : > { %v13881_v48 = vpop.permute.xlu0 %13880 }
 0xb1c   : > { %13884 = vst.msk [vmem:[#allocation5] sm:$0xff] %vm13883_vm7, %v13881_v48  ;;  %v20615_v48 = vld [vmem:[%s24223_s5 + $0x1e0] sm:$0xff]  }
 0xb1f   : > { %v13932_v10 = vpop.permute.xlu1 %13931 }
 0xb20   : > { %13934 = vst.msk [vmem:[#allocation5 + $0x8] sm:$0xff] %vm13864_vm6, %v13932_v10  ;;  %v20616_v10 = vld [vmem:[%s24223_s5 + $0x1a0] sm:$0xff]  }
 0xb28   : > { %v13950_v41 = vpop.permute.xlu1 %13949 }
 0xb29   : > { %13952 = vst.msk [vmem:[#allocation5 + $0x8] sm:$0xff] %vm13883_vm7, %v13950_v41  ;;  %v20618_v41 = vld [vmem:[%s24223_s5 + $0x1a8] sm:$0xff]  }
 0xb30   : > { %v13954_v57 = vld [vmem:[#allocation5] ss:$8 sm:$0x3]  ;;  %v14138_v53 = vld [vmem:[#allocation5 + $0x1] ss:$8 sm:$0x3] }
 0xb31   : > { %v13959_v26 = vrot.slane %v13954_v57, %v23779_v16  ;;  %v13963_v44 = vrot.slane %v13954_v57, %v23781_v42  ;;  %v14147_v29 = vrot.slane %v14138_v53, %v23781_v42  ;;  %v14322_v6 = vld [vmem:[#allocation5 + $0x2] ss:$8 sm:$0x3]  ;;  %v14143_v60 = vrot.slane %v14138_v53, %v23779_v16  ;;  %v14506_v38 = vld [vmem:[#allocation5 + $0x3] ss:$8 sm:$0x3] }
 0xb32   : > { %v14331_v27 = vrot.slane %v14322_v6, %v23781_v42  ;;  %v14327_v8 = vrot.slane %v14322_v6, %v23779_v16  ;;  %v14515_v9 = vrot.slane %v14506_v38, %v23781_v42  ;;  %v20620_v57 = vld [vmem:[%s24223_s5 + $0x1b0] sm:$0xff]   ;;  %v20621_v53 = vld [vmem:[%s24223_s5 + $0x1f8] sm:$0xff]  }
 0xb33   : > { %v13966_v49 = vpack.c.bf16 %v13959_v26, %v13959_v26  ;;  %v13967_v25 = vpack.c.bf16 %v13963_v44, %v13963_v44  ;;  %v14151_v40 = vpack.c.bf16 %v14147_v29, %v14147_v29  ;;  %v14150_v17 = vpack.c.bf16 %v14143_v60, %v14143_v60  ;;  %v14690_v26 = vld [vmem:[#allocation5 + $0x4] ss:$8 sm:$0x3]  ;;  %v20622_v44 = vld [vmem:[%s24223_s5 + $0x1b8] sm:$0xff]  }
 0xb34   : > { %v14335_v5 = vpack.c.bf16 %v14331_v27, %v14331_v27  ;;  %v14334_v36 = vpack.c.bf16 %v14327_v8, %v14327_v8  ;;  %v14519_v20 = vpack.c.bf16 %v14515_v9, %v14515_v9  ;;  %v14511_v29 = vrot.slane %v14506_v38, %v23779_v16  ;;  %v20637_v6 = vld [vmem:[%s24223_s5 + $0x278] sm:$0xff]   ;;  %v20639_v27 = vld [vmem:[%s24223_s5 + $0x2c0] sm:$0xff]  }
 0xb35   : > { %14128 = vmatprep.mubr.bf16.mxu1 %v13967_v25  ;;  %v14699_v25 = vrot.slane %v14690_v26, %v23781_v42  ;;  %v20638_v60 = vld [vmem:[%s24223_s5 + $0x238] sm:$0xff]   ;;  %v20655_v9 = vld [vmem:[%s24223_s5 + $0x340] sm:$0xff]  }
 0xb36   : > { %14129 = vmatmul.mubr.bf16.vlgmr.msra.gmra.mrb[172].mxu1 %v13966_v49  ;;  %v20623_v49 = vld [vmem:[%s24223_s5 + $0x240] sm:$0xff]   ;;  %v20653_v38 = vld [vmem:[%s24223_s5 + $0x2f8] sm:$0xff]  }
 0xb37   : > { %17353 = vmatpush3.bf16.msra.mxu1 %v20576_v63  ;;  %14312 = vmatprep.mubr.bf16.mxu1 %v14151_v40  ;;  %v20624_v63 = vld [vmem:[%s24223_s5 + $0x200] sm:$0xff]   ;;  %v20625_v40 = vld [vmem:[%s24223_s5 + $0x248] sm:$0xff]   ;;  %v20654_v8 = vld [vmem:[%s24223_s5 + $0x2b8] sm:$0xff]  }
 0xb38   : > { %17354 = vmatprep.subr.bf16.mxu1 %v20577_v46  ;;  %v14518_v46 = vpack.c.bf16 %v14511_v29, %v14511_v29  ;;  %v20670_v29 = vld [vmem:[%s24223_s5 + $0x338] sm:$0xff]  }
 0xb3b   : > { %17355 = vmatpush3.bf16.msra.mxu1 %v20578_v54  ;;  %v14703_v54 = vpack.c.bf16 %v14699_v25, %v14699_v25  ;;  %v20671_v25 = vld [vmem:[%s24223_s5 + $0x3c0] sm:$0xff]  }
 0xb3c   : > { %17356 = vmatprep.subr.bf16.mxu1 %v20579_v58  ;;  %v20626_v58 = vld [vmem:[%s24223_s5 + $0x208] sm:$0xff]  }
 0xb3f   : > { %17357 = vmatpush3.bf16.msra.mxu1 %v20580_v1  ;;  %v20627_v1 = vld [vmem:[%s24223_s5 + $0x250] sm:$0xff]  }
 0xb40   : > { %17358 = vmatprep.subr.bf16.mxu1 %v20581_v61  ;;  %v20628_v61 = vld [vmem:[%s24223_s5 + $0x210] sm:$0xff]  }
 0xb43   : > { %17359 = vmatpush3.bf16.msra.mxu1 %v20582_v51  ;;  %v20629_v51 = vld [vmem:[%s24223_s5 + $0x258] sm:$0xff]  }
 0xb44   : > { %17360 = vmatprep.subr.bf16.mxu1 %v20583_v55  ;;  %v20630_v55 = vld [vmem:[%s24223_s5 + $0x218] sm:$0xff]  }
 0xb47   : > { %17361 = vmatpush3.bf16.msra.mxu1 %v20584_v45  ;;  %v20631_v45 = vld [vmem:[%s24223_s5 + $0x260] sm:$0xff]  }
 0xb48   : > { %17362 = vmatprep.subr.bf16.mxu1 %v20585_v0  ;;  %v20632_v0 = vld [vmem:[%s24223_s5 + $0x220] sm:$0xff]  }
 0xb4b   : > { %17363 = vmatpush3.bf16.msra.mxu1 %v20586_v4  ;;  %v20633_v4 = vld [vmem:[%s24223_s5 + $0x268] sm:$0xff]  }
 0xb4c   : > { %17364 = vmatprep.subr.bf16.mxu1 %v20587_v15  ;;  %v20634_v15 = vld [vmem:[%s24223_s5 + $0x228] sm:$0xff]  }
 0xb4f   : > { %17365 = vmatpush3.bf16.msra.mxu1 %v20588_v34  ;;  %v20635_v34 = vld [vmem:[%s24223_s5 + $0x270] sm:$0xff]  }
 0xb50   : > { %17366 = vmatprep.subr.bf16.mxu1 %v20589_v3  ;;  %v20636_v3 = vld [vmem:[%s24223_s5 + $0x230] sm:$0xff]  }
 0xb53   : > { %17367 = vmatpush3.bf16.msra.mxu1 %v20590_v23  ;;  %v14874_v23 = vld [vmem:[#allocation5 + $0x5] ss:$8 sm:$0x3] }
 0xb54   : > { %17374 = vmatprep.subr.bf16.mxu1 %v20591_v11  ;;  %v14695_v11 = vrot.slane %v14690_v26, %v23779_v16  ;;  %v20669_v26 = vld [vmem:[%s24223_s5 + $0x378] sm:$0xff]  }
 0xb56   : > { %14313 = vmatmul.mubr.bf16.vlgmr.msra.gmra.mrb[176].mxu1 %v14150_v17  ;;  %v20640_v17 = vld [vmem:[%s24223_s5 + $0x280] sm:$0xff]  }
 0xb57   : > { %17375 = vmatpush3.bf16.msra.mxu1 %v20592_v31  ;;  %14496 = vmatprep.mubr.bf16.mxu1 %v14335_v5  ;;  %v14883_v31 = vrot.slane %v14874_v23, %v23781_v42  ;;  %v20641_v5 = vld [vmem:[%s24223_s5 + $0x2c8] sm:$0xff]  }
 0xb58   : > { %17376 = vmatprep.subr.bf16.mxu1 %v20593_v21  ;;  %v14702_v21 = vpack.c.bf16 %v14695_v11, %v14695_v11  ;;  %v20684_v11 = vld [vmem:[%s24223_s5 + $0x3b0] sm:$0xff]  }
 0xb5b   : > { %17377 = vmatpush3.bf16.msra.mxu1 %v20594_v33  ;;  %v14887_v33 = vpack.c.bf16 %v14883_v31, %v14883_v31  ;;  %v20685_v31 = vld [vmem:[%s24223_s5 + $0x3f8] sm:$0xff]  }
 0xb5c   : > { %17378 = vmatprep.subr.bf16.mxu1 %v20595_v30  ;;  %v20642_v30 = vld [vmem:[%s24223_s5 + $0x288] sm:$0xff]  }
 0xb5f   : > { %17379 = vmatpush3.bf16.msra.mxu1 %v20596_v14  ;;  %v20643_v14 = vld [vmem:[%s24223_s5 + $0x2d0] sm:$0xff]  }
 0xb60   : > { %17380 = vmatprep.subr.bf16.mxu1 %v20597_v19  ;;  %v20644_v19 = vld [vmem:[%s24223_s5 + $0x290] sm:$0xff]  }
 0xb63   : > { %17381 = vmatpush3.bf16.msra.mxu1 %v20598_v35  ;;  %v20645_v35 = vld [vmem:[%s24223_s5 + $0x2d8] sm:$0xff]  }
 0xb64   : > { %17382 = vmatprep.subr.bf16.mxu1 %v20599_v56  ;;  %v20646_v56 = vld [vmem:[%s24223_s5 + $0x298] sm:$0xff]  }
 0xb67   : > { %17383 = vmatpush3.bf16.msra.mxu1 %v20600_v50  ;;  %v20647_v50 = vld [vmem:[%s24223_s5 + $0x2e0] sm:$0xff]  }
 0xb68   : > { %17384 = vmatprep.subr.bf16.mxu1 %v20601_v13  ;;  %v20648_v13 = vld [vmem:[%s24223_s5 + $0x2a0] sm:$0xff]  }
 0xb6b   : > { %17385 = vmatpush3.bf16.msra.mxu1 %v20602_v7  ;;  %v20649_v7 = vld [vmem:[%s24223_s5 + $0x2e8] sm:$0xff]  }
 0xb6c   : > { %17386 = vmatprep.subr.bf16.mxu1 %v20603_v12  ;;  %v20650_v12 = vld [vmem:[%s24223_s5 + $0x2a8] sm:$0xff]  }
 0xb6f   : > { %17387 = vmatpush3.bf16.msra.mxu1 %v20604_v62  ;;  %v20651_v62 = vld [vmem:[%s24223_s5 + $0x2f0] sm:$0xff]  }
 0xb70   : > { %17388 = vmatprep.subr.bf16.mxu1 %v20605_v22  ;;  %v20652_v22 = vld [vmem:[%s24223_s5 + $0x2b0] sm:$0xff]  }
 0xb73   : > { %17389 = vmatpush3.bf16.msra.mxu1 %v20606_v18  ;;  %v15058_v18 = vld [vmem:[#allocation5 + $0x6] ss:$8 sm:$0x3] }
 0xb74   : > { %17396 = vmatprep.subr.bf16.mxu1 %v20607_v24  ;;  %v14879_v24 = vrot.slane %v14874_v23, %v23779_v16 }
 0xb76   : > { %14497 = vmatmul.mubr.bf16.vlgmr.msra.gmra.mrb[180].mxu1 %v14334_v36  ;;  %v20656_v36 = vld [vmem:[%s24223_s5 + $0x300] sm:$0xff]  }
 0xb77   : > { %17397 = vmatpush3.bf16.msra.mxu1 %v20608_v47  ;;  %14680 = vmatprep.mubr.bf16.mxu1 %v14519_v20  ;;  %v15067_v47 = vrot.slane %v15058_v18, %v23781_v42  ;;  %v20657_v20 = vld [vmem:[%s24223_s5 + $0x348] sm:$0xff]  }
 0xb78   : > { %17398 = vmatprep.subr.bf16.mxu1 %v20609_v43  ;;  %v14886_v43 = vpack.c.bf16 %v14879_v24, %v14879_v24  ;;  %v20688_v24 = vld [vmem:[%s24225_s7 + $0x8] sm:$0xff]  }
 0xb7b   : > { %17399 = vmatpush3.bf16.msra.mxu1 %v20610_v2  ;;  %v15071_v2 = vpack.c.bf16 %v15067_v47, %v15067_v47  ;;  %v20690_v47 = vld [vmem:[%s24225_s7 + $0x18] sm:$0xff]  }
 0xb7c   : > { %17400 = vmatprep.subr.bf16.mxu1 %v20611_v32  ;;  %v20658_v32 = vld [vmem:[%s24223_s5 + $0x308] sm:$0xff]  }
 0xb7f   : > { %17401 = vmatpush3.bf16.msra.mxu1 %v20612_v52  ;;  %v20659_v52 = vld [vmem:[%s24223_s5 + $0x350] sm:$0xff]  }
 0xb80   : > { %17402 = vmatprep.subr.bf16.mxu1 %v20613_v37  ;;  %v20660_v37 = vld [vmem:[%s24223_s5 + $0x310] sm:$0xff]  }
 0xb83   : > { %17403 = vmatpush3.bf16.msra.mxu1 %v20614_v59  ;;  %v20661_v59 = vld [vmem:[%s24223_s5 + $0x358] sm:$0xff]  }
 0xb84   : > { %17404 = vmatprep.subr.bf16.mxu1 %v20615_v48  ;;  %v20662_v48 = vld [vmem:[%s24223_s5 + $0x318] sm:$0xff]  }
 0xb87   : > { %17405 = vmatpush3.bf16.msra.mxu1 %v20616_v10  ;;  %v20663_v10 = vld [vmem:[%s24223_s5 + $0x360] sm:$0xff]  }
 0xb88   : > { %17406 = vmatprep.subr.bf16.mxu1 %v20617_v28  ;;  %v20664_v28 = vld [vmem:[%s24223_s5 + $0x320] sm:$0xff]  }
 0xb8b   : > { %17407 = vmatpush3.bf16.msra.mxu1 %v20618_v41  ;;  %v20665_v41 = vld [vmem:[%s24223_s5 + $0x368] sm:$0xff]  }
 0xb8c   : > { %17408 = vmatprep.subr.bf16.mxu1 %v20619_v39  ;;  %v20666_v39 = vld [vmem:[%s24223_s5 + $0x328] sm:$0xff]  }
 0xb8f   : > { %17409 = vmatpush3.bf16.msra.mxu1 %v20620_v57  ;;  %v20667_v57 = vld [vmem:[%s24223_s5 + $0x370] sm:$0xff]  }
 0xb90   : > { %17410 = vmatprep.subr.bf16.mxu1 %v20621_v53  ;;  %v20668_v53 = vld [vmem:[%s24223_s5 + $0x330] sm:$0xff]  }
 0xb93   : > { %17411 = vmatpush3.bf16.msra.mxu1 %v20622_v44  ;;  %v15242_v44 = vld [vmem:[#allocation5 + $0x7] ss:$8 sm:$0x3] }
 0xb94   : > { %17418 = vmatprep.subr.bf16.mxu1 %v20623_v49  ;;  %v15063_v49 = vrot.slane %v15058_v18, %v23779_v16 }
 0xb96   : > { %14681 = vmatmul.mubr.bf16.vlgmr.msra.gmra.mrb[184].mxu1 %v14518_v46  ;;  %v20672_v46 = vld [vmem:[%s24223_s5 + $0x380] sm:$0xff]  }
 0xb97   : > { %17419 = vmatpush3.bf16.msra.mxu1 %v20624_v63  ;;  %14864 = vmatprep.mubr.bf16.mxu1 %v14703_v54  ;;  %v15251_v63 = vrot.slane %v15242_v44, %v23781_v42  ;;  %v20673_v54 = vld [vmem:[%s24223_s5 + $0x3c8] sm:$0xff]   ;;  %v20675_v42 = vld [vmem:[%s24223_s5 + $0x3d0] sm:$0xff]  }
 0xb98   : > { %17420 = vmatprep.subr.bf16.mxu1 %v20625_v40  ;;  %v15070_v40 = vpack.c.bf16 %v15063_v49, %v15063_v49 }
 0xb9b   : > { %17421 = vmatpush3.bf16.msra.mxu1 %v20626_v58  ;;  %v15255_v58 = vpack.c.bf16 %v15251_v63, %v15251_v63 }
 0xb9c   : > { %17422 = vmatprep.subr.bf16.mxu1 %v20627_v1  ;;  %v20674_v1 = vld [vmem:[%s24223_s5 + $0x388] sm:$0xff]  }
 0xb9f   : > { %17423 = vmatpush3.bf16.msra.mxu1 %v20628_v61  ;;  %v20676_v61 = vld [vmem:[%s24223_s5 + $0x390] sm:$0xff]  }
 0xba0   : > { %17424 = vmatprep.subr.bf16.mxu1 %v20629_v51  ;;  %v20677_v51 = vld [vmem:[%s24223_s5 + $0x3d8] sm:$0xff]  }
 0xba3   : > { %17425 = vmatpush3.bf16.msra.mxu1 %v20630_v55  ;;  %v20678_v55 = vld [vmem:[%s24223_s5 + $0x398] sm:$0xff]  }
 0xba4   : > { %17426 = vmatprep.subr.bf16.mxu1 %v20631_v45  ;;  %v20679_v45 = vld [vmem:[%s24223_s5 + $0x3e0] sm:$0xff]  }
 0xba7   : > { %17427 = vmatpush3.bf16.msra.mxu1 %v20632_v0  ;;  %v20680_v0 = vld [vmem:[%s24223_s5 + $0x3a0] sm:$0xff]  }
 0xba8   : > { %17428 = vmatprep.subr.bf16.mxu1 %v20633_v4  ;;  %v20681_v4 = vld [vmem:[%s24223_s5 + $0x3e8] sm:$0xff]  }
 0xbab   : > { %17429 = vmatpush3.bf16.msra.mxu1 %v20634_v15  ;;  %v20682_v15 = vld [vmem:[%s24223_s5 + $0x3a8] sm:$0xff]  }
 0xbac   : > { %17430 = vmatprep.subr.bf16.mxu1 %v20635_v34  ;;  %v20683_v34 = vld [vmem:[%s24223_s5 + $0x3f0] sm:$0xff]  }
 0xbaf   : > { %17431 = vmatpush3.bf16.msra.mxu1 %v20636_v3 }
 0xbb0   : > { %17432 = vmatprep.subr.bf16.mxu1 %v20637_v6 }
 0xbb3   : > { %17433 = vmatpush3.bf16.msra.mxu1 %v20638_v60 }
 0xbb4   : > { %17440 = vmatprep.subr.bf16.mxu1 %v20639_v27 }
 0xbb6   : > { %14865 = vmatmul.mubr.bf16.vlgmr.msra.gmra.mrb[188].mxu1 %v14702_v21  ;;  %v15247_v21 = vrot.slane %v15242_v44, %v23779_v16 }
 0xbb7   : > { %17441 = vmatpush3.bf16.msra.mxu1 %v20640_v17  ;;  %15048 = vmatprep.mubr.bf16.mxu1 %v14887_v33  ;;  %v20686_v17 = vld [vmem:[%s24223_s5 + $0x3b8] sm:$0xff]   ;;  %v24408_v33 = vmov 0.0  }
 0xbb8   : > { %17442 = vmatprep.subr.bf16.mxu1 %v20641_v5  ;;  %v15254_v5 = vpack.c.bf16 %v15247_v21, %v15247_v21 }
 0xbbb   : > { %17443 = vmatpush3.bf16.msra.mxu1 %v20642_v30  ;;  %v13953_v30 = vld [vmem:[%s24224_s6] sm:$0x1] }
 0xbbc   : > { %17444 = vmatprep.subr.bf16.mxu1 %v20643_v14 }
 0xbbf   : > { %17445 = vmatpush3.bf16.msra.mxu1 %v20644_v19 }
 0xbc0   : > { %17446 = vmatprep.subr.bf16.mxu1 %v20645_v35 }
 0xbc3   : > { %17447 = vmatpush3.bf16.msra.mxu1 %v20646_v56 }
 0xbc4   : > { %17448 = vmatprep.subr.bf16.mxu1 %v20647_v50 }
 0xbc7   : > { %17449 = vmatpush3.bf16.msra.mxu1 %v20648_v13 }
 0xbc8   : > { %17450 = vmatprep.subr.bf16.mxu1 %v20649_v7 }
 0xbcb   : > { %17451 = vmatpush3.bf16.msra.mxu1 %v20650_v12 }
 0xbcc   : > { %17452 = vmatprep.subr.bf16.mxu1 %v20651_v62 }
 0xbcf   : > { %17453 = vmatpush3.bf16.msra.mxu1 %v20652_v22 }
 0xbd0   : > { %17454 = vmatprep.subr.bf16.mxu1 %v20653_v38 }
 0xbd3   : > { %17455 = vmatpush3.bf16.msra.mxu1 %v20654_v8  ;;  %v20687_v8 = vld [vmem:[%s24225_s7] sm:$0xff]  }
 0xbd4   : > { %17462 = vmatprep.subr.bf16.mxu1 %v20655_v9  ;;  %v20689_v9 = vld [vmem:[%s24225_s7 + $0x10] sm:$0xff]  }
 0xbd6   : > { %15049 = vmatmul.mubr.bf16.vlgmr.msra.gmra.mrb[192].mxu1 %v14886_v43  ;;  %v20692_v43 = vld [vmem:[%s24225_s7 + $0x28] sm:$0xff]  }
 0xbd7   : > { %17463 = vmatpush3.bf16.msra.mxu1 %v20656_v36  ;;  %15232 = vmatprep.mubr.bf16.mxu1 %v15071_v2  ;;  %v20691_v36 = vld [vmem:[%s24225_s7 + $0x20] sm:$0xff]  }
 0xbd8   : > { %17464 = vmatprep.subr.bf16.mxu1 %v20657_v20 }
 0xbdb   : > { %17465 = vmatpush3.bf16.msra.mxu1 %v20658_v32 }
 0xbdc   : > { %17466 = vmatprep.subr.bf16.mxu1 %v20659_v52 }
 0xbdf   : > { %17467 = vmatpush3.bf16.msra.mxu1 %v20660_v37 }
 0xbe0   : > { %17468 = vmatprep.subr.bf16.mxu1 %v20661_v59 }
 0xbe3   : > { %17469 = vmatpush3.bf16.msra.mxu1 %v20662_v48  ;;  %v20693_v48 = vld [vmem:[%s24225_s7 + $0x30] sm:$0xff]  }
 0xbe4   : > { %17470 = vmatprep.subr.bf16.mxu1 %v20663_v10  ;;  %v20694_v10 = vld [vmem:[%s24225_s7 + $0x38] sm:$0xff]  }
 0xbe7   : > { %17471 = vmatpush3.bf16.msra.mxu1 %v20664_v28 }
 0xbe8   : > { %17472 = vmatprep.subr.bf16.mxu1 %v20665_v41 }
 0xbeb   : > { %17473 = vmatpush3.bf16.msra.mxu1 %v20666_v39 }
 0xbec   : > { %17474 = vmatprep.subr.bf16.mxu1 %v20667_v57 }
 0xbef   : > { %17475 = vmatpush3.bf16.msra.mxu1 %v20668_v53 }
 0xbf0   : > { %17476 = vmatprep.subr.bf16.mxu1 %v20669_v26 }
 0xbf3   : > { %17477 = vmatpush3.bf16.msra.mxu1 %v20670_v29 }
 0xbf4   : > { %17484 = vmatprep.subr.bf16.mxu1 %v20671_v25 }
 0xbf6   : > { %15233 = vmatmul.mubr.bf16.vlgmr.msra.gmra.mrb[196].mxu1 %v15070_v40 }
 0xbf7   : > { %17485 = vmatpush3.bf16.msra.mxu1 %v20672_v46  ;;  %15416 = vmatprep.mubr.bf16.mxu1 %v15255_v58 }
 0xbf8   : > { %17486 = vmatprep.subr.bf16.mxu1 %v20673_v54 }
 0xbfb   : > { %17487 = vmatpush3.bf16.msra.mxu1 %v20674_v1 }
 0xbfc   : > { %17488 = vmatprep.subr.bf16.mxu1 %v20675_v42 }
 0xbff   : > { %17489 = vmatpush3.bf16.msra.mxu1 %v20676_v61 }
 0xc00   : > { %17490 = vmatprep.subr.bf16.mxu1 %v20677_v51 }
 0xc03   : > { %17491 = vmatpush3.bf16.msra.mxu1 %v20678_v55 }
 0xc04   : > { %17492 = vmatprep.subr.bf16.mxu1 %v20679_v45 }
 0xc07   : > { %17493 = vmatpush3.bf16.msra.mxu1 %v20680_v0 }
 0xc08   : > { %17494 = vmatprep.subr.bf16.mxu1 %v20681_v4 }
 0xc09   : > { %v17346_v3 = vpop.f32.mrb[172].mxu1 }
 0xc0a   : > { %v17347_v6 = vpop.f32.mrb[173].mxu1 }
 0xc0b   : > { %v17348_v23 = vadd.f32 %v17347_v6, %v17346_v3  ;;  %17495 = vmatpush3.bf16.msra.mxu1 %v20682_v15  ;;  %v17349_v60 = vpop.f32.mrb[174].mxu1  ;;  %v15443_v6 = vld [vmem:[%s24226_s8] sm:$0x1] }
 0xc0c   : > { %v17350_v27 = vpop.f32.mrb[175].mxu1  ;;  %17496 = vmatprep.subr.bf16.mxu1 %v20683_v34 }
 0xc0d   : > { %v14136_v35 = vadd.f32 %v17348_v23, %v13953_v30 }
 0xc0f   : > { %17497 = vmatpush3.bf16.msra.mxu1 %v20684_v11 }
 0xc10   : > { %17498 = vmatprep.subr.bf16.mxu1 %v20685_v31 }
 0xc13   : > { %17499 = vmatpush3.bf16.msra.mxu1 %v20686_v17 }
 0xc14   : > { %19099 = vmatprep.subr.bf16.mxu1 %v24408_v33 }
 0xc16   : > { %15417 = vmatmul.mubr.bf16.vlgmr.msra.gmra.mrb[200].mxu1 %v15254_v5 }
 0xc17   : > { %19100 = vmatpush3.bf16.msra.mxu1 %v20687_v8  ;;  %19115 = vmatprep.mubr.msk.bf16.mxu1 %vm20765_vm8, %v24408_v33 }
 0xc18   : > { %19101 = vmatprep.subr.bf16.mxu1 %v24408_v33 }
 0xc1b   : > { %19102 = vmatpush3.bf16.msra.mxu1 %v20688_v24 }
 0xc1c   : > { %19103 = vmatprep.subr.bf16.mxu1 %v24408_v33 }
 0xc1f   : > { %19104 = vmatpush3.bf16.msra.mxu1 %v20689_v9 }
 0xc20   : > { %19105 = vmatprep.subr.bf16.mxu1 %v24408_v33 }
 0xc23   : > { %19106 = vmatpush3.bf16.msra.mxu1 %v20690_v47 }
 0xc24   : > { %19107 = vmatprep.subr.bf16.mxu1 %v24408_v33 }
 0xc27   : > { %19108 = vmatpush3.bf16.msra.mxu1 %v20691_v36 }
 0xc28   : > { %19109 = vmatprep.subr.bf16.mxu1 %v24408_v33 }
 0xc29   : > { %v17368_v14 = vpop.f32.mrb[176].mxu1 }
 0xc2a   : > { %v17369_v19 = vpop.f32.mrb[177].mxu1 }
 0xc2b   : > { %v17370_v56 = vadd.f32 %v17369_v19, %v17368_v14  ;;  %v17371_v50 = vpop.f32.mrb[178].mxu1  ;;  %19110 = vmatpush3.bf16.msra.mxu1 %v20692_v43 }
 0xc2c   : > { %v17372_v13 = vpop.f32.mrb[179].mxu1  ;;  %19111 = vmatprep.subr.bf16.mxu1 %v24408_v33 }
 0xc2d   : > { %v14320_v7 = vadd.f32 %v17370_v56, %v14136_v35 }
 0xc2f   : > { %19112 = vmatpush3.bf16.msra.mxu1 %v20693_v48 }
 0xc30   : > { %19113 = vmatprep.subr.bf16.mxu1 %v24408_v33 }
 0xc33   : > { %19114 = vmatpush3.bf16.msra.mxu1 %v20694_v10 }
 0xc49   : > { %v17390_v12 = vpop.f32.mrb[180].mxu1 }
 0xc4a   : > { %v17391_v62 = vpop.f32.mrb[181].mxu1 }
 0xc4b   : > { %v17392_v16 = vadd.f32 %v17391_v62, %v17390_v12  ;;  %v17393_v22 = vpop.f32.mrb[182].mxu1 }
 0xc4c   : > { %v17394_v38 = vpop.f32.mrb[183].mxu1 }
 0xc4d   : > { %v14504_v18 = vadd.f32 %v17392_v16, %v14320_v7 }
 0xc69   : > { %v17412_v20 = vpop.f32.mrb[184].mxu1 }
 0xc6a   : > { %v17413_v2 = vpop.f32.mrb[185].mxu1 }
 0xc6b   : > { %v17414_v32 = vadd.f32 %v17413_v2, %v17412_v20  ;;  %v17415_v52 = vpop.f32.mrb[186].mxu1 }
 0xc6c   : > { %v17416_v37 = vpop.f32.mrb[187].mxu1 }
 0xc6d   : > { %v14688_v59 = vadd.f32 %v17414_v32, %v14504_v18 }
 0xc89   : > { %v17434_v28 = vpop.f32.mrb[188].mxu1 }
 0xc8a   : > { %v17435_v41 = vpop.f32.mrb[189].mxu1 }
 0xc8b   : > { %v17436_v39 = vadd.f32 %v17435_v41, %v17434_v28  ;;  %v17437_v57 = vpop.f32.mrb[190].mxu1 }
 0xc8c   : > { %v17438_v53 = vpop.f32.mrb[191].mxu1 }
 0xc8d   : > { %v14872_v26 = vadd.f32 %v17436_v39, %v14688_v59 }
 0xca9   : > { %v17456_v44 = vpop.f32.mrb[192].mxu1 }
 0xcaa   : > { %v17457_v29 = vpop.f32.mrb[193].mxu1 }
 0xcab   : > { %v17458_v49 = vadd.f32 %v17457_v29, %v17456_v44  ;;  %v17459_v25 = vpop.f32.mrb[194].mxu1 }
 0xcac   : > { %v17460_v63 = vpop.f32.mrb[195].mxu1 }
 0xcad   : > { %v15056_v46 = vadd.f32 %v17458_v49, %v14872_v26 }
 0xcc9   : > { %v17478_v40 = vpop.f32.mrb[196].mxu1 }
 0xcca   : > { %v17479_v54 = vpop.f32.mrb[197].mxu1 }
 0xccb   : > { %v17480_v58 = vadd.f32 %v17479_v54, %v17478_v40  ;;  %v17481_v1 = vpop.f32.mrb[198].mxu1 }
 0xccc   : > { %v17482_v42 = vpop.f32.mrb[199].mxu1 }
 0xccd   : > { %v15240_v61 = vadd.f32 %v17480_v58, %v15056_v46 }
 0xce9   : > { %v17500_v51 = vpop.f32.mrb[200].mxu1 }
 0xcea   : > { %v17501_v55 = vpop.f32.mrb[201].mxu1 }
 0xceb   : > { %v17502_v45 = vadd.f32 %v17501_v55, %v17500_v51  ;;  %v17503_v0 = vpop.f32.mrb[202].mxu1 }
 0xcec   : > { %v17504_v4 = vpop.f32.mrb[203].mxu1 }
 0xced   : > { %v15424_v15 = vadd.f32 %v17502_v45, %v15240_v61 }
 0xcef   : > { %v15425_v34 = vmax.f32 %v15424_v15, 0.0 }
 0xcf1   : > { %v15426_v3 = vpack.c.bf16 %v15425_v34, %v15425_v34 }
 0xcf3   : > { %19116 = vmatmul.mubr.bf16.vlgmr.msra.gmra.mrb[204].mxu1 %v15426_v3 }
 0xdc6   : > { %v15526_v23 = vpop.f32.mrb[204].mxu1 }
 0xdc7   : > { %v15527_v60 = vadd.f32 %v15526_v23, %v15443_v6  ;;  %v19117_v11 = vpop.f32.mrb[205].mxu1 }
 0xdc8   : > { %v15529_v27 = vpop.f32.mrb[206].mxu1 }
 0xdc9   : > { %v19118_v31 = vpop.f32.mrb[207].mxu1  ;;  %15533 = vst.msk [vmem:[%s324_s26] sm:$0x1] %vm15532_vm9, %v15527_v60 }
 0xdca   : > { %20709 = shalt.err (!%p20706_p3)
}
 0xdcb   : > { %s20710_s29 = scalar_lea.hbm %s24176_s17, 16  ;;  %s20714_s26 = scalar_lea.hbm %s24227_s9, 32 }
 0xdcc   : > { %p20711_p4 = scmp.ne.s32.totalorder %s24176_s17, %s20710_s29  ;;  %p20715_p9 = scmp.lt.u32.totalorder %s24176_s17, %s24227_s9 }
 0xdcd   : > { %p20716_p10 = scmp.lt.u32.totalorder %s20714_s26, %s20710_s29  ;;  %p20718_p12 = scmp.lt.u32.totalorder %s20710_s29, %s24176_s17 }
 0xdce   : > { %p20712_p7 = pnand %p20711_p4, %p20855_p5 }
 0xdcf   : > { %p20717_p11 = por %p20716_p10, %p20715_p9 }
 0xdd0   : > { %p20713_p8 = pneg %p20712_p7 }
 0xdd1   : > { %p20719_p13 = por %p20718_p12, %p20717_p11 }
 0xdd3   : > { %p20720_p0 = pnand %p20719_p13, %p20713_p8 }
 0xdd5   : > { %20723 = shalt.err (!%p20720_p0)
}
 0xdd6   : > { %20498 = dma.vmem_to_hbm [thread:$0]  (%p20855_p5), %s24178_s27, 16, %s24176_s17, %s15535_s13  }
 0xdd7 PF: > { %p20504_p1 = scmp.ge.s32.totalorder %s20758_s12, 2  ;;  %s15559_s21 = sand.u32 1, %s20746_s30  }
 0xdd8   : > { %s15560_s16 = scalar_lea.sflag [#allocation7], %s15559_s21 }
 0xdd9   : > { %p20501_p2 = pnand %p20504_p1, %p20859_p6 }
 0xddb   : > { %20741 = dma.done.wait (!%p20501_p2), %s15560_s16, 16  }
 0xddc   : > { %20743 = vsyncadd (!%p20501_p2), %s15560_s16, 4294967280  ;;  %p19_p3 = scmp.ge.s32.totalorder %s20842_s15, 4   ;;  %s24409_s30 = smov %s20750_s10 }
 0xddd   : > { %s24410_s10 = smov %s20754_s11  ;;  %s24411_s11 = smov %s20853_s18 }
 0xdde   : > { %s24412_s12 = smov %s20842_s15  ;;  %21 = sbr.rel (!%p19_p3) target bundleno = 3 (0x3), region = 256 }
 0xde5   :  { %15564 = vsyncpa [#allocation7], 1 }
 0xde6   :  { %15566 = vsyncpa [#allocation7 + $0x1], 1 }

</bundles_post_ra>
